<compile_context>
chip_gen: v7x
topology: tpu7x:2x2x1
jax: 0.10.0
libtpu: 0.0.40
codegen_flags: <defaults>
</compile_context>

<pallas_src>
import functools

import jax
import jax.numpy as jnp
from jax.experimental import pallas as pl
from jax.experimental.pallas import tpu as pltpu


def _attention_kernel(x_ref, lnw_ref, lnb_ref, w1_ref, b1_ref, w2_ref,
                      ctx_ref, attn_ref):
    TB, S, D = x_ref.shape
    H = w1_ref.shape[1]

    # NOTE: S % 8 == 0 and D % 128 == 0 keep the reshapes below free layout
    # merges (no VMEM copies of the biggest tensor in the kernel).
    x = x_ref[...]                                   # (TB, S, D) f32
    x2 = x.reshape(TB * S, D)

    # --- LayerNorm over the feature axis (biased variance, eps=1e-5) ---
    mean = jnp.mean(x2, axis=-1, keepdims=True)
    xc = x2 - mean
    var = jnp.mean(xc * xc, axis=-1, keepdims=True)
    xn = xc * jax.lax.rsqrt(var + 1e-5) * lnw_ref[...] + lnb_ref[...]  # (TB*S, D)

    # --- Linear(D->H) + tanh: one well-shaped MXU matmul for the whole tile ---
    h = jnp.tanh(
        jnp.dot(xn, w1_ref[...], preferred_element_type=jnp.float32)
        + b1_ref[...])                               # (TB*S, H)

    # --- Linear(H->1) as VPU multiply + lane reduce (no N=1 MXU matmul).
    #     b2 is dropped: softmax is shift invariant, so it cannot change either
    #     output. ---
    s = jnp.sum(h.reshape(TB, S, H) * w2_ref[...], axis=-1)   # (TB, S) lane-dense

    # --- softmax over the sequence axis (lane axis); exact divide so the
    #     weights sum to 1 (EUP slack makes this essentially free). ---
    m = jnp.max(s, axis=-1, keepdims=True)
    e = jnp.exp(s - m)
    w = e / jnp.sum(e, axis=-1, keepdims=True)       # (TB, S)
    attn_ref[...] = w

    # --- context = sum_s w[s] * x[s] on the UN-normalized input, as an exact
    #     f32 VPU weighted sum (broadcast over D, sublane-reduce over S).
    #     Fresh read of x_ref keeps the big (TB,S,D) live range short. ---
    x_fresh = x_ref[...]                             # (TB, S, D)
    ctx_ref[...] = jnp.sum(w[:, :, None] * x_fresh, axis=1)   # (TB, D) slab


def _vmem_capacity_bytes():
    """Physical VMEM per TensorCore; conservative (v7x) fallback if unknown."""
    try:
        return int(pltpu.get_tpu_info().vmem_capacity_bytes)
    except Exception:
        return 64 << 20


def _pick_block_batch(B, S, D, H, tile_budget_bytes):
    """Largest batch tile that satisfies TPU tiling rules and a VMEM budget.

    Working set per batch row (f32): double-buffered x block (2x) plus the
    in-kernel intermediates xn (~1x) and h (~H/D x).
    """
    bytes_per_row = int((2.0 + 1.0 + float(H) / float(D)) * S * D * 4) + 1024
    target = max(1, tile_budget_bytes // bytes_per_row)
    # TB must divide B, and (as the second-to-last dim of the 2-D output
    # blocks) be a multiple of 8 unless it equals B.
    valid = [tb for tb in range(1, B + 1)
             if B % tb == 0 and (tb % 8 == 0 or tb == B)]
    fits = [tb for tb in valid if tb <= target] or [min(valid)]
    tb = max(fits)
    # Prefer >= 2 grid steps so both v7x TensorCores get work; on 1-TC
    # v5e/v6e this only costs ~0.35us of extra per-step overhead.
    if tb == B and B > 1:
        smaller = [t for t in fits if t < B]
        if smaller:
            tb = max(smaller)
    return tb


@functools.partial(jax.jit, static_argnames=("block_batch",))
def attention_forward(lstm_output, params, *, block_batch=None):
    """lstm_output: (B, S, D) float32. Returns (context (B, D), weights (B, S))."""
    B, S, D = lstm_output.shape
    H = params["w1"].shape[1]

    cap = _vmem_capacity_bytes()
    vmem_limit = min((cap * 3) // 4, 96 << 20)        # 48 MiB on v7x, 96 MiB on v5e/v6e
    tile_budget = min((cap * 3) // 5, 40 << 20)       # x double-buffer + intermediates

    TB = block_batch if block_batch is not None else _pick_block_batch(
        B, S, D, H, tile_budget)
    assert B % TB == 0, "batch tile must divide the batch"
    grid = (B // TB,)

    ln_w = params["ln_w"].reshape(1, D)
    ln_b = params["ln_b"].reshape(1, D)
    w1 = params["w1"]                                # (D, H) (transposed torch weight)
    b1 = params["b1"].reshape(1, H)
    w2 = params["w2"].reshape(1, H)                  # row vector for VPU reduce

    ctx, attn = pl.pallas_call(
        _attention_kernel,
        out_shape=(
            jax.ShapeDtypeStruct((B, D), jnp.float32),   # context (lane-dense)
            jax.ShapeDtypeStruct((B, S), jnp.float32),   # weights (lane-dense)
        ),
        grid_spec=pltpu.PrefetchScalarGridSpec(
            num_scalar_prefetch=0,
            grid=grid,
            in_specs=[
                pl.BlockSpec((TB, S, D), lambda g: (g, 0, 0)),   # x
                pl.BlockSpec((1, D), lambda g: (0, 0)),          # ln weight
                pl.BlockSpec((1, D), lambda g: (0, 0)),          # ln bias
                pl.BlockSpec((D, H), lambda g: (0, 0)),          # W1
                pl.BlockSpec((1, H), lambda g: (0, 0)),          # b1
                pl.BlockSpec((1, H), lambda g: (0, 0)),          # W2 (row)
            ],
            out_specs=[
                pl.BlockSpec((TB, D), lambda g: (g, 0)),         # context
                pl.BlockSpec((TB, S), lambda g: (g, 0)),         # attention weights
            ],
        ),
        compiler_params=pltpu.CompilerParams(
            dimension_semantics=("parallel",),
            vmem_limit_bytes=int(vmem_limit),
        ),
    )(lstm_output, ln_w, ln_b, w1, b1, w2)

    return ctx, attn


def attention_ref(x, params):
    """Pure-JAX reference for correctness checking (same math, exact-f32 VPU
    paths except the single D->H matmul, mirroring the kernel)."""
    ln_w, ln_b = params["ln_w"], params["ln_b"]
    w1, b1, w2, b2 = params["w1"], params["b1"], params["w2"], params["b2"]
    mu = x.mean(-1, keepdims=True)
    var = ((x - mu) ** 2).mean(-1, keepdims=True)
    xn = (x - mu) / jnp.sqrt(var + 1e-5) * ln_w + ln_b
    h = jnp.tanh(xn @ w1 + b1)
    s = jnp.sum(h * w2[:, 0], axis=-1) + b2[0]
    w = jax.nn.softmax(s, axis=1)
    ctx = jnp.sum(w[:, :, None] * x, axis=1)
    return ctx, w


def init_params(key, hidden_dim):
    """Deterministic init matching the module's shapes (PyTorch-style uniform)."""
    D = hidden_dim * 2
    H = hidden_dim
    k1, k2, k3, k4 = jax.random.split(key, 4)
    bound1 = 1.0 / jnp.sqrt(D)
    bound2 = 1.0 / jnp.sqrt(H)
    return {
        "ln_w": jnp.ones((D,), jnp.float32),
        "ln_b": jnp.zeros((D,), jnp.float32),
        # stored transposed relative to torch.nn.Linear ((in, out))
        "w1": jax.random.uniform(k1, (D, H), jnp.float32, -bound1, bound1),
        "b1": jax.random.uniform(k2, (H,), jnp.float32, -bound1, bound1),
        "w2": jax.random.uniform(k3, (H, 1), jnp.float32, -bound2, bound2),
        "b2": jax.random.uniform(k4, (1,), jnp.float32, -bound2, bound2),
    }


if __name__ == "__main__":
    # Shapes implied by the module: (batch, seq_len, 2*hidden_dim).
    # Chosen so blocks align with TPU (8, 128) tiling while staying small.
    hidden_dim = 64
    B, S, D = 16, 128, hidden_dim * 2

    key = jax.random.PRNGKey(0)
    k_x, k_p = jax.random.split(key)
    x = jax.random.normal(k_x, (B, S, D), jnp.float32)
    params = init_params(k_p, hidden_dim)

    ctx, attn = attention_forward(x, params)
    jax.block_until_ready((ctx, attn))

    ctx_ref_v, attn_ref_v = attention_ref(x, params)
    assert ctx.shape == (B, D) and attn.shape == (B, S)
    # The only matmul (D->H) runs at the MXU's default precision in both the
    # kernel and the reference; everything else is exact f32, so 2e-3 is ample.
    assert jnp.allclose(attn, attn_ref_v, atol=2e-3, rtol=2e-3)
    assert jnp.allclose(ctx, ctx_ref_v, atol=2e-3, rtol=2e-3)

    print("KERNEL_OK")
</pallas_src>

<mosaic_0001>
module attributes {stable_mosaic.version = 11 : i64} {
  func.func @_attention_kernel(%arg0: i32, %arg1: memref<8x128x128xf32, #tpu.memory_space<vmem>>, %arg2: memref<1x128xf32, #tpu.memory_space<vmem>>, %arg3: memref<1x128xf32, #tpu.memory_space<vmem>>, %arg4: memref<128x64xf32, #tpu.memory_space<vmem>>, %arg5: memref<1x64xf32, #tpu.memory_space<vmem>>, %arg6: memref<1x64xf32, #tpu.memory_space<vmem>>, %arg7: memref<8x128xf32, #tpu.memory_space<vmem>>, %arg8: memref<8x128xf32, #tpu.memory_space<vmem>>) attributes {dimension_semantics = [#tpu.dimension_semantics<parallel>], iteration_bounds = array<i64: 2>, scalar_prefetch = 0 : i64, scratch_operands = 0 : i64, tpu.core_type = #tpu.core_type<tc>, window_params = [{transform_indices = @transform_0, window_bounds = array<i64: 8, 128, 128>}, {pipeline_mode = #tpu.pipeline_mode<synchronous>, transform_indices = @transform_1, window_bounds = array<i64: 1, 128>}, {pipeline_mode = #tpu.pipeline_mode<synchronous>, transform_indices = @transform_2, window_bounds = array<i64: 1, 128>}, {pipeline_mode = #tpu.pipeline_mode<synchronous>, transform_indices = @transform_3, window_bounds = array<i64: 128, 64>}, {pipeline_mode = #tpu.pipeline_mode<synchronous>, transform_indices = @transform_4, window_bounds = array<i64: 1, 64>}, {pipeline_mode = #tpu.pipeline_mode<synchronous>, transform_indices = @transform_5, window_bounds = array<i64: 1, 64>}, {transform_indices = @transform_6, window_bounds = array<i64: 8, 128>}, {transform_indices = @transform_7, window_bounds = array<i64: 8, 128>}]} {
    %c0 = arith.constant 0 : index
    %c0_0 = arith.constant 0 : index
    %c0_1 = arith.constant 0 : index
    %0 = vector.load %arg1[%c0, %c0_0, %c0_1] : memref<8x128x128xf32, #tpu.memory_space<vmem>>, vector<8x128x128xf32>
    %1 = vector.shape_cast %0 : vector<8x128x128xf32> to vector<1024x128xf32>
    %cst = arith.constant dense<0.000000e+00> : vector<1024xf32>
    %2 = vector.multi_reduction <add>, %1, %cst [1] : vector<1024x128xf32> to vector<1024xf32>
    %3 = vector.shape_cast %2 : vector<1024xf32> to vector<1024x1xf32>
    %cst_2 = arith.constant 1.280000e+02 : f32
    %4 = vector.broadcast %cst_2 : f32 to vector<1024x1xf32>
    %5 = arith.divf %3, %4 : vector<1024x1xf32>
    %6 = vector.broadcast %5 : vector<1024x1xf32> to vector<1024x128xf32>
    %7 = arith.subf %1, %6 : vector<1024x128xf32>
    %8 = arith.mulf %7, %7 : vector<1024x128xf32>
    %cst_3 = arith.constant dense<0.000000e+00> : vector<1024xf32>
    %9 = vector.multi_reduction <add>, %8, %cst_3 [1] : vector<1024x128xf32> to vector<1024xf32>
    %10 = vector.shape_cast %9 : vector<1024xf32> to vector<1024x1xf32>
    %cst_4 = arith.constant 1.280000e+02 : f32
    %11 = vector.broadcast %cst_4 : f32 to vector<1024x1xf32>
    %12 = arith.divf %10, %11 : vector<1024x1xf32>
    %cst_5 = arith.constant 9.99999974E-6 : f32
    %13 = vector.broadcast %cst_5 : f32 to vector<1024x1xf32>
    %14 = arith.addf %12, %13 : vector<1024x1xf32>
    %15 = math.rsqrt %14 : vector<1024x1xf32>
    %16 = vector.broadcast %15 : vector<1024x1xf32> to vector<1024x128xf32>
    %17 = arith.mulf %7, %16 : vector<1024x128xf32>
    %c0_6 = arith.constant 0 : index
    %c0_7 = arith.constant 0 : index
    %18 = vector.load %arg2[%c0_6, %c0_7] : memref<1x128xf32, #tpu.memory_space<vmem>>, vector<1x128xf32>
    %19 = vector.broadcast %18 : vector<1x128xf32> to vector<1024x128xf32>
    %20 = arith.mulf %17, %19 : vector<1024x128xf32>
    %c0_8 = arith.constant 0 : index
    %c0_9 = arith.constant 0 : index
    %21 = vector.load %arg3[%c0_8, %c0_9] : memref<1x128xf32, #tpu.memory_space<vmem>>, vector<1x128xf32>
    %22 = vector.broadcast %21 : vector<1x128xf32> to vector<1024x128xf32>
    %23 = arith.addf %20, %22 : vector<1024x128xf32>
    %c0_10 = arith.constant 0 : index
    %c0_11 = arith.constant 0 : index
    %24 = vector.load %arg4[%c0_10, %c0_11] : memref<128x64xf32, #tpu.memory_space<vmem>>, vector<128x64xf32>
    %cst_12 = arith.constant dense<0.000000e+00> : vector<1024x64xf32>
    %25 = tpu.matmul %23, %24, %cst_12 {dimension_numbers = #tpu.dot_dimension_numbers<[1], [0], [0], [1], [0, 0, 1, 1], [], []>} : vector<1024x128xf32>, vector<128x64xf32>, vector<1024x64xf32> -> vector<1024x64xf32>
    %c0_13 = arith.constant 0 : index
    %c0_14 = arith.constant 0 : index
    %26 = vector.load %arg5[%c0_13, %c0_14] : memref<1x64xf32, #tpu.memory_space<vmem>>, vector<1x64xf32>
    %27 = vector.broadcast %26 : vector<1x64xf32> to vector<1024x64xf32>
    %28 = arith.addf %25, %27 : vector<1024x64xf32>
    %29 = math.tanh %28 : vector<1024x64xf32>
    %30 = vector.shape_cast %29 : vector<1024x64xf32> to vector<8x128x64xf32>
    %c0_15 = arith.constant 0 : index
    %c0_16 = arith.constant 0 : index
    %31 = vector.load %arg6[%c0_15, %c0_16] : memref<1x64xf32, #tpu.memory_space<vmem>>, vector<1x64xf32>
    %32 = vector.shape_cast %31 : vector<1x64xf32> to vector<1x1x64xf32>
    %33 = vector.broadcast %32 : vector<1x1x64xf32> to vector<8x128x64xf32>
    %34 = arith.mulf %30, %33 : vector<8x128x64xf32>
    %cst_17 = arith.constant dense<0.000000e+00> : vector<8x128xf32>
    %35 = vector.multi_reduction <add>, %34, %cst_17 [2] : vector<8x128x64xf32> to vector<8x128xf32>
    %cst_18 = arith.constant dense<0xFF800000> : vector<8xf32>
    %36 = vector.multi_reduction <maximumf>, %35, %cst_18 [1] : vector<8x128xf32> to vector<8xf32>
    %37 = vector.shape_cast %36 : vector<8xf32> to vector<8x1xf32>
    %38 = vector.broadcast %37 : vector<8x1xf32> to vector<8x128xf32>
    %39 = arith.subf %35, %38 : vector<8x128xf32>
    %40 = math.exp %39 : vector<8x128xf32>
    %cst_19 = arith.constant dense<0.000000e+00> : vector<8xf32>
    %41 = vector.multi_reduction <add>, %40, %cst_19 [1] : vector<8x128xf32> to vector<8xf32>
    %42 = vector.shape_cast %41 : vector<8xf32> to vector<8x1xf32>
    %43 = vector.broadcast %42 : vector<8x1xf32> to vector<8x128xf32>
    %44 = arith.divf %40, %43 : vector<8x128xf32>
    %c0_20 = arith.constant 0 : index
    %c0_21 = arith.constant 0 : index
    %45 = vector.load %arg8[%c0_20, %c0_21] : memref<8x128xf32, #tpu.memory_space<vmem>>, vector<8x128xf32>
    tpu.vector_store %arg8[%c0_20, %c0_21], %44 {strides = array<i32>} : memref<8x128xf32, #tpu.memory_space<vmem>>, vector<8x128xf32>,
    %c0_22 = arith.constant 0 : index
    %c0_23 = arith.constant 0 : index
    %c0_24 = arith.constant 0 : index
    %46 = vector.load %arg1[%c0_22, %c0_23, %c0_24] : memref<8x128x128xf32, #tpu.memory_space<vmem>>, vector<8x128x128xf32>
    %47 = vector.shape_cast %44 : vector<8x128xf32> to vector<8x128x1xf32>
    %48 = vector.broadcast %47 : vector<8x128x1xf32> to vector<8x128x128xf32>
    %49 = arith.mulf %48, %46 : vector<8x128x128xf32>
    %cst_25 = arith.constant dense<0.000000e+00> : vector<8x128xf32>
    %50 = vector.multi_reduction <add>, %49, %cst_25 [1] : vector<8x128x128xf32> to vector<8x128xf32>
    %c0_26 = arith.constant 0 : index
    %c0_27 = arith.constant 0 : index
    %51 = vector.load %arg7[%c0_26, %c0_27] : memref<8x128xf32, #tpu.memory_space<vmem>>, vector<8x128xf32>
    tpu.vector_store %arg7[%c0_26, %c0_27], %50 {strides = array<i32>} : memref<8x128xf32, #tpu.memory_space<vmem>>, vector<8x128xf32>,
    return
  }
  func.func @transform_0(%arg0: i32) -> (i32, i32, i32) {
    %c0_i32 = arith.constant 0 : i32
    %c0_i32_0 = arith.constant 0 : i32
    %c0_i32_1 = arith.constant 0 : i32
    return %arg0, %c0_i32, %c0_i32_0 : i32, i32, i32
  }
  func.func @transform_1(%arg0: i32) -> (i32, i32) {
    %c0_i32 = arith.constant 0 : i32
    %c0_i32_0 = arith.constant 0 : i32
    %c0_i32_1 = arith.constant 0 : i32
    return %c0_i32, %c0_i32_0 : i32, i32
  }
  func.func @transform_2(%arg0: i32) -> (i32, i32) {
    %c0_i32 = arith.constant 0 : i32
    %c0_i32_0 = arith.constant 0 : i32
    %c0_i32_1 = arith.constant 0 : i32
    return %c0_i32, %c0_i32_0 : i32, i32
  }
  func.func @transform_3(%arg0: i32) -> (i32, i32) {
    %c0_i32 = arith.constant 0 : i32
    %c0_i32_0 = arith.constant 0 : i32
    %c0_i32_1 = arith.constant 0 : i32
    return %c0_i32, %c0_i32_0 : i32, i32
  }
  func.func @transform_4(%arg0: i32) -> (i32, i32) {
    %c0_i32 = arith.constant 0 : i32
    %c0_i32_0 = arith.constant 0 : i32
    %c0_i32_1 = arith.constant 0 : i32
    return %c0_i32, %c0_i32_0 : i32, i32
  }
  func.func @transform_5(%arg0: i32) -> (i32, i32) {
    %c0_i32 = arith.constant 0 : i32
    %c0_i32_0 = arith.constant 0 : i32
    %c0_i32_1 = arith.constant 0 : i32
    return %c0_i32, %c0_i32_0 : i32, i32
  }
  func.func @transform_6(%arg0: i32) -> (i32, i32) {
    %c0_i32 = arith.constant 0 : i32
    %c0_i32_0 = arith.constant 0 : i32
    return %arg0, %c0_i32 : i32, i32
  }
  func.func @transform_7(%arg0: i32) -> (i32, i32) {
    %c0_i32 = arith.constant 0 : i32
    %c0_i32_0 = arith.constant 0 : i32
    return %arg0, %c0_i32 : i32, i32
  }
}

</mosaic_0001>

<bundles_post_ra>
// kernel: attention_forward.1
= control target key start
LH: loop header
LB: loop body
LE: loop exit
PB: predicated region body
PF: predicated region fallthrough
CT: control target
= control target key end

     0   :  { %13 = vsyncpa [#allocation3], 0  ;;  %s15376_s0 = inlined_call_operand.hbm [shape: f32[16,128,128], index: 0, kind: input, shape index: {}]   ;;  %s15377_s1 = inlined_call_operand.vmem [shape: f32[1,128], index: 1, kind: input, shape index: {}]   ;;  %s15378_s2 = inlined_call_operand.vmem [shape: f32[1,128], index: 2, kind: input, shape index: {}]   ;;  %s15379_s3 = inlined_call_operand.vmem [shape: f32[128,64], index: 3, kind: input, shape index: {}]   ;;  %s15380_s4 = inlined_call_operand.vmem [shape: f32[1,64], index: 4, kind: input, shape index: {}]   ;;  %s15381_s5 = inlined_call_operand.vmem [shape: f32[1,64], index: 5, kind: input, shape index: {}]   ;;  %s15382_s6 = inlined_call_operand.hbm [shape: f32[16,128], index: 6, kind: output, shape index: {0}]   ;;  %s15383_s7 = inlined_call_operand.hbm [shape: f32[16,128], index: 7, kind: output, shape index: {1}]  }
   0x1   :  { %15 = vsyncpa [#allocation3 + $0x1], 0 }
   0x2   :  { %16 = vsyncpa [#allocation4], 0 }
   0x3   :  { %18 = vsyncpa [#allocation4 + $0x1], 0 }
   0x4   :  { %19 = vsyncpa [#allocation7], 0 }
   0x5   :  { %21 = vsyncpa [#allocation7 + $0x1], 0  ;;  %s9456_s24 = smov 0   ;;  %s9458_s25 = smov 0  }
   0x6   :  { %s9460_s26 = smov 0   ;;  %s9462_s27 = smov 0  }
   0x7 LB: > { %s9477_s28 = sadd.s32 4294967295, %s9408_s27   ;;  %s7914_s29 = sadd.s32 4294967294, %s9408_s27   ;;  %s9408_s27 = sphi %s9462_s27, %s16921_s27   ;;  %s9404_s26 = sphi %s9460_s26, %s16920_s26   ;;  %s9400_s25 = sphi %s9458_s25, %s16919_s25   ;;  %s9396_s24 = sphi %s9456_s24, %s16918_s24  }
   0x8   : > { %s9481_s30 = sadd.s32 1, %s9408_s27   ;;  %s34_s8 = sadd.s32 1, %s9404_s26 }
   0x9   : > { %s31_s9 = ssub.s32 %s9408_s27, %s9481_s30  ;;  %p41_p0 = scmp.ne.s32.totalorder %s9404_s26, %s9400_s25 }
   0xa   : > { %p32_p1 = scmp.eq.s32.totalorder %s31_s9, 0  ;;  %p42_p2 = scmp.eq.s32.totalorder %s9408_s27, 0 }
   0xb   : > { %p47_p3 = scmp.ne.s32.totalorder %s9400_s25, %s9396_s24  ;;  %p48_p4 = scmp.eq.s32.totalorder %s9477_s28, 0 }
   0xc   : > { %s9493_s10 = scalar_select %p32_p1, %s9404_s26, %s34_s8  }
   0xd   : > { %p9495_p5 = por %p42_p2, %p41_p0  ;;  %p9499_p6 = por %p48_p4, %p47_p3 }
   0xe   : > { %p176_p7 = scmp.eq.s32.totalorder %s9477_s28, 1  ;;  %p182_p8 = scmp.eq.s32.totalorder %s7914_s29, 1 }
   0xf   : > { %p8370_p10 = scmp.lt.s32.totalorder %s9408_s27, 2  ;;  %s243_s15 = sand.u32 1, %s9404_s26  }
  0x10   : > { %p9506_p11 = por %p176_p7, %p41_p0  ;;  %p9510_p12 = por %p182_p8, %p47_p3 }
  0x11   : > { %s7936_s16 = sshll.u32 %s9408_s27, 14  ;;  %s7917_s17 = sshll.u32 %s243_s15, 10 }
  0x12   : > { %s15814_s13 = scalar_select %p9506_p11, 1, 0 }
  0x13   : > { %s15815_s14 = scalar_select %p9510_p12, 1, 0 }
  0x14   : > { %s9519_s20 = scalar_lea.hbm %s15376_s0, %s7936_s16  ;;  %s247_s21 = scalar_lea.vmem [#allocation2], %s7917_s17 }
  0x15   : > { %s255_s22 = sshll.u32 %s247_s21, 4  ;;  %p9523_p13 = pnand %p8370_p10, %p9495_p5  ;;  %s9527_s22 = int_to_ptr.vmem [resolvable:$true] %s255_s22 }
  0x16   : > { %s9529_s29 = scalar_lea.sflag [#allocation3], %s243_s15  ;;  %s9280_s8 = scalar_lea.hbm %s9519_s20, 16384 }
  0x17   : > { %p9281_p0 = scmp.ne.s32.totalorder %s9519_s20, %s9280_s8  ;;  %p9282_p1 = pneg %p9523_p13 }
  0x18   : > { %s9285_s16 = scalar_lea.hbm %s15376_s0, 32768  ;;  %p9286_p4 = scmp.lt.u32.totalorder %s9519_s20, %s15376_s0 }
  0x19   : > { %p9283_p2 = pnand %p9282_p1, %p9281_p0  ;;  %p9287_p5 = scmp.lt.u32.totalorder %s9285_s16, %s9280_s8 }
  0x1a   : > { %p9289_p8 = scmp.lt.u32.totalorder %s9280_s8, %s9519_s20 }
  0x1b   : > { %p9284_p3 = pneg %p9283_p2  ;;  %p9288_p7 = por %p9287_p5, %p9286_p4 }
  0x1d   : > { %p9290_p10 = por %p9289_p8, %p9288_p7 }
  0x1f   : > { %p9291_p9 = pnand %p9290_p10, %p9284_p3 }
  0x21   : > { %9294 = shalt.err (!%p9291_p9)
}
  0x22   : > { %s9295_s15 = scalar_lea.vmem %s9527_s22, 16384  ;;  %s9410_s19 = smov [#allocation2]  }
  0x23   : > { %p9296_p0 = scmp.ne.s32.totalorder %s9527_s22, %s9295_s15  ;;  %s9300_s21 = sshll.u32 %s9410_s19, 4  ;;  %s9301_s21 = int_to_ptr.vmem [resolvable:$false] %s9300_s21 }
  0x24   : > { %s9302_s9 = scalar_lea.vmem %s9301_s21, 32768  ;;  %p9303_p11 = scmp.lt.s32.totalorder %s9527_s22, %s9301_s21 }
  0x25   : > { %p9298_p2 = pnand %p9296_p0, %p9282_p1  ;;  %p9304_p4 = scmp.lt.s32.totalorder %s9302_s9, %s9295_s15 }
  0x27   : > { %p9299_p12 = pneg %p9298_p2  ;;  %p9305_p5 = por %p9304_p4, %p9303_p11 }
  0x29   : > { %p9306_p7 = pnand %p9305_p5, %p9299_p12 }
  0x2b   : > { %9309 = shalt.err (!%p9306_p7)
}
  0x2c   : > { %s9411_s8 = smov 128   ;;  %s9412_s11 = smov 8  }
  0x2d   : > { %8362 = dma.hbm_to_vmem [thread:$0]  (!%p9523_p13), %s9519_s20, 16384, %s9527_s22, %s9529_s29, %s9411_s8, %s9411_s8, %s9412_s11  }
  0x2e   : > { %p7921_p9 = scmp.ge.s32.totalorder %s9408_s27, 1  ;;  %p263_p1 = scmp.lt.s32.totalorder %s9408_s27, 3 }
  0x30   : > { %p264_p3 = pnand %p7921_p9, %p263_p1 }
  0x32   : > { %267 = sbr.rel (%p264_p3) target bundleno = 2399 (0x95f), region = 44 }
  0x39   : > { %s9560_s16 = sand.u32 1, %s9400_s25  }
  0x3a   : > { %s7922_s17 = sshll.u32 %s9560_s16, 10  ;;  %s270_s18 = scalar_lea.sflag [#allocation3], %s9560_s16 }
  0x3b   : > { %s9564_s15 = scalar_lea.vmem [#allocation2], %s7922_s17 }
  0x3c   : > { %9383 = dma.done.wait (%p9499_p6), %s270_s18, 16384  }
  0x3d   : > { %9385 = vsyncadd (%p9499_p6), %s270_s18, 4294950912  ;;  %v9571_v0 = vld [vmem:[%s9564_s15 + $0x10] sm:$0xff]  ;;  %v9574_v1 = vld [vmem:[%s9564_s15] sm:$0xff]  ;;  %vm3108_vm0 = vcmask 523264   ;;  %vm3632_vm1 = vcmask 130112   ;;  %vm3639_vm2 = vcmask 195712  }
  0x3e   : > { %442 = vadd.xlane.f32.xlu1 %v9571_v0  ;;  %438 = vadd.xlane.f32.xlu0 %v9574_v1  ;;  %v9579_v2 = vld [vmem:[%s9564_s15 + $0x18] sm:$0xff]  ;;  %v9582_v3 = vld [vmem:[%s9564_s15 + $0x8] sm:$0xff]  ;;  %v9590_v5 = vld [vmem:[%s9564_s15 + $0x20] sm:$0xff]  ;;  %vm3646_vm3 = vcmask 261312   ;;  %vm15627_vm4 = vcmask 326912   ;;  %vm15633_vm5 = vcmask 392512  }
  0x3f   : > { %v9587_v4 = vld [vmem:[%s9564_s15 + $0x28] sm:$0xff]  ;;  %v9595_v6 = vld [vmem:[%s9564_s15 + $0x38] sm:$0xff]  ;;  %v9598_v7 = vld [vmem:[%s9564_s15 + $0x30] sm:$0xff]  ;;  %vm15640_vm6 = vcmask 458112   ;;  %vm3674_vm7 = vcmask 523712   ;;  %vm3681_vm8 = vcmask 589312  }
  0x40   : > { %v9603_v8 = vld [vmem:[%s9564_s15 + $0x48] sm:$0xff]  ;;  %v9606_v9 = vld [vmem:[%s9564_s15 + $0x40] sm:$0xff]  ;;  %v9611_v10 = vld [vmem:[%s9564_s15 + $0x58] sm:$0xff]  ;;  %vm3688_vm9 = vcmask 654912   ;;  %vm3695_vm10 = vcmask 720512   ;;  %vm3702_vm11 = vcmask 786112  }
  0x41   : > { %v9614_v11 = vld [vmem:[%s9564_s15 + $0x50] sm:$0xff]  ;;  %v9619_v12 = vld [vmem:[%s9564_s15 + $0x68] sm:$0xff]  ;;  %v9622_v13 = vld [vmem:[%s9564_s15 + $0x60] sm:$0xff]  ;;  %vm3709_vm12 = vcmask 851712   ;;  %vm15801_vm13 = vcmask 917312   ;;  %vm3723_vm14 = vcmask 982912  }
  0x42   : > { %444 = vadd.xlane.f32.xlu1 %v9579_v2  ;;  %440 = vadd.xlane.f32.xlu0 %v9582_v3  ;;  %v9627_v14 = vld [vmem:[%s9564_s15 + $0x78] sm:$0xff]  ;;  %v9630_v15 = vld [vmem:[%s9564_s15 + $0x70] sm:$0xff]  ;;  %v9635_v16 = vld [vmem:[%s9564_s15 + $0x88] sm:$0xff]  ;;  %vm3730_vm15 = vcmask 1048512   ;;  %s7923_s21 = sshll.u32 %s9560_s16, 3  ;;  %s7931_s9 = sshll.u32 %s9477_s28, 7 }
  0x43   : > { %v9638_v17 = vld [vmem:[%s9564_s15 + $0x80] sm:$0xff]  ;;  %v9643_v18 = vld [vmem:[%s9564_s15 + $0x98] sm:$0xff]  ;;  %v9646_v19 = vld [vmem:[%s9564_s15 + $0x90] sm:$0xff]  ;;  %s308_s8 = scalar_lea.vmem [#allocation6], %s7923_s21  ;;  %s15294_s18 = scalar_lea.hbm %s15383_s7, %s7931_s9 }
  0x44   : > { %v9651_v20 = vld [vmem:[%s9564_s15 + $0xa8] sm:$0xff]  ;;  %v9654_v21 = vld [vmem:[%s9564_s15 + $0xa0] sm:$0xff]  ;;  %v9659_v22 = vld [vmem:[%s9564_s15 + $0xb8] sm:$0xff]  ;;  %s7812_s11 = sshll.u32 %s308_s8, 4  ;;  %s7786_s12 = scalar_lea.sflag [#allocation7], %s9560_s16  ;;  %s15296_s11 = int_to_ptr.vmem [resolvable:$true] %s7812_s11 }
  0x45   : > { %v9662_v23 = vld [vmem:[%s9564_s15 + $0xb0] sm:$0xff]  ;;  %v9667_v24 = vld [vmem:[%s9564_s15 + $0xc8] sm:$0xff]  ;;  %v9670_v25 = vld [vmem:[%s9564_s15 + $0xc0] sm:$0xff]  ;;  %s9310_s20 = scalar_lea.vmem %s15296_s11, 128  ;;  %p16912_p11 = scmp.ne.s32.totalorder %s15814_s13, 0 }
  0x46   : > { %448 = vadd.xlane.f32.xlu1 %v9587_v4  ;;  %446 = vadd.xlane.f32.xlu0 %v9590_v5  ;;  %15817 = vst [vmem:[#allocation11_spill] sm:$0xff] %v9667_v24  ;;  %15818 = vst [vmem:[#allocation12_spill] sm:$0xff] %v9670_v25  ;;  %v9675_v26 = vld [vmem:[%s9564_s15 + $0xd8] sm:$0xff]  ;;  %v9678_v27 = vld [vmem:[%s9564_s15 + $0xd0] sm:$0xff]  ;;  %p9311_p6 = scmp.ne.s32.totalorder %s15296_s11, %s9310_s20  ;;  %s9414_s22 = smov [#allocation6]  }
  0x47   : > { %15819 = vst [vmem:[#allocation13_spill] sm:$0xff] %v9675_v26  ;;  %15820 = vst [vmem:[#allocation14_spill] sm:$0xff] %v9678_v27  ;;  %v9683_v28 = vld [vmem:[%s9564_s15 + $0xe8] sm:$0xff]  ;;  %v9686_v29 = vld [vmem:[%s9564_s15 + $0xe0] sm:$0xff]  ;;  %s9314_s23 = sshll.u32 %s9414_s22, 4  ;;  %s9315_s23 = int_to_ptr.vmem [resolvable:$false] %s9314_s23 }
  0x48   : > { %15821 = vst [vmem:[#allocation15_spill] sm:$0xff] %v9683_v28  ;;  %15822 = vst [vmem:[#allocation16_spill] sm:$0xff] %v9686_v29  ;;  %v9691_v30 = vld [vmem:[%s9564_s15 + $0xf8] sm:$0xff]  ;;  %v9694_v31 = vld [vmem:[%s9564_s15 + $0xf0] sm:$0xff]  ;;  %p9312_p12 = pnand %p9311_p6, %p16912_p11  ;;  %s9316_s29 = scalar_lea.vmem %s9315_s23, 256 }
  0x49   : > { %15823 = vst [vmem:[#allocation17_spill] sm:$0xff] %v9691_v30  ;;  %15824 = vst [vmem:[#allocation18_spill] sm:$0xff] %v9694_v31  ;;  %v9699_v32 = vld [vmem:[%s9564_s15 + $0x108] sm:$0xff]  ;;  %v9702_v33 = vld [vmem:[%s9564_s15 + $0x100] sm:$0xff]  ;;  %p9317_p8 = scmp.lt.s32.totalorder %s15296_s11, %s9315_s23  ;;  %p9318_p10 = scmp.lt.s32.totalorder %s9316_s29, %s9310_s20 }
  0x4a   : > { %452 = vadd.xlane.f32.xlu1 %v9595_v6  ;;  %450 = vadd.xlane.f32.xlu0 %v9598_v7  ;;  %15825 = vst [vmem:[#allocation19_spill] sm:$0xff] %v9699_v32  ;;  %15826 = vst [vmem:[#allocation20_spill] sm:$0xff] %v9702_v33  ;;  %v9707_v34 = vld [vmem:[%s9564_s15 + $0x118] sm:$0xff]  ;;  %v9710_v35 = vld [vmem:[%s9564_s15 + $0x110] sm:$0xff]  ;;  %p9313_p13 = pneg %p9312_p12 }
  0x4b   : > { %15827 = vst [vmem:[#allocation21_spill] sm:$0xff] %v9707_v34  ;;  %15828 = vst [vmem:[#allocation22_spill] sm:$0xff] %v9710_v35  ;;  %v9715_v36 = vld [vmem:[%s9564_s15 + $0x128] sm:$0xff]  ;;  %v9718_v37 = vld [vmem:[%s9564_s15 + $0x120] sm:$0xff]  ;;  %p9319_p0 = por %p9318_p10, %p9317_p8 }
  0x4c   : > { %15829 = vst [vmem:[#allocation23_spill] sm:$0xff] %v9715_v36  ;;  %15830 = vst [vmem:[#allocation24_spill] sm:$0xff] %v9718_v37  ;;  %v9723_v38 = vld [vmem:[%s9564_s15 + $0x138] sm:$0xff]  ;;  %v9726_v39 = vld [vmem:[%s9564_s15 + $0x130] sm:$0xff] }
  0x4d   : > { %15831 = vst [vmem:[#allocation25_spill] sm:$0xff] %v9723_v38  ;;  %15832 = vst [vmem:[#allocation26_spill] sm:$0xff] %v9726_v39  ;;  %v9731_v40 = vld [vmem:[%s9564_s15 + $0x148] sm:$0xff]  ;;  %v9734_v41 = vld [vmem:[%s9564_s15 + $0x140] sm:$0xff]  ;;  %p9320_p2 = pnand %p9319_p0, %p9313_p13 }
  0x4e   : > { %456 = vadd.xlane.f32.xlu1 %v9603_v8  ;;  %454 = vadd.xlane.f32.xlu0 %v9606_v9  ;;  %15833 = vst [vmem:[#allocation27_spill] sm:$0xff] %v9731_v40  ;;  %15834 = vst [vmem:[#allocation28_spill] sm:$0xff] %v9734_v41  ;;  %v9739_v42 = vld [vmem:[%s9564_s15 + $0x158] sm:$0xff]  ;;  %v9742_v43 = vld [vmem:[%s9564_s15 + $0x150] sm:$0xff] }
  0x4f   : > { %15835 = vst [vmem:[#allocation29_spill] sm:$0xff] %v9739_v42  ;;  %15836 = vst [vmem:[#allocation30_spill] sm:$0xff] %v9742_v43  ;;  %v9747_v44 = vld [vmem:[%s9564_s15 + $0x168] sm:$0xff]  ;;  %v9750_v45 = vld [vmem:[%s9564_s15 + $0x160] sm:$0xff] }
  0x50   : > { %15837 = vst [vmem:[#allocation31_spill] sm:$0xff] %v9747_v44  ;;  %15838 = vst [vmem:[#allocation32_spill] sm:$0xff] %v9750_v45  ;;  %v9755_v46 = vld [vmem:[%s9564_s15 + $0x178] sm:$0xff]  ;;  %v9758_v47 = vld [vmem:[%s9564_s15 + $0x170] sm:$0xff] }
  0x51   : > { %15839 = vst [vmem:[#allocation33_spill] sm:$0xff] %v9755_v46  ;;  %15840 = vst [vmem:[#allocation34_spill] sm:$0xff] %v9758_v47  ;;  %v359_v48 = vld [vmem:[%s9564_s15 + $0x188] sm:$0xff]  ;;  %v358_v49 = vld [vmem:[%s9564_s15 + $0x180] sm:$0xff] }
  0x52   : > { %460 = vadd.xlane.f32.xlu1 %v9611_v10  ;;  %458 = vadd.xlane.f32.xlu0 %v9614_v11  ;;  %v361_v50 = vld [vmem:[%s9564_s15 + $0x198] sm:$0xff]  ;;  %v360_v51 = vld [vmem:[%s9564_s15 + $0x190] sm:$0xff]  ;;  %v363_v52 = vld [vmem:[%s9564_s15 + $0x1a8] sm:$0xff] }
  0x53   : > { %v362_v53 = vld [vmem:[%s9564_s15 + $0x1a0] sm:$0xff]  ;;  %v365_v54 = vld [vmem:[%s9564_s15 + $0x1b8] sm:$0xff]  ;;  %v364_v55 = vld [vmem:[%s9564_s15 + $0x1b0] sm:$0xff] }
  0x54   : > { %v367_v56 = vld [vmem:[%s9564_s15 + $0x1c8] sm:$0xff]  ;;  %v366_v57 = vld [vmem:[%s9564_s15 + $0x1c0] sm:$0xff]  ;;  %v369_v58 = vld [vmem:[%s9564_s15 + $0x1d8] sm:$0xff] }
  0x55   : > { %v368_v59 = vld [vmem:[%s9564_s15 + $0x1d0] sm:$0xff]  ;;  %v371_v60 = vld [vmem:[%s9564_s15 + $0x1e8] sm:$0xff]  ;;  %v370_v61 = vld [vmem:[%s9564_s15 + $0x1e0] sm:$0xff] }
  0x56   : > { %464 = vadd.xlane.f32.xlu1 %v9619_v12  ;;  %462 = vadd.xlane.f32.xlu0 %v9622_v13  ;;  %v373_v62 = vld [vmem:[%s9564_s15 + $0x1f8] sm:$0xff]  ;;  %v372_v63 = vld [vmem:[%s9564_s15 + $0x1f0] sm:$0xff] }
  0x5a   : > { %468 = vadd.xlane.f32.xlu1 %v9627_v14  ;;  %466 = vadd.xlane.f32.xlu0 %v9630_v15 }
  0x5e   : > { %472 = vadd.xlane.f32.xlu1 %v9635_v16  ;;  %470 = vadd.xlane.f32.xlu0 %v9638_v17 }
  0x62   : > { %476 = vadd.xlane.f32.xlu1 %v9643_v18  ;;  %474 = vadd.xlane.f32.xlu0 %v9646_v19 }
  0x66   : > { %480 = vadd.xlane.f32.xlu1 %v9651_v20  ;;  %478 = vadd.xlane.f32.xlu0 %v9654_v21 }
  0x6a   : > { %484 = vadd.xlane.f32.xlu1 %v9659_v22  ;;  %482 = vadd.xlane.f32.xlu0 %v9662_v23 }
  0x6e   : > { %488 = vadd.xlane.f32.xlu1 %v9667_v24  ;;  %486 = vadd.xlane.f32.xlu0 %v9670_v25 }
  0x72   : > { %492 = vadd.xlane.f32.xlu1 %v9675_v26  ;;  %490 = vadd.xlane.f32.xlu0 %v9678_v27  ;;  %v413_v27 = vld [vmem:[%s9564_s15 + $0x338] sm:$0xff]  ;;  %v412_v26 = vld [vmem:[%s9564_s15 + $0x330] sm:$0xff] }
  0x76   : > { %496 = vadd.xlane.f32.xlu1 %v9683_v28  ;;  %494 = vadd.xlane.f32.xlu0 %v9686_v29  ;;  %v411_v29 = vld [vmem:[%s9564_s15 + $0x328] sm:$0xff]  ;;  %v410_v28 = vld [vmem:[%s9564_s15 + $0x320] sm:$0xff] }
  0x7a   : > { %500 = vadd.xlane.f32.xlu1 %v9691_v30  ;;  %498 = vadd.xlane.f32.xlu0 %v9694_v31  ;;  %v409_v31 = vld [vmem:[%s9564_s15 + $0x318] sm:$0xff]  ;;  %v408_v30 = vld [vmem:[%s9564_s15 + $0x310] sm:$0xff] }
  0x7e   : > { %504 = vadd.xlane.f32.xlu1 %v9699_v32  ;;  %502 = vadd.xlane.f32.xlu0 %v9702_v33  ;;  %v407_v33 = vld [vmem:[%s9564_s15 + $0x308] sm:$0xff]  ;;  %v406_v32 = vld [vmem:[%s9564_s15 + $0x300] sm:$0xff] }
  0x82   : > { %508 = vadd.xlane.f32.xlu1 %v9707_v34  ;;  %506 = vadd.xlane.f32.xlu0 %v9710_v35  ;;  %v405_v35 = vld [vmem:[%s9564_s15 + $0x2f8] sm:$0xff]  ;;  %v404_v34 = vld [vmem:[%s9564_s15 + $0x2f0] sm:$0xff] }
  0x86   : > { %512 = vadd.xlane.f32.xlu1 %v9715_v36  ;;  %510 = vadd.xlane.f32.xlu0 %v9718_v37  ;;  %v403_v37 = vld [vmem:[%s9564_s15 + $0x2e8] sm:$0xff]  ;;  %v402_v36 = vld [vmem:[%s9564_s15 + $0x2e0] sm:$0xff] }
  0x8a   : > { %516 = vadd.xlane.f32.xlu1 %v9723_v38  ;;  %514 = vadd.xlane.f32.xlu0 %v9726_v39  ;;  %v401_v39 = vld [vmem:[%s9564_s15 + $0x2d8] sm:$0xff]  ;;  %v400_v38 = vld [vmem:[%s9564_s15 + $0x2d0] sm:$0xff] }
  0x8e   : > { %520 = vadd.xlane.f32.xlu1 %v9731_v40  ;;  %518 = vadd.xlane.f32.xlu0 %v9734_v41  ;;  %v399_v41 = vld [vmem:[%s9564_s15 + $0x2c8] sm:$0xff]  ;;  %v398_v40 = vld [vmem:[%s9564_s15 + $0x2c0] sm:$0xff] }
  0x92   : > { %524 = vadd.xlane.f32.xlu1 %v9739_v42  ;;  %522 = vadd.xlane.f32.xlu0 %v9742_v43  ;;  %v397_v43 = vld [vmem:[%s9564_s15 + $0x2b8] sm:$0xff]  ;;  %v396_v42 = vld [vmem:[%s9564_s15 + $0x2b0] sm:$0xff] }
  0x96   : > { %528 = vadd.xlane.f32.xlu1 %v9747_v44  ;;  %526 = vadd.xlane.f32.xlu0 %v9750_v45  ;;  %v395_v45 = vld [vmem:[%s9564_s15 + $0x2a8] sm:$0xff]  ;;  %v394_v44 = vld [vmem:[%s9564_s15 + $0x2a0] sm:$0xff] }
  0x9a   : > { %532 = vadd.xlane.f32.xlu1 %v9755_v46  ;;  %530 = vadd.xlane.f32.xlu0 %v9758_v47  ;;  %v393_v47 = vld [vmem:[%s9564_s15 + $0x298] sm:$0xff]  ;;  %v392_v46 = vld [vmem:[%s9564_s15 + $0x290] sm:$0xff] }
  0x9e   : > { %536 = vadd.xlane.f32.xlu1 %v359_v48  ;;  %534 = vadd.xlane.f32.xlu0 %v358_v49  ;;  %v375_v48 = vld [vmem:[%s9564_s15 + $0x208] sm:$0xff]  ;;  %v374_v49 = vld [vmem:[%s9564_s15 + $0x200] sm:$0xff] }
  0xa2   : > { %540 = vadd.xlane.f32.xlu1 %v361_v50  ;;  %538 = vadd.xlane.f32.xlu0 %v360_v51  ;;  %v377_v50 = vld [vmem:[%s9564_s15 + $0x218] sm:$0xff]  ;;  %v376_v51 = vld [vmem:[%s9564_s15 + $0x210] sm:$0xff] }
  0xa6   : > { %544 = vadd.xlane.f32.xlu1 %v363_v52  ;;  %542 = vadd.xlane.f32.xlu0 %v362_v53  ;;  %v379_v52 = vld [vmem:[%s9564_s15 + $0x228] sm:$0xff]  ;;  %v378_v53 = vld [vmem:[%s9564_s15 + $0x220] sm:$0xff] }
  0xaa   : > { %548 = vadd.xlane.f32.xlu1 %v365_v54  ;;  %546 = vadd.xlane.f32.xlu0 %v364_v55  ;;  %v381_v54 = vld [vmem:[%s9564_s15 + $0x238] sm:$0xff]  ;;  %v380_v55 = vld [vmem:[%s9564_s15 + $0x230] sm:$0xff] }
  0xae   : > { %552 = vadd.xlane.f32.xlu1 %v367_v56  ;;  %550 = vadd.xlane.f32.xlu0 %v366_v57 }
  0xb2   : > { %556 = vadd.xlane.f32.xlu1 %v369_v58  ;;  %554 = vadd.xlane.f32.xlu0 %v368_v59  ;;  %v383_v58 = vld [vmem:[%s9564_s15 + $0x248] sm:$0xff]  ;;  %v382_v59 = vld [vmem:[%s9564_s15 + $0x240] sm:$0xff] }
  0xb6   : > { %560 = vadd.xlane.f32.xlu1 %v371_v60  ;;  %558 = vadd.xlane.f32.xlu0 %v370_v61 }
  0xba   : > { %564 = vadd.xlane.f32.xlu1 %v373_v62  ;;  %562 = vadd.xlane.f32.xlu0 %v372_v63  ;;  %v385_v62 = vld [vmem:[%s9564_s15 + $0x258] sm:$0xff]  ;;  %v384_v63 = vld [vmem:[%s9564_s15 + $0x250] sm:$0xff] }
  0xbe   : > { %568 = vadd.xlane.f32.xlu1 %v375_v48  ;;  %566 = vadd.xlane.f32.xlu0 %v374_v49 }
  0xc2   : > { %572 = vadd.xlane.f32.xlu1 %v377_v50  ;;  %570 = vadd.xlane.f32.xlu0 %v376_v51  ;;  %v387_v50 = vld [vmem:[%s9564_s15 + $0x268] sm:$0xff]  ;;  %v386_v51 = vld [vmem:[%s9564_s15 + $0x260] sm:$0xff] }
  0xc6   : > { %576 = vadd.xlane.f32.xlu1 %v379_v52  ;;  %574 = vadd.xlane.f32.xlu0 %v378_v53 }
  0xca   : > { %580 = vadd.xlane.f32.xlu1 %v381_v54  ;;  %578 = vadd.xlane.f32.xlu0 %v380_v55  ;;  %v389_v54 = vld [vmem:[%s9564_s15 + $0x278] sm:$0xff]  ;;  %v388_v55 = vld [vmem:[%s9564_s15 + $0x270] sm:$0xff] }
  0xcb   : > { %v9786_v56 = vpop.xlane.xlu1 %442  ;;  %v9788_v57 = vpop.xlane.xlu0 %438 }
  0xcc   : > { %v695_v25 = vmul.f32 0.0078125, %v9788_v57 }
  0xce   : > { %584 = vadd.xlane.f32.xlu1 %v383_v58  ;;  %582 = vadd.xlane.f32.xlu0 %v382_v59 }
  0xcf   : > { %v9792_v60 = vpop.xlane.xlu1 %444  ;;  %v9794_v61 = vpop.xlane.xlu0 %440 }
  0xd2   : > { %588 = vadd.xlane.f32.xlu1 %v385_v62  ;;  %586 = vadd.xlane.f32.xlu0 %v384_v63  ;;  %v391_v62 = vld [vmem:[%s9564_s15 + $0x288] sm:$0xff]  ;;  %v390_v63 = vld [vmem:[%s9564_s15 + $0x280] sm:$0xff] }
  0xd3   : > { %v9798_v48 = vpop.xlane.xlu1 %448  ;;  %v9800_v49 = vpop.xlane.xlu0 %446 }
  0xd6   : > { %592 = vadd.xlane.f32.xlu1 %v387_v50  ;;  %590 = vadd.xlane.f32.xlu0 %v386_v51 }
  0xd7   : > { %v9804_v52 = vpop.xlane.xlu1 %452  ;;  %v9806_v53 = vpop.xlane.xlu0 %450 }
  0xda   : > { %596 = vadd.xlane.f32.xlu1 %v389_v54  ;;  %594 = vadd.xlane.f32.xlu0 %v388_v55 }
  0xdb   : > { %v9810_v58 = vpop.xlane.xlu1 %456  ;;  %v9812_v59 = vpop.xlane.xlu0 %454 }
  0xde   : > { %600 = vadd.xlane.f32.xlu1 %v391_v62  ;;  %598 = vadd.xlane.f32.xlu0 %v390_v63 }
  0xdf   : > { %v9816_v50 = vpop.xlane.xlu1 %460  ;;  %v9818_v51 = vpop.xlane.xlu0 %458 }
  0xe2   : > { %604 = vadd.xlane.f32.xlu1 %v393_v47  ;;  %602 = vadd.xlane.f32.xlu0 %v392_v46 }
  0xe3   : > { %v9822_v54 = vpop.xlane.xlu1 %464  ;;  %v9824_v55 = vpop.xlane.xlu0 %462 }
  0xe6   : > { %608 = vadd.xlane.f32.xlu1 %v395_v45  ;;  %606 = vadd.xlane.f32.xlu0 %v394_v44 }
  0xe7   : > { %v9828_v62 = vpop.xlane.xlu1 %468  ;;  %v9830_v63 = vpop.xlane.xlu0 %466 }
  0xea   : > { %612 = vadd.xlane.f32.xlu1 %v397_v43  ;;  %610 = vadd.xlane.f32.xlu0 %v396_v42 }
  0xeb   : > { %v9834_v46 = vpop.xlane.xlu1 %472  ;;  %v9836_v47 = vpop.xlane.xlu0 %470 }
  0xee   : > { %616 = vadd.xlane.f32.xlu1 %v399_v41  ;;  %614 = vadd.xlane.f32.xlu0 %v398_v40 }
  0xef   : > { %v9840_v44 = vpop.xlane.xlu1 %476  ;;  %v9842_v45 = vpop.xlane.xlu0 %474 }
  0xf2   : > { %620 = vadd.xlane.f32.xlu1 %v401_v39  ;;  %618 = vadd.xlane.f32.xlu0 %v400_v38 }
  0xf3   : > { %v9846_v42 = vpop.xlane.xlu1 %480  ;;  %v9848_v43 = vpop.xlane.xlu0 %478 }
  0xf6   : > { %624 = vadd.xlane.f32.xlu1 %v403_v37  ;;  %622 = vadd.xlane.f32.xlu0 %v402_v36 }
  0xf7   : > { %v9852_v40 = vpop.xlane.xlu1 %484  ;;  %v9854_v41 = vpop.xlane.xlu0 %482 }
  0xfa   : > { %628 = vadd.xlane.f32.xlu1 %v405_v35  ;;  %626 = vadd.xlane.f32.xlu0 %v404_v34 }
  0xfb   : > { %v9858_v38 = vpop.xlane.xlu1 %488  ;;  %v9860_v39 = vpop.xlane.xlu0 %486 }
  0xfe   : > { %632 = vadd.xlane.f32.xlu1 %v407_v33  ;;  %630 = vadd.xlane.f32.xlu0 %v406_v32 }
  0xff   : > { %v9864_v36 = vpop.xlane.xlu1 %492  ;;  %v9866_v37 = vpop.xlane.xlu0 %490 }
 0x102   : > { %636 = vadd.xlane.f32.xlu1 %v409_v31  ;;  %634 = vadd.xlane.f32.xlu0 %v408_v30 }
 0x103   : > { %v9870_v34 = vpop.xlane.xlu1 %496  ;;  %v9872_v35 = vpop.xlane.xlu0 %494 }
 0x104   : > { %15841 = vst [vmem:[#allocation35_spill] sm:$0xff] %v9870_v34  ;;  %15842 = vst [vmem:[#allocation36_spill] sm:$0xff] %v9872_v35  ;;  %v415_v35 = vld [vmem:[%s9564_s15 + $0x348] sm:$0xff]  ;;  %v414_v34 = vld [vmem:[%s9564_s15 + $0x340] sm:$0xff] }
 0x106   : > { %640 = vadd.xlane.f32.xlu1 %v411_v29  ;;  %638 = vadd.xlane.f32.xlu0 %v410_v28 }
 0x107   : > { %v9876_v32 = vpop.xlane.xlu1 %500  ;;  %v9878_v33 = vpop.xlane.xlu0 %498 }
 0x108   : > { %15843 = vst [vmem:[#allocation37_spill] sm:$0xff] %v9876_v32  ;;  %15844 = vst [vmem:[#allocation38_spill] sm:$0xff] %v9878_v33  ;;  %v417_v33 = vld [vmem:[%s9564_s15 + $0x358] sm:$0xff]  ;;  %v416_v32 = vld [vmem:[%s9564_s15 + $0x350] sm:$0xff] }
 0x10a   : > { %644 = vadd.xlane.f32.xlu1 %v413_v27  ;;  %642 = vadd.xlane.f32.xlu0 %v412_v26 }
 0x10b   : > { %v9882_v30 = vpop.xlane.xlu1 %504  ;;  %v9884_v31 = vpop.xlane.xlu0 %502 }
 0x10c   : > { %15845 = vst [vmem:[#allocation39_spill] sm:$0xff] %v9882_v30  ;;  %15846 = vst [vmem:[#allocation40_spill] sm:$0xff] %v9884_v31  ;;  %v419_v31 = vld [vmem:[%s9564_s15 + $0x368] sm:$0xff]  ;;  %v418_v30 = vld [vmem:[%s9564_s15 + $0x360] sm:$0xff] }
 0x10e   : > { %648 = vadd.xlane.f32.xlu1 %v415_v35  ;;  %646 = vadd.xlane.f32.xlu0 %v414_v34 }
 0x10f   : > { %v9888_v28 = vpop.xlane.xlu1 %508  ;;  %v9890_v29 = vpop.xlane.xlu0 %506 }
 0x110   : > { %15847 = vst [vmem:[#allocation41_spill] sm:$0xff] %v9888_v28  ;;  %15848 = vst [vmem:[#allocation42_spill] sm:$0xff] %v9890_v29  ;;  %v421_v29 = vld [vmem:[%s9564_s15 + $0x378] sm:$0xff]  ;;  %v420_v28 = vld [vmem:[%s9564_s15 + $0x370] sm:$0xff] }
 0x112   : > { %652 = vadd.xlane.f32.xlu1 %v417_v33  ;;  %650 = vadd.xlane.f32.xlu0 %v416_v32 }
 0x113   : > { %v9894_v26 = vpop.xlane.xlu1 %512  ;;  %v9896_v27 = vpop.xlane.xlu0 %510 }
 0x114   : > { %15849 = vst [vmem:[#allocation43_spill] sm:$0xff] %v9894_v26  ;;  %15850 = vst [vmem:[#allocation44_spill] sm:$0xff] %v9896_v27  ;;  %v423_v27 = vld [vmem:[%s9564_s15 + $0x388] sm:$0xff]  ;;  %v422_v26 = vld [vmem:[%s9564_s15 + $0x380] sm:$0xff] }
 0x116   : > { %656 = vadd.xlane.f32.xlu1 %v419_v31  ;;  %654 = vadd.xlane.f32.xlu0 %v418_v30 }
 0x117   : > { %v9900_v34 = vpop.xlane.xlu1 %516  ;;  %v9902_v35 = vpop.xlane.xlu0 %514 }
 0x118   : > { %15851 = vst [vmem:[#allocation45_spill] sm:$0xff] %v9900_v34  ;;  %15852 = vst [vmem:[#allocation46_spill] sm:$0xff] %v9902_v35  ;;  %v425_v35 = vld [vmem:[%s9564_s15 + $0x398] sm:$0xff]  ;;  %v424_v34 = vld [vmem:[%s9564_s15 + $0x390] sm:$0xff] }
 0x11a   : > { %660 = vadd.xlane.f32.xlu1 %v421_v29  ;;  %658 = vadd.xlane.f32.xlu0 %v420_v28 }
 0x11b   : > { %v9906_v32 = vpop.xlane.xlu1 %520  ;;  %v9908_v33 = vpop.xlane.xlu0 %518 }
 0x11c   : > { %15853 = vst [vmem:[#allocation47_spill] sm:$0xff] %v9906_v32  ;;  %15854 = vst [vmem:[#allocation48_spill] sm:$0xff] %v9908_v33  ;;  %v427_v33 = vld [vmem:[%s9564_s15 + $0x3a8] sm:$0xff]  ;;  %v426_v32 = vld [vmem:[%s9564_s15 + $0x3a0] sm:$0xff] }
 0x11e   : > { %664 = vadd.xlane.f32.xlu1 %v423_v27  ;;  %662 = vadd.xlane.f32.xlu0 %v422_v26 }
 0x11f   : > { %v9912_v30 = vpop.xlane.xlu1 %524  ;;  %v9914_v31 = vpop.xlane.xlu0 %522 }
 0x120   : > { %15855 = vst [vmem:[#allocation49_spill] sm:$0xff] %v9912_v30  ;;  %15856 = vst [vmem:[#allocation50_spill] sm:$0xff] %v9914_v31  ;;  %v429_v31 = vld [vmem:[%s9564_s15 + $0x3b8] sm:$0xff]  ;;  %v428_v30 = vld [vmem:[%s9564_s15 + $0x3b0] sm:$0xff] }
 0x122   : > { %668 = vadd.xlane.f32.xlu1 %v425_v35  ;;  %666 = vadd.xlane.f32.xlu0 %v424_v34 }
 0x123   : > { %v9918_v28 = vpop.xlane.xlu1 %528  ;;  %v9920_v29 = vpop.xlane.xlu0 %526 }
 0x124   : > { %15857 = vst [vmem:[#allocation51_spill] sm:$0xff] %v9918_v28  ;;  %15858 = vst [vmem:[#allocation52_spill] sm:$0xff] %v9920_v29  ;;  %v431_v29 = vld [vmem:[%s9564_s15 + $0x3c8] sm:$0xff]  ;;  %v430_v28 = vld [vmem:[%s9564_s15 + $0x3c0] sm:$0xff] }
 0x126   : > { %672 = vadd.xlane.f32.xlu1 %v427_v33  ;;  %670 = vadd.xlane.f32.xlu0 %v426_v32 }
 0x127   : > { %v9924_v26 = vpop.xlane.xlu1 %532  ;;  %v9926_v27 = vpop.xlane.xlu0 %530 }
 0x128   : > { %15859 = vst [vmem:[#allocation53_spill] sm:$0xff] %v9924_v26  ;;  %15860 = vst [vmem:[#allocation54_spill] sm:$0xff] %v9926_v27  ;;  %v433_v27 = vld [vmem:[%s9564_s15 + $0x3d8] sm:$0xff]  ;;  %v432_v26 = vld [vmem:[%s9564_s15 + $0x3d0] sm:$0xff] }
 0x12a   : > { %676 = vadd.xlane.f32.xlu1 %v429_v31  ;;  %674 = vadd.xlane.f32.xlu0 %v428_v30 }
 0x12b   : > { %v9930_v34 = vpop.xlane.xlu1 %536  ;;  %v9932_v35 = vpop.xlane.xlu0 %534 }
 0x12c   : > { %15861 = vst [vmem:[#allocation55_spill] sm:$0xff] %v9930_v34  ;;  %15862 = vst [vmem:[#allocation56_spill] sm:$0xff] %v9932_v35  ;;  %v435_v34 = vld [vmem:[%s9564_s15 + $0x3e8] sm:$0xff]  ;;  %v434_v35 = vld [vmem:[%s9564_s15 + $0x3e0] sm:$0xff] }
 0x12e   : > { %680 = vadd.xlane.f32.xlu1 %v431_v29  ;;  %678 = vadd.xlane.f32.xlu0 %v430_v28  ;;  %v696_v28 = vmul.f32 0.0078125, %v9794_v61  ;;  %v697_v29 = vmul.f32 0.0078125, %v9786_v56  ;;  %v700_v56 = vmul.f32 0.0078125, %v9798_v48 }
 0x12f   : > { %v9936_v32 = vpop.xlane.xlu1 %540  ;;  %v9938_v33 = vpop.xlane.xlu0 %538 }
 0x130   : > { %15863 = vst [vmem:[#allocation57_spill] sm:$0xff] %v9936_v32  ;;  %15864 = vst [vmem:[#allocation58_spill] sm:$0xff] %v9938_v33  ;;  %v9962_v24 = vsub.f32 %v9582_v3, %v696_v28  ;;  %v9965_v57 = vsub.f32 %v9571_v0, %v697_v29  ;;  %v9981_v0 = vsub.f32 %v9587_v4, %v700_v56  ;;  %v702_v4 = vmul.f32 0.0078125, %v9804_v52  ;;  %v2119_v52 = vld [vmem:[%s15379_s3 + $0x10] sm:$0xff] }
 0x131   : > { %v701_v29 = vmul.f32 0.0078125, %v9806_v53  ;;  %v704_v56 = vmul.f32 0.0078125, %v9810_v58  ;;  %v2120_v53 = vld [vmem:[%s15379_s3 + $0x18] sm:$0xff] }
 0x132   : > { %684 = vadd.xlane.f32.xlu1 %v433_v27  ;;  %682 = vadd.xlane.f32.xlu0 %v432_v26  ;;  %v437_v27 = vld [vmem:[%s9564_s15 + $0x3f8] sm:$0xff]  ;;  %v436_v26 = vld [vmem:[%s9564_s15 + $0x3f0] sm:$0xff]  ;;  %15868 = vst [vmem:[#allocation62_spill] sm:$0xff] %v9962_v24  ;;  %15869 = vst [vmem:[#allocation63_spill] sm:$0xff] %v9965_v57  ;;  %v952_v3 = vmul.f32 %v9962_v24, %v9962_v24 }
 0x133   : > { %v9942_v30 = vpop.xlane.xlu1 %544  ;;  %v9944_v31 = vpop.xlane.xlu0 %542  ;;  %15871 = vst [vmem:[#allocation65_spill] sm:$0xff] %v9981_v0  ;;  %v10019_v58 = vsub.f32 %v9598_v7, %v701_v29  ;;  %v2121_v7 = vld [vmem:[%s15379_s3 + $0x20] sm:$0xff] }
 0x134   : > { %15865 = vst [vmem:[#allocation59_spill] sm:$0xff] %v9942_v30  ;;  %15866 = vst [vmem:[#allocation60_spill] sm:$0xff] %v9944_v31  ;;  %v9958_v30 = vsub.f32 %v9574_v1, %v695_v25  ;;  %v698_v31 = vmul.f32 0.0078125, %v9792_v60  ;;  %v699_v1 = vmul.f32 0.0078125, %v9800_v49  ;;  %v2117_v49 = vld [vmem:[%s15379_s3] sm:$0xff] }
 0x135   : > { %15874 = vst [vmem:[#allocation68_spill] sm:$0xff] %v10019_v58 }
 0x136   : > { %688 = vadd.xlane.f32.xlu1 %v435_v34  ;;  %686 = vadd.xlane.f32.xlu0 %v434_v35  ;;  %15867 = vst [vmem:[#allocation61_spill] sm:$0xff] %v9958_v30  ;;  %v9973_v35 = vsub.f32 %v9579_v2, %v698_v31  ;;  %v951_v25 = vmul.f32 %v9958_v30, %v9958_v30  ;;  %v2118_v31 = vld [vmem:[%s15379_s3 + $0x8] sm:$0xff] }
 0x137   : > { %v9951_v33 = vpop.xlane.xlu1 %548  ;;  %v9953_v32 = vpop.xlane.xlu0 %546  ;;  %v953_v2 = vmul.f32 %v9965_v57, %v9965_v57  ;;  %v9996_v28 = vsub.f32 %v9590_v5, %v699_v1  ;;  %v956_v5 = vmul.f32 %v9981_v0, %v9981_v0  ;;  %v10016_v1 = vsub.f32 %v9595_v6, %v702_v4 }
 0x138   : > { %15870 = vst [vmem:[#allocation64_spill] sm:$0xff] %v9973_v35  ;;  %v706_v0 = vmul.f32 0.0078125, %v9816_v50 }
 0x139   : > { %15872 = vst [vmem:[#allocation66_spill] sm:$0xff] %v9996_v28  ;;  %15873 = vst [vmem:[#allocation67_spill] sm:$0xff] %v10016_v1  ;;  %v958_v50 = vmul.f32 %v10016_v1, %v10016_v1  ;;  %v15944_v1 = vld [vmem:[#allocation52_spill] sm:$0xff] }
 0x13a   : > { %692 = vadd.xlane.f32.xlu1 %v437_v27  ;;  %690 = vadd.xlane.f32.xlu0 %v436_v26  ;;  %v954_v27 = vmul.f32 %v9973_v35, %v9973_v35  ;;  %v8305_v26 = vpack.c.bf16 %v2118_v31, %v2117_v49  ;;  %v955_v49 = vmul.f32 %v9996_v28, %v9996_v28  ;;  %v739_v28 = vmul.f32 0.0078125, %v15944_v1 }
 0x13b   : > { %v9968_v61 = vpop.xlane.xlu1 %552  ;;  %v9970_v34 = vpop.xlane.xlu0 %550  ;;  %v8309_v31 = vpack.c.bf16 %v2120_v53, %v2119_v52 }
 0x13c   : > { %8306 = vmatprep.subr.bf16.mxu0 %v8305_v26  ;;  %8337 = vmatprep.subr.bf16.mxu1 %v8305_v26 }
 0x13d   : > { %8308 = vmatpush3.bf16.msra.mxu0 %v8305_v26  ;;  %8345 = vmatpush3.bf16.msra.mxu1 %v8305_v26  ;;  %v957_v26 = vmul.f32 %v10019_v58, %v10019_v58 }
 0x13e   : > { %1081 = vadd.xlane.f32.xlu1 %v952_v3  ;;  %1079 = vadd.xlane.f32.xlu0 %v951_v25 }
 0x13f   : > { %v9983_v60 = vpop.xlane.xlu1 %556  ;;  %v9985_v48 = vpop.xlane.xlu0 %554  ;;  %8310 = vmatprep.subr.bf16.mxu0 %v8309_v31  ;;  %8338 = vmatprep.subr.bf16.mxu1 %v8309_v31 }
 0x141   : > { %8312 = vmatpush3.bf16.msra.mxu0 %v8309_v31  ;;  %8346 = vmatpush3.bf16.msra.mxu1 %v8309_v31  ;;  %v2124_v31 = vld [vmem:[%s15379_s3 + $0x38] sm:$0xff] }
 0x142   : > { %1085 = vadd.xlane.f32.xlu1 %v954_v27  ;;  %1083 = vadd.xlane.f32.xlu0 %v953_v2  ;;  %v703_v2 = vmul.f32 0.0078125, %v9812_v59  ;;  %v10025_v27 = vsub.f32 %v9603_v8, %v704_v56  ;;  %v2122_v59 = vld [vmem:[%s15379_s3 + $0x28] sm:$0xff]  ;;  %v705_v8 = vmul.f32 0.0078125, %v9818_v51 }
 0x143   : > { %v10003_v3 = vpop.xlane.xlu1 %560  ;;  %v10005_v25 = vpop.xlane.xlu0 %558  ;;  %v8313_v56 = vpack.c.bf16 %v2122_v59, %v2121_v7 }
 0x144   : > { %15875 = vst [vmem:[#allocation69_spill] sm:$0xff] %v10025_v27  ;;  %v10039_v29 = vsub.f32 %v9606_v9, %v703_v2  ;;  %v960_v51 = vmul.f32 %v10025_v27, %v10025_v27  ;;  %v10056_v53 = vsub.f32 %v9614_v11, %v705_v8  ;;  %v708_v2 = vmul.f32 0.0078125, %v9822_v54  ;;  %v15943_v27 = vld [vmem:[#allocation51_spill] sm:$0xff] }
 0x145   : > { %8314 = vmatprep.subr.bf16.mxu0 %v8313_v56  ;;  %8339 = vmatprep.subr.bf16.mxu1 %v8313_v56  ;;  %v710_v11 = vmul.f32 0.0078125, %v9828_v62  ;;  %v740_v58 = vmul.f32 0.0078125, %v15943_v27  ;;  %v15949_v27 = vld [vmem:[#allocation31_spill] sm:$0xff] }
 0x146   : > { %1089 = vadd.xlane.f32.xlu1 %v956_v5  ;;  %1087 = vadd.xlane.f32.xlu0 %v955_v49  ;;  %15876 = vst [vmem:[#allocation70_spill] sm:$0xff] %v10039_v29  ;;  %v10047_v5 = vsub.f32 %v9611_v10, %v706_v0  ;;  %15878 = vst [vmem:[#allocation72_spill] sm:$0xff] %v10056_v53  ;;  %v707_v49 = vmul.f32 0.0078125, %v9824_v55  ;;  %v959_v10 = vmul.f32 %v10039_v29, %v10039_v29  ;;  %v2123_v0 = vld [vmem:[%s15379_s3 + $0x30] sm:$0xff] }
 0x147   : > { %v10028_v6 = vpop.xlane.xlu1 %564  ;;  %v10030_v4 = vpop.xlane.xlu0 %562  ;;  %8316 = vmatpush3.bf16.msra.mxu0 %v8313_v56  ;;  %8347 = vmatpush3.bf16.msra.mxu1 %v8313_v56  ;;  %v8317_v7 = vpack.c.bf16 %v2124_v31, %v2123_v0  ;;  %v10076_v8 = vsub.f32 %v9619_v12, %v708_v2  ;;  %v961_v62 = vmul.f32 %v10056_v53, %v10056_v53  ;;  %v2125_v56 = vld [vmem:[%s15379_s3 + $0x40] sm:$0xff]  ;;  %v711_v0 = vmul.f32 0.0078125, %v9836_v47 }
 0x148   : > { %15877 = vst [vmem:[#allocation71_spill] sm:$0xff] %v10047_v5  ;;  %v962_v59 = vmul.f32 %v10047_v5, %v10047_v5  ;;  %v10349_v1 = vsub.f32 %v15949_v27, %v740_v58 }
 0x149   : > { %8318 = vmatprep.subr.bf16.mxu0 %v8317_v7  ;;  %8340 = vmatprep.subr.bf16.mxu1 %v8317_v7  ;;  %15879 = vst [vmem:[#allocation73_spill] sm:$0xff] %v10076_v8  ;;  %v964_v31 = vmul.f32 %v10076_v8, %v10076_v8  ;;  %v15926_v8 = vld [vmem:[#allocation46_spill] sm:$0xff] }
 0x14a   : > { %1093 = vadd.xlane.f32.xlu1 %v958_v50  ;;  %1091 = vadd.xlane.f32.xlu0 %v957_v26  ;;  %v10079_v50 = vsub.f32 %v9622_v13, %v707_v49  ;;  %v709_v26 = vmul.f32 0.0078125, %v9830_v63  ;;  %v10091_v13 = vsub.f32 %v9627_v14, %v710_v11  ;;  %v712_v63 = vmul.f32 0.0078125, %v9834_v46  ;;  %v2127_v46 = vld [vmem:[%s15379_s3 + $0x50] sm:$0xff] }
 0x14b   : > { %v10049_v52 = vpop.xlane.xlu1 %568  ;;  %v10051_v9 = vpop.xlane.xlu0 %566  ;;  %8320 = vmatpush3.bf16.msra.mxu0 %v8317_v7  ;;  %8348 = vmatpush3.bf16.msra.mxu1 %v8317_v7  ;;  %v2128_v7 = vld [vmem:[%s15379_s3 + $0x58] sm:$0xff]  ;;  %v733_v53 = vmul.f32 0.0078125, %v15926_v8 }
 0x14c   : > { %15880 = vst [vmem:[#allocation74_spill] sm:$0xff] %v10079_v50  ;;  %15881 = vst [vmem:[#allocation75_spill] sm:$0xff] %v10091_v13  ;;  %v963_v14 = vmul.f32 %v10079_v50, %v10079_v50  ;;  %v10113_v47 = vsub.f32 %v9635_v16, %v712_v63  ;;  %v2130_v63 = vld [vmem:[%s15379_s3 + $0x68] sm:$0xff] }
 0x14e   : > { %1097 = vadd.xlane.f32.xlu1 %v960_v51  ;;  %1095 = vadd.xlane.f32.xlu0 %v959_v10  ;;  %v2126_v51 = vld [vmem:[%s15379_s3 + $0x48] sm:$0xff]  ;;  %v10099_v10 = vsub.f32 %v9630_v15, %v709_v26  ;;  %v8325_v15 = vpack.c.bf16 %v2128_v7, %v2127_v46  ;;  %15883 = vst [vmem:[#allocation77_spill] sm:$0xff] %v10113_v47 }
 0x14f   : > { %v10069_v54 = vpop.xlane.xlu1 %572  ;;  %v10071_v55 = vpop.xlane.xlu0 %570  ;;  %v8321_v12 = vpack.c.bf16 %v2126_v51, %v2125_v56  ;;  %v966_v26 = vmul.f32 %v10091_v13, %v10091_v13  ;;  %v714_v56 = vmul.f32 0.0078125, %v9840_v44  ;;  %v713_v51 = vmul.f32 0.0078125, %v9842_v45  ;;  %v15925_v13 = vld [vmem:[#allocation45_spill] sm:$0xff] }
 0x150   : > { %15882 = vst [vmem:[#allocation76_spill] sm:$0xff] %v10099_v10  ;;  %v965_v16 = vmul.f32 %v10099_v10, %v10099_v10  ;;  %v715_v44 = vmul.f32 0.0078125, %v9848_v43  ;;  %v2131_v43 = vld [vmem:[%s15379_s3 + $0x70] sm:$0xff]  ;;  %v734_v50 = vmul.f32 0.0078125, %v15925_v13 }
 0x151   : > { %8322 = vmatprep.subr.bf16.mxu0 %v8321_v12  ;;  %8341 = vmatprep.subr.bf16.mxu1 %v8321_v12  ;;  %v10143_v46 = vsub.f32 %v9643_v18, %v714_v56  ;;  %v10146_v7 = vsub.f32 %v9646_v19, %v713_v51  ;;  %v15931_v13 = vld [vmem:[#allocation25_spill] sm:$0xff] }
 0x152   : > { %1101 = vadd.xlane.f32.xlu1 %v962_v59  ;;  %1099 = vadd.xlane.f32.xlu0 %v961_v62  ;;  %v10122_v62 = vsub.f32 %v9638_v17, %v711_v0  ;;  %v716_v17 = vmul.f32 0.0078125, %v9846_v42  ;;  %v10160_v19 = vsub.f32 %v9654_v21, %v715_v44  ;;  %v10301_v8 = vsub.f32 %v15931_v13, %v734_v50 }
 0x153   : > { %v10094_v2 = vpop.xlane.xlu1 %576  ;;  %v10096_v49 = vpop.xlane.xlu0 %574  ;;  %8324 = vmatpush3.bf16.msra.mxu0 %v8321_v12  ;;  %8349 = vmatpush3.bf16.msra.mxu1 %v8321_v12  ;;  %v2129_v12 = vld [vmem:[%s15379_s3 + $0x60] sm:$0xff]  ;;  %15885 = vst [vmem:[#allocation79_spill] sm:$0xff] %v10143_v46  ;;  %15886 = vst [vmem:[#allocation80_spill] sm:$0xff] %v10146_v7 }
 0x154   : > { %8326 = vmatprep.subr.bf16.mxu0 %v8325_v15  ;;  %8342 = vmatprep.subr.bf16.mxu1 %v8325_v15  ;;  %15884 = vst [vmem:[#allocation78_spill] sm:$0xff] %v10122_v62  ;;  %v967_v42 = vmul.f32 %v10122_v62, %v10122_v62  ;;  %v10157_v18 = vsub.f32 %v9651_v20, %v716_v17  ;;  %15888 = vst [vmem:[#allocation82_spill] sm:$0xff] %v10160_v19 }
 0x155   : > { %v969_v20 = vmul.f32 %v10146_v7, %v10146_v7 }
 0x156   : > { %1105 = vadd.xlane.f32.xlu1 %v964_v31  ;;  %1103 = vadd.xlane.f32.xlu0 %v963_v14  ;;  %v8329_v31 = vpack.c.bf16 %v2130_v63, %v2129_v12  ;;  %v968_v14 = vmul.f32 %v10113_v47, %v10113_v47  ;;  %15887 = vst [vmem:[#allocation81_spill] sm:$0xff] %v10157_v18  ;;  %v717_v12 = vmul.f32 0.0078125, %v9854_v41 }
 0x157   : > { %v10115_v11 = vpop.xlane.xlu1 %580  ;;  %v10117_v59 = vpop.xlane.xlu0 %578  ;;  %8328 = vmatpush3.bf16.msra.mxu0 %v8325_v15  ;;  %8350 = vmatpush3.bf16.msra.mxu1 %v8325_v15  ;;  %v2132_v15 = vld [vmem:[%s15379_s3 + $0x78] sm:$0xff]  ;;  %v970_v63 = vmul.f32 %v10143_v46, %v10143_v46  ;;  %v972_v17 = vmul.f32 %v10157_v18, %v10157_v18  ;;  %v15907_v18 = vld [vmem:[#allocation39_spill] sm:$0xff]  ;;  %v15908_v46 = vld [vmem:[#allocation40_spill] sm:$0xff] }
 0x158   : > { %8330 = vmatprep.subr.bf16.mxu0 %v8329_v31  ;;  %8343 = vmatprep.subr.bf16.mxu1 %v8329_v31  ;;  %v10184_v44 = vsub.f32 %v9662_v23, %v717_v12  ;;  %v15897_v12 = vld [vmem:[#allocation14_spill] sm:$0xff]  ;;  %v728_v7 = vmul.f32 0.0078125, %v15907_v18  ;;  %v727_v62 = vmul.f32 0.0078125, %v15908_v46  ;;  %v15913_v18 = vld [vmem:[#allocation19_spill] sm:$0xff] }
 0x159   : > { %15932 = vst [vmem:[#allocation19_spill] sm:$0xff] %v10301_v8 }
 0x15a   : > { %1109 = vadd.xlane.f32.xlu1 %v966_v26  ;;  %1107 = vadd.xlane.f32.xlu0 %v965_v16  ;;  %v8333_v26 = vpack.c.bf16 %v2132_v15, %v2131_v43  ;;  %v718_v16 = vmul.f32 0.0078125, %v9852_v40  ;;  %v971_v40 = vmul.f32 %v10160_v19, %v10160_v19  ;;  %15890 = vst [vmem:[#allocation84_spill] sm:$0xff] %v10184_v44  ;;  %v722_v43 = vmul.f32 0.0078125, %v9864_v36  ;;  %v15895_v36 = vld [vmem:[#allocation13_spill] sm:$0xff] }
 0x15b   : > { %v10136_v45 = vpop.xlane.xlu1 %584  ;;  %v10138_v0 = vpop.xlane.xlu0 %582  ;;  %8332 = vmatpush3.bf16.msra.mxu0 %v8329_v31  ;;  %8351 = vmatpush3.bf16.msra.mxu1 %v8329_v31  ;;  %v721_v15 = vmul.f32 0.0078125, %v9866_v37  ;;  %v10253_v46 = vsub.f32 %v15913_v18, %v728_v7 }
 0x15c   : > { %8334 = vmatprep.subr.bf16.mxu0 %v8333_v26  ;;  %8344 = vmatprep.subr.bf16.mxu1 %v8333_v26  ;;  %v10181_v41 = vsub.f32 %v9659_v22, %v718_v16  ;;  %v15893_v16 = vld [vmem:[#allocation12_spill] sm:$0xff]  ;;  %v10205_v37 = vsub.f32 %v15895_v36, %v722_v43 }
 0x15e   : > { %1113 = vadd.xlane.f32.xlu1 %v968_v14  ;;  %1111 = vadd.xlane.f32.xlu0 %v967_v42  ;;  %15889 = vst [vmem:[#allocation83_spill] sm:$0xff] %v10181_v41  ;;  %v720_v14 = vmul.f32 0.0078125, %v9858_v38  ;;  %v719_v42 = vmul.f32 0.0078125, %v9860_v39  ;;  %v974_v38 = vmul.f32 %v10181_v41, %v10181_v41  ;;  %v973_v39 = vmul.f32 %v10184_v44, %v10184_v44  ;;  %v15905_v44 = vld [vmem:[#allocation37_spill] sm:$0xff] }
 0x15f   : > { %v10162_v56 = vpop.xlane.xlu1 %588  ;;  %v10164_v51 = vpop.xlane.xlu0 %586  ;;  %8336 = vmatpush3.bf16.msra.mxu0 %v8333_v26  ;;  %8352 = vmatpush3.bf16.msra.mxu1 %v8333_v26  ;;  %15896 = vst [vmem:[#allocation13_spill] sm:$0xff] %v10205_v37  ;;  %15914 = vst [vmem:[#allocation37_spill] sm:$0xff] %v10253_v46 }
 0x160   : > { %v10198_v23 = vsub.f32 %v15893_v16, %v719_v42  ;;  %v15899_v42 = vld [vmem:[#allocation35_spill] sm:$0xff]  ;;  %v15900_v16 = vld [vmem:[#allocation36_spill] sm:$0xff] }
 0x161   : > { %v723_v19 = vmul.f32 0.0078125, %v15900_v16  ;;  %v15903_v16 = vld [vmem:[#allocation16_spill] sm:$0xff] }
 0x162   : > { %1117 = vadd.xlane.f32.xlu1 %v970_v63  ;;  %1115 = vadd.xlane.f32.xlu0 %v969_v20  ;;  %v15891_v20 = vld [vmem:[#allocation11_spill] sm:$0xff]  ;;  %15894 = vst [vmem:[#allocation12_spill] sm:$0xff] %v10198_v23 }
 0x163   : > { %v10172_v21 = vpop.xlane.xlu1 %592  ;;  %v10174_v31 = vpop.xlane.xlu0 %590  ;;  %v10195_v22 = vsub.f32 %v15891_v20, %v720_v14  ;;  %v724_v20 = vmul.f32 0.0078125, %v15899_v42 }
 0x165   : > { %15892 = vst [vmem:[#allocation11_spill] sm:$0xff] %v10195_v22  ;;  %v976_v41 = vmul.f32 %v10195_v22, %v10195_v22  ;;  %v10232_v22 = vsub.f32 %v15903_v16, %v723_v19 }
 0x166   : > { %1121 = vadd.xlane.f32.xlu1 %v972_v17  ;;  %1119 = vadd.xlane.f32.xlu0 %v971_v40  ;;  %v10208_v17 = vsub.f32 %v15897_v12, %v721_v15  ;;  %v15901_v12 = vld [vmem:[#allocation15_spill] sm:$0xff] }
 0x167   : > { %v10190_v26 = vpop.xlane.xlu1 %596  ;;  %v10192_v63 = vpop.xlane.xlu0 %594  ;;  %v10229_v42 = vsub.f32 %v15901_v12, %v724_v20  ;;  %15904 = vst [vmem:[#allocation36_spill] sm:$0xff] %v10232_v22  ;;  %v15911_v12 = vld [vmem:[#allocation18_spill] sm:$0xff] }
 0x168   : > { %15898 = vst [vmem:[#allocation14_spill] sm:$0xff] %v10208_v17  ;;  %v977_v36 = vmul.f32 %v10208_v17, %v10208_v17  ;;  %v15909_v17 = vld [vmem:[#allocation17_spill] sm:$0xff] }
 0x169   : > { %15902 = vst [vmem:[#allocation35_spill] sm:$0xff] %v10229_v42 }
 0x16a   : > { %1125 = vadd.xlane.f32.xlu1 %v974_v38  ;;  %1123 = vadd.xlane.f32.xlu0 %v973_v39  ;;  %v975_v38 = vmul.f32 %v10198_v23, %v10198_v23  ;;  %v978_v39 = vmul.f32 %v10205_v37, %v10205_v37  ;;  %v726_v23 = vmul.f32 0.0078125, %v15905_v44  ;;  %v980_v44 = vmul.f32 %v10229_v42, %v10229_v42 }
 0x16b   : > { %v10210_v40 = vpop.xlane.xlu1 %600  ;;  %v10212_v14 = vpop.xlane.xlu0 %598 }
 0x16c   : > { %v10243_v20 = vsub.f32 %v15909_v17, %v726_v23  ;;  %v15917_v17 = vld [vmem:[#allocation41_spill] sm:$0xff] }
 0x16e   : > { %1129 = vadd.xlane.f32.xlu1 %v976_v41  ;;  %1127 = vadd.xlane.f32.xlu0 %v975_v38  ;;  %v15906_v41 = vld [vmem:[#allocation38_spill] sm:$0xff]  ;;  %15910 = vst [vmem:[#allocation15_spill] sm:$0xff] %v10243_v20  ;;  %v982_v42 = vmul.f32 %v10243_v20, %v10243_v20 }
 0x16f   : > { %v10220_v43 = vpop.xlane.xlu1 %604  ;;  %v10222_v15 = vpop.xlane.xlu0 %602  ;;  %v725_v38 = vmul.f32 0.0078125, %v15906_v41 }
 0x171   : > { %v10246_v19 = vsub.f32 %v15911_v12, %v725_v38  ;;  %v730_v38 = vmul.f32 0.0078125, %v15917_v17  ;;  %v15918_v12 = vld [vmem:[#allocation42_spill] sm:$0xff] }
 0x172   : > { %1133 = vadd.xlane.f32.xlu1 %v978_v39  ;;  %1131 = vadd.xlane.f32.xlu0 %v977_v36  ;;  %v979_v39 = vmul.f32 %v10232_v22, %v10232_v22  ;;  %v15915_v36 = vld [vmem:[#allocation20_spill] sm:$0xff]  ;;  %v729_v10 = vmul.f32 0.0078125, %v15918_v12  ;;  %v15921_v12 = vld [vmem:[#allocation22_spill] sm:$0xff]  ;;  %v15923_v22 = vld [vmem:[#allocation43_spill] sm:$0xff] }
 0x173   : > { %v10238_v37 = vpop.xlane.xlu1 %608  ;;  %v10240_v47 = vpop.xlane.xlu0 %606  ;;  %15912 = vst [vmem:[#allocation16_spill] sm:$0xff] %v10246_v19  ;;  %v10256_v16 = vsub.f32 %v15915_v36, %v727_v62  ;;  %v15919_v36 = vld [vmem:[#allocation21_spill] sm:$0xff]  ;;  %15950 = vst [vmem:[#allocation43_spill] sm:$0xff] %v10349_v1 }
 0x174   : > { %v10277_v17 = vsub.f32 %v15919_v36, %v730_v38  ;;  %v10280_v20 = vsub.f32 %v15921_v12, %v729_v10  ;;  %v15929_v36 = vld [vmem:[#allocation24_spill] sm:$0xff] }
 0x175   : > { %15916 = vst [vmem:[#allocation38_spill] sm:$0xff] %v10256_v16  ;;  %v983_v18 = vmul.f32 %v10256_v16, %v10256_v16  ;;  %v15927_v16 = vld [vmem:[#allocation23_spill] sm:$0xff] }
 0x176   : > { %1137 = vadd.xlane.f32.xlu1 %v980_v44  ;;  %1135 = vadd.xlane.f32.xlu0 %v979_v39  ;;  %v981_v44 = vmul.f32 %v10246_v19, %v10246_v19  ;;  %v984_v39 = vmul.f32 %v10253_v46, %v10253_v46  ;;  %15920 = vst [vmem:[#allocation39_spill] sm:$0xff] %v10277_v17  ;;  %15922 = vst [vmem:[#allocation40_spill] sm:$0xff] %v10280_v20  ;;  %v732_v19 = vmul.f32 0.0078125, %v15923_v22 }
 0x177   : > { %v10258_v41 = vpop.xlane.xlu1 %612  ;;  %v10260_v23 = vpop.xlane.xlu0 %610  ;;  %v986_v22 = vmul.f32 %v10277_v17, %v10277_v17 }
 0x178   : > { %v10291_v38 = vsub.f32 %v15927_v16, %v732_v19  ;;  %v15935_v16 = vld [vmem:[#allocation47_spill] sm:$0xff] }
 0x17a   : > { %1141 = vadd.xlane.f32.xlu1 %v982_v42  ;;  %1139 = vadd.xlane.f32.xlu0 %v981_v44  ;;  %v15924_v42 = vld [vmem:[#allocation44_spill] sm:$0xff]  ;;  %15928 = vst [vmem:[#allocation17_spill] sm:$0xff] %v10291_v38  ;;  %v988_v17 = vmul.f32 %v10291_v38, %v10291_v38 }
 0x17b   : > { %v10268_v7 = vpop.xlane.xlu1 %616  ;;  %v10270_v62 = vpop.xlane.xlu0 %614  ;;  %v731_v44 = vmul.f32 0.0078125, %v15924_v42 }
 0x17d   : > { %v10294_v10 = vsub.f32 %v15929_v36, %v731_v44  ;;  %v736_v44 = vmul.f32 0.0078125, %v15935_v16  ;;  %v15936_v36 = vld [vmem:[#allocation48_spill] sm:$0xff] }
 0x17e   : > { %1145 = vadd.xlane.f32.xlu1 %v984_v39  ;;  %1143 = vadd.xlane.f32.xlu0 %v983_v18  ;;  %v985_v39 = vmul.f32 %v10280_v20, %v10280_v20  ;;  %v15933_v18 = vld [vmem:[#allocation26_spill] sm:$0xff]  ;;  %v735_v29 = vmul.f32 0.0078125, %v15936_v36  ;;  %v15939_v36 = vld [vmem:[#allocation28_spill] sm:$0xff]  ;;  %v15941_v20 = vld [vmem:[#allocation49_spill] sm:$0xff] }
 0x17f   : > { %v10286_v46 = vpop.xlane.xlu1 %620  ;;  %v10288_v5 = vpop.xlane.xlu0 %618  ;;  %15930 = vst [vmem:[#allocation18_spill] sm:$0xff] %v10294_v10  ;;  %v10304_v12 = vsub.f32 %v15933_v18, %v733_v53  ;;  %v15937_v18 = vld [vmem:[#allocation27_spill] sm:$0xff] }
 0x180   : > { %v10325_v16 = vsub.f32 %v15937_v18, %v736_v44  ;;  %v10328_v38 = vsub.f32 %v15939_v36, %v735_v29  ;;  %v15947_v18 = vld [vmem:[#allocation30_spill] sm:$0xff] }
 0x181   : > { %15934 = vst [vmem:[#allocation20_spill] sm:$0xff] %v10304_v12  ;;  %v989_v13 = vmul.f32 %v10304_v12, %v10304_v12  ;;  %v15945_v12 = vld [vmem:[#allocation29_spill] sm:$0xff] }
 0x182   : > { %1149 = vadd.xlane.f32.xlu1 %v986_v22  ;;  %1147 = vadd.xlane.f32.xlu0 %v985_v39  ;;  %v987_v22 = vmul.f32 %v10294_v10, %v10294_v10  ;;  %v990_v39 = vmul.f32 %v10301_v8, %v10301_v8  ;;  %15938 = vst [vmem:[#allocation41_spill] sm:$0xff] %v10325_v16  ;;  %15940 = vst [vmem:[#allocation42_spill] sm:$0xff] %v10328_v38  ;;  %v738_v10 = vmul.f32 0.0078125, %v15941_v20 }
 0x183   : > { %v10306_v42 = vpop.xlane.xlu1 %624  ;;  %v10308_v19 = vpop.xlane.xlu0 %622  ;;  %v992_v20 = vmul.f32 %v10325_v16, %v10325_v16 }
 0x184   : > { %v10339_v44 = vsub.f32 %v15945_v12, %v738_v10  ;;  %v15953_v12 = vld [vmem:[#allocation53_spill] sm:$0xff] }
 0x186   : > { %1153 = vadd.xlane.f32.xlu1 %v988_v17  ;;  %1151 = vadd.xlane.f32.xlu0 %v987_v22  ;;  %v15942_v17 = vld [vmem:[#allocation50_spill] sm:$0xff]  ;;  %15946 = vst [vmem:[#allocation21_spill] sm:$0xff] %v10339_v44  ;;  %v994_v16 = vmul.f32 %v10339_v44, %v10339_v44 }
 0x187   : > { %v10316_v50 = vpop.xlane.xlu1 %628  ;;  %v10318_v53 = vpop.xlane.xlu0 %626  ;;  %v737_v22 = vmul.f32 0.0078125, %v15942_v17 }
 0x189   : > { %v10342_v29 = vsub.f32 %v15947_v18, %v737_v22  ;;  %v742_v22 = vmul.f32 0.0078125, %v15953_v12  ;;  %v15954_v18 = vld [vmem:[#allocation54_spill] sm:$0xff] }
 0x18a   : > { %1157 = vadd.xlane.f32.xlu1 %v990_v39  ;;  %1155 = vadd.xlane.f32.xlu0 %v989_v13  ;;  %v991_v39 = vmul.f32 %v10328_v38, %v10328_v38  ;;  %v15951_v13 = vld [vmem:[#allocation32_spill] sm:$0xff]  ;;  %v741_v35 = vmul.f32 0.0078125, %v15954_v18  ;;  %v15959_v18 = vld [vmem:[#allocation34_spill] sm:$0xff] }
 0x18b   : > { %v10334_v8 = vpop.xlane.xlu1 %632  ;;  %v10336_v57 = vpop.xlane.xlu0 %630  ;;  %15948 = vst [vmem:[#allocation22_spill] sm:$0xff] %v10342_v29  ;;  %v10352_v36 = vsub.f32 %v15951_v13, %v739_v28  ;;  %v15957_v13 = vld [vmem:[#allocation33_spill] sm:$0xff] }
 0x18c   : > { %v10373_v12 = vsub.f32 %v15957_v13, %v742_v22  ;;  %v10376_v44 = vsub.f32 %v15959_v18, %v741_v35  ;;  %v9193_v22 = vld [vmem:[%s9564_s15 + $0x188] sm:$0xff]  ;;  %v9194_v35 = vld [vmem:[%s9564_s15 + $0x180] sm:$0xff] }
 0x18d   : > { %15952 = vst [vmem:[#allocation44_spill] sm:$0xff] %v10352_v36  ;;  %v995_v27 = vmul.f32 %v10352_v36, %v10352_v36 }
 0x18e   : > { %1161 = vadd.xlane.f32.xlu1 %v992_v20  ;;  %1159 = vadd.xlane.f32.xlu0 %v991_v39  ;;  %v993_v20 = vmul.f32 %v10342_v29, %v10342_v29  ;;  %v996_v39 = vmul.f32 %v10349_v1, %v10349_v1  ;;  %15958 = vst [vmem:[#allocation23_spill] sm:$0xff] %v10373_v12  ;;  %15960 = vst [vmem:[#allocation24_spill] sm:$0xff] %v10376_v44  ;;  %v15964_v1 = vld [vmem:[#allocation58_spill] sm:$0xff] }
 0x18f   : > { %v10354_v17 = vpop.xlane.xlu1 %636  ;;  %v10356_v10 = vpop.xlane.xlu0 %634  ;;  %v745_v30 = vmul.f32 0.0078125, %v15964_v1 }
 0x192   : > { %1165 = vadd.xlane.f32.xlu1 %v994_v16  ;;  %1163 = vadd.xlane.f32.xlu0 %v993_v20  ;;  %v15961_v16 = vld [vmem:[#allocation55_spill] sm:$0xff]  ;;  %v15962_v20 = vld [vmem:[#allocation56_spill] sm:$0xff] }
 0x193   : > { %v10364_v58 = vpop.xlane.xlu1 %640  ;;  %v10366_v28 = vpop.xlane.xlu0 %638  ;;  %v744_v29 = vmul.f32 0.0078125, %v15961_v16  ;;  %v743_v38 = vmul.f32 0.0078125, %v15962_v20  ;;  %v998_v16 = vmul.f32 %v10373_v12, %v10373_v12  ;;  %v15971_v12 = vld [vmem:[#allocation60_spill] sm:$0xff] }
 0x194   : > { %15955 = vst [vmem:[#allocation45_spill] sm:$0xff] %v10364_v58  ;;  %15956 = vst [vmem:[#allocation46_spill] sm:$0xff] %v10366_v28  ;;  %v15963_v28 = vld [vmem:[#allocation57_spill] sm:$0xff] }
 0x195   : > { %v746_v58 = vmul.f32 0.0078125, %v15963_v28  ;;  %v10387_v13 = vsub.f32 %v9193_v22, %v744_v29  ;;  %v10390_v18 = vsub.f32 %v9194_v35, %v743_v38  ;;  %v9195_v28 = vld [vmem:[%s9564_s15 + $0x198] sm:$0xff]  ;;  %v15970_v22 = vld [vmem:[#allocation59_spill] sm:$0xff] }
 0x196   : > { %1169 = vadd.xlane.f32.xlu1 %v996_v39  ;;  %1167 = vadd.xlane.f32.xlu0 %v995_v27  ;;  %v997_v39 = vmul.f32 %v10376_v44, %v10376_v44  ;;  %v9196_v27 = vld [vmem:[%s9564_s15 + $0x190] sm:$0xff]  ;;  %v748_v35 = vmul.f32 0.0078125, %v15970_v22 }
 0x197   : > { %v10382_v24 = vpop.xlane.xlu1 %644  ;;  %v10384_v36 = vpop.xlane.xlu0 %642  ;;  %15966 = vst [vmem:[#allocation26_spill] sm:$0xff] %v10387_v13  ;;  %15967 = vst [vmem:[#allocation47_spill] sm:$0xff] %v10390_v18  ;;  %v10397_v1 = vsub.f32 %v9195_v28, %v746_v58  ;;  %v10400_v20 = vsub.f32 %v9196_v27, %v745_v30  ;;  %v9197_v27 = vld [vmem:[%s9564_s15 + $0x1a8] sm:$0xff] }
 0x198   : > { %15965 = vst [vmem:[#allocation25_spill] sm:$0xff] %v10384_v36  ;;  %v747_v36 = vmul.f32 0.0078125, %v15971_v12  ;;  %v10421_v22 = vsub.f32 %v9197_v27, %v748_v35  ;;  %v9199_v35 = vld [vmem:[%s9564_s15 + $0x1b8] sm:$0xff] }
 0x199   : > { %15968 = vst [vmem:[#allocation48_spill] sm:$0xff] %v10397_v1  ;;  %15969 = vst [vmem:[#allocation27_spill] sm:$0xff] %v10400_v20  ;;  %v1002_v28 = vmul.f32 %v10397_v1, %v10397_v1  ;;  %v1001_v12 = vmul.f32 %v10400_v20, %v10400_v20  ;;  %v752_v1 = vmul.f32 0.0078125, %v9968_v61  ;;  %v9201_v61 = vld [vmem:[%s9564_s15 + $0x1c8] sm:$0xff] }
 0x19a   : > { %1173 = vadd.xlane.f32.xlu1 %v998_v16  ;;  %1171 = vadd.xlane.f32.xlu0 %v997_v39  ;;  %v1000_v16 = vmul.f32 %v10387_v13, %v10387_v13  ;;  %v999_v39 = vmul.f32 %v10390_v18, %v10390_v18  ;;  %15973 = vst [vmem:[#allocation49_spill] sm:$0xff] %v10421_v22  ;;  %v9198_v13 = vld [vmem:[%s9564_s15 + $0x1a0] sm:$0xff]  ;;  %v751_v18 = vmul.f32 0.0078125, %v9970_v34 }
 0x19b   : > { %v10402_v29 = vpop.xlane.xlu1 %648  ;;  %v10404_v38 = vpop.xlane.xlu0 %646  ;;  %v10424_v44 = vsub.f32 %v9198_v13, %v747_v36  ;;  %v9200_v36 = vld [vmem:[%s9564_s15 + $0x1b0] sm:$0xff]  ;;  %v10445_v34 = vsub.f32 %v9201_v61, %v752_v1 }
 0x19d   : > { %15974 = vst [vmem:[#allocation50_spill] sm:$0xff] %v10424_v44  ;;  %15977 = vst [vmem:[#allocation29_spill] sm:$0xff] %v10445_v34  ;;  %v1008_v61 = vmul.f32 %v10445_v34, %v10445_v34  ;;  %v758_v34 = vmul.f32 0.0078125, %v10028_v6  ;;  %v9207_v6 = vld [vmem:[%s9564_s15 + $0x1f8] sm:$0xff] }
 0x19e   : > { %1177 = vadd.xlane.f32.xlu1 %v1000_v16  ;;  %1175 = vadd.xlane.f32.xlu0 %v999_v39  ;;  %v750_v16 = vmul.f32 0.0078125, %v9951_v33  ;;  %v749_v39 = vmul.f32 0.0078125, %v9953_v32  ;;  %v1004_v32 = vmul.f32 %v10421_v22, %v10421_v22  ;;  %v1003_v33 = vmul.f32 %v10424_v44, %v10424_v44 }
 0x19f   : > { %v10412_v58 = vpop.xlane.xlu1 %652  ;;  %v10414_v30 = vpop.xlane.xlu0 %650 }
 0x1a0   : > { %15972 = vst [vmem:[#allocation28_spill] sm:$0xff] %v10414_v30  ;;  %v10435_v27 = vsub.f32 %v9199_v35, %v750_v16  ;;  %v10438_v13 = vsub.f32 %v9200_v36, %v749_v39  ;;  %v754_v35 = vmul.f32 0.0078125, %v9983_v60  ;;  %v753_v36 = vmul.f32 0.0078125, %v9985_v48  ;;  %v9203_v48 = vld [vmem:[%s9564_s15 + $0x1d8] sm:$0xff] }
 0x1a2   : > { %1181 = vadd.xlane.f32.xlu1 %v1002_v28  ;;  %1179 = vadd.xlane.f32.xlu0 %v1001_v12  ;;  %15975 = vst [vmem:[#allocation51_spill] sm:$0xff] %v10435_v27  ;;  %15976 = vst [vmem:[#allocation52_spill] sm:$0xff] %v10438_v13  ;;  %v9202_v28 = vld [vmem:[%s9564_s15 + $0x1c0] sm:$0xff] }
 0x1a3   : > { %v10430_v30 = vpop.xlane.xlu1 %656  ;;  %v10432_v20 = vpop.xlane.xlu0 %654  ;;  %v10448_v12 = vsub.f32 %v9202_v28, %v751_v18  ;;  %v10469_v28 = vsub.f32 %v9203_v48, %v754_v35  ;;  %v9205_v35 = vld [vmem:[%s9564_s15 + $0x1e8] sm:$0xff] }
 0x1a5   : > { %15978 = vst [vmem:[#allocation30_spill] sm:$0xff] %v10448_v12  ;;  %v1007_v60 = vmul.f32 %v10448_v12, %v10448_v12  ;;  %15979 = vst [vmem:[#allocation31_spill] sm:$0xff] %v10469_v28 }
 0x1a6   : > { %1185 = vadd.xlane.f32.xlu1 %v1004_v32  ;;  %1183 = vadd.xlane.f32.xlu0 %v1003_v33  ;;  %v1006_v32 = vmul.f32 %v10435_v27, %v10435_v27  ;;  %v1005_v33 = vmul.f32 %v10438_v13, %v10438_v13  ;;  %v9204_v27 = vld [vmem:[%s9564_s15 + $0x1d0] sm:$0xff]  ;;  %v757_v13 = vmul.f32 0.0078125, %v10030_v4  ;;  %v10493_v4 = vsub.f32 %v9207_v6, %v758_v34 }
 0x1a7   : > { %v10450_v16 = vpop.xlane.xlu1 %660  ;;  %v10452_v39 = vpop.xlane.xlu0 %658  ;;  %v10472_v44 = vsub.f32 %v9204_v27, %v753_v36  ;;  %v9206_v27 = vld [vmem:[%s9564_s15 + $0x1e0] sm:$0xff] }
 0x1a8   : > { %15983 = vst [vmem:[#allocation33_spill] sm:$0xff] %v10493_v4  ;;  %v1014_v6 = vmul.f32 %v10493_v4, %v10493_v4  ;;  %v763_v4 = vmul.f32 0.0078125, %v10096_v49  ;;  %v765_v49 = vmul.f32 0.0078125, %v10117_v59 }
 0x1a9   : > { %15980 = vst [vmem:[#allocation32_spill] sm:$0xff] %v10472_v44 }
 0x1aa   : > { %1189 = vadd.xlane.f32.xlu1 %v1006_v32  ;;  %1187 = vadd.xlane.f32.xlu0 %v1005_v33  ;;  %v756_v32 = vmul.f32 0.0078125, %v10003_v3  ;;  %v755_v33 = vmul.f32 0.0078125, %v10005_v25  ;;  %v1010_v3 = vmul.f32 %v10469_v28, %v10469_v28  ;;  %v1009_v25 = vmul.f32 %v10472_v44, %v10472_v44 }
 0x1ab   : > { %v10460_v1 = vpop.xlane.xlu1 %664  ;;  %v10462_v18 = vpop.xlane.xlu0 %662 }
 0x1ac   : > { %v10483_v48 = vsub.f32 %v9205_v35, %v756_v32  ;;  %v10486_v36 = vsub.f32 %v9206_v27, %v755_v33  ;;  %v760_v35 = vmul.f32 0.0078125, %v10049_v52  ;;  %v759_v27 = vmul.f32 0.0078125, %v10051_v9  ;;  %v9209_v9 = vld [vmem:[%s9564_s15 + $0x208] sm:$0xff] }
 0x1ae   : > { %1193 = vadd.xlane.f32.xlu1 %v1008_v61  ;;  %1191 = vadd.xlane.f32.xlu0 %v1007_v60  ;;  %15981 = vst [vmem:[#allocation53_spill] sm:$0xff] %v10483_v48  ;;  %15982 = vst [vmem:[#allocation54_spill] sm:$0xff] %v10486_v36  ;;  %v9208_v61 = vld [vmem:[%s9564_s15 + $0x1f0] sm:$0xff] }
 0x1af   : > { %v10478_v22 = vpop.xlane.xlu1 %668  ;;  %v10480_v12 = vpop.xlane.xlu0 %666  ;;  %v10496_v60 = vsub.f32 %v9208_v61, %v757_v13  ;;  %v10517_v61 = vsub.f32 %v9209_v9, %v760_v35 }
 0x1b1   : > { %15984 = vst [vmem:[#allocation34_spill] sm:$0xff] %v10496_v60  ;;  %v1013_v52 = vmul.f32 %v10496_v60, %v10496_v60  ;;  %15985 = vst [vmem:[#allocation55_spill] sm:$0xff] %v10517_v61  ;;  %v766_v60 = vmul.f32 0.0078125, %v10115_v11  ;;  %v9213_v11 = vld [vmem:[%s9564_s15 + $0x228] sm:$0xff] }
 0x1b2   : > { %1197 = vadd.xlane.f32.xlu1 %v1010_v3  ;;  %1195 = vadd.xlane.f32.xlu0 %v1009_v25  ;;  %v1012_v3 = vmul.f32 %v10483_v48, %v10483_v48  ;;  %v1011_v25 = vmul.f32 %v10486_v36, %v10486_v36  ;;  %v9210_v48 = vld [vmem:[%s9564_s15 + $0x200] sm:$0xff]  ;;  %v764_v36 = vmul.f32 0.0078125, %v10094_v2 }
 0x1b3   : > { %v10498_v32 = vpop.xlane.xlu1 %672  ;;  %v10500_v33 = vpop.xlane.xlu0 %670  ;;  %v10520_v44 = vsub.f32 %v9210_v48, %v759_v27  ;;  %v9211_v48 = vld [vmem:[%s9564_s15 + $0x218] sm:$0xff] }
 0x1b5   : > { %15986 = vst [vmem:[#allocation56_spill] sm:$0xff] %v10520_v44  ;;  %v1015_v2 = vmul.f32 %v10520_v44, %v10520_v44  ;;  %v770_v44 = vmul.f32 0.0078125, %v10162_v56  ;;  %v9217_v56 = vld [vmem:[%s9564_s15 + $0x248] sm:$0xff] }
 0x1b6   : > { %1201 = vadd.xlane.f32.xlu1 %v1012_v3  ;;  %1199 = vadd.xlane.f32.xlu0 %v1011_v25  ;;  %v762_v3 = vmul.f32 0.0078125, %v10069_v54  ;;  %v761_v25 = vmul.f32 0.0078125, %v10071_v55  ;;  %v9212_v54 = vld [vmem:[%s9564_s15 + $0x210] sm:$0xff]  ;;  %v1016_v55 = vmul.f32 %v10517_v61, %v10517_v61 }
 0x1b7   : > { %v10508_v34 = vpop.xlane.xlu1 %676  ;;  %v10510_v13 = vpop.xlane.xlu0 %674  ;;  %v9228_v61 = vld [vmem:[%s9564_s15 + $0x290] sm:$0xff] }
 0x1b8   : > { %v10532_v27 = vsub.f32 %v9211_v48, %v762_v3  ;;  %v10535_v9 = vsub.f32 %v9212_v54, %v761_v25  ;;  %v768_v3 = vmul.f32 0.0078125, %v10136_v45  ;;  %v9215_v25 = vld [vmem:[%s9564_s15 + $0x238] sm:$0xff]  ;;  %v767_v54 = vmul.f32 0.0078125, %v10138_v0 }
 0x1b9   : > { %v10550_v48 = vsub.f32 %v9215_v25, %v766_v60  ;;  %v9218_v25 = vld [vmem:[%s9564_s15 + $0x240] sm:$0xff] }
 0x1ba   : > { %1205 = vadd.xlane.f32.xlu1 %v1014_v6  ;;  %1203 = vadd.xlane.f32.xlu0 %v1013_v52  ;;  %15988 = vst [vmem:[#allocation58_spill] sm:$0xff] %v10532_v27  ;;  %15989 = vst [vmem:[#allocation59_spill] sm:$0xff] %v10535_v9  ;;  %v10543_v6 = vsub.f32 %v9213_v11, %v764_v36  ;;  %v9214_v52 = vld [vmem:[%s9564_s15 + $0x220] sm:$0xff]  ;;  %v772_v11 = vmul.f32 0.0078125, %v10172_v21  ;;  %v1018_v45 = vmul.f32 %v10532_v27, %v10532_v27 }
 0x1bb   : > { %v10527_v28 = vpop.xlane.xlu1 %680  ;;  %v10529_v35 = vpop.xlane.xlu0 %678  ;;  %15992 = vst [vmem:[#allocation86_spill] sm:$0xff] %v10550_v48  ;;  %v1017_v60 = vmul.f32 %v10535_v9, %v10535_v9  ;;  %v10576_v9 = vsub.f32 %v9218_v25, %v767_v54  ;;  %v773_v25 = vmul.f32 0.0078125, %v10192_v63  ;;  %v777_v27 = vmul.f32 0.0078125, %v10222_v15 }
 0x1bc   : > { %15987 = vst [vmem:[#allocation57_spill] sm:$0xff] %v10529_v35  ;;  %15990 = vst [vmem:[#allocation60_spill] sm:$0xff] %v10543_v6  ;;  %v10546_v35 = vsub.f32 %v9214_v52, %v763_v4  ;;  %v769_v4 = vmul.f32 0.0078125, %v10164_v51  ;;  %v771_v52 = vmul.f32 0.0078125, %v10174_v31  ;;  %v1020_v51 = vmul.f32 %v10543_v6, %v10543_v6 }
 0x1bd   : > { %15995 = vst [vmem:[#allocation89_spill] sm:$0xff] %v10576_v9  ;;  %v779_v63 = vmul.f32 0.0078125, %v10240_v47  ;;  %v782_v15 = vmul.f32 0.0078125, %v10258_v41  ;;  %v1023_v47 = vmul.f32 %v10576_v9, %v10576_v9 }
 0x1be   : > { %15991 = vst [vmem:[#allocation85_spill] sm:$0xff] %v10546_v35  ;;  %1209 = vadd.xlane.f32.xlu1 %v1016_v55  ;;  %1207 = vadd.xlane.f32.xlu0 %v1015_v2  ;;  %v9216_v55 = vld [vmem:[%s9564_s15 + $0x230] sm:$0xff]  ;;  %v10568_v2 = vsub.f32 %v9217_v56, %v768_v3  ;;  %v1019_v21 = vmul.f32 %v10546_v35, %v10546_v35  ;;  %v774_v3 = vmul.f32 0.0078125, %v10190_v26  ;;  %v9221_v35 = vld [vmem:[%s9564_s15 + $0x268] sm:$0xff]  ;;  %v775_v26 = vmul.f32 0.0078125, %v10212_v14  ;;  %v9223_v14 = vld [vmem:[%s9564_s15 + $0x278] sm:$0xff] }
 0x1bf   : > { %v10554_v59 = vpop.xlane.xlu1 %684  ;;  %v10556_v36 = vpop.xlane.xlu0 %682  ;;  %v10565_v0 = vsub.f32 %v9216_v55, %v765_v49  ;;  %v9219_v49 = vld [vmem:[%s9564_s15 + $0x258] sm:$0xff]  ;;  %v10592_v54 = vsub.f32 %v9221_v35, %v772_v11  ;;  %v780_v35 = vmul.f32 0.0078125, %v10238_v37 }
 0x1c0   : > { %15994 = vst [vmem:[#allocation88_spill] sm:$0xff] %v10568_v2  ;;  %v10579_v55 = vsub.f32 %v9219_v49, %v770_v44  ;;  %v776_v44 = vmul.f32 0.0078125, %v10210_v40  ;;  %v778_v49 = vmul.f32 0.0078125, %v10220_v43  ;;  %v1024_v40 = vmul.f32 %v10568_v2, %v10568_v2  ;;  %v9226_v2 = vld [vmem:[%s9564_s15 + $0x280] sm:$0xff] }
 0x1c1   : > { %15993 = vst [vmem:[#allocation87_spill] sm:$0xff] %v10565_v0  ;;  %15998 = vst [vmem:[#allocation92_spill] sm:$0xff] %v10592_v54  ;;  %v10609_v43 = vsub.f32 %v9223_v14, %v774_v3  ;;  %v9225_v3 = vld [vmem:[%s9564_s15 + $0x288] sm:$0xff]  ;;  %v10630_v14 = vmul.f32 %v10592_v54, %v10592_v54  ;;  %v10633_v9 = vsub.f32 %v9226_v2, %v775_v26 }
 0x1c2   : > { %1213 = vadd.xlane.f32.xlu1 %v1018_v45  ;;  %1211 = vadd.xlane.f32.xlu0 %v1017_v60  ;;  %15996 = vst [vmem:[#allocation90_spill] sm:$0xff] %v10579_v55  ;;  %v1022_v45 = vmul.f32 %v10550_v48, %v10550_v48  ;;  %v9220_v60 = vld [vmem:[%s9564_s15 + $0x250] sm:$0xff]  ;;  %v1021_v48 = vmul.f32 %v10565_v0, %v10565_v0  ;;  %v9227_v0 = vld [vmem:[%s9564_s15 + $0x298] sm:$0xff] }
 0x1c3   : > { %v10582_v56 = vpop.xlane.xlu1 %688  ;;  %v10584_v31 = vpop.xlane.xlu0 %686  ;;  %v10589_v6 = vsub.f32 %v9220_v60, %v769_v4  ;;  %v9222_v4 = vld [vmem:[%s9564_s15 + $0x260] sm:$0xff]  ;;  %16000 = vst [vmem:[#allocation94_spill] sm:$0xff] %v10609_v43  ;;  %v1026_v37 = vmul.f32 %v10579_v55, %v10579_v55  ;;  %16005 = vst [vmem:[#allocation99_spill] sm:$0xff] %v10633_v9  ;;  %v10636_v55 = vsub.f32 %v9227_v0, %v778_v49  ;;  %v9231_v0 = vld [vmem:[%s9564_s15 + $0x2b8] sm:$0xff] }
 0x1c4   : > { %v10602_v60 = vsub.f32 %v9222_v4, %v771_v52  ;;  %v10624_v4 = vsub.f32 %v9225_v3, %v776_v44  ;;  %v781_v44 = vmul.f32 0.0078125, %v10260_v23  ;;  %v10653_v26 = vsub.f32 %v9231_v0, %v782_v15 }
 0x1c5   : > { %15997 = vst [vmem:[#allocation91_spill] sm:$0xff] %v10589_v6  ;;  %v1025_v41 = vmul.f32 %v10589_v6, %v10589_v6  ;;  %16006 = vst [vmem:[#allocation100_spill] sm:$0xff] %v10636_v55  ;;  %v9230_v6 = vld [vmem:[%s9564_s15 + $0x2a0] sm:$0xff]  ;;  %v783_v23 = vmul.f32 0.0078125, %v10270_v62  ;;  %v10674_v15 = vmul.f32 %v10633_v9, %v10633_v9  ;;  %v9233_v9 = vld [vmem:[%s9564_s15 + $0x2c8] sm:$0xff] }
 0x1c6   : > { %15999 = vst [vmem:[#allocation93_spill] sm:$0xff] %v10602_v60  ;;  %1217 = vadd.xlane.f32.xlu1 %v1020_v51  ;;  %1215 = vadd.xlane.f32.xlu0 %v1019_v21  ;;  %v9224_v51 = vld [vmem:[%s9564_s15 + $0x270] sm:$0xff]  ;;  %16004 = vst [vmem:[#allocation98_spill] sm:$0xff] %v10624_v4  ;;  %v10650_v2 = vmul.f32 %v10602_v60, %v10602_v60 }
 0x1c7   : > { %v10612_v11 = vpop.xlane.xlu1 %692  ;;  %v10614_v52 = vpop.xlane.xlu0 %690  ;;  %v10621_v21 = vsub.f32 %v9224_v51, %v773_v25  ;;  %v10639_v25 = vsub.f32 %v9228_v61, %v777_v27  ;;  %v9229_v51 = vld [vmem:[%s9564_s15 + $0x2a8] sm:$0xff]  ;;  %16010 = vst [vmem:[#allocation104_spill] sm:$0xff] %v10653_v26  ;;  %v784_v61 = vmul.f32 0.0078125, %v10268_v7  ;;  %v9232_v7 = vld [vmem:[%s9564_s15 + $0x2b0] sm:$0xff] }
 0x1c8   : > { %16001 = vst [vmem:[#allocation95_spill] sm:$0xff] %v10612_v11  ;;  %16002 = vst [vmem:[#allocation96_spill] sm:$0xff] %v10614_v52  ;;  %v10643_v3 = vsub.f32 %v9229_v51, %v780_v35  ;;  %v10646_v52 = vsub.f32 %v9230_v6, %v779_v63  ;;  %v10659_v35 = vmul.f32 %v10609_v43, %v10609_v43 }
 0x1c9   : > { %16003 = vst [vmem:[#allocation97_spill] sm:$0xff] %v10621_v21  ;;  %16007 = vst [vmem:[#allocation101_spill] sm:$0xff] %v10639_v25  ;;  %v10667_v63 = vmul.f32 %v10624_v4, %v10624_v4  ;;  %v10670_v62 = vsub.f32 %v9232_v7, %v781_v44  ;;  %v10678_v51 = vmul.f32 %v10636_v55, %v10636_v55  ;;  %v9234_v55 = vld [vmem:[%s9564_s15 + $0x2c0] sm:$0xff] }
 0x1ca   : > { %16008 = vst [vmem:[#allocation102_spill] sm:$0xff] %v10643_v3  ;;  %16009 = vst [vmem:[#allocation103_spill] sm:$0xff] %v10646_v52  ;;  %1221 = vadd.xlane.f32.xlu1 %v1022_v45  ;;  %1219 = vadd.xlane.f32.xlu0 %v1021_v48  ;;  %v10663_v45 = vmul.f32 %v10621_v21, %v10621_v21  ;;  %v10682_v0 = vmul.f32 %v10639_v25, %v10639_v25  ;;  %v786_v25 = vmul.f32 0.0078125, %v10286_v46 }
 0x1cb   : > { %v1082_v27 = vpop.xlane.xlu1 %1081  ;;  %v1080_v49 = vpop.xlane.xlu0 %1079  ;;  %16011 = vst [vmem:[#allocation105_spill] sm:$0xff] %v10670_v62  ;;  %v10686_v44 = vmul.f32 %v10643_v3, %v10643_v3  ;;  %v10690_v7 = vmul.f32 %v10646_v52, %v10646_v52  ;;  %v10693_v4 = vsub.f32 %v9233_v9, %v784_v61  ;;  %v10696_v21 = vsub.f32 %v9234_v55, %v783_v23 }
 0x1cc   : > { %v1336_v6 = vmul.f32 0.0078125, %v1082_v27  ;;  %v1335_v48 = vmul.f32 0.0078125, %v1080_v49  ;;  %v788_v9 = vmul.f32 0.0078125, %v10306_v42  ;;  %v787_v61 = vmul.f32 0.0078125, %v10308_v19 }
 0x1cd   : > { %16012 = vst [vmem:[#allocation106_spill] sm:$0xff] %v10693_v4  ;;  %16013 = vst [vmem:[#allocation107_spill] sm:$0xff] %v10696_v21  ;;  %v10708_v46 = vmul.f32 %v10670_v62, %v10670_v62  ;;  %v790_v55 = vmul.f32 0.0078125, %v10316_v50  ;;  %v789_v23 = vmul.f32 0.0078125, %v10318_v53  ;;  %v792_v19 = vmul.f32 0.0078125, %v10334_v8  ;;  %v9237_v8 = vld [vmem:[%s9564_s15 + $0x2e8] sm:$0xff] }
 0x1ce   : > { %v1464_v27 = vadd.f32 1e-05, %v1336_v6  ;;  %v1463_v49 = vadd.f32 1e-05, %v1335_v48  ;;  %1225 = vadd.xlane.f32.xlu1 %v1024_v40  ;;  %1223 = vadd.xlane.f32.xlu0 %v1023_v47  ;;  %v10701_v40 = vmul.f32 %v10653_v26, %v10653_v26  ;;  %v785_v47 = vmul.f32 0.0078125, %v10288_v5  ;;  %v9239_v62 = vld [vmem:[%s9564_s15 + $0x2f8] sm:$0xff] }
 0x1cf   : > { %v1086_v6 = vpop.xlane.xlu1 %1085  ;;  %v1084_v48 = vpop.xlane.xlu0 %1083  ;;  %v10718_v50 = vmul.f32 %v10693_v4, %v10693_v4  ;;  %v10722_v53 = vmul.f32 %v10696_v21, %v10696_v21  ;;  %v791_v4 = vmul.f32 0.0078125, %v10336_v57  ;;  %v10735_v43 = vsub.f32 %v9239_v62, %v790_v55  ;;  %v9240_v21 = vld [vmem:[%s9564_s15 + $0x2f0] sm:$0xff] }
 0x1d0   : > { %8409 = vrsqrt.f32 %v1464_v27  ;;  %v1338_v52 = vmul.f32 0.0078125, %v1086_v6  ;;  %v1337_v3 = vmul.f32 0.0078125, %v1084_v48  ;;  %v9235_v27 = vld [vmem:[%s9564_s15 + $0x2d8] sm:$0xff]  ;;  %v9238_v48 = vld [vmem:[%s9564_s15 + $0x2e0] sm:$0xff]  ;;  %v10738_v60 = vsub.f32 %v9240_v21, %v789_v23 }
 0x1d1   : > { %8411 = vrsqrt.f32 %v1463_v49  ;;  %v10713_v42 = vsub.f32 %v9235_v27, %v786_v25  ;;  %v10731_v27 = vsub.f32 %v9238_v48, %v787_v61  ;;  %16018 = vst [vmem:[#allocation112_spill] sm:$0xff] %v10735_v43  ;;  %v794_v61 = vmul.f32 0.0078125, %v10354_v17 }
 0x1d2   : > { %v1466_v26 = vadd.f32 1e-05, %v1338_v52  ;;  %v1465_v5 = vadd.f32 1e-05, %v1337_v3  ;;  %1229 = vadd.xlane.f32.xlu1 %v1026_v37  ;;  %1227 = vadd.xlane.f32.xlu0 %v1025_v41  ;;  %v9236_v52 = vld [vmem:[%s9564_s15 + $0x2d0] sm:$0xff]  ;;  %v10728_v3 = vsub.f32 %v9237_v8, %v788_v9  ;;  %16019 = vst [vmem:[#allocation113_spill] sm:$0xff] %v10738_v60  ;;  %v10779_v8 = vmul.f32 %v10738_v60, %v10738_v60 }
 0x1d3   : > { %16014 = vst [vmem:[#allocation108_spill] sm:$0xff] %v10713_v42  ;;  %v1090_v49 = vpop.xlane.xlu1 %1089  ;;  %v1088_v6 = vpop.xlane.xlu0 %1087  ;;  %v10725_v37 = vsub.f32 %v9236_v52, %v785_v47  ;;  %16017 = vst [vmem:[#allocation111_spill] sm:$0xff] %v10731_v27  ;;  %v9241_v9 = vld [vmem:[%s9564_s15 + $0x308] sm:$0xff]  ;;  %v793_v57 = vmul.f32 0.0078125, %v10356_v10  ;;  %v10749_v21 = vmul.f32 %v10713_v42, %v10713_v42  ;;  %v10764_v10 = vmul.f32 %v10731_v27, %v10731_v27  ;;  %v16025_v60 = vld [vmem:[#allocation61_spill] sm:$0xff] }
 0x1d4   : > { %8413 = vrsqrt.f32 %v1466_v26  ;;  %v1340_v41 = vmul.f32 0.0078125, %v1090_v49  ;;  %v1339_v25 = vmul.f32 0.0078125, %v1088_v6  ;;  %16016 = vst [vmem:[#allocation110_spill] sm:$0xff] %v10728_v3  ;;  %v10743_v49 = vsub.f32 %v9241_v9, %v792_v19 }
 0x1d5   : > { %16015 = vst [vmem:[#allocation109_spill] sm:$0xff] %v10725_v37  ;;  %8415 = vrsqrt.f32 %v1465_v5  ;;  %v10760_v17 = vmul.f32 %v10728_v3, %v10728_v3 }
 0x1d6   : > { %v1468_v26 = vadd.f32 1e-05, %v1340_v41  ;;  %v1467_v47 = vadd.f32 1e-05, %v1339_v25  ;;  %1233 = vadd.xlane.f32.xlu1 %v10630_v14  ;;  %1231 = vadd.xlane.f32.xlu0 %v10650_v2  ;;  %16020 = vst [vmem:[#allocation114_spill] sm:$0xff] %v10743_v49  ;;  %v10753_v14 = vmul.f32 %v10725_v37, %v10725_v37  ;;  %v9242_v2 = vld [vmem:[%s9564_s15 + $0x300] sm:$0xff]  ;;  %v10775_v25 = vmul.f32 %v10735_v43, %v10735_v43 }
 0x1d7   : > { %v1094_v5 = vpop.xlane.xlu1 %1093  ;;  %v1092_v62 = vpop.xlane.xlu0 %1091  ;;  %v10756_v19 = vsub.f32 %v9242_v2, %v791_v4  ;;  %v10771_v4 = vld [vmem:[%s15377_s1] ss:$0 sm:$0xff] }
 0x1d8   : > { %8417 = vrsqrt.f32 %v1468_v26  ;;  %v1342_v55 = vmul.f32 0.0078125, %v1094_v5  ;;  %v1341_v23 = vmul.f32 0.0078125, %v1092_v62  ;;  %v9243_v26 = vld [vmem:[%s9564_s15 + $0x318] sm:$0xff] }
 0x1d9   : > { %16021 = vst [vmem:[#allocation115_spill] sm:$0xff] %v10756_v19  ;;  %8419 = vrsqrt.f32 %v1467_v47  ;;  %v10782_v47 = vsub.f32 %v9243_v26, %v794_v61  ;;  %v16024_v62 = vld [vmem:[#allocation62_spill] sm:$0xff]  ;;  %v10796_v61 = vld [vmem:[%s15378_s2] ss:$0 sm:$0xff] }
 0x1da   : > { %v8410_v6 = vpop.eup %8409  ;;  %v1470_v52 = vadd.f32 1e-05, %v1342_v55  ;;  %v1469_v41 = vadd.f32 1e-05, %v1341_v23  ;;  %1237 = vadd.xlane.f32.xlu1 %v10659_v35  ;;  %1235 = vadd.xlane.f32.xlu0 %v10663_v45  ;;  %v9244_v35 = vld [vmem:[%s9564_s15 + $0x310] sm:$0xff]  ;;  %v10790_v23 = vmul.f32 %v10743_v49, %v10743_v49 }
 0x1db   : > { %v8412_v48 = vpop.eup %8411  ;;  %16022 = vst [vmem:[#allocation116_spill] sm:$0xff] %v10782_v47  ;;  %v10785_v9 = vsub.f32 %v9244_v35, %v793_v57  ;;  %v1098_v45 = vpop.xlane.xlu1 %1097  ;;  %v1720_v55 = vmul.f32 %v8410_v6, %v16024_v62  ;;  %v16026_v57 = vld [vmem:[#allocation45_spill] sm:$0xff]  ;;  %v10802_v6 = vmul.f32 %v10756_v19, %v10756_v19  ;;  %v16028_v19 = vld [vmem:[#allocation64_spill] sm:$0xff] }
 0x1dc   : > { %v1096_v5 = vpop.xlane.xlu0 %1095  ;;  %8421 = vrsqrt.f32 %v1470_v52  ;;  %v1344_v2 = vmul.f32 0.0078125, %v1098_v45  ;;  %v1719_v27 = vmul.f32 %v8412_v48, %v16025_v60  ;;  %v796_v26 = vmul.f32 0.0078125, %v16026_v57  ;;  %v16027_v52 = vld [vmem:[#allocation46_spill] sm:$0xff] }
 0x1dd   : > { %16023 = vst [vmem:[#allocation117_spill] sm:$0xff] %v10785_v9  ;;  %v1343_v43 = vmul.f32 0.0078125, %v1096_v5  ;;  %8423 = vrsqrt.f32 %v1469_v41  ;;  %v1855_v35 = vmul.f32 %v10771_v4, %v1720_v55  ;;  %v795_v45 = vmul.f32 0.0078125, %v16027_v52 }
 0x1de   : > { %v8414_v62 = vpop.eup %8413  ;;  %v1472_v5 = vadd.f32 1e-05, %v1344_v2  ;;  %1241 = vadd.xlane.f32.xlu1 %v10667_v63  ;;  %1239 = vadd.xlane.f32.xlu0 %v10674_v15  ;;  %v1854_v48 = vmul.f32 %v10771_v4, %v1719_v27  ;;  %v10812_v52 = vmul.f32 %v10782_v47, %v10782_v47  ;;  %v9245_v2 = vld [vmem:[%s9564_s15 + $0x328] sm:$0xff]  ;;  %v9246_v47 = vld [vmem:[%s9564_s15 + $0x320] sm:$0xff] }
 0x1df   : > { %v1471_v60 = vadd.f32 1e-05, %v1343_v43  ;;  %v8416_v57 = vpop.eup %8415  ;;  %v1102_v41 = vpop.xlane.xlu1 %1101  ;;  %v1990_v49 = vadd.f32 %v10796_v61, %v1855_v35  ;;  %v1722_v3 = vmul.f32 %v8414_v62, %v16028_v19  ;;  %v10816_v43 = vmul.f32 %v10785_v9, %v10785_v9  ;;  %v16029_v35 = vld [vmem:[#allocation63_spill] sm:$0xff] }
 0x1e0   : > { %v1100_v55 = vpop.xlane.xlu0 %1099  ;;  %8425 = vrsqrt.f32 %v1472_v5  ;;  %v1346_v63 = vmul.f32 0.0078125, %v1102_v41  ;;  %v1989_v27 = vadd.f32 %v10796_v61, %v1854_v48  ;;  %v10820_v37 = vsub.f32 %v9245_v2, %v796_v26  ;;  %v16030_v41 = vld [vmem:[#allocation25_spill] sm:$0xff] }
 0x1e1   : > { %v1345_v15 = vmul.f32 0.0078125, %v1100_v55  ;;  %8427 = vrsqrt.f32 %v1471_v60  ;;  %v1721_v42 = vmul.f32 %v8416_v57, %v16029_v35  ;;  %v1857_v19 = vmul.f32 %v10771_v4, %v1722_v3 }
 0x1e2   : > { %v8418_v62 = vpop.eup %8417  ;;  %v10825_v54 = vsub.f32 %v9246_v47, %v795_v45  ;;  %v798_v9 = vmul.f32 0.0078125, %v10382_v24  ;;  %v1474_v11 = vadd.f32 1e-05, %v1346_v63  ;;  %8113 = vmatprep.mubr.f32.mxu0 %v1989_v27  ;;  %1245 = vadd.xlane.f32.xlu1 %v10678_v51  ;;  %v797_v26 = vmul.f32 0.0078125, %v16030_v41  ;;  %v16031_v45 = vld [vmem:[#allocation65_spill] sm:$0xff] }
 0x1e3   : > { %v1473_v5 = vadd.f32 1e-05, %v1345_v15  ;;  %v8420_v48 = vpop.eup %8419  ;;  %1243 = vadd.xlane.f32.xlu0 %v10682_v0  ;;  %8114 = vmatmul.mubr.f32.vlgmr.msra.gmra.mrb[0].mxu0 %v1990_v49  ;;  %v1106_v60 = vpop.xlane.xlu1 %1105  ;;  %v1856_v57 = vmul.f32 %v10771_v4, %v1721_v42  ;;  %v1992_v47 = vadd.f32 %v10796_v61, %v1857_v19  ;;  %v1724_v24 = vmul.f32 %v8418_v62, %v16031_v45  ;;  %v16032_v15 = vld [vmem:[#allocation66_spill] sm:$0xff] }
 0x1e4   : > { %v1104_v3 = vpop.xlane.xlu0 %1103  ;;  %8429 = vrsqrt.f32 %v1474_v11  ;;  %v1348_v55 = vmul.f32 0.0078125, %v1106_v60  ;;  %v1723_v51 = vmul.f32 %v8420_v48, %v16032_v15  ;;  %v10839_v49 = vmul.f32 %v10820_v37, %v10820_v37  ;;  %v9247_v42 = vld [vmem:[%s9564_s15 + $0x338] sm:$0xff] }
 0x1e5   : > { %v1347_v63 = vmul.f32 0.0078125, %v1104_v3  ;;  %8431 = vrsqrt.f32 %v1473_v5  ;;  %v1991_v27 = vadd.f32 %v10796_v61, %v1856_v57  ;;  %v1859_v0 = vmul.f32 %v10771_v4, %v1724_v24  ;;  %v16033_v57 = vld [vmem:[#allocation67_spill] sm:$0xff] }
 0x1e6   : > { %v8422_v2 = vpop.eup %8421  ;;  %v10842_v35 = vsub.f32 %v9247_v42, %v798_v9  ;;  %v1476_v19 = vadd.f32 1e-05, %v1348_v55  ;;  %1249 = vadd.xlane.f32.xlu1 %v10686_v44  ;;  %v1858_v11 = vmul.f32 %v10771_v4, %v1723_v51  ;;  %v800_v5 = vmul.f32 0.0078125, %v10402_v29  ;;  %v16034_v55 = vld [vmem:[#allocation68_spill] sm:$0xff] }
 0x1e7   : > { %v1475_v62 = vadd.f32 1e-05, %v1347_v63  ;;  %v8424_v48 = vpop.eup %8423  ;;  %8116 = vmatprep.mubr.f32.mxu0 %v1991_v27  ;;  %1247 = vadd.xlane.f32.xlu0 %v10690_v7  ;;  %v1110_v41 = vpop.xlane.xlu1 %1109  ;;  %v1994_v3 = vadd.f32 %v10796_v61, %v1859_v0  ;;  %v1726_v9 = vmul.f32 %v8422_v2, %v16033_v57  ;;  %v10852_v45 = vmul.f32 %v10825_v54, %v10825_v54  ;;  %v9248_v27 = vld [vmem:[%s9564_s15 + $0x330] sm:$0xff] }
 0x1e8   : > { %v1108_v60 = vpop.xlane.xlu0 %1107  ;;  %8433 = vrsqrt.f32 %v1476_v19  ;;  %8117 = vmatmul.mubr.f32.gmra.mrb[2].mxu0 %v1992_v47  ;;  %v1350_v44 = vmul.f32 0.0078125, %v1110_v41  ;;  %v1993_v29 = vadd.f32 %v10796_v61, %v1858_v11  ;;  %v799_v7 = vmul.f32 0.0078125, %v10404_v38  ;;  %v9249_v19 = vld [vmem:[%s9564_s15 + $0x348] sm:$0xff] }
 0x1e9   : > { %v1349_v24 = vmul.f32 0.0078125, %v1108_v60  ;;  %8435 = vrsqrt.f32 %v1475_v62  ;;  %v1725_v63 = vmul.f32 %v8424_v48, %v16034_v55  ;;  %v1861_v15 = vmul.f32 %v10771_v4, %v1726_v9  ;;  %v16035_v60 = vld [vmem:[#allocation69_spill] sm:$0xff] }
 0x1ea   : > { %v8426_v51 = vpop.eup %8425  ;;  %v10859_v0 = vsub.f32 %v9248_v27, %v797_v26  ;;  %v1478_v2 = vadd.f32 1e-05, %v1350_v44  ;;  %8119 = vmatprep.mubr.f32.mxu0 %v1993_v29  ;;  %1253 = vadd.xlane.f32.xlu1 %v10701_v40  ;;  %v10864_v47 = vmul.f32 %v10842_v35, %v10842_v35  ;;  %v10867_v62 = vsub.f32 %v9249_v19, %v800_v5  ;;  %v16036_v44 = vld [vmem:[#allocation70_spill] sm:$0xff]  ;;  %v9250_v29 = vld [vmem:[%s9564_s15 + $0x340] sm:$0xff] }
 0x1eb   : > { %v1477_v42 = vadd.f32 1e-05, %v1349_v24  ;;  %v8428_v38 = vpop.eup %8427  ;;  %1251 = vadd.xlane.f32.xlu0 %v10708_v46  ;;  %v1114_v11 = vpop.xlane.xlu1 %1113  ;;  %v1860_v26 = vmul.f32 %v10771_v4, %v1725_v63  ;;  %v1996_v41 = vadd.f32 %v10796_v61, %v1861_v15  ;;  %v1728_v57 = vmul.f32 %v8426_v51, %v16035_v60 }
 0x1ec   : > { %v1112_v48 = vpop.xlane.xlu0 %1111  ;;  %8437 = vrsqrt.f32 %v1478_v2  ;;  %8120 = vmatmul.mubr.f32.gmra.mrb[4].mxu0 %v1994_v3  ;;  %v1352_v40 = vmul.f32 0.0078125, %v1114_v11  ;;  %v1727_v24 = vmul.f32 %v8428_v38, %v16036_v44  ;;  %v10875_v55 = vsub.f32 %v9250_v29, %v799_v7  ;;  %v16037_v2 = vld [vmem:[#allocation28_spill] sm:$0xff]  ;;  %v9251_v29 = vld [vmem:[%s9564_s15 + $0x358] sm:$0xff] }
 0x1ed   : > { %v1351_v9 = vmul.f32 0.0078125, %v1112_v48  ;;  %8439 = vrsqrt.f32 %v1477_v42  ;;  %v1995_v46 = vadd.f32 %v10796_v61, %v1860_v26  ;;  %v1863_v5 = vmul.f32 %v10771_v4, %v1728_v57  ;;  %v16038_v48 = vld [vmem:[#allocation71_spill] sm:$0xff] }
 0x1ee   : > { %v8430_v27 = vpop.eup %8429  ;;  %v802_v63 = vmul.f32 0.0078125, %v10412_v58  ;;  %v1480_v15 = vadd.f32 1e-05, %v1352_v40  ;;  %1257 = vadd.xlane.f32.xlu1 %v10718_v50  ;;  %v1862_v3 = vmul.f32 %v10771_v4, %v1727_v24  ;;  %v801_v38 = vmul.f32 0.0078125, %v16037_v2 }
 0x1ef   : > { %v1479_v19 = vadd.f32 1e-05, %v1351_v9  ;;  %v8432_v51 = vpop.eup %8431  ;;  %8122 = vmatprep.mubr.f32.mxu0 %v1995_v46  ;;  %1255 = vadd.xlane.f32.xlu0 %v10722_v53  ;;  %v1118_v7 = vpop.xlane.xlu1 %1117  ;;  %v1998_v11 = vadd.f32 %v10796_v61, %v1863_v5  ;;  %v1730_v26 = vmul.f32 %v8430_v27, %v16038_v48  ;;  %v10888_v58 = vmul.f32 %v10859_v0, %v10859_v0  ;;  %v16039_v53 = vld [vmem:[#allocation72_spill] sm:$0xff] }
 0x1f0   : > { %v1116_v42 = vpop.xlane.xlu0 %1115  ;;  %8441 = vrsqrt.f32 %v1480_v15  ;;  %8123 = vmatmul.mubr.f32.gmra.mrb[6].mxu0 %v1996_v41  ;;  %v1354_v50 = vmul.f32 0.0078125, %v1118_v7  ;;  %v1997_v57 = vadd.f32 %v10796_v61, %v1862_v3  ;;  %v1729_v40 = vmul.f32 %v8432_v51, %v16039_v53 }
 0x1f1   : > { %v1353_v60 = vmul.f32 0.0078125, %v1116_v42  ;;  %8443 = vrsqrt.f32 %v1479_v19  ;;  %v1865_v9 = vmul.f32 %v10771_v4, %v1730_v26  ;;  %v10895_v44 = vmul.f32 %v10867_v62, %v10867_v62  ;;  %v9252_v19 = vld [vmem:[%s9564_s15 + $0x350] sm:$0xff] }
 0x1f2   : > { %v8434_v24 = vpop.eup %8433  ;;  %v10898_v46 = vsub.f32 %v9251_v29, %v802_v63  ;;  %v1482_v5 = vadd.f32 1e-05, %v1354_v50  ;;  %8125 = vmatprep.mubr.f32.mxu0 %v1997_v57  ;;  %1261 = vadd.xlane.f32.xlu1 %v10749_v21  ;;  %v10903_v27 = vmul.f32 %v10875_v55, %v10875_v55  ;;  %v10906_v3 = vsub.f32 %v9252_v19, %v801_v38  ;;  %v16040_v42 = vld [vmem:[#allocation73_spill] sm:$0xff]  ;;  %v16041_v50 = vld [vmem:[#allocation74_spill] sm:$0xff] }
 0x1f3   : > { %v1481_v41 = vadd.f32 1e-05, %v1353_v60  ;;  %v8436_v15 = vpop.eup %8435  ;;  %1259 = vadd.xlane.f32.xlu0 %v10753_v14  ;;  %v1122_v51 = vpop.xlane.xlu1 %1121  ;;  %v1864_v63 = vmul.f32 %v10771_v4, %v1729_v40  ;;  %v2000_v7 = vadd.f32 %v10796_v61, %v1865_v9  ;;  %v1732_v48 = vmul.f32 %v8434_v24, %v16040_v42 }
 0x1f4   : > { %v1120_v2 = vpop.xlane.xlu0 %1119  ;;  %8445 = vrsqrt.f32 %v1482_v5  ;;  %8126 = vmatmul.mubr.f32.gmra.mrb[8].mxu0 %v1998_v11  ;;  %v1356_v21 = vmul.f32 0.0078125, %v1122_v51  ;;  %v1731_v60 = vmul.f32 %v8436_v15, %v16041_v50  ;;  %v804_v57 = vmul.f32 0.0078125, %v10430_v30  ;;  %v16042_v15 = vld [vmem:[#allocation75_spill] sm:$0xff] }
 0x1f5   : > { %v1355_v26 = vmul.f32 0.0078125, %v1120_v2  ;;  %8447 = vrsqrt.f32 %v1481_v41  ;;  %v1999_v38 = vadd.f32 %v10796_v61, %v1864_v63  ;;  %v1867_v14 = vmul.f32 %v10771_v4, %v1732_v48 }
 0x1f6   : > { %v8438_v53 = vpop.eup %8437  ;;  %v803_v40 = vmul.f32 0.0078125, %v10432_v20  ;;  %v1484_v29 = vadd.f32 1e-05, %v1356_v21  ;;  %1265 = vadd.xlane.f32.xlu1 %v10760_v17  ;;  %v1866_v11 = vmul.f32 %v10771_v4, %v1731_v60  ;;  %v10924_v20 = vmul.f32 %v10898_v46, %v10898_v46  ;;  %v9254_v60 = vld [vmem:[%s9564_s15 + $0x360] sm:$0xff] }
 0x1f7   : > { %v1483_v9 = vadd.f32 1e-05, %v1355_v26  ;;  %v8440_v24 = vpop.eup %8439  ;;  %8128 = vmatprep.mubr.f32.mxu0 %v1999_v38  ;;  %1263 = vadd.xlane.f32.xlu0 %v10764_v10  ;;  %v1126_v30 = vpop.xlane.xlu1 %1125  ;;  %v2002_v41 = vadd.f32 %v10796_v61, %v1867_v14  ;;  %v1734_v19 = vmul.f32 %v8438_v53, %v16042_v15  ;;  %v16043_v10 = vld [vmem:[#allocation76_spill] sm:$0xff]  ;;  %v10931_v48 = vmul.f32 %v10906_v3, %v10906_v3 }
 0x1f8   : > { %v1124_v5 = vpop.xlane.xlu0 %1123  ;;  %8449 = vrsqrt.f32 %v1484_v29  ;;  %8129 = vmatmul.mubr.f32.gmra.mrb[10].mxu0 %v2000_v7  ;;  %v1358_v17 = vmul.f32 0.0078125, %v1126_v30  ;;  %v2001_v2 = vadd.f32 %v10796_v61, %v1866_v11  ;;  %v1733_v63 = vmul.f32 %v8440_v24, %v16043_v10  ;;  %v9253_v26 = vld [vmem:[%s9564_s15 + $0x368] sm:$0xff]  ;;  %v16044_v30 = vld [vmem:[#allocation77_spill] sm:$0xff] }
 0x1f9   : > { %v1357_v51 = vmul.f32 0.0078125, %v1124_v5  ;;  %8451 = vrsqrt.f32 %v1483_v9  ;;  %v1869_v42 = vmul.f32 %v10771_v4, %v1734_v19  ;;  %v10934_v50 = vsub.f32 %v9253_v26, %v804_v57  ;;  %v16045_v19 = vld [vmem:[#allocation78_spill] sm:$0xff] }
 0x1fa   : > { %v8442_v21 = vpop.eup %8441  ;;  %v10937_v38 = vsub.f32 %v9254_v60, %v803_v40  ;;  %v1486_v7 = vadd.f32 1e-05, %v1358_v17  ;;  %8131 = vmatprep.mubr.f32.mxu0 %v2001_v2  ;;  %1269 = vadd.xlane.f32.xlu1 %v10775_v25  ;;  %v806_v29 = vmul.f32 0.0078125, %v10450_v16  ;;  %v1868_v24 = vmul.f32 %v10771_v4, %v1733_v63  ;;  %v16046_v60 = vld [vmem:[#allocation79_spill] sm:$0xff] }
 0x1fb   : > { %v1485_v14 = vadd.f32 1e-05, %v1357_v51  ;;  %v8444_v53 = vpop.eup %8443  ;;  %1267 = vadd.xlane.f32.xlu0 %v10779_v8  ;;  %v1130_v9 = vpop.xlane.xlu1 %1129  ;;  %v2004_v57 = vadd.f32 %v10796_v61, %v1869_v42  ;;  %v1736_v5 = vmul.f32 %v8442_v21, %v16044_v30  ;;  %v805_v25 = vmul.f32 0.0078125, %v10452_v39 }
 0x1fc   : > { %v1128_v11 = vpop.xlane.xlu0 %1127  ;;  %8453 = vrsqrt.f32 %v1486_v7  ;;  %8132 = vmatmul.mubr.f32.gmra.mrb[12].mxu0 %v2002_v41  ;;  %v1360_v40 = vmul.f32 0.0078125, %v1130_v9  ;;  %v1735_v17 = vmul.f32 %v8444_v53, %v16045_v19  ;;  %v2003_v16 = vadd.f32 %v10796_v61, %v1868_v24 }
 0x1fd   : > { %v1359_v15 = vmul.f32 0.0078125, %v1128_v11  ;;  %8455 = vrsqrt.f32 %v1485_v14  ;;  %v1871_v8 = vmul.f32 %v10771_v4, %v1736_v5  ;;  %v10953_v41 = vmul.f32 %v10934_v50, %v10934_v50  ;;  %v9255_v11 = vld [vmem:[%s9564_s15 + $0x378] sm:$0xff] }
 0x1fe   : > { %v8446_v51 = vpop.eup %8445  ;;  %v1488_v2 = vadd.f32 1e-05, %v1360_v40  ;;  %1273 = vadd.xlane.f32.xlu1 %v10790_v23  ;;  %v1870_v63 = vmul.f32 %v10771_v4, %v1735_v17  ;;  %8134 = vmatprep.mubr.f32.mxu0 %v2003_v16  ;;  %v10960_v23 = vmul.f32 %v10937_v38, %v10937_v38  ;;  %v10964_v24 = vsub.f32 %v9255_v11, %v806_v29 }
 0x1ff   : > { %v1487_v10 = vadd.f32 1e-05, %v1359_v15  ;;  %v8448_v42 = vpop.eup %8447  ;;  %1271 = vadd.xlane.f32.xlu0 %v10802_v6  ;;  %v1134_v39 = vpop.xlane.xlu1 %1133  ;;  %v2006_v26 = vadd.f32 %v10796_v61, %v1871_v8  ;;  %v1738_v7 = vmul.f32 %v8446_v51, %v16046_v60  ;;  %v16047_v6 = vld [vmem:[#allocation80_spill] sm:$0xff]  ;;  %v9256_v15 = vld [vmem:[%s9564_s15 + $0x370] sm:$0xff]  ;;  %v808_v17 = vmul.f32 0.0078125, %v10460_v1 }
 0x200   : > { %v1132_v21 = vpop.xlane.xlu0 %1131  ;;  %8457 = vrsqrt.f32 %v1488_v2  ;;  %8135 = vmatmul.mubr.f32.gmra.mrb[14].mxu0 %v2004_v57  ;;  %v1362_v14 = vmul.f32 0.0078125, %v1134_v39  ;;  %v2005_v9 = vadd.f32 %v10796_v61, %v1870_v63  ;;  %v1737_v30 = vmul.f32 %v8448_v42, %v16047_v6  ;;  %v16048_v63 = vld [vmem:[#allocation81_spill] sm:$0xff] }
 0x201   : > { %v1361_v53 = vmul.f32 0.0078125, %v1132_v21  ;;  %8459 = vrsqrt.f32 %v1487_v10  ;;  %v1873_v5 = vmul.f32 %v10771_v4, %v1738_v7  ;;  %v10969_v19 = vsub.f32 %v9256_v15, %v805_v25  ;;  %v16049_v21 = vld [vmem:[#allocation82_spill] sm:$0xff] }
 0x202   : > { %v8450_v40 = vpop.eup %8449  ;;  %v1490_v16 = vadd.f32 1e-05, %v1362_v14  ;;  %8137 = vmatprep.mubr.f32.mxu0 %v2005_v9  ;;  %1277 = vadd.xlane.f32.xlu1 %v10812_v52  ;;  %v807_v29 = vmul.f32 0.0078125, %v10462_v18  ;;  %v1872_v10 = vmul.f32 %v10771_v4, %v1737_v30  ;;  %v10983_v60 = vmul.f32 %v10964_v24, %v10964_v24  ;;  %v9257_v14 = vld [vmem:[%s9564_s15 + $0x388] sm:$0xff] }
 0x203   : > { %v1489_v57 = vadd.f32 1e-05, %v1361_v53  ;;  %v8452_v8 = vpop.eup %8451  ;;  %1275 = vadd.xlane.f32.xlu0 %v10816_v43  ;;  %v1138_v51 = vpop.xlane.xlu1 %1137  ;;  %v2008_v25 = vadd.f32 %v10796_v61, %v1873_v5  ;;  %v1740_v42 = vmul.f32 %v8450_v40, %v16048_v63  ;;  %v10986_v53 = vsub.f32 %v9257_v14, %v808_v17 }
 0x204   : > { %v1136_v2 = vpop.xlane.xlu0 %1135  ;;  %8461 = vrsqrt.f32 %v1490_v16  ;;  %8138 = vmatmul.mubr.f32.gmra.mrb[16].mxu0 %v2006_v26  ;;  %v1364_v1 = vmul.f32 0.0078125, %v1138_v51  ;;  %v1739_v52 = vmul.f32 %v8452_v8, %v16049_v21  ;;  %v2007_v18 = vadd.f32 %v10796_v61, %v1872_v10  ;;  %v16050_v16 = vld [vmem:[#allocation83_spill] sm:$0xff]  ;;  %v16051_v51 = vld [vmem:[#allocation84_spill] sm:$0xff] }
 0x205   : > { %v1363_v39 = vmul.f32 0.0078125, %v1136_v2  ;;  %8463 = vrsqrt.f32 %v1489_v57  ;;  %v1875_v43 = vmul.f32 %v10771_v4, %v1740_v42  ;;  %v810_v30 = vmul.f32 0.0078125, %v10478_v22  ;;  %v9258_v42 = vld [vmem:[%s9564_s15 + $0x380] sm:$0xff] }
 0x206   : > { %v8454_v7 = vpop.eup %8453  ;;  %v1492_v9 = vadd.f32 1e-05, %v1364_v1  ;;  %1281 = vadd.xlane.f32.xlu1 %v10839_v49  ;;  %v1874_v26 = vmul.f32 %v10771_v4, %v1739_v52  ;;  %8140 = vmatprep.mubr.f32.mxu0 %v2007_v18  ;;  %v10996_v57 = vmul.f32 %v10969_v19, %v10969_v19  ;;  %v11003_v1 = vsub.f32 %v9258_v42, %v807_v29  ;;  %v9259_v52 = vld [vmem:[%s9564_s15 + $0x398] sm:$0xff]  ;;  %v16054_v42 = vld [vmem:[#allocation13_spill] sm:$0xff] }
 0x207   : > { %v1491_v11 = vadd.f32 1e-05, %v1363_v39  ;;  %v8456_v6 = vpop.eup %8455  ;;  %1279 = vadd.xlane.f32.xlu0 %v10852_v45  ;;  %v1142_v5 = vpop.xlane.xlu1 %1141  ;;  %v2010_v15 = vadd.f32 %v10796_v61, %v1875_v43  ;;  %v1742_v17 = vmul.f32 %v8454_v7, %v16050_v16  ;;  %v809_v45 = vmul.f32 0.0078125, %v10480_v12 }
 0x208   : > { %v1140_v40 = vpop.xlane.xlu0 %1139  ;;  %8465 = vrsqrt.f32 %v1492_v9  ;;  %8141 = vmatmul.mubr.f32.gmra.mrb[18].mxu0 %v2008_v25  ;;  %v1366_v49 = vmul.f32 0.0078125, %v1142_v5  ;;  %v2009_v22 = vadd.f32 %v10796_v61, %v1874_v26  ;;  %v1741_v2 = vmul.f32 %v8456_v6, %v16051_v51  ;;  %v16052_v9 = vld [vmem:[#allocation11_spill] sm:$0xff]  ;;  %v16053_v6 = vld [vmem:[#allocation12_spill] sm:$0xff] }
 0x209   : > { %v1365_v8 = vmul.f32 0.0078125, %v1140_v40  ;;  %8467 = vrsqrt.f32 %v1491_v11  ;;  %v1877_v10 = vmul.f32 %v10771_v4, %v1742_v17  ;;  %v11008_v25 = vmul.f32 %v10986_v53, %v10986_v53  ;;  %v9260_v40 = vld [vmem:[%s9564_s15 + $0x390] sm:$0xff] }
 0x20a   : > { %v8458_v63 = vpop.eup %8457  ;;  %v1494_v39 = vadd.f32 1e-05, %v1366_v49  ;;  %8143 = vmatprep.mubr.f32.mxu0 %v2009_v22  ;;  %1285 = vadd.xlane.f32.xlu1 %v10864_v47  ;;  %v11011_v18 = vsub.f32 %v9259_v52, %v810_v30  ;;  %v1876_v29 = vmul.f32 %v10771_v4, %v1741_v2  ;;  %v11019_v16 = vsub.f32 %v9260_v40, %v809_v45 }
 0x20b   : > { %v1493_v21 = vadd.f32 1e-05, %v1365_v8  ;;  %v8460_v12 = vpop.eup %8459  ;;  %1283 = vadd.xlane.f32.xlu0 %v10888_v58  ;;  %v1146_v43 = vpop.xlane.xlu1 %1145  ;;  %v2012_v14 = vadd.f32 %v10796_v61, %v1877_v10  ;;  %v1744_v11 = vmul.f32 %v8458_v63, %v16052_v9  ;;  %v812_v49 = vmul.f32 0.0078125, %v10498_v32 }
 0x20c   : > { %v1144_v7 = vpop.xlane.xlu0 %1143  ;;  %8469 = vrsqrt.f32 %v1494_v39  ;;  %8144 = vmatmul.mubr.f32.gmra.mrb[20].mxu0 %v2010_v15  ;;  %v1368_v47 = vmul.f32 0.0078125, %v1146_v43  ;;  %v1743_v5 = vmul.f32 %v8460_v12, %v16053_v6  ;;  %v2011_v58 = vadd.f32 %v10796_v61, %v1876_v29  ;;  %v9261_v29 = vld [vmem:[%s9564_s15 + $0x3a8] sm:$0xff]  ;;  %v9262_v6 = vld [vmem:[%s9564_s15 + $0x3a0] sm:$0xff] }
 0x20d   : > { %v1367_v26 = vmul.f32 0.0078125, %v1144_v7  ;;  %8471 = vrsqrt.f32 %v1493_v21  ;;  %v1879_v30 = vmul.f32 %v10771_v4, %v1744_v11  ;;  %v811_v2 = vmul.f32 0.0078125, %v10500_v33 }
 0x20e   : > { %v8462_v17 = vpop.eup %8461  ;;  %v1496_v8 = vadd.f32 1e-05, %v1368_v47  ;;  %1289 = vadd.xlane.f32.xlu1 %v10895_v44  ;;  %v1878_v15 = vmul.f32 %v10771_v4, %v1743_v5  ;;  %8146 = vmatprep.mubr.f32.mxu0 %v2011_v58  ;;  %v11032_v32 = vmul.f32 %v11003_v1, %v11003_v1  ;;  %v11039_v43 = vmul.f32 %v11011_v18, %v11011_v18 }
 0x20f   : > { %v1495_v22 = vadd.f32 1e-05, %v1367_v26  ;;  %v8464_v51 = vpop.eup %8463  ;;  %1287 = vadd.xlane.f32.xlu0 %v10903_v27  ;;  %v1150_v45 = vpop.xlane.xlu1 %1149  ;;  %v2014_v63 = vadd.f32 %v10796_v61, %v1879_v30  ;;  %v1746_v39 = vmul.f32 %v8462_v17, %v16054_v42  ;;  %v16055_v27 = vld [vmem:[#allocation14_spill] sm:$0xff]  ;;  %v11042_v9 = vsub.f32 %v9261_v29, %v812_v49  ;;  %v16056_v49 = vld [vmem:[#allocation35_spill] sm:$0xff] }
 0x210   : > { %v1148_v10 = vpop.xlane.xlu0 %1147  ;;  %8473 = vrsqrt.f32 %v1496_v8  ;;  %8147 = vmatmul.mubr.f32.gmra.mrb[22].mxu0 %v2012_v14  ;;  %v1370_v44 = vmul.f32 0.0078125, %v1150_v45  ;;  %v2013_v33 = vadd.f32 %v10796_v61, %v1878_v15  ;;  %v1745_v12 = vmul.f32 %v8464_v51, %v16055_v27  ;;  %v16057_v15 = vld [vmem:[#allocation36_spill] sm:$0xff] }
 0x211   : > { %v1369_v21 = vmul.f32 0.0078125, %v1148_v10  ;;  %8475 = vrsqrt.f32 %v1495_v22  ;;  %v1881_v52 = vmul.f32 %v10771_v4, %v1746_v39  ;;  %v11047_v47 = vmul.f32 %v11019_v16, %v11019_v16 }
 0x212   : > { %v8466_v7 = vpop.eup %8465  ;;  %v1498_v11 = vadd.f32 1e-05, %v1370_v44  ;;  %8149 = vmatprep.mubr.f32.mxu0 %v2013_v33  ;;  %1293 = vadd.xlane.f32.xlu1 %v10924_v20  ;;  %v11050_v5 = vsub.f32 %v9262_v6, %v811_v2  ;;  %v1880_v30 = vmul.f32 %v10771_v4, %v1745_v12  ;;  %v814_v45 = vmul.f32 0.0078125, %v10508_v34  ;;  %v16058_v12 = vld [vmem:[#allocation15_spill] sm:$0xff] }
 0x213   : > { %v1497_v14 = vadd.f32 1e-05, %v1369_v21  ;;  %v8468_v26 = vpop.eup %8467  ;;  %1291 = vadd.xlane.f32.xlu0 %v10931_v48  ;;  %v1154_v40 = vpop.xlane.xlu1 %1153  ;;  %v2016_v17 = vadd.f32 %v10796_v61, %v1881_v52  ;;  %v1748_v8 = vmul.f32 %v8466_v7, %v16056_v49  ;;  %v813_v42 = vmul.f32 0.0078125, %v10510_v13 }
 0x214   : > { %v1152_v58 = vpop.xlane.xlu0 %1151  ;;  %8477 = vrsqrt.f32 %v1498_v11  ;;  %8150 = vmatmul.mubr.f32.gmra.mrb[24].mxu0 %v2014_v63  ;;  %v1372_v20 = vmul.f32 0.0078125, %v1154_v40  ;;  %v1747_v51 = vmul.f32 %v8468_v26, %v16057_v15  ;;  %v2015_v2 = vadd.f32 %v10796_v61, %v1880_v30  ;;  %v9263_v40 = vld [vmem:[%s9564_s15 + $0x3b8] sm:$0xff]  ;;  %v9264_v30 = vld [vmem:[%s9564_s15 + $0x3b0] sm:$0xff] }
 0x215   : > { %v1371_v22 = vmul.f32 0.0078125, %v1152_v58  ;;  %8479 = vrsqrt.f32 %v1497_v14  ;;  %v1883_v48 = vmul.f32 %v10771_v4, %v1748_v8  ;;  %v11068_v13 = vmul.f32 %v11042_v9, %v11042_v9 }
 0x216   : > { %v8470_v10 = vpop.eup %8469  ;;  %v1500_v39 = vadd.f32 1e-05, %v1372_v20  ;;  %1297 = vadd.xlane.f32.xlu1 %v10953_v41  ;;  %v1882_v63 = vmul.f32 %v10771_v4, %v1747_v51  ;;  %8152 = vmatprep.mubr.f32.mxu0 %v2015_v2  ;;  %v11075_v26 = vmul.f32 %v11050_v5, %v11050_v5  ;;  %v11078_v58 = vsub.f32 %v9263_v40, %v814_v45 }
 0x217   : > { %v1499_v44 = vadd.f32 1e-05, %v1371_v22  ;;  %v8472_v21 = vpop.eup %8471  ;;  %1295 = vadd.xlane.f32.xlu0 %v10960_v23  ;;  %v1158_v34 = vpop.xlane.xlu1 %1157  ;;  %v2018_v27 = vadd.f32 %v10796_v61, %v1883_v48  ;;  %v1750_v52 = vmul.f32 %v8470_v10, %v16058_v12  ;;  %v16059_v23 = vld [vmem:[#allocation16_spill] sm:$0xff]  ;;  %v11081_v49 = vsub.f32 %v9264_v30, %v813_v42  ;;  %v16060_v48 = vld [vmem:[#allocation37_spill] sm:$0xff] }
 0x218   : > { %v1156_v33 = vpop.xlane.xlu0 %1155  ;;  %8481 = vrsqrt.f32 %v1500_v39  ;;  %8153 = vmatmul.mubr.f32.gmra.mrb[26].mxu0 %v2016_v17  ;;  %v1374_v41 = vmul.f32 0.0078125, %v1158_v34  ;;  %v2017_v29 = vadd.f32 %v10796_v61, %v1882_v63  ;;  %v1749_v11 = vmul.f32 %v8472_v21, %v16059_v23 }
 0x219   : > { %v1373_v7 = vmul.f32 0.0078125, %v1156_v33  ;;  %8483 = vrsqrt.f32 %v1499_v44  ;;  %v1885_v14 = vmul.f32 %v10771_v4, %v1750_v52  ;;  %v816_v22 = vmul.f32 0.0078125, %v10527_v28  ;;  %v16061_v44 = vld [vmem:[#allocation38_spill] sm:$0xff] }
 0x21a   : > { %v8474_v6 = vpop.eup %8473  ;;  %v1502_v17 = vadd.f32 1e-05, %v1374_v41  ;;  %8155 = vmatprep.mubr.f32.mxu0 %v2017_v29  ;;  %1301 = vadd.xlane.f32.xlu1 %v10983_v60  ;;  %v1884_v2 = vmul.f32 %v10771_v4, %v1749_v11  ;;  %v16062_v60 = vld [vmem:[#allocation57_spill] sm:$0xff]  ;;  %v16063_v11 = vld [vmem:[#allocation39_spill] sm:$0xff] }
 0x21b   : > { %v1501_v8 = vadd.f32 1e-05, %v1373_v7  ;;  %v8476_v20 = vpop.eup %8475  ;;  %1299 = vadd.xlane.f32.xlu0 %v10996_v57  ;;  %v1162_v15 = vpop.xlane.xlu1 %1161  ;;  %v2020_v45 = vadd.f32 %v10796_v61, %v1885_v14  ;;  %v1752_v10 = vmul.f32 %v8474_v6, %v16060_v48  ;;  %v815_v21 = vmul.f32 0.0078125, %v16062_v60 }
 0x21c   : > { %v1160_v51 = vpop.xlane.xlu0 %1159  ;;  %8485 = vrsqrt.f32 %v1502_v17  ;;  %8156 = vmatmul.mubr.f32.gmra.mrb[28].mxu0 %v2018_v27  ;;  %v1376_v42 = vmul.f32 0.0078125, %v1162_v15  ;;  %v1751_v63 = vmul.f32 %v8476_v20, %v16061_v44  ;;  %v2019_v28 = vadd.f32 %v10796_v61, %v1884_v2  ;;  %v9265_v17 = vld [vmem:[%s9564_s15 + $0x3c8] sm:$0xff]  ;;  %v9266_v2 = vld [vmem:[%s9564_s15 + $0x3c0] sm:$0xff] }
 0x21d   : > { %v1375_v39 = vmul.f32 0.0078125, %v1160_v51  ;;  %8487 = vrsqrt.f32 %v1501_v8  ;;  %v1887_v57 = vmul.f32 %v10771_v4, %v1752_v10  ;;  %v11097_v27 = vmul.f32 %v11078_v58, %v11078_v58 }
 0x21e   : > { %v8478_v34 = vpop.eup %8477  ;;  %v1504_v33 = vadd.f32 1e-05, %v1376_v42  ;;  %1305 = vadd.xlane.f32.xlu1 %v11008_v25  ;;  %v1886_v52 = vmul.f32 %v10771_v4, %v1751_v63  ;;  %8158 = vmatprep.mubr.f32.mxu0 %v2019_v28  ;;  %v11104_v25 = vmul.f32 %v11081_v49, %v11081_v49  ;;  %v11108_v8 = vsub.f32 %v9265_v17, %v816_v22 }
 0x21f   : > { %v1503_v12 = vadd.f32 1e-05, %v1375_v39  ;;  %v8480_v41 = vpop.eup %8479  ;;  %1303 = vadd.xlane.f32.xlu0 %v11032_v32  ;;  %v1166_v7 = vpop.xlane.xlu1 %1165  ;;  %v2022_v23 = vadd.f32 %v10796_v61, %v1887_v57  ;;  %v1754_v14 = vmul.f32 %v8478_v34, %v16063_v11  ;;  %v16064_v32 = vld [vmem:[#allocation40_spill] sm:$0xff]  ;;  %v11113_v48 = vsub.f32 %v9266_v2, %v815_v21  ;;  %v16065_v21 = vld [vmem:[#allocation17_spill] sm:$0xff] }
 0x220   : > { %v1164_v29 = vpop.xlane.xlu0 %1163  ;;  %8489 = vrsqrt.f32 %v1504_v33  ;;  %8159 = vmatmul.mubr.f32.gmra.mrb[30].mxu0 %v2020_v45  ;;  %v1378_v6 = vmul.f32 0.0078125, %v1166_v7  ;;  %v2021_v30 = vadd.f32 %v10796_v61, %v1886_v52  ;;  %v1753_v20 = vmul.f32 %v8480_v41, %v16064_v32  ;;  %v16066_v33 = vld [vmem:[#allocation18_spill] sm:$0xff]  ;;  %v16067_v32 = vld [vmem:[#allocation19_spill] sm:$0xff] }
 0x221   : > { %v1377_v40 = vmul.f32 0.0078125, %v1164_v29  ;;  %8491 = vrsqrt.f32 %v1503_v12  ;;  %v1889_v15 = vmul.f32 %v10771_v4, %v1754_v14  ;;  %v818_v10 = vmul.f32 0.0078125, %v10554_v59  ;;  %v9267_v14 = vld [vmem:[%s9564_s15 + $0x3d8] sm:$0xff] }
 0x222   : > { %v8482_v51 = vpop.eup %8481  ;;  %v1506_v42 = vadd.f32 1e-05, %v1378_v6  ;;  %8161 = vmatprep.mubr.f32.mxu0 %v2021_v30  ;;  %1309 = vadd.xlane.f32.xlu1 %v11039_v43  ;;  %v817_v22 = vmul.f32 0.0078125, %v10556_v36  ;;  %v1888_v60 = vmul.f32 %v10771_v4, %v1753_v20  ;;  %v1072_v12 = vmul.f32 %v11108_v8, %v11108_v8 }
 0x223   : > { %v1505_v45 = vadd.f32 1e-05, %v1377_v40  ;;  %v8484_v39 = vpop.eup %8483  ;;  %1307 = vadd.xlane.f32.xlu0 %v11047_v47  ;;  %v1170_v44 = vpop.xlane.xlu1 %1169  ;;  %v2024_v28 = vadd.f32 %v10796_v61, %v1889_v15  ;;  %v1756_v57 = vmul.f32 %v8482_v51, %v16065_v21  ;;  %v11132_v6 = vsub.f32 %v9267_v14, %v818_v10  ;;  %v16068_v10 = vld [vmem:[#allocation20_spill] sm:$0xff] }
 0x224   : > { %v1168_v63 = vpop.xlane.xlu0 %1167  ;;  %8493 = vrsqrt.f32 %v1506_v42  ;;  %8162 = vmatmul.mubr.f32.gmra.mrb[32].mxu0 %v2022_v23  ;;  %v1380_v59 = vmul.f32 0.0078125, %v1170_v44  ;;  %v1755_v43 = vmul.f32 %v8484_v39, %v16066_v33  ;;  %v2023_v36 = vadd.f32 %v10796_v61, %v1888_v60  ;;  %v9268_v39 = vld [vmem:[%s9564_s15 + $0x3d0] sm:$0xff] }
 0x225   : > { %v1379_v34 = vmul.f32 0.0078125, %v1168_v63  ;;  %8495 = vrsqrt.f32 %v1505_v45  ;;  %v1891_v47 = vmul.f32 %v10771_v4, %v1756_v57  ;;  %v1071_v23 = vmul.f32 %v11113_v48, %v11113_v48 }
 0x226   : > { %v8486_v52 = vpop.eup %8485  ;;  %v1508_v41 = vadd.f32 1e-05, %v1380_v59  ;;  %1313 = vadd.xlane.f32.xlu1 %v11068_v13  ;;  %v1890_v29 = vmul.f32 %v10771_v4, %v1755_v43  ;;  %8164 = vmatprep.mubr.f32.mxu0 %v2023_v36  ;;  %v820_v2 = vmul.f32 0.0078125, %v10582_v56  ;;  %v11142_v44 = vsub.f32 %v9268_v39, %v817_v22  ;;  %v16073_v39 = vld [vmem:[#allocation96_spill] sm:$0xff] }
 0x227   : > { %v1507_v7 = vadd.f32 1e-05, %v1379_v34  ;;  %v8488_v11 = vpop.eup %8487  ;;  %1311 = vadd.xlane.f32.xlu0 %v11075_v26  ;;  %v1174_v40 = vpop.xlane.xlu1 %1173  ;;  %v2026_v17 = vadd.f32 %v10796_v61, %v1891_v47  ;;  %v1758_v20 = vmul.f32 %v8486_v52, %v16067_v32  ;;  %v819_v63 = vmul.f32 0.0078125, %v10584_v31  ;;  %v16069_v31 = vld [vmem:[#allocation41_spill] sm:$0xff]  ;;  %v9269_v52 = vld [vmem:[%s9564_s15 + $0x3e8] sm:$0xff] }
 0x228   : > { %v1172_v30 = vpop.xlane.xlu0 %1171  ;;  %8497 = vrsqrt.f32 %v1508_v41  ;;  %8165 = vmatmul.mubr.f32.gmra.mrb[34].mxu0 %v2024_v28  ;;  %v1382_v13 = vmul.f32 0.0078125, %v1174_v40  ;;  %v2025_v51 = vadd.f32 %v10796_v61, %v1890_v29  ;;  %v1757_v42 = vmul.f32 %v8488_v11, %v16068_v10  ;;  %v9270_v11 = vld [vmem:[%s9564_s15 + $0x3e0] sm:$0xff] }
 0x229   : > { %v1381_v15 = vmul.f32 0.0078125, %v1172_v30  ;;  %8499 = vrsqrt.f32 %v1507_v7  ;;  %v1893_v45 = vmul.f32 %v10771_v4, %v1758_v20  ;;  %v1074_v22 = vmul.f32 %v11132_v6, %v11132_v6  ;;  %v16071_v20 = vld [vmem:[#allocation95_spill] sm:$0xff] }
 0x22a   : > { %v8490_v26 = vpop.eup %8489  ;;  %v1510_v60 = vadd.f32 1e-05, %v1382_v13  ;;  %8167 = vmatprep.mubr.f32.mxu0 %v2025_v51  ;;  %1317 = vadd.xlane.f32.xlu1 %v11097_v27  ;;  %v1892_v59 = vmul.f32 %v10771_v4, %v1757_v42  ;;  %v16070_v27 = vld [vmem:[#allocation42_spill] sm:$0xff]  ;;  %v11159_v14 = vsub.f32 %v9270_v11, %v819_v63  ;;  %v822_v13 = vmul.f32 0.0078125, %v16071_v20  ;;  %v16072_v42 = vld [vmem:[#allocation21_spill] sm:$0xff] }
 0x22b   : > { %v1509_v21 = vadd.f32 1e-05, %v1381_v15  ;;  %v8492_v28 = vpop.eup %8491  ;;  %1315 = vadd.xlane.f32.xlu0 %v11104_v25  ;;  %v1178_v56 = vpop.xlane.xlu1 %1177  ;;  %v2028_v34 = vadd.f32 %v10796_v61, %v1893_v45  ;;  %v1760_v33 = vmul.f32 %v8490_v26, %v16069_v31  ;;  %v11154_v25 = vsub.f32 %v9269_v52, %v820_v2 }
 0x22c   : > { %v1176_v57 = vpop.xlane.xlu0 %1175  ;;  %8501 = vrsqrt.f32 %v1510_v60  ;;  %8168 = vmatmul.mubr.f32.gmra.mrb[36].mxu0 %v2026_v17  ;;  %v1384_v43 = vmul.f32 0.0078125, %v1178_v56  ;;  %v1759_v47 = vmul.f32 %v8492_v28, %v16070_v27  ;;  %v2027_v41 = vadd.f32 %v10796_v61, %v1892_v59 }
 0x22d   : > { %v1383_v36 = vmul.f32 0.0078125, %v1176_v57  ;;  %8503 = vrsqrt.f32 %v1509_v21  ;;  %v1895_v7 = vmul.f32 %v10771_v4, %v1760_v33  ;;  %v1073_v2 = vmul.f32 %v11142_v44, %v11142_v44  ;;  %v11173_v21 = vld [vmem:[%s15377_s1] ss:$0 sm:$0xff]  ;;  %v9272_v33 = vld [vmem:[%s9564_s15 + $0x3f8] sm:$0xff] }
 0x22e   : > { %v8494_v29 = vpop.eup %8493  ;;  %v1512_v40 = vadd.f32 1e-05, %v1384_v43  ;;  %1321 = vadd.xlane.f32.xlu1 %v1072_v12  ;;  %v1894_v17 = vmul.f32 %v10771_v4, %v1759_v47  ;;  %8170 = vmatprep.mubr.f32.mxu0 %v2027_v41  ;;  %v821_v63 = vmul.f32 0.0078125, %v16073_v39  ;;  %v11181_v43 = vsub.f32 %v9272_v33, %v822_v13  ;;  %v16075_v41 = vld [vmem:[#allocation43_spill] sm:$0xff] }
 0x22f   : > { %v1511_v30 = vadd.f32 1e-05, %v1383_v36  ;;  %v8496_v32 = vpop.eup %8495  ;;  %1319 = vadd.xlane.f32.xlu0 %v1071_v23  ;;  %v1182_v15 = vpop.xlane.xlu1 %1181  ;;  %v2030_v10 = vadd.f32 %v10796_v61, %v1895_v7  ;;  %v1762_v45 = vmul.f32 %v8494_v29, %v16072_v42  ;;  %v16074_v23 = vld [vmem:[#allocation22_spill] sm:$0xff]  ;;  %v16077_v39 = vld [vmem:[#allocation23_spill] sm:$0xff] }
 0x230   : > { %v1180_v51 = vpop.xlane.xlu0 %1179  ;;  %8505 = vrsqrt.f32 %v1512_v40  ;;  %8171 = vmatmul.mubr.f32.gmra.mrb[38].mxu0 %v2028_v34  ;;  %v1386_v26 = vmul.f32 0.0078125, %v1182_v15  ;;  %v2029_v4 = vadd.f32 %v10796_v61, %v1894_v17  ;;  %v1761_v60 = vmul.f32 %v8496_v32, %v16074_v23  ;;  %v16076_v40 = vld [vmem:[#allocation44_spill] sm:$0xff]  ;;  %v9274_v17 = vld [vmem:[%s9564_s15 + $0x3f0] sm:$0xff] }
 0x231   : > { %v1385_v12 = vmul.f32 0.0078125, %v1180_v51  ;;  %8507 = vrsqrt.f32 %v1511_v30  ;;  %v1897_v28 = vmul.f32 %v11173_v21, %v1762_v45  ;;  %v1076_v61 = vmul.f32 %v11154_v25, %v11154_v25 }
 0x232   : > { %v8498_v56 = vpop.eup %8497  ;;  %v1514_v57 = vadd.f32 1e-05, %v1386_v26  ;;  %8173 = vmatprep.mubr.f32.mxu0 %v2029_v4  ;;  %1325 = vadd.xlane.f32.xlu1 %v1074_v22  ;;  %v1075_v34 = vmul.f32 %v11159_v14, %v11159_v14  ;;  %v1896_v47 = vmul.f32 %v11173_v21, %v1761_v60  ;;  %v11187_v22 = vld [vmem:[%s15378_s2] ss:$0 sm:$0xff]  ;;  %v11193_v32 = vsub.f32 %v9274_v17, %v821_v63 }
 0x233   : > { %v1513_v59 = vadd.f32 1e-05, %v1385_v12  ;;  %v8500_v31 = vpop.eup %8499  ;;  %1323 = vadd.xlane.f32.xlu0 %v1073_v2  ;;  %v1186_v36 = vpop.xlane.xlu1 %1185  ;;  %v2032_v52 = vadd.f32 %v11187_v22, %v1897_v28  ;;  %v1764_v7 = vmul.f32 %v8498_v56, %v16075_v41  ;;  %v1078_v12 = vmul.f32 %v11181_v43, %v11181_v43 }
 0x234   : > { %v1184_v27 = vpop.xlane.xlu0 %1183  ;;  %8509 = vrsqrt.f32 %v1514_v57  ;;  %8174 = vmatmul.mubr.f32.gmra.mrb[40].mxu0 %v2030_v10  ;;  %v1388_v29 = vmul.f32 0.0078125, %v1186_v36  ;;  %v1763_v30 = vmul.f32 %v8500_v31, %v16076_v40  ;;  %v2031_v20 = vadd.f32 %v11187_v22, %v1896_v47  ;;  %v16078_v57 = vld [vmem:[#allocation24_spill] sm:$0xff] }
 0x235   : > { %v1387_v11 = vmul.f32 0.0078125, %v1184_v27  ;;  %8511 = vrsqrt.f32 %v1513_v59  ;;  %v1899_v13 = vmul.f32 %v11173_v21, %v1764_v7  ;;  %v1077_v56 = vmul.f32 %v11193_v32, %v11193_v32  ;;  %v16079_v7 = vld [vmem:[#allocation26_spill] sm:$0xff] }
 0x236   : > { %v8502_v15 = vpop.eup %8501  ;;  %v1516_v51 = vadd.f32 1e-05, %v1388_v29  ;;  %1329 = vadd.xlane.f32.xlu1 %v1076_v61  ;;  %v1898_v42 = vmul.f32 %v11173_v21, %v1763_v30  ;;  %8176 = vmatprep.mubr.f32.mxu0 %v2031_v20  ;;  %v16080_v30 = vld [vmem:[#allocation47_spill] sm:$0xff] }
 0x237   : > { %v1515_v2 = vadd.f32 1e-05, %v1387_v11  ;;  %v8504_v45 = vpop.eup %8503  ;;  %1327 = vadd.xlane.f32.xlu0 %v1075_v34  ;;  %v1190_v10 = vpop.xlane.xlu1 %1189  ;;  %v2034_v4 = vadd.f32 %v11187_v22, %v1899_v13  ;;  %v1766_v63 = vmul.f32 %v8502_v15, %v16077_v39 }
 0x238   : > { %v1188_v26 = vpop.xlane.xlu0 %1187  ;;  %8513 = vrsqrt.f32 %v1516_v51  ;;  %8177 = vmatmul.mubr.f32.gmra.mrb[42].mxu0 %v2032_v52  ;;  %v1390_v23 = vmul.f32 0.0078125, %v1190_v10  ;;  %v2033_v28 = vadd.f32 %v11187_v22, %v1898_v42  ;;  %v1765_v59 = vmul.f32 %v8504_v45, %v16078_v57 }
 0x239   : > { %v1389_v60 = vmul.f32 0.0078125, %v1188_v26  ;;  %8515 = vrsqrt.f32 %v1515_v2  ;;  %v1901_v61 = vmul.f32 %v11173_v21, %v1766_v63 }
 0x23a   : > { %v8506_v34 = vpop.eup %8505  ;;  %v1518_v31 = vadd.f32 1e-05, %v1390_v23  ;;  %8179 = vmatprep.mubr.f32.mxu0 %v2033_v28  ;;  %1333 = vadd.xlane.f32.xlu1 %v1078_v12  ;;  %v1900_v52 = vmul.f32 %v11173_v21, %v1765_v59  ;;  %v16082_v28 = vld [vmem:[#allocation27_spill] sm:$0xff] }
 0x23b   : > { %v1517_v33 = vadd.f32 1e-05, %v1389_v60  ;;  %v8508_v36 = vpop.eup %8507  ;;  %1331 = vadd.xlane.f32.xlu0 %v1077_v56  ;;  %v1194_v27 = vpop.xlane.xlu1 %1193  ;;  %v2036_v41 = vadd.f32 %v11187_v22, %v1901_v61  ;;  %v1768_v29 = vmul.f32 %v8506_v34, %v16079_v7 }
 0x23c   : > { %v1192_v47 = vpop.xlane.xlu0 %1191  ;;  %8517 = vrsqrt.f32 %v1518_v31  ;;  %8180 = vmatmul.mubr.f32.gmra.mrb[44].mxu0 %v2034_v4  ;;  %v1392_v11 = vmul.f32 0.0078125, %v1194_v27  ;;  %v1767_v17 = vmul.f32 %v8508_v36, %v16080_v30  ;;  %v2035_v20 = vadd.f32 %v11187_v22, %v1900_v52  ;;  %v16081_v4 = vld [vmem:[#allocation48_spill] sm:$0xff]  ;;  %v16083_v52 = vld [vmem:[#allocation49_spill] sm:$0xff] }
 0x23d   : > { %v1391_v40 = vmul.f32 0.0078125, %v1192_v47  ;;  %8519 = vrsqrt.f32 %v1517_v33  ;;  %v1903_v13 = vmul.f32 %v11173_v21, %v1768_v29 }
 0x23e   : > { %v8510_v15 = vpop.eup %8509  ;;  %v1520_v51 = vadd.f32 1e-05, %v1392_v11  ;;  %v1902_v42 = vmul.f32 %v11173_v21, %v1767_v17  ;;  %8182 = vmatprep.mubr.f32.mxu0 %v2035_v20  ;;  %v16084_v11 = vld [vmem:[#allocation50_spill] sm:$0xff] }
 0x23f   : > { %v1519_v2 = vadd.f32 1e-05, %v1391_v40  ;;  %v8512_v45 = vpop.eup %8511  ;;  %v1198_v10 = vpop.xlane.xlu1 %1197  ;;  %v2038_v12 = vadd.f32 %v11187_v22, %v1903_v13  ;;  %v1770_v39 = vmul.f32 %v8510_v15, %v16081_v4 }
 0x240   : > { %v1196_v26 = vpop.xlane.xlu0 %1195  ;;  %8521 = vrsqrt.f32 %v1520_v51  ;;  %8183 = vmatmul.mubr.f32.gmra.mrb[46].mxu0 %v2036_v41  ;;  %v1394_v63 = vmul.f32 0.0078125, %v1198_v10  ;;  %v2037_v60 = vadd.f32 %v11187_v22, %v1902_v42  ;;  %v1769_v56 = vmul.f32 %v8512_v45, %v16082_v28 }
 0x241   : > { %v1393_v23 = vmul.f32 0.0078125, %v1196_v26  ;;  %8523 = vrsqrt.f32 %v1519_v2  ;;  %v1905_v57 = vmul.f32 %v11173_v21, %v1770_v39  ;;  %v16085_v26 = vld [vmem:[#allocation51_spill] sm:$0xff] }
 0x242   : > { %v8514_v59 = vpop.eup %8513  ;;  %v1522_v61 = vadd.f32 1e-05, %v1394_v63  ;;  %8185 = vmatprep.mubr.f32.mxu0 %v2037_v60  ;;  %v1904_v27 = vmul.f32 %v11173_v21, %v1769_v56 }
 0x243   : > { %v1521_v34 = vadd.f32 1e-05, %v1393_v23  ;;  %v8516_v31 = vpop.eup %8515  ;;  %v1202_v33 = vpop.xlane.xlu1 %1201  ;;  %v2040_v47 = vadd.f32 %v11187_v22, %v1905_v57  ;;  %v1772_v41 = vmul.f32 %v8514_v59, %v16083_v52  ;;  %v16086_v23 = vld [vmem:[#allocation52_spill] sm:$0xff] }
 0x244   : > { %v1200_v36 = vpop.xlane.xlu0 %1199  ;;  %8525 = vrsqrt.f32 %v1522_v61  ;;  %8186 = vmatmul.mubr.f32.gmra.mrb[48].mxu0 %v2038_v12  ;;  %v1396_v7 = vmul.f32 0.0078125, %v1202_v33  ;;  %v1771_v40 = vmul.f32 %v8516_v31, %v16084_v11  ;;  %v2039_v30 = vadd.f32 %v11187_v22, %v1904_v27  ;;  %v16087_v27 = vld [vmem:[#allocation29_spill] sm:$0xff] }
 0x245   : > { %v1395_v29 = vmul.f32 0.0078125, %v1200_v36  ;;  %8527 = vrsqrt.f32 %v1521_v34  ;;  %v1907_v17 = vmul.f32 %v11173_v21, %v1772_v41 }
 0x246   : > { %v8518_v20 = vpop.eup %8517  ;;  %v1524_v13 = vadd.f32 1e-05, %v1396_v7  ;;  %v1906_v51 = vmul.f32 %v11173_v21, %v1771_v40  ;;  %8188 = vmatprep.mubr.f32.mxu0 %v2039_v30  ;;  %v16088_v7 = vld [vmem:[#allocation30_spill] sm:$0xff] }
 0x247   : > { %v1523_v15 = vadd.f32 1e-05, %v1395_v29  ;;  %v8520_v2 = vpop.eup %8519  ;;  %v1206_v42 = vpop.xlane.xlu1 %1205  ;;  %v2042_v10 = vadd.f32 %v11187_v22, %v1907_v17  ;;  %v1774_v12 = vmul.f32 %v8518_v20, %v16085_v26 }
 0x248   : > { %v1204_v45 = vpop.xlane.xlu0 %1203  ;;  %8529 = vrsqrt.f32 %v1524_v13  ;;  %8189 = vmatmul.mubr.f32.gmra.mrb[50].mxu0 %v2040_v47  ;;  %v1398_v4 = vmul.f32 0.0078125, %v1206_v42  ;;  %v2041_v63 = vadd.f32 %v11187_v22, %v1906_v51  ;;  %v1773_v60 = vmul.f32 %v8520_v2, %v16086_v23 }
 0x249   : > { %v1397_v39 = vmul.f32 0.0078125, %v1204_v45  ;;  %8531 = vrsqrt.f32 %v1523_v15  ;;  %v1909_v28 = vmul.f32 %v11173_v21, %v1774_v12  ;;  %v16089_v45 = vld [vmem:[#allocation31_spill] sm:$0xff] }
 0x24a   : > { %v8522_v56 = vpop.eup %8521  ;;  %v1526_v57 = vadd.f32 1e-05, %v1398_v4  ;;  %8191 = vmatprep.mubr.f32.mxu0 %v2041_v63  ;;  %v1908_v33 = vmul.f32 %v11173_v21, %v1773_v60 }
 0x24b   : > { %v1525_v59 = vadd.f32 1e-05, %v1397_v39  ;;  %v8524_v61 = vpop.eup %8523  ;;  %v1210_v34 = vpop.xlane.xlu1 %1209  ;;  %v2044_v36 = vadd.f32 %v11187_v22, %v1909_v28  ;;  %v1776_v47 = vmul.f32 %v8522_v56, %v16087_v27  ;;  %v16090_v39 = vld [vmem:[#allocation32_spill] sm:$0xff] }
 0x24c   : > { %v1208_v31 = vpop.xlane.xlu0 %1207  ;;  %8533 = vrsqrt.f32 %v1526_v57  ;;  %8192 = vmatmul.mubr.f32.gmra.mrb[52].mxu0 %v2042_v10  ;;  %v1400_v52 = vmul.f32 0.0078125, %v1210_v34  ;;  %v1775_v29 = vmul.f32 %v8524_v61, %v16088_v7  ;;  %v2043_v11 = vadd.f32 %v11187_v22, %v1908_v33  ;;  %v16091_v33 = vld [vmem:[#allocation53_spill] sm:$0xff] }
 0x24d   : > { %v1399_v41 = vmul.f32 0.0078125, %v1208_v31  ;;  %8535 = vrsqrt.f32 %v1525_v59  ;;  %v1911_v40 = vmul.f32 %v11173_v21, %v1776_v47 }
 0x24e   : > { %v8526_v30 = vpop.eup %8525  ;;  %v1528_v17 = vadd.f32 1e-05, %v1400_v52  ;;  %v1910_v13 = vmul.f32 %v11173_v21, %v1775_v29  ;;  %8194 = vmatprep.mubr.f32.mxu0 %v2043_v11  ;;  %v16092_v52 = vld [vmem:[#allocation54_spill] sm:$0xff] }
 0x24f   : > { %v1527_v20 = vadd.f32 1e-05, %v1399_v41  ;;  %v8528_v15 = vpop.eup %8527  ;;  %v1214_v51 = vpop.xlane.xlu1 %1213  ;;  %v2046_v42 = vadd.f32 %v11187_v22, %v1911_v40  ;;  %v1778_v10 = vmul.f32 %v8526_v30, %v16089_v45 }
 0x250   : > { %v1212_v2 = vpop.xlane.xlu0 %1211  ;;  %8537 = vrsqrt.f32 %v1528_v17  ;;  %8195 = vmatmul.mubr.f32.gmra.mrb[54].mxu0 %v2044_v36  ;;  %v1402_v26 = vmul.f32 0.0078125, %v1214_v51  ;;  %v2045_v4 = vadd.f32 %v11187_v22, %v1910_v13  ;;  %v1777_v63 = vmul.f32 %v8528_v15, %v16090_v39 }
 0x251   : > { %v1401_v12 = vmul.f32 0.0078125, %v1212_v2  ;;  %8539 = vrsqrt.f32 %v1527_v20  ;;  %v1913_v23 = vmul.f32 %v11173_v21, %v1778_v10  ;;  %v16093_v2 = vld [vmem:[#allocation33_spill] sm:$0xff] }
 0x252   : > { %v8530_v60 = vpop.eup %8529  ;;  %v1530_v28 = vadd.f32 1e-05, %v1402_v26  ;;  %8197 = vmatprep.mubr.f32.mxu0 %v2045_v4  ;;  %v1912_v34 = vmul.f32 %v11173_v21, %v1777_v63 }
 0x253   : > { %v1529_v56 = vadd.f32 1e-05, %v1401_v12  ;;  %v8532_v57 = vpop.eup %8531  ;;  %v1218_v59 = vpop.xlane.xlu1 %1217  ;;  %v2048_v31 = vadd.f32 %v11187_v22, %v1913_v23  ;;  %v1780_v36 = vmul.f32 %v8530_v60, %v16091_v33  ;;  %v16094_v12 = vld [vmem:[#allocation34_spill] sm:$0xff] }
 0x254   : > { %v1216_v61 = vpop.xlane.xlu0 %1215  ;;  %8541 = vrsqrt.f32 %v1530_v28  ;;  %8198 = vmatmul.mubr.f32.gmra.mrb[56].mxu0 %v2046_v42  ;;  %v1404_v27 = vmul.f32 0.0078125, %v1218_v59  ;;  %v1779_v41 = vmul.f32 %v8532_v57, %v16092_v52  ;;  %v2047_v7 = vadd.f32 %v11187_v22, %v1912_v34  ;;  %v16095_v34 = vld [vmem:[#allocation55_spill] sm:$0xff] }
 0x255   : > { %v1403_v47 = vmul.f32 0.0078125, %v1216_v61  ;;  %8543 = vrsqrt.f32 %v1529_v56  ;;  %v1915_v29 = vmul.f32 %v11173_v21, %v1780_v36 }
 0x256   : > { %v8534_v11 = vpop.eup %8533  ;;  %v1532_v40 = vadd.f32 1e-05, %v1404_v27  ;;  %v1914_v17 = vmul.f32 %v11173_v21, %v1779_v41  ;;  %8200 = vmatprep.mubr.f32.mxu0 %v2047_v7  ;;  %v16096_v27 = vld [vmem:[#allocation56_spill] sm:$0xff] }
 0x257   : > { %v1531_v30 = vadd.f32 1e-05, %v1403_v47  ;;  %v8536_v20 = vpop.eup %8535  ;;  %v1222_v13 = vpop.xlane.xlu1 %1221  ;;  %v2050_v51 = vadd.f32 %v11187_v22, %v1915_v29  ;;  %v1782_v42 = vmul.f32 %v8534_v11, %v16093_v2 }
 0x258   : > { %v1220_v15 = vpop.xlane.xlu0 %1219  ;;  %8545 = vrsqrt.f32 %v1532_v40  ;;  %8201 = vmatmul.mubr.f32.gmra.mrb[58].mxu0 %v2048_v31  ;;  %v1406_v45 = vmul.f32 0.0078125, %v1222_v13  ;;  %v2049_v26 = vadd.f32 %v11187_v22, %v1914_v17  ;;  %v1781_v4 = vmul.f32 %v8536_v20, %v16094_v12 }
 0x259   : > { %v1405_v10 = vmul.f32 0.0078125, %v1220_v15  ;;  %8547 = vrsqrt.f32 %v1531_v30  ;;  %v1917_v39 = vmul.f32 %v11173_v21, %v1782_v42  ;;  %v16097_v15 = vld [vmem:[#allocation58_spill] sm:$0xff] }
 0x25a   : > { %v8538_v63 = vpop.eup %8537  ;;  %v1534_v23 = vadd.f32 1e-05, %v1406_v45  ;;  %8203 = vmatprep.mubr.f32.mxu0 %v2049_v26  ;;  %v1916_v59 = vmul.f32 %v11173_v21, %v1781_v4 }
 0x25b   : > { %v1533_v60 = vadd.f32 1e-05, %v1405_v10  ;;  %v8540_v28 = vpop.eup %8539  ;;  %v1226_v56 = vpop.xlane.xlu1 %1225  ;;  %v2052_v61 = vadd.f32 %v11187_v22, %v1917_v39  ;;  %v1784_v31 = vmul.f32 %v8538_v63, %v16095_v34  ;;  %v16098_v10 = vld [vmem:[#allocation59_spill] sm:$0xff] }
 0x25c   : > { %v1224_v57 = vpop.xlane.xlu0 %1223  ;;  %8549 = vrsqrt.f32 %v1534_v23  ;;  %8204 = vmatmul.mubr.f32.gmra.mrb[60].mxu0 %v2050_v51  ;;  %v1408_v33 = vmul.f32 0.0078125, %v1226_v56  ;;  %v1783_v47 = vmul.f32 %v8540_v28, %v16096_v27  ;;  %v2051_v52 = vadd.f32 %v11187_v22, %v1916_v59  ;;  %v16099_v59 = vld [vmem:[#allocation60_spill] sm:$0xff] }
 0x25d   : > { %v1407_v36 = vmul.f32 0.0078125, %v1224_v57  ;;  %8551 = vrsqrt.f32 %v1533_v60  ;;  %v1919_v41 = vmul.f32 %v11173_v21, %v1784_v31 }
 0x25e   : > { %v8542_v7 = vpop.eup %8541  ;;  %v1536_v29 = vadd.f32 1e-05, %v1408_v33  ;;  %v1918_v40 = vmul.f32 %v11173_v21, %v1783_v47  ;;  %8206 = vmatprep.mubr.f32.mxu0 %v2051_v52  ;;  %v16100_v33 = vld [vmem:[#allocation85_spill] sm:$0xff] }
 0x25f   : > { %v1535_v11 = vadd.f32 1e-05, %v1407_v36  ;;  %v8544_v30 = vpop.eup %8543  ;;  %v1230_v17 = vpop.xlane.xlu1 %1229  ;;  %v2054_v13 = vadd.f32 %v11187_v22, %v1919_v41  ;;  %v1786_v51 = vmul.f32 %v8542_v7, %v16097_v15 }
 0x260   : > { %v1228_v20 = vpop.xlane.xlu0 %1227  ;;  %8553 = vrsqrt.f32 %v1536_v29  ;;  %8207 = vmatmul.mubr.f32.gmra.mrb[62].mxu0 %v2052_v61  ;;  %v1410_v2 = vmul.f32 0.0078125, %v1230_v17  ;;  %v2053_v45 = vadd.f32 %v11187_v22, %v1918_v40  ;;  %v1785_v26 = vmul.f32 %v8544_v30, %v16098_v10 }
 0x261   : > { %v1409_v42 = vmul.f32 0.0078125, %v1228_v20  ;;  %8555 = vrsqrt.f32 %v1535_v11  ;;  %v1921_v12 = vmul.f32 %v11173_v21, %v1786_v51  ;;  %v16101_v20 = vld [vmem:[#allocation86_spill] sm:$0xff] }
 0x262   : > { %v8546_v4 = vpop.eup %8545  ;;  %v1538_v39 = vadd.f32 1e-05, %v1410_v2  ;;  %8209 = vmatprep.mubr.f32.mxu1 %v2053_v45  ;;  %v1920_v56 = vmul.f32 %v11173_v21, %v1785_v26 }
 0x263   : > { %v1537_v63 = vadd.f32 1e-05, %v1409_v42  ;;  %v8548_v23 = vpop.eup %8547  ;;  %8210 = vmatmul.mubr.f32.vlgmr.msra.gmra.mrb[0].mxu1 %v2054_v13  ;;  %v1234_v60 = vpop.xlane.xlu1 %1233  ;;  %v2056_v57 = vadd.f32 %v11187_v22, %v1921_v12  ;;  %v1788_v61 = vmul.f32 %v8546_v4, %v16099_v59  ;;  %v16102_v42 = vld [vmem:[#allocation87_spill] sm:$0xff] }
 0x264   : > { %v1232_v28 = vpop.xlane.xlu0 %1231  ;;  %8557 = vrsqrt.f32 %v1538_v39  ;;  %v1412_v34 = vmul.f32 0.0078125, %v1234_v60  ;;  %v1787_v36 = vmul.f32 %v8548_v23, %v16100_v33  ;;  %v2055_v27 = vadd.f32 %v11187_v22, %v1920_v56  ;;  %v16103_v56 = vld [vmem:[#allocation88_spill] sm:$0xff] }
 0x265   : > { %v1411_v31 = vmul.f32 0.0078125, %v1232_v28  ;;  %8559 = vrsqrt.f32 %v1537_v63  ;;  %v1923_v47 = vmul.f32 %v11173_v21, %v1788_v61 }
 0x266   : > { %v8550_v52 = vpop.eup %8549  ;;  %v1540_v41 = vadd.f32 1e-05, %v1412_v34  ;;  %v1922_v29 = vmul.f32 %v11173_v21, %v1787_v36  ;;  %8212 = vmatprep.mubr.f32.mxu1 %v2055_v27  ;;  %v16104_v34 = vld [vmem:[#allocation89_spill] sm:$0xff] }
 0x267   : > { %v1539_v7 = vadd.f32 1e-05, %v1411_v31  ;;  %v8552_v11 = vpop.eup %8551  ;;  %v1238_v40 = vpop.xlane.xlu1 %1237  ;;  %v2058_v17 = vadd.f32 %v11187_v22, %v1923_v47  ;;  %v1790_v13 = vmul.f32 %v8550_v52, %v16101_v20  ;;  %8213 = vmatmul.mubr.f32.gmra.mrb[2].mxu1 %v2056_v57 }
 0x268   : > { %v1236_v30 = vpop.xlane.xlu0 %1235  ;;  %8561 = vrsqrt.f32 %v1540_v41  ;;  %v1414_v15 = vmul.f32 0.0078125, %v1238_v40  ;;  %v2057_v2 = vadd.f32 %v11187_v22, %v1922_v29  ;;  %v1789_v45 = vmul.f32 %v8552_v11, %v16102_v42  ;;  %v16105_v40 = vld [vmem:[#allocation90_spill] sm:$0xff] }
 0x269   : > { %v1413_v51 = vmul.f32 0.0078125, %v1236_v30  ;;  %8563 = vrsqrt.f32 %v1539_v7  ;;  %v1925_v10 = vmul.f32 %v11173_v21, %v1790_v13 }
 0x26a   : > { %v8554_v26 = vpop.eup %8553  ;;  %v1542_v12 = vadd.f32 1e-05, %v1414_v15  ;;  %8215 = vmatprep.mubr.f32.mxu1 %v2057_v2  ;;  %v1924_v60 = vmul.f32 %v11173_v21, %v1789_v45  ;;  %v16106_v15 = vld [vmem:[#allocation91_spill] sm:$0xff] }
 0x26b   : > { %v1541_v4 = vadd.f32 1e-05, %v1413_v51  ;;  %v8556_v39 = vpop.eup %8555  ;;  %v1242_v63 = vpop.xlane.xlu1 %1241  ;;  %v2060_v28 = vadd.f32 %v11187_v22, %v1925_v10  ;;  %v1792_v57 = vmul.f32 %v8554_v26, %v16103_v56  ;;  %8216 = vmatmul.mubr.f32.gmra.mrb[4].mxu1 %v2058_v17 }
 0x26c   : > { %v1240_v23 = vpop.xlane.xlu0 %1239  ;;  %8565 = vrsqrt.f32 %v1542_v12  ;;  %v1416_v59 = vmul.f32 0.0078125, %v1242_v63  ;;  %v1791_v31 = vmul.f32 %v8556_v39, %v16104_v34  ;;  %v2059_v33 = vadd.f32 %v11187_v22, %v1924_v60 }
 0x26d   : > { %v1415_v61 = vmul.f32 0.0078125, %v1240_v23  ;;  %8567 = vrsqrt.f32 %v1541_v4  ;;  %v1927_v36 = vmul.f32 %v11173_v21, %v1792_v57  ;;  %v16107_v23 = vld [vmem:[#allocation92_spill] sm:$0xff] }
 0x26e   : > { %v8558_v27 = vpop.eup %8557  ;;  %v1544_v47 = vadd.f32 1e-05, %v1416_v59  ;;  %v1926_v41 = vmul.f32 %v11173_v21, %v1791_v31  ;;  %8218 = vmatprep.mubr.f32.mxu1 %v2059_v33  ;;  %v16108_v59 = vld [vmem:[#allocation93_spill] sm:$0xff] }
 0x26f   : > { %v1543_v52 = vadd.f32 1e-05, %v1415_v61  ;;  %v8560_v7 = vpop.eup %8559  ;;  %v1246_v29 = vpop.xlane.xlu1 %1245  ;;  %v2062_v11 = vadd.f32 %v11187_v22, %v1927_v36  ;;  %v1794_v30 = vmul.f32 %v8558_v27, %v16105_v40  ;;  %8219 = vmatmul.mubr.f32.gmra.mrb[6].mxu1 %v2060_v28 }
 0x270   : > { %8569 = vrsqrt.f32 %v1544_v47  ;;  %v1418_v17 = vmul.f32 0.0078125, %v1246_v29  ;;  %v1244_v20 = vpop.xlane.xlu0 %1243  ;;  %v2061_v13 = vadd.f32 %v11187_v22, %v1926_v41  ;;  %v1793_v51 = vmul.f32 %v8560_v7, %v16106_v15  ;;  %v16109_v29 = vld [vmem:[#allocation94_spill] sm:$0xff] }
 0x271   : > { %8571 = vrsqrt.f32 %v1543_v52  ;;  %v1417_v2 = vmul.f32 0.0078125, %v1244_v20  ;;  %v1929_v42 = vmul.f32 %v11173_v21, %v1794_v30  ;;  %v16110_v20 = vld [vmem:[#allocation97_spill] sm:$0xff] }
 0x272   : > { %v8562_v45 = vpop.eup %8561  ;;  %v1546_v10 = vadd.f32 1e-05, %v1418_v17  ;;  %8221 = vmatprep.mubr.f32.mxu1 %v2061_v13  ;;  %v1928_v26 = vmul.f32 %v11173_v21, %v1793_v51 }
 0x273   : > { %v8564_v12 = vpop.eup %8563  ;;  %v1545_v4 = vadd.f32 1e-05, %v1417_v2  ;;  %v1250_v39 = vpop.xlane.xlu1 %1249  ;;  %v2064_v63 = vadd.f32 %v11187_v22, %v1929_v42  ;;  %v1796_v60 = vmul.f32 %v8562_v45, %v16107_v23  ;;  %8222 = vmatmul.mubr.f32.gmra.mrb[8].mxu1 %v2062_v11 }
 0x274   : > { %8573 = vrsqrt.f32 %v1546_v10  ;;  %v1420_v28 = vmul.f32 0.0078125, %v1250_v39  ;;  %v1248_v56 = vpop.xlane.xlu0 %1247  ;;  %v2063_v57 = vadd.f32 %v11187_v22, %v1928_v26  ;;  %v1795_v61 = vmul.f32 %v8564_v12, %v16108_v59  ;;  %v16111_v39 = vld [vmem:[#allocation98_spill] sm:$0xff] }
 0x275   : > { %8575 = vrsqrt.f32 %v1545_v4  ;;  %v1419_v34 = vmul.f32 0.0078125, %v1248_v56  ;;  %v1931_v31 = vmul.f32 %v11173_v21, %v1796_v60  ;;  %v16112_v56 = vld [vmem:[#allocation99_spill] sm:$0xff] }
 0x276   : > { %v8566_v33 = vpop.eup %8565  ;;  %v1548_v36 = vadd.f32 1e-05, %v1420_v28  ;;  %8224 = vmatprep.mubr.f32.mxu1 %v2063_v57  ;;  %v1930_v27 = vmul.f32 %v11173_v21, %v1795_v61 }
 0x277   : > { %v8568_v47 = vpop.eup %8567  ;;  %v1547_v52 = vadd.f32 1e-05, %v1419_v34  ;;  %v1254_v41 = vpop.xlane.xlu1 %1253  ;;  %v2066_v7 = vadd.f32 %v11187_v22, %v1931_v31  ;;  %v1798_v11 = vmul.f32 %v8566_v33, %v16109_v29  ;;  %8225 = vmatmul.mubr.f32.gmra.mrb[10].mxu1 %v2064_v63 }
 0x278   : > { %8577 = vrsqrt.f32 %v1548_v36  ;;  %v1422_v40 = vmul.f32 0.0078125, %v1254_v41  ;;  %v1252_v30 = vpop.xlane.xlu0 %1251  ;;  %v2065_v17 = vadd.f32 %v11187_v22, %v1930_v27  ;;  %v1797_v13 = vmul.f32 %v8568_v47, %v16110_v20  ;;  %v16113_v41 = vld [vmem:[#allocation100_spill] sm:$0xff] }
 0x279   : > { %8579 = vrsqrt.f32 %v1547_v52  ;;  %v1421_v15 = vmul.f32 0.0078125, %v1252_v30  ;;  %v1933_v51 = vmul.f32 %v11173_v21, %v1798_v11  ;;  %v16114_v30 = vld [vmem:[#allocation101_spill] sm:$0xff] }
 0x27a   : > { %v8570_v2 = vpop.eup %8569  ;;  %v1550_v42 = vadd.f32 1e-05, %v1422_v40  ;;  %8227 = vmatprep.mubr.f32.mxu1 %v2065_v17  ;;  %v1932_v45 = vmul.f32 %v11173_v21, %v1797_v13 }
 0x27b   : > { %v8572_v10 = vpop.eup %8571  ;;  %v1549_v26 = vadd.f32 1e-05, %v1421_v15  ;;  %v1258_v12 = vpop.xlane.xlu1 %1257  ;;  %v2068_v4 = vadd.f32 %v11187_v22, %v1933_v51  ;;  %v1800_v63 = vmul.f32 %v8570_v2, %v16111_v39  ;;  %8228 = vmatmul.mubr.f32.gmra.mrb[12].mxu1 %v2066_v7 }
 0x27c   : > { %8581 = vrsqrt.f32 %v1550_v42  ;;  %v1424_v23 = vmul.f32 0.0078125, %v1258_v12  ;;  %v1256_v60 = vpop.xlane.xlu0 %1255  ;;  %v2067_v28 = vadd.f32 %v11187_v22, %v1932_v45  ;;  %v1799_v57 = vmul.f32 %v8572_v10, %v16112_v56  ;;  %v16115_v12 = vld [vmem:[#allocation102_spill] sm:$0xff] }
 0x27d   : > { %8583 = vrsqrt.f32 %v1549_v26  ;;  %v1423_v59 = vmul.f32 0.0078125, %v1256_v60  ;;  %v1935_v61 = vmul.f32 %v11173_v21, %v1800_v63  ;;  %v16116_v60 = vld [vmem:[#allocation103_spill] sm:$0xff] }
 0x27e   : > { %v8574_v34 = vpop.eup %8573  ;;  %v1552_v31 = vadd.f32 1e-05, %v1424_v23  ;;  %8230 = vmatprep.mubr.f32.mxu1 %v2067_v28  ;;  %v1934_v33 = vmul.f32 %v11173_v21, %v1799_v57 }
 0x27f   : > { %v8576_v36 = vpop.eup %8575  ;;  %v1551_v27 = vadd.f32 1e-05, %v1423_v59  ;;  %v1262_v47 = vpop.xlane.xlu1 %1261  ;;  %v2070_v52 = vadd.f32 %v11187_v22, %v1935_v61  ;;  %v1802_v7 = vmul.f32 %v8574_v34, %v16113_v41  ;;  %8231 = vmatmul.mubr.f32.gmra.mrb[14].mxu1 %v2068_v4 }
 0x280   : > { %8585 = vrsqrt.f32 %v1552_v31  ;;  %v1426_v29 = vmul.f32 0.0078125, %v1262_v47  ;;  %v1260_v11 = vpop.xlane.xlu0 %1259  ;;  %v2069_v40 = vadd.f32 %v11187_v22, %v1934_v33  ;;  %v1801_v17 = vmul.f32 %v8576_v36, %v16114_v30  ;;  %v16117_v47 = vld [vmem:[#allocation104_spill] sm:$0xff] }
 0x281   : > { %8587 = vrsqrt.f32 %v1551_v27  ;;  %v1425_v20 = vmul.f32 0.0078125, %v1260_v11  ;;  %v1937_v13 = vmul.f32 %v11173_v21, %v1802_v7  ;;  %v16118_v11 = vld [vmem:[#allocation105_spill] sm:$0xff] }
 0x282   : > { %v8578_v15 = vpop.eup %8577  ;;  %v1554_v51 = vadd.f32 1e-05, %v1426_v29  ;;  %8233 = vmatprep.mubr.f32.mxu1 %v2069_v40  ;;  %v1936_v2 = vmul.f32 %v11173_v21, %v1801_v17 }
 0x283   : > { %v8580_v42 = vpop.eup %8579  ;;  %v1553_v45 = vadd.f32 1e-05, %v1425_v20  ;;  %v1266_v10 = vpop.xlane.xlu1 %1265  ;;  %v2072_v26 = vadd.f32 %v11187_v22, %v1937_v13  ;;  %v1804_v4 = vmul.f32 %v8578_v15, %v16115_v12  ;;  %8234 = vmatmul.mubr.f32.gmra.mrb[16].mxu1 %v2070_v52 }
 0x284   : > { %8589 = vrsqrt.f32 %v1554_v51  ;;  %v1428_v39 = vmul.f32 0.0078125, %v1266_v10  ;;  %v1264_v63 = vpop.xlane.xlu0 %1263  ;;  %v2071_v23 = vadd.f32 %v11187_v22, %v1936_v2  ;;  %v1803_v28 = vmul.f32 %v8580_v42, %v16116_v60  ;;  %v16119_v10 = vld [vmem:[#allocation106_spill] sm:$0xff] }
 0x285   : > { %8591 = vrsqrt.f32 %v1553_v45  ;;  %v1427_v56 = vmul.f32 0.0078125, %v1264_v63  ;;  %v1939_v57 = vmul.f32 %v11173_v21, %v1804_v4  ;;  %v16120_v63 = vld [vmem:[#allocation107_spill] sm:$0xff] }
 0x286   : > { %v8582_v59 = vpop.eup %8581  ;;  %v1556_v61 = vadd.f32 1e-05, %v1428_v39  ;;  %8236 = vmatprep.mubr.f32.mxu1 %v2071_v23  ;;  %v1938_v34 = vmul.f32 %v11173_v21, %v1803_v28 }
 0x287   : > { %v8584_v31 = vpop.eup %8583  ;;  %v1555_v33 = vadd.f32 1e-05, %v1427_v56  ;;  %v1270_v36 = vpop.xlane.xlu1 %1269  ;;  %v2074_v27 = vadd.f32 %v11187_v22, %v1939_v57  ;;  %v1806_v52 = vmul.f32 %v8582_v59, %v16117_v47  ;;  %8237 = vmatmul.mubr.f32.gmra.mrb[18].mxu1 %v2072_v26 }
 0x288   : > { %8593 = vrsqrt.f32 %v1556_v61  ;;  %v1430_v41 = vmul.f32 0.0078125, %v1270_v36  ;;  %v1268_v7 = vpop.xlane.xlu0 %1267  ;;  %v2073_v29 = vadd.f32 %v11187_v22, %v1938_v34  ;;  %v1805_v40 = vmul.f32 %v8584_v31, %v16118_v11  ;;  %v16121_v36 = vld [vmem:[#allocation108_spill] sm:$0xff] }
 0x289   : > { %8595 = vrsqrt.f32 %v1555_v33  ;;  %v1429_v30 = vmul.f32 0.0078125, %v1268_v7  ;;  %v1941_v17 = vmul.f32 %v11173_v21, %v1806_v52  ;;  %v16122_v7 = vld [vmem:[#allocation109_spill] sm:$0xff] }
 0x28a   : > { %v8586_v20 = vpop.eup %8585  ;;  %v1558_v13 = vadd.f32 1e-05, %v1430_v41  ;;  %8239 = vmatprep.mubr.f32.mxu1 %v2073_v29  ;;  %v1940_v15 = vmul.f32 %v11173_v21, %v1805_v40 }
 0x28b   : > { %v8588_v51 = vpop.eup %8587  ;;  %v1557_v2 = vadd.f32 1e-05, %v1429_v30  ;;  %v1274_v42 = vpop.xlane.xlu1 %1273  ;;  %v2076_v45 = vadd.f32 %v11187_v22, %v1941_v17  ;;  %v1808_v26 = vmul.f32 %v8586_v20, %v16119_v10  ;;  %8240 = vmatmul.mubr.f32.gmra.mrb[20].mxu1 %v2074_v27 }
 0x28c   : > { %8597 = vrsqrt.f32 %v1558_v13  ;;  %v1432_v12 = vmul.f32 0.0078125, %v1274_v42  ;;  %v1272_v4 = vpop.xlane.xlu0 %1271  ;;  %v2075_v39 = vadd.f32 %v11187_v22, %v1940_v15  ;;  %v1807_v23 = vmul.f32 %v8588_v51, %v16120_v63  ;;  %v16123_v42 = vld [vmem:[#allocation110_spill] sm:$0xff] }
 0x28d   : > { %8599 = vrsqrt.f32 %v1557_v2  ;;  %v1431_v60 = vmul.f32 0.0078125, %v1272_v4  ;;  %v1943_v28 = vmul.f32 %v11173_v21, %v1808_v26  ;;  %v16124_v4 = vld [vmem:[#allocation111_spill] sm:$0xff] }
 0x28e   : > { %v8590_v56 = vpop.eup %8589  ;;  %v1560_v57 = vadd.f32 1e-05, %v1432_v12  ;;  %8242 = vmatprep.mubr.f32.mxu1 %v2075_v39  ;;  %v1942_v59 = vmul.f32 %v11173_v21, %v1807_v23 }
 0x28f   : > { %v8592_v61 = vpop.eup %8591  ;;  %v1559_v34 = vadd.f32 1e-05, %v1431_v60  ;;  %v1278_v31 = vpop.xlane.xlu1 %1277  ;;  %v2078_v33 = vadd.f32 %v11187_v22, %v1943_v28  ;;  %v1810_v27 = vmul.f32 %v8590_v56, %v16121_v36  ;;  %8243 = vmatmul.mubr.f32.gmra.mrb[22].mxu1 %v2076_v45 }
 0x290   : > { %8601 = vrsqrt.f32 %v1560_v57  ;;  %v1434_v47 = vmul.f32 0.0078125, %v1278_v31  ;;  %v1276_v52 = vpop.xlane.xlu0 %1275  ;;  %v2077_v41 = vadd.f32 %v11187_v22, %v1942_v59  ;;  %v1809_v29 = vmul.f32 %v8592_v61, %v16122_v7  ;;  %v16125_v31 = vld [vmem:[#allocation112_spill] sm:$0xff] }
 0x291   : > { %8603 = vrsqrt.f32 %v1559_v34  ;;  %v1433_v11 = vmul.f32 0.0078125, %v1276_v52  ;;  %v1945_v40 = vmul.f32 %v11173_v21, %v1810_v27  ;;  %v16126_v52 = vld [vmem:[#allocation113_spill] sm:$0xff] }
 0x292   : > { %v8594_v30 = vpop.eup %8593  ;;  %v1562_v17 = vadd.f32 1e-05, %v1434_v47  ;;  %8245 = vmatprep.mubr.f32.mxu1 %v2077_v41  ;;  %v1944_v20 = vmul.f32 %v11173_v21, %v1809_v29 }
 0x293   : > { %v8596_v13 = vpop.eup %8595  ;;  %v1561_v15 = vadd.f32 1e-05, %v1433_v11  ;;  %v1282_v51 = vpop.xlane.xlu1 %1281  ;;  %v2080_v2 = vadd.f32 %v11187_v22, %v1945_v40  ;;  %v1812_v45 = vmul.f32 %v8594_v30, %v16123_v42  ;;  %8246 = vmatmul.mubr.f32.gmra.mrb[24].mxu1 %v2078_v33 }
 0x294   : > { %8605 = vrsqrt.f32 %v1562_v17  ;;  %v1436_v10 = vmul.f32 0.0078125, %v1282_v51  ;;  %v1280_v26 = vpop.xlane.xlu0 %1279  ;;  %v2079_v12 = vadd.f32 %v11187_v22, %v1944_v20  ;;  %v1811_v39 = vmul.f32 %v8596_v13, %v16124_v4  ;;  %v16127_v51 = vld [vmem:[#allocation114_spill] sm:$0xff] }
 0x295   : > { %8607 = vrsqrt.f32 %v1561_v15  ;;  %v1435_v63 = vmul.f32 0.0078125, %v1280_v26  ;;  %v1947_v23 = vmul.f32 %v11173_v21, %v1812_v45  ;;  %v16128_v26 = vld [vmem:[#allocation115_spill] sm:$0xff] }
 0x296   : > { %v8598_v60 = vpop.eup %8597  ;;  %v1564_v28 = vadd.f32 1e-05, %v1436_v10  ;;  %8248 = vmatprep.mubr.f32.mxu1 %v2079_v12  ;;  %v1946_v56 = vmul.f32 %v11173_v21, %v1811_v39 }
 0x297   : > { %v8600_v57 = vpop.eup %8599  ;;  %v1563_v59 = vadd.f32 1e-05, %v1435_v63  ;;  %v1286_v61 = vpop.xlane.xlu1 %1285  ;;  %v2082_v34 = vadd.f32 %v11187_v22, %v1947_v23  ;;  %v1814_v33 = vmul.f32 %v8598_v60, %v16125_v31  ;;  %8249 = vmatmul.mubr.f32.gmra.mrb[26].mxu1 %v2080_v2 }
 0x298   : > { %8609 = vrsqrt.f32 %v1564_v28  ;;  %v1438_v36 = vmul.f32 0.0078125, %v1286_v61  ;;  %v1284_v27 = vpop.xlane.xlu0 %1283  ;;  %v2081_v47 = vadd.f32 %v11187_v22, %v1946_v56  ;;  %v1813_v41 = vmul.f32 %v8600_v57, %v16126_v52  ;;  %v16129_v61 = vld [vmem:[#allocation116_spill] sm:$0xff] }
 0x299   : > { %8611 = vrsqrt.f32 %v1563_v59  ;;  %v1437_v7 = vmul.f32 0.0078125, %v1284_v27  ;;  %v1949_v29 = vmul.f32 %v11173_v21, %v1814_v33  ;;  %v16130_v27 = vld [vmem:[#allocation117_spill] sm:$0xff] }
 0x29a   : > { %v8602_v11 = vpop.eup %8601  ;;  %v1566_v40 = vadd.f32 1e-05, %v1438_v36  ;;  %8251 = vmatprep.mubr.f32.mxu1 %v2081_v47  ;;  %v1948_v30 = vmul.f32 %v11173_v21, %v1813_v41 }
 0x29b   : > { %v8604_v17 = vpop.eup %8603  ;;  %v1565_v20 = vadd.f32 1e-05, %v1437_v7  ;;  %v1290_v13 = vpop.xlane.xlu1 %1289  ;;  %v2084_v15 = vadd.f32 %v11187_v22, %v1949_v29  ;;  %v1816_v2 = vmul.f32 %v8602_v11, %v16127_v51  ;;  %8252 = vmatmul.mubr.f32.gmra.mrb[28].mxu1 %v2082_v34 }
 0x29c   : > { %8613 = vrsqrt.f32 %v1566_v40  ;;  %v1440_v42 = vmul.f32 0.0078125, %v1290_v13  ;;  %v1288_v45 = vpop.xlane.xlu0 %1287  ;;  %v2083_v10 = vadd.f32 %v11187_v22, %v1948_v30  ;;  %v1815_v12 = vmul.f32 %v8604_v17, %v16128_v26 }
 0x29d   : > { %8615 = vrsqrt.f32 %v1565_v20  ;;  %v1439_v4 = vmul.f32 0.0078125, %v1288_v45  ;;  %v1951_v39 = vmul.f32 %v11173_v21, %v1816_v2  ;;  %v11374_v2 = vld [vmem:[%s15378_s2] ss:$0 sm:$0xff] }
 0x29e   : > { %v8606_v63 = vpop.eup %8605  ;;  %v1568_v23 = vadd.f32 1e-05, %v1440_v42  ;;  %8254 = vmatprep.mubr.f32.mxu1 %v2083_v10  ;;  %v1950_v60 = vmul.f32 %v11173_v21, %v1815_v12  ;;  %v11365_v21 = vld [vmem:[%s15377_s1] ss:$0 sm:$0xff] }
 0x29f   : > { %v8608_v28 = vpop.eup %8607  ;;  %v1567_v56 = vadd.f32 1e-05, %v1439_v4  ;;  %v1294_v57 = vpop.xlane.xlu1 %1293  ;;  %v2086_v59 = vadd.f32 %v11187_v22, %v1951_v39  ;;  %v1818_v34 = vmul.f32 %v8606_v63, %v16129_v61  ;;  %8255 = vmatmul.mubr.f32.gmra.mrb[30].mxu1 %v2084_v15 }
 0x2a0   : > { %8617 = vrsqrt.f32 %v1568_v23  ;;  %v1442_v31 = vmul.f32 0.0078125, %v1294_v57  ;;  %v1292_v33 = vpop.xlane.xlu0 %1291  ;;  %v2085_v36 = vadd.f32 %v11187_v22, %v1950_v60  ;;  %v1817_v47 = vmul.f32 %v8608_v28, %v16130_v27 }
 0x2a1   : > { %8619 = vrsqrt.f32 %v1567_v56  ;;  %v1441_v52 = vmul.f32 0.0078125, %v1292_v33  ;;  %v1953_v41 = vmul.f32 %v11365_v21, %v1818_v34 }
 0x2a2   : > { %v8610_v7 = vpop.eup %8609  ;;  %v1570_v29 = vadd.f32 1e-05, %v1442_v31  ;;  %8257 = vmatprep.mubr.f32.mxu1 %v2085_v36  ;;  %v1952_v11 = vmul.f32 %v11365_v21, %v1817_v47 }
 0x2a3   : > { %v8612_v40 = vpop.eup %8611  ;;  %v1569_v30 = vadd.f32 1e-05, %v1441_v52  ;;  %v1298_v17 = vpop.xlane.xlu1 %1297  ;;  %v2088_v20 = vadd.f32 %v11187_v22, %v1953_v41  ;;  %v1820_v13 = vmul.f32 %v8610_v7, %v10820_v37  ;;  %8258 = vmatmul.mubr.f32.gmra.mrb[32].mxu1 %v2086_v59 }
 0x2a4   : > { %8621 = vrsqrt.f32 %v1570_v29  ;;  %v1444_v15 = vmul.f32 0.0078125, %v1298_v17  ;;  %v1296_v51 = vpop.xlane.xlu0 %1295  ;;  %v2087_v42 = vadd.f32 %v11374_v2, %v1952_v11  ;;  %v1819_v45 = vmul.f32 %v8612_v40, %v10825_v54 }
 0x2a5   : > { %8623 = vrsqrt.f32 %v1569_v30  ;;  %v1443_v10 = vmul.f32 0.0078125, %v1296_v51  ;;  %v1955_v26 = vmul.f32 %v11365_v21, %v1820_v13 }
 0x2a6   : > { %v8614_v22 = vpop.eup %8613  ;;  %v1572_v12 = vadd.f32 1e-05, %v1444_v15  ;;  %8260 = vmatprep.mubr.f32.mxu1 %v2087_v42  ;;  %v1954_v37 = vmul.f32 %v11365_v21, %v1819_v45 }
 0x2a7   : > { %v8616_v4 = vpop.eup %8615  ;;  %v1571_v39 = vadd.f32 1e-05, %v1443_v10  ;;  %v1302_v63 = vpop.xlane.xlu1 %1301  ;;  %v2090_v23 = vadd.f32 %v11374_v2, %v1955_v26  ;;  %v1822_v60 = vmul.f32 %v8614_v22, %v10842_v35  ;;  %8261 = vmatmul.mubr.f32.gmra.mrb[34].mxu1 %v2088_v20 }
 0x2a8   : > { %8625 = vrsqrt.f32 %v1572_v12  ;;  %v1446_v28 = vmul.f32 0.0078125, %v1302_v63  ;;  %v1300_v54 = vpop.xlane.xlu0 %1299  ;;  %v2089_v56 = vadd.f32 %v11374_v2, %v1954_v37  ;;  %v1821_v57 = vmul.f32 %v8616_v4, %v10859_v0 }
 0x2a9   : > { %8627 = vrsqrt.f32 %v1571_v39  ;;  %v1445_v59 = vmul.f32 0.0078125, %v1300_v54  ;;  %v1957_v61 = vmul.f32 %v11365_v21, %v1822_v60 }
 0x2aa   : > { %v8618_v34 = vpop.eup %8617  ;;  %v1574_v31 = vadd.f32 1e-05, %v1446_v28  ;;  %8263 = vmatprep.mubr.f32.mxu1 %v2089_v56  ;;  %v1956_v33 = vmul.f32 %v11365_v21, %v1821_v57  ;;  %v11403_v56 = vld [vmem:[%s15380_s4] ss:$0 sm:$0xff] }
 0x2ab   : > { %v8620_v36 = vpop.eup %8619  ;;  %v1573_v27 = vadd.f32 1e-05, %v1445_v59  ;;  %v1306_v35 = vpop.xlane.xlu1 %1305  ;;  %v2092_v47 = vadd.f32 %v11374_v2, %v1957_v61  ;;  %v1824_v52 = vmul.f32 %v8618_v34, %v10867_v62  ;;  %8264 = vmatmul.mubr.f32.gmra.mrb[36].mxu1 %v2090_v23 }
 0x2ac   : > { %8629 = vrsqrt.f32 %v1574_v31  ;;  %v1448_v41 = vmul.f32 0.0078125, %v1306_v35  ;;  %v1304_v0 = vpop.xlane.xlu0 %1303  ;;  %v2091_v7 = vadd.f32 %v11374_v2, %v1956_v33  ;;  %v1823_v29 = vmul.f32 %v8620_v36, %v10875_v55 }
 0x2ad   : > { %8631 = vrsqrt.f32 %v1573_v27  ;;  %v1447_v11 = vmul.f32 0.0078125, %v1304_v0  ;;  %v1959_v40 = vmul.f32 %v11365_v21, %v1824_v52 }
 0x2ae   : > { %v8622_v30 = vpop.eup %8621  ;;  %v1576_v17 = vadd.f32 1e-05, %v1448_v41  ;;  %8266 = vmatprep.mubr.f32.mxu1 %v2091_v7  ;;  %v1958_v20 = vmul.f32 %v11365_v21, %v1823_v29 }
 0x2af   : > { %v8624_v13 = vpop.eup %8623  ;;  %v1575_v15 = vadd.f32 1e-05, %v1447_v11  ;;  %v1310_v62 = vpop.xlane.xlu1 %1309  ;;  %v2094_v51 = vadd.f32 %v11374_v2, %v1959_v40  ;;  %v1826_v42 = vmul.f32 %v8622_v30, %v10898_v46  ;;  %8267 = vmatmul.mubr.f32.gmra.mrb[38].mxu1 %v2092_v47 }
 0x2b0   : > { %8633 = vrsqrt.f32 %v1576_v17  ;;  %v1450_v45 = vmul.f32 0.0078125, %v1310_v62  ;;  %v1308_v55 = vpop.xlane.xlu0 %1307  ;;  %v2093_v10 = vadd.f32 %v11374_v2, %v1958_v20  ;;  %v1825_v26 = vmul.f32 %v8624_v13, %v10906_v3 }
 0x2b1   : > { %8635 = vrsqrt.f32 %v1575_v15  ;;  %v1449_v22 = vmul.f32 0.0078125, %v1308_v55  ;;  %v1961_v12 = vmul.f32 %v11365_v21, %v1826_v42 }
 0x2b2   : > { %v8626_v37 = vpop.eup %8625  ;;  %v1578_v4 = vadd.f32 1e-05, %v1450_v45  ;;  %8269 = vmatprep.mubr.f32.mxu1 %v2093_v10  ;;  %v1960_v39 = vmul.f32 %v11365_v21, %v1825_v26 }
 0x2b3   : > { %v8628_v63 = vpop.eup %8627  ;;  %v1577_v23 = vadd.f32 1e-05, %v1449_v22  ;;  %v1314_v46 = vpop.xlane.xlu1 %1313  ;;  %v2096_v60 = vadd.f32 %v11374_v2, %v1961_v12  ;;  %v1828_v28 = vmul.f32 %v8626_v37, %v10934_v50  ;;  %8270 = vmatmul.mubr.f32.gmra.mrb[40].mxu1 %v2094_v51 }
 0x2b4   : > { %8637 = vrsqrt.f32 %v1578_v4  ;;  %v1452_v54 = vmul.f32 0.0078125, %v1314_v46  ;;  %v1312_v3 = vpop.xlane.xlu0 %1311  ;;  %v2095_v57 = vadd.f32 %v11374_v2, %v1960_v39  ;;  %v1827_v59 = vmul.f32 %v8628_v63, %v10937_v38 }
 0x2b5   : > { %8639 = vrsqrt.f32 %v1577_v23  ;;  %v1451_v61 = vmul.f32 0.0078125, %v1312_v3  ;;  %v1963_v34 = vmul.f32 %v11365_v21, %v1828_v28 }
 0x2b6   : > { %v8630_v31 = vpop.eup %8629  ;;  %v1580_v33 = vadd.f32 1e-05, %v1452_v54  ;;  %v8115_v50 = vpop.f32.mrb[0].mxu0  ;;  %8272 = vmatprep.mubr.f32.mxu1 %v2095_v57  ;;  %v1962_v36 = vmul.f32 %v11365_v21, %v1827_v59 }
 0x2b7   : > { %v8632_v27 = vpop.eup %8631  ;;  %v1579_v35 = vadd.f32 1e-05, %v1451_v61  ;;  %v2212_v47 = vadd.f32 %v8115_v50, %v11403_v56  ;;  %v2206_v52 = vpop.f32.mrb[1].mxu0  ;;  %v2098_v0 = vadd.f32 %v11374_v2, %v1963_v34  ;;  %v1830_v38 = vmul.f32 %v8630_v31, %v10964_v24  ;;  %8273 = vmatmul.mubr.f32.gmra.mrb[42].mxu1 %v2096_v60 }
 0x2b8   : > { %v1318_v41 = vpop.xlane.xlu1 %1317  ;;  %8641 = vrsqrt.f32 %v1580_v33  ;;  %v2207_v7 = vadd.f32 %v11403_v56, %v2206_v52  ;;  %v1316_v11 = vpop.xlane.xlu0 %1315  ;;  %v2097_v40 = vadd.f32 %v11374_v2, %v1962_v36  ;;  %v1829_v17 = vmul.f32 %v8632_v27, %v10969_v19 }
 0x2b9   : > { %v1454_v29 = vmul.f32 0.0078125, %v1318_v41  ;;  %8643 = vrsqrt.f32 %v1579_v35  ;;  %v1453_v30 = vmul.f32 0.0078125, %v1316_v11  ;;  %v1965_v20 = vmul.f32 %v11365_v21, %v1830_v38 }
 0x2ba   : > { %v8634_v13 = vpop.eup %8633  ;;  %8645 = vtanh.f32 %v2212_v47  ;;  %8275 = vmatprep.mubr.f32.mxu1 %v2097_v40  ;;  %v1964_v45 = vmul.f32 %v11365_v21, %v1829_v17 }
 0x2bb   : > { %v1582_v15 = vadd.f32 1e-05, %v1454_v29  ;;  %v8636_v62 = vpop.eup %8635  ;;  %8647 = vtanh.f32 %v2207_v7  ;;  %v1581_v24 = vadd.f32 1e-05, %v1453_v30  ;;  %v11416_v51 = vpop.f32.mrb[2].mxu0  ;;  %8276 = vmatmul.mubr.f32.gmra.mrb[44].mxu1 %v2098_v0  ;;  %v2100_v19 = vadd.f32 %v11374_v2, %v1965_v20 }
 0x2bc   : > { %v1322_v42 = vpop.xlane.xlu1 %1321  ;;  %v11419_v55 = vpop.f32.mrb[3].mxu0  ;;  %v1831_v22 = vmul.f32 %v8636_v62, %v11003_v1  ;;  %v2099_v37 = vadd.f32 %v11374_v2, %v1964_v45  ;;  %v1832_v23 = vmul.f32 %v8634_v13, %v10986_v53 }
 0x2bd   : > { %v1456_v10 = vmul.f32 0.0078125, %v1322_v42  ;;  %v1320_v26 = vpop.xlane.xlu0 %1319  ;;  %8649 = vrsqrt.f32 %v1582_v15 }
 0x2be   : > { %v1455_v12 = vmul.f32 0.0078125, %v1320_v26  ;;  %v8638_v4 = vpop.eup %8637  ;;  %8651 = vrsqrt.f32 %v1581_v24  ;;  %v1966_v63 = vmul.f32 %v11365_v21, %v1831_v22  ;;  %8278 = vmatprep.mubr.f32.mxu1 %v2099_v37  ;;  %v1967_v53 = vmul.f32 %v11365_v21, %v1832_v23 }
 0x2bf   : > { %v1584_v39 = vadd.f32 1e-05, %v1456_v10  ;;  %v8640_v46 = vpop.eup %8639  ;;  %v11426_v28 = vpop.f32.mrb[4].mxu0  ;;  %v1834_v3 = vmul.f32 %v8638_v4, %v11011_v18  ;;  %8279 = vmatmul.mubr.f32.gmra.mrb[46].mxu1 %v2100_v19  ;;  %v11437_v18 = vld [vmem:[%s15381_s5] ss:$0 sm:$0xff] }
 0x2c0   : > { %v1583_v60 = vadd.f32 1e-05, %v1455_v12  ;;  %v1326_v54 = vpop.xlane.xlu1 %1325  ;;  %v11429_v1 = vpop.f32.mrb[5].mxu0  ;;  %v2101_v61 = vadd.f32 %v11374_v2, %v1966_v63  ;;  %v1833_v50 = vmul.f32 %v8640_v46, %v11019_v16  ;;  %v2102_v52 = vadd.f32 %v11374_v2, %v1967_v53 }
 0x2c1   : > { %8653 = vrsqrt.f32 %v1584_v39  ;;  %v1458_v57 = vmul.f32 0.0078125, %v1326_v54  ;;  %v1324_v59 = vpop.xlane.xlu0 %1323  ;;  %v1969_v36 = vmul.f32 %v11365_v21, %v1834_v3 }
 0x2c2   : > { %8655 = vrsqrt.f32 %v1583_v60  ;;  %v1457_v34 = vmul.f32 0.0078125, %v1324_v59  ;;  %v8642_v31 = vpop.eup %8641  ;;  %8281 = vmatprep.mubr.f32.mxu1 %v2101_v61  ;;  %v1968_v29 = vmul.f32 %v11365_v21, %v1833_v50 }
 0x2c3   : > { %v1586_v33 = vadd.f32 1e-05, %v1458_v57  ;;  %v8644_v27 = vpop.eup %8643  ;;  %v11440_v47 = vpop.f32.mrb[6].mxu0  ;;  %8282 = vmatmul.mubr.f32.gmra.mrb[48].mxu1 %v2102_v52  ;;  %v2104_v13 = vadd.f32 %v11374_v2, %v1969_v36  ;;  %v1836_v15 = vmul.f32 %v8642_v31, %v11042_v9 }
 0x2c4   : > { %v1585_v35 = vadd.f32 1e-05, %v1457_v34  ;;  %v1330_v41 = vpop.xlane.xlu1 %1329  ;;  %v8646_v0 = vpop.eup %8645  ;;  %v2103_v20 = vadd.f32 %v11374_v2, %v1968_v29  ;;  %v1835_v4 = vmul.f32 %v8644_v27, %v11050_v5 }
 0x2c5   : > { %8657 = vrsqrt.f32 %v1586_v33  ;;  %v11443_v38 = vpop.f32.mrb[7].mxu0  ;;  %v1460_v7 = vmul.f32 0.0078125, %v1330_v41  ;;  %v1328_v16 = vpop.xlane.xlu0 %1327  ;;  %v2981_v30 = vmul.f32 %v8646_v0, %v11437_v18  ;;  %v1971_v60 = vmul.f32 %v11365_v21, %v1836_v15 }
 0x2c6   : > { %v8648_v11 = vpop.eup %8647  ;;  %8659 = vrsqrt.f32 %v1585_v35  ;;  %v1459_v40 = vmul.f32 0.0078125, %v1328_v16  ;;  %8284 = vmatprep.mubr.f32.mxu1 %v2103_v20  ;;  %v1970_v46 = vmul.f32 %v11365_v21, %v1835_v4 }
 0x2c7   : > { %v1588_v17 = vadd.f32 1e-05, %v1460_v7  ;;  %v8650_v62 = vpop.eup %8649  ;;  %v11450_v42 = vpop.f32.mrb[8].mxu0  ;;  %v3112_v45 = vsel %vm3108_vm0, %v2981_v30, 0.0  ;;  %v2980_v26 = vmul.f32 %v8648_v11, %v11437_v18  ;;  %8285 = vmatmul.mubr.f32.gmra.mrb[50].mxu1 %v2104_v13  ;;  %v2106_v53 = vadd.f32 %v11374_v2, %v1971_v60 }
 0x2c8   : > { %v1587_v24 = vadd.f32 1e-05, %v1459_v40  ;;  %v1334_v10 = vpop.xlane.xlu1 %1333  ;;  %v8652_v19 = vpop.eup %8651  ;;  %3113 = vadd.xlane.f32.xlu1 %v3112_v45  ;;  %v1838_v5 = vmul.f32 %v8650_v62, %v11078_v58  ;;  %v2105_v61 = vadd.f32 %v11374_v2, %v1970_v46 }
 0x2c9   : > { %8661 = vrsqrt.f32 %v1588_v17  ;;  %v11454_v22 = vpop.f32.mrb[9].mxu0  ;;  %v1462_v12 = vmul.f32 0.0078125, %v1334_v10  ;;  %v1332_v37 = vpop.xlane.xlu0 %1331  ;;  %v3109_v9 = vsel %vm3108_vm0, %v2980_v26, 0.0  ;;  %v1837_v59 = vmul.f32 %v8652_v19, %v11081_v49 }
 0x2ca   : > { %8663 = vrsqrt.f32 %v1587_v24  ;;  %v1461_v39 = vmul.f32 0.0078125, %v1332_v37  ;;  %3110 = vadd.xlane.f32.xlu0 %v3109_v9  ;;  %v1973_v33 = vmul.f32 %v11365_v21, %v1838_v5  ;;  %8287 = vmatprep.mubr.f32.mxu1 %v2105_v61 }
 0x2cb   : > { %v8654_v63 = vpop.eup %8653  ;;  %v1590_v23 = vadd.f32 1e-05, %v1462_v12  ;;  %v11460_v57 = vpop.f32.mrb[10].mxu0  ;;  %v1972_v31 = vmul.f32 %v11365_v21, %v1837_v59  ;;  %8288 = vmatmul.mubr.f32.gmra.mrb[52].mxu1 %v2106_v53 }
 0x2cc   : > { %v8656_v54 = vpop.eup %8655  ;;  %v1589_v3 = vadd.f32 1e-05, %v1461_v39  ;;  %v11465_v34 = vpop.f32.mrb[11].mxu0  ;;  %v1840_v49 = vmul.f32 %v8654_v63, %v11108_v8  ;;  %v2108_v52 = vadd.f32 %v11374_v2, %v1973_v33 }
 0x2cd   : > { %8665 = vrsqrt.f32 %v1590_v23  ;;  %v1839_v36 = vmul.f32 %v8656_v54, %v11113_v48  ;;  %v2107_v35 = vadd.f32 %v11374_v2, %v1972_v31 }
 0x2ce   : > { %8667 = vrsqrt.f32 %v1589_v3  ;;  %v1975_v16 = vmul.f32 %v11365_v21, %v1840_v49 }
 0x2cf   : > { %v8658_v50 = vpop.eup %8657  ;;  %v11472_v58 = vpop.f32.mrb[12].mxu0  ;;  %v1974_v7 = vmul.f32 %v11365_v21, %v1839_v36  ;;  %8290 = vmatprep.mubr.f32.mxu1 %v2107_v35 }
 0x2d0   : > { %v8660_v27 = vpop.eup %8659  ;;  %v1842_v41 = vmul.f32 %v8658_v50, %v11132_v6  ;;  %v11477_v0 = vpop.f32.mrb[13].mxu0  ;;  %8291 = vmatmul.mubr.f32.gmra.mrb[54].mxu1 %v2108_v52  ;;  %v2110_v6 = vadd.f32 %v11374_v2, %v1975_v16 }
 0x2d1   : > { %v1841_v48 = vmul.f32 %v8660_v27, %v11142_v44  ;;  %v2109_v29 = vadd.f32 %v11374_v2, %v1974_v7 }
 0x2d2   : > { %v1977_v17 = vmul.f32 %v11365_v21, %v1842_v41 }
 0x2d3   : > { %v8662_v8 = vpop.eup %8661  ;;  %v1976_v11 = vmul.f32 %v11365_v21, %v1841_v48  ;;  %v11484_v30 = vpop.f32.mrb[14].mxu0  ;;  %8293 = vmatprep.mubr.f32.mxu1 %v2109_v29 }
 0x2d4   : > { %v8664_v40 = vpop.eup %8663  ;;  %v1844_v20 = vmul.f32 %v8662_v8, %v11154_v25  ;;  %v11489_v13 = vpop.f32.mrb[15].mxu0  ;;  %8294 = vmatmul.mubr.f32.gmra.mrb[56].mxu1 %v2110_v6  ;;  %v2112_v26 = vadd.f32 %v11374_v2, %v1977_v17 }
 0x2d5   : > { %v2111_v44 = vadd.f32 %v11374_v2, %v1976_v11  ;;  %v1843_v15 = vmul.f32 %v8664_v40, %v11159_v14 }
 0x2d6   : > { %v1979_v19 = vmul.f32 %v11365_v21, %v1844_v20 }
 0x2d7   : > { %v8666_v62 = vpop.eup %8665  ;;  %v1978_v24 = vmul.f32 %v11365_v21, %v1843_v15  ;;  %v11494_v10 = vpop.f32.mrb[16].mxu0  ;;  %8296 = vmatprep.mubr.f32.mxu1 %v2111_v44 }
 0x2d8   : > { %v8668_v45 = vpop.eup %8667  ;;  %v1846_v25 = vmul.f32 %v8666_v62, %v11181_v43  ;;  %v11499_v12 = vpop.f32.mrb[17].mxu0  ;;  %8297 = vmatmul.mubr.f32.gmra.mrb[58].mxu1 %v2112_v26  ;;  %v2114_v39 = vadd.f32 %v11374_v2, %v1979_v19 }
 0x2d9   : > { %v2113_v37 = vadd.f32 %v11374_v2, %v1978_v24  ;;  %v1845_v14 = vmul.f32 %v8668_v45, %v11193_v32 }
 0x2da   : > { %v1981_v63 = vmul.f32 %v11365_v21, %v1846_v25 }
 0x2db   : > { %v1980_v4 = vmul.f32 %v11365_v21, %v1845_v14  ;;  %v11504_v9 = vpop.f32.mrb[18].mxu0  ;;  %8299 = vmatprep.mubr.f32.mxu1 %v2113_v37 }
 0x2dc   : > { %v11508_v23 = vpop.f32.mrb[19].mxu0  ;;  %8300 = vmatmul.mubr.f32.gmra.mrb[60].mxu1 %v2114_v39  ;;  %v2116_v60 = vadd.f32 %v11374_v2, %v1981_v63 }
 0x2dd   : > { %v2115_v43 = vadd.f32 %v11374_v2, %v1980_v4 }
 0x2df   : > { %v11511_v46 = vpop.f32.mrb[20].mxu0  ;;  %8302 = vmatprep.mubr.f32.mxu1 %v2115_v43  ;;  %v2222_v43 = vadd.f32 %v11416_v51, %v11403_v56 }
 0x2e0   : > { %v11514_v32 = vpop.f32.mrb[21].mxu0  ;;  %8303 = vmatmul.mubr.f32.gmra.mrb[62].mxu1 %v2116_v60 }
 0x2e1   : > { %8669 = vtanh.f32 %v2222_v43  ;;  %v2227_v43 = vadd.f32 %v11403_v56, %v11429_v1  ;;  %v2242_v1 = vadd.f32 %v11440_v47, %v11403_v56 }
 0x2e3   : > { %v11516_v54 = vpop.f32.mrb[22].mxu0 }
 0x2e4   : > { %v11518_v3 = vpop.f32.mrb[23].mxu0 }
 0x2e7   : > { %v11520_v59 = vpop.f32.mrb[24].mxu0 }
 0x2e8   : > { %v11522_v21 = vpop.f32.mrb[25].mxu0 }
 0x2eb   : > { %v11524_v5 = vpop.f32.mrb[26].mxu0 }
 0x2ec   : > { %v11526_v61 = vpop.f32.mrb[27].mxu0 }
 0x2ef   : > { %v11528_v53 = vpop.f32.mrb[28].mxu0 }
 0x2f0   : > { %v11530_v31 = vpop.f32.mrb[29].mxu0 }
 0x2f3   : > { %v11532_v2 = vpop.f32.mrb[30].mxu0 }
 0x2f4   : > { %v11534_v33 = vpop.f32.mrb[31].mxu0 }
 0x2f7   : > { %v11536_v50 = vpop.f32.mrb[32].mxu0 }
 0x2f8   : > { %v11538_v36 = vpop.f32.mrb[33].mxu0 }
 0x2fb   : > { %v11540_v49 = vpop.f32.mrb[34].mxu0 }
 0x2fc   : > { %v11542_v27 = vpop.f32.mrb[35].mxu0 }
 0x2ff   : > { %v11544_v35 = vpop.f32.mrb[36].mxu0 }
 0x300   : > { %v11546_v52 = vpop.f32.mrb[37].mxu0 }
 0x303   : > { %v11548_v41 = vpop.f32.mrb[38].mxu0 }
 0x304   : > { %v11550_v7 = vpop.f32.mrb[39].mxu0 }
 0x307   : > { %v11552_v16 = vpop.f32.mrb[40].mxu0 }
 0x308   : > { %v11554_v48 = vpop.f32.mrb[41].mxu0 }
 0x30b   : > { %v11556_v8 = vpop.f32.mrb[42].mxu0 }
 0x30c   : > { %v11558_v29 = vpop.f32.mrb[43].mxu0 }
 0x30f   : > { %v11560_v11 = vpop.f32.mrb[44].mxu0 }
 0x310   : > { %v11562_v40 = vpop.f32.mrb[45].mxu0 }
 0x313   : > { %v11564_v6 = vpop.f32.mrb[46].mxu0 }
 0x314   : > { %v11566_v17 = vpop.f32.mrb[47].mxu0 }
 0x317   : > { %v11568_v20 = vpop.f32.mrb[48].mxu0 }
 0x318   : > { %v11570_v44 = vpop.f32.mrb[49].mxu0 }
 0x31b   : > { %v11572_v15 = vpop.f32.mrb[50].mxu0 }
 0x31c   : > { %16131 = vst [vmem:[#allocation62_spill] sm:$0xff] %v11572_v15  ;;  %v11574_v62 = vpop.f32.mrb[51].mxu0 }
 0x31d   : > { %16132 = vst [vmem:[#allocation61_spill] sm:$0xff] %v11574_v62 }
 0x31f   : > { %v11576_v24 = vpop.f32.mrb[52].mxu0 }
 0x320   : > { %16133 = vst [vmem:[#allocation45_spill] sm:$0xff] %v11576_v24  ;;  %v11578_v45 = vpop.f32.mrb[53].mxu0 }
 0x321   : > { %16134 = vst [vmem:[#allocation46_spill] sm:$0xff] %v11578_v45 }
 0x323   : > { %v11580_v26 = vpop.f32.mrb[54].mxu0 }
 0x324   : > { %16135 = vst [vmem:[#allocation64_spill] sm:$0xff] %v11580_v26  ;;  %v11582_v19 = vpop.f32.mrb[55].mxu0 }
 0x325   : > { %16136 = vst [vmem:[#allocation63_spill] sm:$0xff] %v11582_v19  ;;  %v2217_v19 = vadd.f32 %v11403_v56, %v11419_v55 }
 0x327   : > { %v11584_v25 = vpop.f32.mrb[56].mxu0  ;;  %8671 = vtanh.f32 %v2217_v19 }
 0x328   : > { %16137 = vst [vmem:[#allocation25_spill] sm:$0xff] %v11584_v25  ;;  %v11586_v37 = vpop.f32.mrb[57].mxu0 }
 0x329   : > { %16138 = vst [vmem:[#allocation65_spill] sm:$0xff] %v11586_v37 }
 0x32b   : > { %v11588_v14 = vpop.f32.mrb[58].mxu0 }
 0x32c   : > { %16139 = vst [vmem:[#allocation66_spill] sm:$0xff] %v11588_v14  ;;  %v11590_v4 = vpop.f32.mrb[59].mxu0 }
 0x32d   : > { %16140 = vst [vmem:[#allocation67_spill] sm:$0xff] %v11590_v4 }
 0x32f   : > { %v11592_v39 = vpop.f32.mrb[60].mxu0 }
 0x330   : > { %16141 = vst [vmem:[#allocation68_spill] sm:$0xff] %v11592_v39  ;;  %v11594_v63 = vpop.f32.mrb[61].mxu0 }
 0x331   : > { %16142 = vst [vmem:[#allocation69_spill] sm:$0xff] %v11594_v63 }
 0x333   : > { %v11598_v60 = vpop.f32.mrb[62].mxu0 }
 0x334   : > { %16143 = vst [vmem:[#allocation70_spill] sm:$0xff] %v11598_v60  ;;  %v11602_v26 = vpop.f32.mrb[63].mxu0  ;;  %v2232_v60 = vadd.f32 %v11426_v28, %v11403_v56 }
 0x335   : > { %16144 = vst [vmem:[#allocation28_spill] sm:$0xff] %v11602_v26  ;;  %v8670_v26 = vpop.eup %8669 }
 0x336   : > { %v8211_v25 = vpop.f32.mrb[0].mxu1 }
 0x337   : > { %v2532_v14 = vadd.f32 %v8211_v25, %v11403_v56  ;;  %v2526_v37 = vpop.f32.mrb[1].mxu1 }
 0x338   : > { %v2527_v39 = vadd.f32 %v11403_v56, %v2526_v37 }
 0x339   : > { %8673 = vtanh.f32 %v2532_v14  ;;  %v8672_v14 = vpop.eup %8671 }
 0x33a   : > { %8675 = vtanh.f32 %v2527_v39  ;;  %v8214_v63 = vpop.f32.mrb[2].mxu1 }
 0x33b   : > { %v2542_v51 = vadd.f32 %v8214_v63, %v11403_v56  ;;  %v2536_v4 = vpop.f32.mrb[3].mxu1 }
 0x33c   : > { %v2537_v55 = vadd.f32 %v11403_v56, %v2536_v4 }
 0x33d   : > { %8677 = vtanh.f32 %v2542_v51 }
 0x33e   : > { %8679 = vtanh.f32 %v2537_v55  ;;  %v8217_v25 = vpop.f32.mrb[4].mxu1 }
 0x33f   : > { %v2546_v19 = vpop.f32.mrb[5].mxu1  ;;  %8681 = vtanh.f32 %v2232_v60  ;;  %v2552_v37 = vadd.f32 %v8217_v25, %v11403_v56  ;;  %v2237_v60 = vadd.f32 %v11403_v56, %v11443_v38 }
 0x340   : > { %8683 = vtanh.f32 %v2227_v43  ;;  %v2547_v39 = vadd.f32 %v11403_v56, %v2546_v19  ;;  %v2983_v43 = vmul.f32 %v8670_v26, %v11437_v18 }
 0x341   : > { %8685 = vtanh.f32 %v2552_v37 }
 0x342   : > { %v8220_v45 = vpop.f32.mrb[6].mxu1  ;;  %8687 = vtanh.f32 %v2547_v39  ;;  %v3118_v39 = vsel %vm3108_vm0, %v2983_v43, 0.0 }
 0x343   : > { %v8674_v63 = vpop.eup %8673  ;;  %v2556_v24 = vpop.f32.mrb[7].mxu1  ;;  %8689 = vtanh.f32 %v2242_v1  ;;  %v2562_v37 = vadd.f32 %v8220_v45, %v11403_v56  ;;  %v2252_v45 = vadd.f32 %v11450_v42, %v11403_v56 }
 0x344   : > { %v8676_v28 = vpop.eup %8675  ;;  %v3045_v4 = vmul.f32 %v8674_v63, %v11437_v18  ;;  %v2982_v63 = vmul.f32 %v8672_v14, %v11437_v18  ;;  %8691 = vtanh.f32 %v2237_v60  ;;  %v2557_v38 = vadd.f32 %v11403_v56, %v2556_v24 }
 0x345   : > { %v3044_v51 = vmul.f32 %v8676_v28, %v11437_v18  ;;  %8693 = vtanh.f32 %v2562_v37  ;;  %v2247_v24 = vadd.f32 %v11403_v56, %v11454_v22 }
 0x346   : > { %v3304_v55 = vsel %vm3108_vm0, %v3045_v4, 0.0  ;;  %v8223_v25 = vpop.f32.mrb[8].mxu1  ;;  %8695 = vtanh.f32 %v2557_v38 }
 0x347   : > { %3305 = vadd.xlane.f32.xlu1 %v3304_v55  ;;  %v3301_v19 = vsel %vm3108_vm0, %v3044_v51, 0.0  ;;  %v8678_v62 = vpop.eup %8677  ;;  %v2566_v15 = vpop.f32.mrb[9].mxu1  ;;  %v3115_v51 = vsel %vm3108_vm0, %v2982_v63, 0.0  ;;  %8697 = vtanh.f32 %v2252_v45  ;;  %v2572_v42 = vadd.f32 %v8223_v25, %v11403_v56 }
 0x348   : > { %3302 = vadd.xlane.f32.xlu0 %v3301_v19  ;;  %v8680_v47 = vpop.eup %8679  ;;  %v3047_v26 = vmul.f32 %v8678_v62, %v11437_v18  ;;  %8699 = vtanh.f32 %v2247_v24  ;;  %v2567_v22 = vadd.f32 %v11403_v56, %v2566_v15  ;;  %v2262_v25 = vadd.f32 %v11460_v57, %v11403_v56 }
 0x349   : > { %v8682_v28 = vpop.eup %8681  ;;  %v3046_v14 = vmul.f32 %v8680_v47, %v11437_v18  ;;  %8701 = vtanh.f32 %v2572_v42  ;;  %v2257_v15 = vadd.f32 %v11403_v56, %v11465_v34 }
 0x34a   : > { %v8226_v4 = vpop.f32.mrb[10].mxu1  ;;  %v8684_v55 = vpop.eup %8683  ;;  %v3310_v62 = vsel %vm3108_vm0, %v3047_v26, 0.0  ;;  %v2985_v1 = vmul.f32 %v8682_v28, %v11437_v18  ;;  %8703 = vtanh.f32 %v2567_v22 }
 0x34b   : > { %3119 = vadd.xlane.f32.xlu1 %v3118_v39  ;;  %v2576_v19 = vpop.f32.mrb[11].mxu1  ;;  %v8686_v60 = vpop.eup %8685  ;;  %v3307_v63 = vsel %vm3108_vm0, %v3046_v14, 0.0  ;;  %v2984_v47 = vmul.f32 %v8684_v55, %v11437_v18  ;;  %8705 = vtanh.f32 %v2262_v25  ;;  %v2582_v57 = vadd.f32 %v8226_v4, %v11403_v56 }
 0x34c   : > { %3116 = vadd.xlane.f32.xlu0 %v3115_v51  ;;  %v8688_v39 = vpop.eup %8687  ;;  %v3124_v37 = vsel %vm3108_vm0, %v2985_v1, 0.0  ;;  %v3049_v38 = vmul.f32 %v8686_v60, %v11437_v18  ;;  %8707 = vtanh.f32 %v2257_v15  ;;  %v2577_v34 = vadd.f32 %v11403_v56, %v2576_v19 }
 0x34d   : > { %v8690_v26 = vpop.eup %8689  ;;  %v3121_v14 = vsel %vm3108_vm0, %v2984_v47, 0.0  ;;  %v3048_v55 = vmul.f32 %v8688_v39, %v11437_v18  ;;  %v2272_v4 = vadd.f32 %v11472_v58, %v11403_v56  ;;  %8709 = vtanh.f32 %v2582_v57 }
 0x34e   : > { %v11636_v43 = vpop.f32.mrb[12].mxu1  ;;  %v3316_v45 = vsel %vm3108_vm0, %v3049_v38, 0.0  ;;  %v2987_v24 = vmul.f32 %v8690_v26, %v11437_v18  ;;  %v2267_v19 = vadd.f32 %v11403_v56, %v11477_v0  ;;  %8711 = vtanh.f32 %v2577_v34 }
 0x34f   : > { %3311 = vadd.xlane.f32.xlu1 %v3310_v62  ;;  %v2586_v51 = vpop.f32.mrb[13].mxu1  ;;  %v8692_v62 = vpop.eup %8691  ;;  %v3313_v47 = vsel %vm3108_vm0, %v3048_v55, 0.0  ;;  %8713 = vtanh.f32 %v2272_v4  ;;  %v2592_v58 = vadd.f32 %v11636_v43, %v11403_v56  ;;  %v2282_v43 = vadd.f32 %v11484_v30, %v11403_v56 }
 0x350   : > { %3308 = vadd.xlane.f32.xlu0 %v3307_v63  ;;  %v8694_v1 = vpop.eup %8693  ;;  %v2986_v39 = vmul.f32 %v8692_v62, %v11437_v18  ;;  %v3130_v42 = vsel %vm3108_vm0, %v2987_v24, 0.0  ;;  %8715 = vtanh.f32 %v2267_v19  ;;  %v2587_v0 = vadd.f32 %v11403_v56, %v2586_v51 }
 0x351   : > { %v3051_v22 = vmul.f32 %v8694_v1, %v11437_v18  ;;  %8717 = vtanh.f32 %v2592_v58  ;;  %v2277_v51 = vadd.f32 %v11403_v56, %v11489_v13 }
 0x352   : > { %v11644_v28 = vpop.f32.mrb[14].mxu1  ;;  %v3127_v55 = vsel %vm3108_vm0, %v2986_v39, 0.0  ;;  %8719 = vtanh.f32 %v2587_v0 }
 0x353   : > { %3125 = vadd.xlane.f32.xlu1 %v3124_v37  ;;  %v11648_v63 = vpop.f32.mrb[15].mxu1  ;;  %v8696_v37 = vpop.eup %8695  ;;  %v3322_v25 = vsel %vm3108_vm0, %v3051_v22, 0.0  ;;  %8721 = vtanh.f32 %v2282_v43  ;;  %v2602_v30 = vadd.f32 %v11644_v28, %v11403_v56  ;;  %v2292_v28 = vadd.f32 %v11494_v10, %v11403_v56 }
 0x354   : > { %3122 = vadd.xlane.f32.xlu0 %v3121_v14  ;;  %v8698_v38 = vpop.eup %8697  ;;  %v3050_v62 = vmul.f32 %v8696_v37, %v11437_v18  ;;  %8723 = vtanh.f32 %v2277_v51  ;;  %v2597_v13 = vadd.f32 %v11403_v56, %v11648_v63  ;;  %v2287_v63 = vadd.f32 %v11403_v56, %v11499_v12 }
 0x355   : > { %v2989_v15 = vmul.f32 %v8698_v38, %v11437_v18  ;;  %8725 = vtanh.f32 %v2602_v30 }
 0x356   : > { %v11656_v60 = vpop.f32.mrb[16].mxu1  ;;  %v3319_v39 = vsel %vm3108_vm0, %v3050_v62, 0.0  ;;  %8727 = vtanh.f32 %v2597_v13 }
 0x357   : > { %3317 = vadd.xlane.f32.xlu1 %v3316_v45  ;;  %v11660_v14 = vpop.f32.mrb[17].mxu1  ;;  %v8700_v45 = vpop.eup %8699  ;;  %v3136_v57 = vsel %vm3108_vm0, %v2989_v15, 0.0  ;;  %8729 = vtanh.f32 %v2292_v28  ;;  %v2612_v10 = vadd.f32 %v11656_v60, %v11403_v56  ;;  %v2302_v60 = vadd.f32 %v11504_v9, %v11403_v56 }
 0x358   : > { %3314 = vadd.xlane.f32.xlu0 %v3313_v47  ;;  %v8702_v24 = vpop.eup %8701  ;;  %v2988_v37 = vmul.f32 %v8700_v45, %v11437_v18  ;;  %8731 = vtanh.f32 %v2287_v63  ;;  %v2607_v12 = vadd.f32 %v11403_v56, %v11660_v14  ;;  %v2297_v14 = vadd.f32 %v11403_v56, %v11508_v23 }
 0x359   : > { %v3053_v34 = vmul.f32 %v8702_v24, %v11437_v18  ;;  %8733 = vtanh.f32 %v2612_v10  ;;  %v2312_v9 = vadd.f32 %v11511_v46, %v11403_v56  ;;  %v2307_v23 = vadd.f32 %v11403_v56, %v11514_v32 }
 0x35a   : > { %v11666_v26 = vpop.f32.mrb[18].mxu1  ;;  %v3133_v62 = vsel %vm3108_vm0, %v2988_v37, 0.0  ;;  %v2322_v46 = vadd.f32 %v11516_v54, %v11403_v56  ;;  %v2317_v32 = vadd.f32 %v11403_v56, %v11518_v3  ;;  %v2332_v54 = vadd.f32 %v11520_v59, %v11403_v56 }
 0x35b   : > { %3131 = vadd.xlane.f32.xlu1 %v3130_v42  ;;  %v11670_v47 = vpop.f32.mrb[19].mxu1  ;;  %v8704_v42 = vpop.eup %8703  ;;  %v3328_v19 = vsel %vm3108_vm0, %v3053_v34, 0.0  ;;  %8735 = vtanh.f32 %v2607_v12  ;;  %v2327_v3 = vadd.f32 %v11403_v56, %v11522_v21  ;;  %v2342_v59 = vadd.f32 %v11524_v5, %v11403_v56 }
 0x35c   : > { %3128 = vadd.xlane.f32.xlu0 %v3127_v55  ;;  %v8706_v22 = vpop.eup %8705  ;;  %v3052_v45 = vmul.f32 %v8704_v42, %v11437_v18  ;;  %8737 = vtanh.f32 %v2302_v60  ;;  %v2337_v21 = vadd.f32 %v11403_v56, %v11526_v61  ;;  %v2352_v5 = vadd.f32 %v11528_v53, %v11403_v56 }
 0x35d   : > { %v2991_v15 = vmul.f32 %v8706_v22, %v11437_v18  ;;  %v2347_v61 = vadd.f32 %v11403_v56, %v11530_v31  ;;  %v2362_v53 = vadd.f32 %v11532_v2, %v11403_v56  ;;  %v11820_v31 = vld [vmem:[%s15380_s4] ss:$0 sm:$0xff] }
 0x35e   : > { %v11678_v1 = vpop.f32.mrb[20].mxu1  ;;  %v3325_v37 = vsel %vm3108_vm0, %v3052_v45, 0.0 }
 0x35f   : > { %3323 = vadd.xlane.f32.xlu1 %v3322_v25  ;;  %v11682_v55 = vpop.f32.mrb[21].mxu1  ;;  %v8708_v25 = vpop.eup %8707  ;;  %v3142_v58 = vsel %vm3108_vm0, %v2991_v15, 0.0  ;;  %8739 = vtanh.f32 %v2297_v14 }
 0x360   : > { %3320 = vadd.xlane.f32.xlu0 %v3319_v39  ;;  %v8710_v24 = vpop.eup %8709  ;;  %v2990_v42 = vmul.f32 %v8708_v25, %v11437_v18  ;;  %8741 = vtanh.f32 %v2312_v9 }
 0x361   : > { %v3055_v0 = vmul.f32 %v8710_v24, %v11437_v18 }
 0x362   : > { %v11689_v38 = vpop.f32.mrb[22].mxu1  ;;  %v3139_v45 = vsel %vm3108_vm0, %v2990_v42, 0.0 }
 0x363   : > { %3137 = vadd.xlane.f32.xlu1 %v3136_v57  ;;  %v11693_v4 = vpop.f32.mrb[23].mxu1  ;;  %v8712_v57 = vpop.eup %8711  ;;  %v3334_v51 = vsel %vm3108_vm0, %v3055_v0, 0.0  ;;  %8743 = vtanh.f32 %v2307_v23 }
 0x364   : > { %3134 = vadd.xlane.f32.xlu0 %v3133_v62  ;;  %v8714_v34 = vpop.eup %8713  ;;  %v3054_v25 = vmul.f32 %v8712_v57, %v11437_v18  ;;  %8745 = vtanh.f32 %v2322_v46 }
 0x365   : > { %v8716_v43 = vpop.eup %8715  ;;  %v2993_v15 = vmul.f32 %v8714_v34, %v11437_v18  ;;  %8747 = vtanh.f32 %v2317_v32 }
 0x366   : > { %v11701_v39 = vpop.f32.mrb[24].mxu1  ;;  %v8718_v24 = vpop.eup %8717  ;;  %v3331_v42 = vsel %vm3108_vm0, %v3054_v25, 0.0  ;;  %v2992_v57 = vmul.f32 %v8716_v43, %v11437_v18  ;;  %8749 = vtanh.f32 %v2332_v54 }
 0x367   : > { %3329 = vadd.xlane.f32.xlu1 %v3328_v19  ;;  %v11705_v62 = vpop.f32.mrb[25].mxu1  ;;  %v3148_v30 = vsel %vm3108_vm0, %v2993_v15, 0.0  ;;  %v3057_v13 = vmul.f32 %v8718_v24, %v11437_v18 }
 0x368   : > { %3326 = vadd.xlane.f32.xlu0 %v3325_v37  ;;  %v3145_v25 = vsel %vm3108_vm0, %v2992_v57, 0.0 }
 0x369   : > { %v3340_v63 = vsel %vm3108_vm0, %v3057_v13, 0.0 }
 0x36a   : > { %v11713_v22 = vpop.f32.mrb[26].mxu1 }
 0x36b   : > { %3143 = vadd.xlane.f32.xlu1 %v3142_v58  ;;  %v11717_v19 = vpop.f32.mrb[27].mxu1  ;;  %v8720_v58 = vpop.eup %8719  ;;  %8751 = vtanh.f32 %v2327_v3 }
 0x36c   : > { %3140 = vadd.xlane.f32.xlu0 %v3139_v45  ;;  %v8722_v0 = vpop.eup %8721  ;;  %v3056_v43 = vmul.f32 %v8720_v58, %v11437_v18  ;;  %8753 = vtanh.f32 %v2342_v59 }
 0x36d   : > { %v8724_v28 = vpop.eup %8723  ;;  %v2995_v15 = vmul.f32 %v8722_v0, %v11437_v18  ;;  %8755 = vtanh.f32 %v2337_v21  ;;  %v2357_v21 = vadd.f32 %v11820_v31, %v11534_v33  ;;  %v2372_v33 = vadd.f32 %v11820_v31, %v11536_v50 }
 0x36e   : > { %v11725_v37 = vpop.f32.mrb[28].mxu1  ;;  %v8726_v24 = vpop.eup %8725  ;;  %v3337_v57 = vsel %vm3108_vm0, %v3056_v43, 0.0  ;;  %v2994_v58 = vmul.f32 %v8724_v28, %v11437_v18  ;;  %8757 = vtanh.f32 %v2352_v5  ;;  %v2382_v50 = vadd.f32 %v11820_v31, %v11540_v49 }
 0x36f   : > { %3335 = vadd.xlane.f32.xlu1 %v3334_v51  ;;  %v11729_v45 = vpop.f32.mrb[29].mxu1  ;;  %v3154_v10 = vsel %vm3108_vm0, %v2995_v15, 0.0  ;;  %v3059_v12 = vmul.f32 %v8726_v24, %v11437_v18  ;;  %v2392_v49 = vadd.f32 %v11820_v31, %v11544_v35  ;;  %v2402_v35 = vadd.f32 %v11820_v31, %v11548_v41 }
 0x370   : > { %3332 = vadd.xlane.f32.xlu0 %v3331_v42  ;;  %v3151_v43 = vsel %vm3108_vm0, %v2994_v58, 0.0  ;;  %v2412_v41 = vadd.f32 %v11820_v31, %v11552_v16 }
 0x371   : > { %v3346_v14 = vsel %vm3108_vm0, %v3059_v12, 0.0 }
 0x372   : > { %v11737_v34 = vpop.f32.mrb[30].mxu1 }
 0x373   : > { %3149 = vadd.xlane.f32.xlu1 %v3148_v30  ;;  %v11741_v51 = vpop.f32.mrb[31].mxu1  ;;  %v8728_v30 = vpop.eup %8727  ;;  %8759 = vtanh.f32 %v2347_v61  ;;  %v2367_v61 = vadd.f32 %v11820_v31, %v11538_v36  ;;  %v2377_v36 = vadd.f32 %v11820_v31, %v11542_v27  ;;  %v2387_v27 = vadd.f32 %v11820_v31, %v11546_v52 }
 0x374   : > { %3146 = vadd.xlane.f32.xlu0 %v3145_v25  ;;  %v8730_v13 = vpop.eup %8729  ;;  %v3058_v28 = vmul.f32 %v8728_v30, %v11437_v18  ;;  %8761 = vtanh.f32 %v2362_v53  ;;  %v2397_v52 = vadd.f32 %v11820_v31, %v11550_v7  ;;  %v2407_v7 = vadd.f32 %v11820_v31, %v11554_v48 }
 0x375   : > { %v8732_v60 = vpop.eup %8731  ;;  %v2997_v15 = vmul.f32 %v8730_v13, %v11437_v18  ;;  %8763 = vtanh.f32 %v2357_v21 }
 0x376   : > { %v11749_v42 = vpop.f32.mrb[32].mxu1  ;;  %v8734_v24 = vpop.eup %8733  ;;  %v3343_v58 = vsel %vm3108_vm0, %v3058_v28, 0.0  ;;  %v2996_v30 = vmul.f32 %v8732_v60, %v11437_v18  ;;  %8765 = vtanh.f32 %v2372_v33 }
 0x377   : > { %3341 = vadd.xlane.f32.xlu1 %v3340_v63  ;;  %v11753_v25 = vpop.f32.mrb[33].mxu1  ;;  %v8736_v9 = vpop.eup %8735  ;;  %v3160_v23 = vsel %vm3108_vm0, %v2997_v15, 0.0  ;;  %v3061_v12 = vmul.f32 %v8734_v24, %v11437_v18  ;;  %8767 = vtanh.f32 %v2367_v61 }
 0x378   : > { %3338 = vadd.xlane.f32.xlu0 %v3337_v57  ;;  %v8738_v13 = vpop.eup %8737  ;;  %v3157_v28 = vsel %vm3108_vm0, %v2996_v30, 0.0  ;;  %v3060_v60 = vmul.f32 %v8736_v9, %v11437_v18  ;;  %8769 = vtanh.f32 %v2382_v50 }
 0x379   : > { %v8740_v46 = vpop.eup %8739  ;;  %v3352_v32 = vsel %vm3108_vm0, %v3061_v12, 0.0  ;;  %v2999_v15 = vmul.f32 %v8738_v13, %v11437_v18  ;;  %8771 = vtanh.f32 %v2377_v36 }
 0x37a   : > { %v11761_v0 = vpop.f32.mrb[34].mxu1  ;;  %v8742_v24 = vpop.eup %8741  ;;  %v3349_v30 = vsel %vm3108_vm0, %v3060_v60, 0.0  ;;  %v2998_v9 = vmul.f32 %v8740_v46, %v11437_v18  ;;  %8773 = vtanh.f32 %v2392_v49 }
 0x37b   : > { %3155 = vadd.xlane.f32.xlu1 %v3154_v10  ;;  %v11765_v63 = vpop.f32.mrb[35].mxu1  ;;  %v8744_v54 = vpop.eup %8743  ;;  %v3166_v3 = vsel %vm3108_vm0, %v2999_v15, 0.0  ;;  %v3001_v12 = vmul.f32 %v8742_v24, %v11437_v18  ;;  %8775 = vtanh.f32 %v2387_v27 }
 0x37c   : > { %3152 = vadd.xlane.f32.xlu0 %v3151_v43  ;;  %v8746_v13 = vpop.eup %8745  ;;  %v3163_v60 = vsel %vm3108_vm0, %v2998_v9, 0.0  ;;  %v3000_v46 = vmul.f32 %v8744_v54, %v11437_v18  ;;  %8777 = vtanh.f32 %v2402_v35 }
 0x37d   : > { %v8748_v59 = vpop.eup %8747  ;;  %v3172_v15 = vsel %vm3108_vm0, %v3001_v12, 0.0  ;;  %v3003_v24 = vmul.f32 %v8746_v13, %v11437_v18  ;;  %8779 = vtanh.f32 %v2397_v52 }
 0x37e   : > { %v11773_v57 = vpop.f32.mrb[36].mxu1  ;;  %v3169_v54 = vsel %vm3108_vm0, %v3000_v46, 0.0  ;;  %v3002_v56 = vmul.f32 %v8748_v59, %v11437_v18 }
 0x37f   : > { %3347 = vadd.xlane.f32.xlu1 %v3346_v14  ;;  %v11777_v10 = vpop.f32.mrb[37].mxu1 }
 0x380   : > { %3344 = vadd.xlane.f32.xlu0 %v3343_v58  ;;  %v3175_v46 = vsel %vm3108_vm0, %v3002_v56, 0.0 }
 0x382   : > { %v11785_v43 = vpop.f32.mrb[38].mxu1 }
 0x383   : > { %3161 = vadd.xlane.f32.xlu1 %v3160_v23  ;;  %v11789_v14 = vpop.f32.mrb[39].mxu1 }
 0x384   : > { %3158 = vadd.xlane.f32.xlu0 %v3157_v28 }
 0x386   : > { %v11797_v58 = vpop.f32.mrb[40].mxu1 }
 0x387   : > { %3353 = vadd.xlane.f32.xlu1 %v3352_v32  ;;  %v11801_v23 = vpop.f32.mrb[41].mxu1 }
 0x388   : > { %3350 = vadd.xlane.f32.xlu0 %v3349_v30  ;;  %v8750_v30 = vpop.eup %8749  ;;  %8781 = vtanh.f32 %v2412_v41 }
 0x389   : > { %v8752_v2 = vpop.eup %8751  ;;  %v3005_v12 = vmul.f32 %v8750_v30, %v11437_v18  ;;  %8783 = vtanh.f32 %v2407_v7 }
 0x38a   : > { %v11809_v28 = vpop.f32.mrb[42].mxu1  ;;  %v8754_v13 = vpop.eup %8753  ;;  %v3004_v59 = vmul.f32 %v8752_v2, %v11437_v18 }
 0x38b   : > { %3167 = vadd.xlane.f32.xlu1 %v3166_v3  ;;  %v11813_v32 = vpop.f32.mrb[43].mxu1  ;;  %v3178_v3 = vsel %vm3108_vm0, %v3003_v24, 0.0  ;;  %v8756_v53 = vpop.eup %8755  ;;  %v3184_v21 = vsel %vm3108_vm0, %v3005_v12, 0.0  ;;  %v3007_v24 = vmul.f32 %v8754_v13, %v11437_v18 }
 0x38c   : > { %3164 = vadd.xlane.f32.xlu0 %v3163_v60  ;;  %v8758_v30 = vpop.eup %8757  ;;  %v3006_v56 = vmul.f32 %v8756_v53, %v11437_v18 }
 0x38d   : > { %v8760_v2 = vpop.eup %8759  ;;  %v3190_v61 = vsel %vm3108_vm0, %v3007_v24, 0.0  ;;  %v3009_v12 = vmul.f32 %v8758_v30, %v11437_v18 }
 0x38e   : > { %v11826_v9 = vpop.f32.mrb[44].mxu1  ;;  %v8762_v13 = vpop.eup %8761 }
 0x38f   : > { %3173 = vadd.xlane.f32.xlu1 %v3172_v15  ;;  %v11830_v5 = vpop.f32.mrb[45].mxu1  ;;  %v8764_v53 = vpop.eup %8763  ;;  %v3011_v24 = vmul.f32 %v8762_v13, %v11437_v18 }
 0x390   : > { %3170 = vadd.xlane.f32.xlu0 %v3169_v54  ;;  %v3181_v54 = vsel %vm3108_vm0, %v3004_v59, 0.0  ;;  %v3008_v59 = vmul.f32 %v8760_v2, %v11437_v18  ;;  %v8766_v30 = vpop.eup %8765 }
 0x391   : > { %v8768_v2 = vpop.eup %8767  ;;  %v3202_v27 = vsel %vm3108_vm0, %v3011_v24, 0.0 }
 0x392   : > { %v11838_v60 = vpop.f32.mrb[46].mxu1 }
 0x393   : > { %3179 = vadd.xlane.f32.xlu1 %v3178_v3  ;;  %v11842_v15 = vpop.f32.mrb[47].mxu1 }
 0x394   : > { %3176 = vadd.xlane.f32.xlu0 %v3175_v46  ;;  %v3187_v46 = vsel %vm3108_vm0, %v3006_v56, 0.0  ;;  %v3010_v56 = vmul.f32 %v8764_v53, %v11437_v18  ;;  %v2417_v53 = vadd.f32 %v11820_v31, %v11558_v29  ;;  %v2427_v29 = vadd.f32 %v11820_v31, %v11562_v40 }
 0x395   : > { %v2437_v40 = vadd.f32 %v11820_v31, %v11566_v17  ;;  %v2447_v17 = vadd.f32 %v11820_v31, %v11570_v44 }
 0x396   : > { %v11852_v3 = vpop.f32.mrb[48].mxu1  ;;  %v3199_v16 = vsel %vm3108_vm0, %v3010_v56, 0.0 }
 0x397   : > { %3185 = vadd.xlane.f32.xlu1 %v3184_v21  ;;  %v11856_v33 = vpop.f32.mrb[49].mxu1  ;;  %v3196_v21 = vsel %vm3108_vm0, %v3009_v12, 0.0  ;;  %v8770_v12 = vpop.eup %8769 }
 0x398   : > { %3182 = vadd.xlane.f32.xlu0 %v3181_v54  ;;  %v3193_v54 = vsel %vm3108_vm0, %v3008_v59, 0.0  ;;  %v8772_v48 = vpop.eup %8771  ;;  %v2422_v59 = vadd.f32 %v11820_v31, %v11556_v8  ;;  %v2432_v8 = vadd.f32 %v11820_v31, %v11560_v11  ;;  %v2442_v11 = vadd.f32 %v11820_v31, %v11564_v6 }
 0x399   : > { %v8774_v24 = vpop.eup %8773  ;;  %v2452_v6 = vadd.f32 %v11820_v31, %v11568_v20  ;;  %v16145_v20 = vld [vmem:[#allocation62_spill] sm:$0xff] }
 0x39a   : > { %v11864_v50 = vpop.f32.mrb[50].mxu1  ;;  %8785 = vtanh.f32 %v2422_v59  ;;  %v2462_v44 = vadd.f32 %v11820_v31, %v16145_v20  ;;  %v16149_v20 = vld [vmem:[#allocation46_spill] sm:$0xff] }
 0x39b   : > { %3191 = vadd.xlane.f32.xlu1 %v3190_v61  ;;  %v11868_v36 = vpop.f32.mrb[51].mxu1  ;;  %v11886_v61 = vld [vmem:[%s15381_s5] ss:$0 sm:$0xff]  ;;  %8787 = vtanh.f32 %v2417_v53 }
 0x39c   : > { %3188 = vadd.xlane.f32.xlu0 %v3187_v46  ;;  %v3013_v18 = vmul.f32 %v11886_v61, %v8766_v30  ;;  %v3012_v46 = vmul.f32 %v11886_v61, %v8768_v2  ;;  %v3014_v56 = vmul.f32 %v11886_v61, %v8772_v48  ;;  %v8776_v2 = vpop.eup %8775  ;;  %8789 = vtanh.f32 %v2432_v8 }
 0x39d   : > { %8791 = vtanh.f32 %v2427_v29 }
 0x39e   : > { %v11880_v49 = vpop.f32.mrb[52].mxu1  ;;  %v3208_v52 = vsel %vm3108_vm0, %v3013_v18, 0.0  ;;  %v8778_v18 = vpop.eup %8777  ;;  %8793 = vtanh.f32 %v2442_v11  ;;  %v16146_v11 = vld [vmem:[#allocation61_spill] sm:$0xff] }
 0x39f   : > { %3197 = vadd.xlane.f32.xlu1 %v3196_v21  ;;  %v11889_v13 = vpop.f32.mrb[53].mxu1  ;;  %v3015_v21 = vmul.f32 %v11886_v61, %v8770_v12  ;;  %v8780_v48 = vpop.eup %8779  ;;  %8795 = vtanh.f32 %v2437_v40  ;;  %v2457_v40 = vadd.f32 %v11820_v31, %v16146_v11 }
 0x3a0   : > { %3194 = vadd.xlane.f32.xlu0 %v3193_v54  ;;  %v3205_v54 = vsel %vm3108_vm0, %v3012_v46, 0.0  ;;  %v3016_v46 = vmul.f32 %v11886_v61, %v8776_v2  ;;  %8797 = vtanh.f32 %v2452_v6 }
 0x3a1   : > { %v3214_v7 = vsel %vm3108_vm0, %v3015_v21, 0.0  ;;  %v8782_v21 = vpop.eup %8781  ;;  %8799 = vtanh.f32 %v2447_v17  ;;  %v16148_v17 = vld [vmem:[#allocation45_spill] sm:$0xff] }
 0x3a2   : > { %v8784_v2 = vpop.eup %8783  ;;  %8801 = vtanh.f32 %v2462_v44  ;;  %v16150_v44 = vld [vmem:[#allocation64_spill] sm:$0xff] }
 0x3a3   : > { %3203 = vadd.xlane.f32.xlu1 %v3202_v27  ;;  %v11897_v35 = vpop.f32.mrb[54].mxu1  ;;  %v3017_v27 = vmul.f32 %v11886_v61, %v8774_v24  ;;  %8803 = vtanh.f32 %v2457_v40  ;;  %v16151_v40 = vld [vmem:[#allocation63_spill] sm:$0xff] }
 0x3a4   : > { %3200 = vadd.xlane.f32.xlu0 %v3199_v16  ;;  %v11901_v30 = vpop.f32.mrb[55].mxu1  ;;  %v3211_v16 = vsel %vm3108_vm0, %v3014_v56, 0.0  ;;  %v3018_v56 = vmul.f32 %v11886_v61, %v8780_v48 }
 0x3a5   : > { %v3220_v53 = vsel %vm3108_vm0, %v3017_v27, 0.0  ;;  %v8786_v27 = vpop.eup %8785 }
 0x3a6   : > { %v8788_v48 = vpop.eup %8787 }
 0x3a7   : > { %3209 = vadd.xlane.f32.xlu1 %v3208_v52  ;;  %v11909_v41 = vpop.f32.mrb[56].mxu1  ;;  %v3019_v52 = vmul.f32 %v11886_v61, %v8778_v18  ;;  %v3022_v6 = vmul.f32 %v11886_v61, %v8788_v48 }
 0x3a8   : > { %3206 = vadd.xlane.f32.xlu0 %v3205_v54  ;;  %v11913_v12 = vpop.f32.mrb[57].mxu1  ;;  %v3217_v54 = vsel %vm3108_vm0, %v3016_v46, 0.0  ;;  %v3020_v46 = vmul.f32 %v11886_v61, %v8784_v2 }
 0x3a9   : > { %v3226_v29 = vsel %vm3108_vm0, %v3019_v52, 0.0 }
 0x3aa   : > { %v3229_v2 = vsel %vm3108_vm0, %v3020_v46, 0.0  ;;  %v3235_v46 = vsel %vm3108_vm0, %v3022_v6, 0.0 }
 0x3ab   : > { %3215 = vadd.xlane.f32.xlu1 %v3214_v7  ;;  %v11921_v59 = vpop.f32.mrb[58].mxu1  ;;  %v3021_v7 = vmul.f32 %v11886_v61, %v8782_v21  ;;  %v3023_v21 = vmul.f32 %v11886_v61, %v8786_v27 }
 0x3ac   : > { %3212 = vadd.xlane.f32.xlu0 %v3211_v16  ;;  %v11925_v24 = vpop.f32.mrb[59].mxu1  ;;  %v3223_v16 = vsel %vm3108_vm0, %v3018_v56, 0.0 }
 0x3ad   : > { %v3232_v52 = vsel %vm3108_vm0, %v3021_v7, 0.0  ;;  %v2467_v7 = vadd.f32 %v11820_v31, %v16149_v20  ;;  %v3238_v27 = vsel %vm3108_vm0, %v3023_v21, 0.0 }
 0x3af   : > { %3221 = vadd.xlane.f32.xlu1 %v3220_v53  ;;  %v11933_v8 = vpop.f32.mrb[60].mxu1 }
 0x3b0   : > { %3218 = vadd.xlane.f32.xlu0 %v3217_v54  ;;  %v11937_v18 = vpop.f32.mrb[61].mxu1  ;;  %v8790_v54 = vpop.eup %8789 }
 0x3b1   : > { %v3025_v11 = vmul.f32 %v11886_v61, %v8790_v54 }
 0x3b3   : > { %3227 = vadd.xlane.f32.xlu1 %v3226_v29  ;;  %v11945_v53 = vpop.f32.mrb[62].mxu1  ;;  %v8792_v29 = vpop.eup %8791  ;;  %v3244_v21 = vsel %vm3108_vm0, %v3025_v11, 0.0 }
 0x3b4   : > { %3224 = vadd.xlane.f32.xlu0 %v3223_v16  ;;  %v11949_v56 = vpop.f32.mrb[63].mxu1  ;;  %v2472_v16 = vadd.f32 %v11820_v31, %v16148_v17  ;;  %v3024_v48 = vmul.f32 %v11886_v61, %v8792_v29  ;;  %v2477_v17 = vadd.f32 %v11820_v31, %v16151_v40 }
 0x3b5   : > { %16147 = vst [vmem:[#allocation71_spill] sm:$0xff] %v11949_v56  ;;  %v8794_v56 = vpop.eup %8793 }
 0x3b6   : > { %8805 = vtanh.f32 %v2472_v16  ;;  %v3027_v54 = vmul.f32 %v11886_v61, %v8794_v56  ;;  %v3241_v6 = vsel %vm3108_vm0, %v3024_v48, 0.0  ;;  %v16152_v16 = vld [vmem:[#allocation25_spill] sm:$0xff] }
 0x3b7   : > { %3233 = vadd.xlane.f32.xlu1 %v3232_v52  ;;  %v8796_v52 = vpop.eup %8795  ;;  %8807 = vtanh.f32 %v2467_v7  ;;  %v16153_v7 = vld [vmem:[#allocation65_spill] sm:$0xff] }
 0x3b8   : > { %3230 = vadd.xlane.f32.xlu0 %v3229_v2  ;;  %v2482_v2 = vadd.f32 %v11820_v31, %v16150_v44  ;;  %v8798_v20 = vpop.eup %8797  ;;  %v3026_v29 = vmul.f32 %v11886_v61, %v8796_v52  ;;  %v2487_v44 = vadd.f32 %v11820_v31, %v16153_v7  ;;  %v3250_v11 = vsel %vm3108_vm0, %v3027_v54, 0.0 }
 0x3b9   : > { %v3029_v56 = vmul.f32 %v11886_v61, %v8798_v20 }
 0x3ba   : > { %8809 = vtanh.f32 %v2482_v2  ;;  %v3247_v48 = vsel %vm3108_vm0, %v3026_v29, 0.0  ;;  %v16154_v2 = vld [vmem:[#allocation66_spill] sm:$0xff] }
 0x3bb   : > { %3239 = vadd.xlane.f32.xlu1 %v3238_v27  ;;  %v8800_v27 = vpop.eup %8799  ;;  %8811 = vtanh.f32 %v2477_v17  ;;  %v16155_v17 = vld [vmem:[#allocation67_spill] sm:$0xff]  ;;  %v3256_v54 = vsel %vm3108_vm0, %v3029_v56, 0.0 }
 0x3bc   : > { %3236 = vadd.xlane.f32.xlu0 %v3235_v46  ;;  %v2492_v46 = vadd.f32 %v11820_v31, %v16152_v16  ;;  %v8802_v40 = vpop.eup %8801  ;;  %v3028_v52 = vmul.f32 %v11886_v61, %v8800_v27  ;;  %v2497_v16 = vadd.f32 %v11820_v31, %v16155_v17 }
 0x3bd   : > { %v3031_v20 = vmul.f32 %v11886_v61, %v8802_v40 }
 0x3be   : > { %8813 = vtanh.f32 %v2492_v46  ;;  %v3253_v29 = vsel %vm3108_vm0, %v3028_v52, 0.0  ;;  %v16156_v46 = vld [vmem:[#allocation68_spill] sm:$0xff] }
 0x3bf   : > { %3245 = vadd.xlane.f32.xlu1 %v3244_v21  ;;  %v8804_v21 = vpop.eup %8803  ;;  %8815 = vtanh.f32 %v2487_v44  ;;  %v16157_v44 = vld [vmem:[#allocation69_spill] sm:$0xff]  ;;  %v3262_v56 = vsel %vm3108_vm0, %v3031_v20, 0.0 }
 0x3c0   : > { %3242 = vadd.xlane.f32.xlu0 %v3241_v6  ;;  %v2502_v6 = vadd.f32 %v11820_v31, %v16154_v2  ;;  %v8806_v7 = vpop.eup %8805  ;;  %v3030_v27 = vmul.f32 %v11886_v61, %v8804_v21  ;;  %v2507_v2 = vadd.f32 %v11820_v31, %v16157_v44 }
 0x3c1   : > { %v3033_v40 = vmul.f32 %v11886_v61, %v8806_v7 }
 0x3c2   : > { %8817 = vtanh.f32 %v2502_v6  ;;  %v3259_v52 = vsel %vm3108_vm0, %v3030_v27, 0.0  ;;  %v16158_v6 = vld [vmem:[#allocation70_spill] sm:$0xff] }
 0x3c3   : > { %3251 = vadd.xlane.f32.xlu1 %v3250_v11  ;;  %v8808_v11 = vpop.eup %8807  ;;  %8819 = vtanh.f32 %v2497_v16  ;;  %v16159_v16 = vld [vmem:[#allocation28_spill] sm:$0xff]  ;;  %v3268_v20 = vsel %vm3108_vm0, %v3033_v40, 0.0  ;;  %v2617_v40 = vadd.f32 %v11820_v31, %v11670_v47  ;;  %v2627_v47 = vadd.f32 %v11820_v31, %v11682_v55 }
 0x3c4   : > { %3248 = vadd.xlane.f32.xlu0 %v3247_v48  ;;  %v2512_v48 = vadd.f32 %v11820_v31, %v16156_v46  ;;  %v8810_v17 = vpop.eup %8809  ;;  %v3032_v21 = vmul.f32 %v11886_v61, %v8808_v11  ;;  %v2517_v46 = vadd.f32 %v11820_v31, %v16159_v16  ;;  %v2637_v55 = vadd.f32 %v11820_v31, %v11693_v4 }
 0x3c5   : > { %v3035_v7 = vmul.f32 %v11886_v61, %v8810_v17  ;;  %v2647_v4 = vadd.f32 %v11820_v31, %v11705_v62  ;;  %v2657_v62 = vadd.f32 %v11820_v31, %v11717_v19  ;;  %v2667_v19 = vadd.f32 %v11820_v31, %v11729_v45 }
 0x3c6   : > { %8821 = vtanh.f32 %v2512_v48  ;;  %v3265_v27 = vsel %vm3108_vm0, %v3032_v21, 0.0  ;;  %v12003_v48 = vpop.xlane.xlu0 %3110  ;;  %v2677_v45 = vadd.f32 %v11820_v31, %v11741_v51  ;;  %v2687_v51 = vadd.f32 %v11820_v31, %v11753_v25 }
 0x3c7   : > { %3257 = vadd.xlane.f32.xlu1 %v3256_v54  ;;  %v8812_v54 = vpop.eup %8811  ;;  %8823 = vtanh.f32 %v2507_v2  ;;  %16161 = vst [vmem:[#allocation73_spill] sm:$0xff] %v12003_v48  ;;  %v2622_v2 = vadd.f32 %v11820_v31, %v11666_v26  ;;  %v3274_v17 = vsel %vm3108_vm0, %v3035_v7, 0.0  ;;  %v2632_v26 = vadd.f32 %v11820_v31, %v11678_v1 }
 0x3c8   : > { %3254 = vadd.xlane.f32.xlu0 %v3253_v29  ;;  %v2522_v29 = vadd.f32 %v11820_v31, %v16158_v6  ;;  %v8814_v44 = vpop.eup %8813  ;;  %v3034_v11 = vmul.f32 %v11886_v61, %v8812_v54  ;;  %v2642_v1 = vadd.f32 %v11820_v31, %v11689_v38  ;;  %v2652_v38 = vadd.f32 %v11820_v31, %v11701_v39 }
 0x3c9   : > { %v3037_v21 = vmul.f32 %v11886_v61, %v8814_v44  ;;  %v2662_v39 = vadd.f32 %v11820_v31, %v11713_v22  ;;  %v2672_v22 = vadd.f32 %v11820_v31, %v11725_v37  ;;  %v2682_v37 = vadd.f32 %v11820_v31, %v11737_v34 }
 0x3ca   : > { %8825 = vtanh.f32 %v2522_v29  ;;  %v3271_v54 = vsel %vm3108_vm0, %v3034_v11, 0.0  ;;  %v2692_v34 = vadd.f32 %v11820_v31, %v11749_v42  ;;  %v2702_v42 = vadd.f32 %v11820_v31, %v11761_v0 }
 0x3cb   : > { %3263 = vadd.xlane.f32.xlu1 %v3262_v56  ;;  %v8816_v56 = vpop.eup %8815  ;;  %8827 = vtanh.f32 %v2517_v46  ;;  %v3280_v7 = vsel %vm3108_vm0, %v3037_v21, 0.0  ;;  %v2697_v25 = vadd.f32 %v11820_v31, %v11765_v63  ;;  %v2712_v0 = vadd.f32 %v11820_v31, %v11773_v57 }
 0x3cc   : > { %3260 = vadd.xlane.f32.xlu0 %v3259_v52  ;;  %v12001_v52 = vpop.xlane.xlu1 %3113  ;;  %v8818_v6 = vpop.eup %8817  ;;  %v3036_v16 = vmul.f32 %v11886_v61, %v8816_v56  ;;  %8829 = vtanh.f32 %v2622_v2  ;;  %v2707_v63 = vadd.f32 %v11820_v31, %v11777_v10  ;;  %v2722_v57 = vadd.f32 %v11820_v31, %v11785_v43 }
 0x3cd   : > { %16160 = vst [vmem:[#allocation72_spill] sm:$0xff] %v12001_v52  ;;  %v8820_v29 = vpop.eup %8819  ;;  %8831 = vtanh.f32 %v2617_v40  ;;  %v3039_v44 = vmul.f32 %v11886_v61, %v8818_v6  ;;  %v2717_v10 = vadd.f32 %v11820_v31, %v11789_v14  ;;  %v2732_v43 = vadd.f32 %v11820_v31, %v11797_v58 }
 0x3ce   : > { %v3277_v11 = vsel %vm3108_vm0, %v3036_v16, 0.0  ;;  %v3038_v56 = vmul.f32 %v11886_v61, %v8820_v29  ;;  %8833 = vtanh.f32 %v2632_v26  ;;  %v2727_v14 = vadd.f32 %v11820_v31, %v11801_v23 }
 0x3cf   : > { %3269 = vadd.xlane.f32.xlu1 %v3268_v20  ;;  %8835 = vtanh.f32 %v2627_v47  ;;  %v3286_v21 = vsel %vm3108_vm0, %v3039_v44, 0.0  ;;  %v2742_v58 = vadd.f32 %v11820_v31, %v11809_v28  ;;  %v2737_v23 = vadd.f32 %v11820_v31, %v11813_v32 }
 0x3d0   : > { %3266 = vadd.xlane.f32.xlu0 %v3265_v27  ;;  %v8822_v27 = vpop.eup %8821  ;;  %v3283_v16 = vsel %vm3108_vm0, %v3038_v56, 0.0  ;;  %8837 = vtanh.f32 %v2642_v1  ;;  %v2752_v28 = vadd.f32 %v11820_v31, %v11826_v9  ;;  %v2747_v32 = vadd.f32 %v11820_v31, %v11830_v5 }
 0x3d1   : > { %v8824_v2 = vpop.eup %8823  ;;  %v3041_v6 = vmul.f32 %v11886_v61, %v8822_v27  ;;  %8839 = vtanh.f32 %v2637_v55  ;;  %v2762_v9 = vadd.f32 %v11820_v31, %v11838_v60  ;;  %v2757_v5 = vadd.f32 %v11820_v31, %v11842_v15 }
 0x3d2   : > { %v3040_v29 = vmul.f32 %v11886_v61, %v8824_v2  ;;  %8841 = vtanh.f32 %v2652_v38  ;;  %v2772_v60 = vadd.f32 %v11820_v31, %v11852_v3  ;;  %v2767_v15 = vadd.f32 %v11820_v31, %v11856_v33 }
 0x3d3   : > { %3275 = vadd.xlane.f32.xlu1 %v3274_v17  ;;  %v3292_v44 = vsel %vm3108_vm0, %v3041_v6, 0.0  ;;  %8843 = vtanh.f32 %v2647_v4  ;;  %v2782_v3 = vadd.f32 %v11820_v31, %v11864_v50  ;;  %v2777_v33 = vadd.f32 %v11820_v31, %v11868_v36 }
 0x3d4   : > { %v12013_v20 = vpop.xlane.xlu1 %3305  ;;  %3272 = vadd.xlane.f32.xlu0 %v3271_v54  ;;  %v8826_v54 = vpop.eup %8825  ;;  %v3289_v56 = vsel %vm3108_vm0, %v3040_v29, 0.0  ;;  %8845 = vtanh.f32 %v2662_v39  ;;  %v2792_v50 = vadd.f32 %v11820_v31, %v11880_v49  ;;  %v2787_v36 = vadd.f32 %v11820_v31, %v11889_v13 }
 0x3d5   : > { %16162 = vst [vmem:[#allocation74_spill] sm:$0xff] %v12013_v20  ;;  %v12017_v46 = vpop.xlane.xlu0 %3302  ;;  %v8828_v26 = vpop.eup %8827  ;;  %v3043_v27 = vmul.f32 %v11886_v61, %v8826_v54  ;;  %8847 = vtanh.f32 %v2657_v62  ;;  %v2802_v49 = vadd.f32 %v11820_v31, %v11897_v35  ;;  %v2797_v13 = vadd.f32 %v11820_v31, %v11901_v30 }
 0x3d6   : > { %16163 = vst [vmem:[#allocation75_spill] sm:$0xff] %v12017_v46  ;;  %v3042_v2 = vmul.f32 %v11886_v61, %v8828_v26  ;;  %8849 = vtanh.f32 %v2672_v22  ;;  %v2812_v35 = vadd.f32 %v11820_v31, %v11909_v41  ;;  %v2807_v30 = vadd.f32 %v11820_v31, %v11913_v12 }
 0x3d7   : > { %3281 = vadd.xlane.f32.xlu1 %v3280_v7  ;;  %v3298_v6 = vsel %vm3108_vm0, %v3043_v27, 0.0  ;;  %8851 = vtanh.f32 %v2667_v19  ;;  %v2822_v41 = vadd.f32 %v11820_v31, %v11921_v59  ;;  %v2817_v12 = vadd.f32 %v11820_v31, %v11925_v24  ;;  %v9279_v59 = vld [vmem:[%s15380_s4] ss:$0 sm:$0xff] }
 0x3d8   : > { %v12025_v17 = vpop.xlane.xlu1 %3119  ;;  %3278 = vadd.xlane.f32.xlu0 %v3277_v11  ;;  %v8830_v11 = vpop.eup %8829  ;;  %v3295_v29 = vsel %vm3108_vm0, %v3042_v2, 0.0  ;;  %8853 = vtanh.f32 %v2682_v37  ;;  %v2832_v31 = vadd.f32 %v9279_v59, %v11933_v8  ;;  %v2842_v8 = vadd.f32 %v9279_v59, %v11945_v53 }
 0x3d9   : > { %16164 = vst [vmem:[#allocation76_spill] sm:$0xff] %v12025_v17  ;;  %v12029_v40 = vpop.xlane.xlu0 %3116  ;;  %v8832_v1 = vpop.eup %8831  ;;  %v3063_v54 = vmul.f32 %v11886_v61, %v8830_v11  ;;  %8855 = vtanh.f32 %v2677_v45 }
 0x3da   : > { %16165 = vst [vmem:[#allocation77_spill] sm:$0xff] %v12029_v40  ;;  %v3062_v26 = vmul.f32 %v11886_v61, %v8832_v1  ;;  %8857 = vtanh.f32 %v2692_v34 }
 0x3db   : > { %3287 = vadd.xlane.f32.xlu1 %v3286_v21  ;;  %v3358_v27 = vsel %vm3108_vm0, %v3063_v54, 0.0  ;;  %8859 = vtanh.f32 %v2687_v51 }
 0x3dc   : > { %v12037_v7 = vpop.xlane.xlu1 %3311  ;;  %3284 = vadd.xlane.f32.xlu0 %v3283_v16  ;;  %v8834_v16 = vpop.eup %8833  ;;  %v3355_v2 = vsel %vm3108_vm0, %v3062_v26, 0.0  ;;  %8861 = vtanh.f32 %v2702_v42 }
 0x3dd   : > { %16166 = vst [vmem:[#allocation78_spill] sm:$0xff] %v12037_v7  ;;  %v12041_v47 = vpop.xlane.xlu0 %3308  ;;  %v8836_v38 = vpop.eup %8835  ;;  %v3065_v11 = vmul.f32 %v11886_v61, %v8834_v16  ;;  %8863 = vtanh.f32 %v2697_v25 }
 0x3de   : > { %16167 = vst [vmem:[#allocation79_spill] sm:$0xff] %v12041_v47  ;;  %v3064_v1 = vmul.f32 %v11886_v61, %v8836_v38  ;;  %8865 = vtanh.f32 %v2712_v0 }
 0x3df   : > { %3293 = vadd.xlane.f32.xlu1 %v3292_v44  ;;  %v3364_v54 = vsel %vm3108_vm0, %v3065_v11, 0.0  ;;  %8867 = vtanh.f32 %v2707_v63 }
 0x3e0   : > { %v12049_v21 = vpop.xlane.xlu1 %3125  ;;  %3290 = vadd.xlane.f32.xlu0 %v3289_v56  ;;  %v8838_v56 = vpop.eup %8837  ;;  %v3361_v26 = vsel %vm3108_vm0, %v3064_v1, 0.0  ;;  %8869 = vtanh.f32 %v2722_v57 }
 0x3e1   : > { %v12053_v55 = vpop.xlane.xlu0 %3122  ;;  %v8840_v39 = vpop.eup %8839  ;;  %v3067_v16 = vmul.f32 %v11886_v61, %v8838_v56  ;;  %8871 = vtanh.f32 %v2717_v10 }
 0x3e2   : > { %16168 = vst [vmem:[#allocation80_spill] sm:$0xff] %v12053_v55  ;;  %v3066_v38 = vmul.f32 %v11886_v61, %v8840_v39 }
 0x3e3   : > { %3299 = vadd.xlane.f32.xlu1 %v3298_v6  ;;  %v3370_v11 = vsel %vm3108_vm0, %v3067_v16, 0.0 }
 0x3e4   : > { %v12061_v44 = vpop.xlane.xlu1 %3317  ;;  %3296 = vadd.xlane.f32.xlu0 %v3295_v29  ;;  %v8842_v29 = vpop.eup %8841  ;;  %v3367_v1 = vsel %vm3108_vm0, %v3066_v38, 0.0  ;;  %8873 = vtanh.f32 %v2732_v43 }
 0x3e5   : > { %16169 = vst [vmem:[#allocation81_spill] sm:$0xff] %v12061_v44  ;;  %v12065_v4 = vpop.xlane.xlu0 %3314  ;;  %v8844_v22 = vpop.eup %8843  ;;  %v3069_v56 = vmul.f32 %v11886_v61, %v8842_v29  ;;  %8875 = vtanh.f32 %v2727_v14 }
 0x3e6   : > { %16170 = vst [vmem:[#allocation82_spill] sm:$0xff] %v12065_v4  ;;  %v3068_v39 = vmul.f32 %v11886_v61, %v8844_v22 }
 0x3e7   : > { %3359 = vadd.xlane.f32.xlu1 %v3358_v27  ;;  %v3376_v16 = vsel %vm3108_vm0, %v3069_v56, 0.0 }
 0x3e8   : > { %v12073_v6 = vpop.xlane.xlu1 %3131  ;;  %3356 = vadd.xlane.f32.xlu0 %v3355_v2  ;;  %v8846_v2 = vpop.eup %8845  ;;  %v3373_v38 = vsel %vm3108_vm0, %v3068_v39, 0.0  ;;  %8877 = vtanh.f32 %v2742_v58 }
 0x3e9   : > { %16171 = vst [vmem:[#allocation83_spill] sm:$0xff] %v12073_v6  ;;  %v12077_v62 = vpop.xlane.xlu0 %3128  ;;  %v8848_v37 = vpop.eup %8847  ;;  %v3071_v29 = vmul.f32 %v11886_v61, %v8846_v2  ;;  %8879 = vtanh.f32 %v2737_v23 }
 0x3ea   : > { %v3070_v22 = vmul.f32 %v11886_v61, %v8848_v37 }
 0x3eb   : > { %3365 = vadd.xlane.f32.xlu1 %v3364_v54  ;;  %v3382_v56 = vsel %vm3108_vm0, %v3071_v29, 0.0 }
 0x3ec   : > { %v12085_v27 = vpop.xlane.xlu1 %3323  ;;  %3362 = vadd.xlane.f32.xlu0 %v3361_v26  ;;  %v8850_v26 = vpop.eup %8849  ;;  %v3379_v39 = vsel %vm3108_vm0, %v3070_v22, 0.0  ;;  %8881 = vtanh.f32 %v2752_v28 }
 0x3ed   : > { %16172 = vst [vmem:[#allocation84_spill] sm:$0xff] %v12085_v27  ;;  %v12089_v19 = vpop.xlane.xlu0 %3320  ;;  %v8852_v34 = vpop.eup %8851  ;;  %v3073_v2 = vmul.f32 %v11886_v61, %v8850_v26  ;;  %8883 = vtanh.f32 %v2747_v32 }
 0x3ee   : > { %16173 = vst [vmem:[#allocation11_spill] sm:$0xff] %v12089_v19  ;;  %v3072_v37 = vmul.f32 %v11886_v61, %v8852_v34 }
 0x3ef   : > { %3371 = vadd.xlane.f32.xlu1 %v3370_v11  ;;  %v3388_v29 = vsel %vm3108_vm0, %v3073_v2, 0.0 }
 0x3f0   : > { %v12097_v54 = vpop.xlane.xlu1 %3137  ;;  %3368 = vadd.xlane.f32.xlu0 %v3367_v1  ;;  %v8854_v1 = vpop.eup %8853  ;;  %v3385_v22 = vsel %vm3108_vm0, %v3072_v37, 0.0  ;;  %8885 = vtanh.f32 %v2762_v9 }
 0x3f1   : > { %16174 = vst [vmem:[#allocation12_spill] sm:$0xff] %v12097_v54  ;;  %v12101_v45 = vpop.xlane.xlu0 %3134  ;;  %v8856_v42 = vpop.eup %8855  ;;  %v3075_v26 = vmul.f32 %v11886_v61, %v8854_v1  ;;  %8887 = vtanh.f32 %v2757_v5 }
 0x3f2   : > { %16175 = vst [vmem:[#allocation13_spill] sm:$0xff] %v12101_v45  ;;  %v3074_v34 = vmul.f32 %v11886_v61, %v8856_v42 }
 0x3f3   : > { %3377 = vadd.xlane.f32.xlu1 %v3376_v16  ;;  %v3394_v2 = vsel %vm3108_vm0, %v3075_v26, 0.0 }
 0x3f4   : > { %v12109_v11 = vpop.xlane.xlu1 %3329  ;;  %3374 = vadd.xlane.f32.xlu0 %v3373_v38  ;;  %v8858_v38 = vpop.eup %8857  ;;  %v3391_v37 = vsel %vm3108_vm0, %v3074_v34, 0.0  ;;  %8889 = vtanh.f32 %v2772_v60 }
 0x3f5   : > { %16176 = vst [vmem:[#allocation14_spill] sm:$0xff] %v12109_v11  ;;  %v12113_v51 = vpop.xlane.xlu0 %3326  ;;  %v8860_v0 = vpop.eup %8859  ;;  %v3077_v1 = vmul.f32 %v11886_v61, %v8858_v38  ;;  %8891 = vtanh.f32 %v2767_v15 }
 0x3f6   : > { %16177 = vst [vmem:[#allocation35_spill] sm:$0xff] %v12113_v51  ;;  %v3076_v42 = vmul.f32 %v11886_v61, %v8860_v0 }
 0x3f7   : > { %3383 = vadd.xlane.f32.xlu1 %v3382_v56  ;;  %v3400_v26 = vsel %vm3108_vm0, %v3077_v1, 0.0 }
 0x3f8   : > { %v12121_v16 = vpop.xlane.xlu1 %3143  ;;  %3380 = vadd.xlane.f32.xlu0 %v3379_v39  ;;  %v8862_v39 = vpop.eup %8861  ;;  %v3397_v34 = vsel %vm3108_vm0, %v3076_v42, 0.0  ;;  %8893 = vtanh.f32 %v2782_v3 }
 0x3f9   : > { %16178 = vst [vmem:[#allocation36_spill] sm:$0xff] %v12121_v16  ;;  %v12125_v25 = vpop.xlane.xlu0 %3140  ;;  %v8864_v57 = vpop.eup %8863  ;;  %v3079_v38 = vmul.f32 %v11886_v61, %v8862_v39  ;;  %8895 = vtanh.f32 %v2777_v33 }
 0x3fa   : > { %v3078_v0 = vmul.f32 %v11886_v61, %v8864_v57 }
 0x3fb   : > { %3389 = vadd.xlane.f32.xlu1 %v3388_v29  ;;  %v3406_v1 = vsel %vm3108_vm0, %v3079_v38, 0.0 }
 0x3fc   : > { %v12133_v56 = vpop.xlane.xlu1 %3335  ;;  %3386 = vadd.xlane.f32.xlu0 %v3385_v22  ;;  %v8866_v22 = vpop.eup %8865  ;;  %v3403_v42 = vsel %vm3108_vm0, %v3078_v0, 0.0  ;;  %8897 = vtanh.f32 %v2792_v50 }
 0x3fd   : > { %16179 = vst [vmem:[#allocation15_spill] sm:$0xff] %v12133_v56  ;;  %v12137_v63 = vpop.xlane.xlu0 %3332  ;;  %v8868_v43 = vpop.eup %8867  ;;  %v3081_v39 = vmul.f32 %v11886_v61, %v8866_v22  ;;  %8899 = vtanh.f32 %v2787_v36 }
 0x3fe   : > { %16180 = vst [vmem:[#allocation16_spill] sm:$0xff] %v12137_v63  ;;  %v3080_v57 = vmul.f32 %v11886_v61, %v8868_v43 }
 0x3ff   : > { %3395 = vadd.xlane.f32.xlu1 %v3394_v2  ;;  %v3412_v38 = vsel %vm3108_vm0, %v3081_v39, 0.0 }
 0x400   : > { %v12145_v29 = vpop.xlane.xlu1 %3149  ;;  %3392 = vadd.xlane.f32.xlu0 %v3391_v37  ;;  %v8870_v37 = vpop.eup %8869  ;;  %v3409_v0 = vsel %vm3108_vm0, %v3080_v57, 0.0  ;;  %8901 = vtanh.f32 %v2802_v49 }
 0x401   : > { %16181 = vst [vmem:[#allocation37_spill] sm:$0xff] %v12145_v29  ;;  %v12149_v10 = vpop.xlane.xlu0 %3146  ;;  %v8872_v58 = vpop.eup %8871  ;;  %v3083_v22 = vmul.f32 %v11886_v61, %v8870_v37  ;;  %8903 = vtanh.f32 %v2797_v13 }
 0x402   : > { %v3082_v43 = vmul.f32 %v11886_v61, %v8872_v58 }
 0x403   : > { %3401 = vadd.xlane.f32.xlu1 %v3400_v26  ;;  %v3418_v39 = vsel %vm3108_vm0, %v3083_v22, 0.0 }
 0x404   : > { %v12157_v2 = vpop.xlane.xlu1 %3341  ;;  %3398 = vadd.xlane.f32.xlu0 %v3397_v34  ;;  %v8874_v34 = vpop.eup %8873  ;;  %v3415_v57 = vsel %vm3108_vm0, %v3082_v43, 0.0  ;;  %8905 = vtanh.f32 %v2812_v35 }
 0x405   : > { %16182 = vst [vmem:[#allocation38_spill] sm:$0xff] %v12157_v2  ;;  %v12161_v14 = vpop.xlane.xlu0 %3338  ;;  %v8876_v28 = vpop.eup %8875  ;;  %v3085_v37 = vmul.f32 %v11886_v61, %v8874_v34  ;;  %8907 = vtanh.f32 %v2807_v30  ;;  %v2827_v30 = vadd.f32 %v9279_v59, %v11937_v18  ;;  %v16202_v18 = vld [vmem:[#allocation71_spill] sm:$0xff] }
 0x406   : > { %16183 = vst [vmem:[#allocation57_spill] sm:$0xff] %v12161_v14  ;;  %v3084_v58 = vmul.f32 %v11886_v61, %v8876_v28 }
 0x407   : > { %3407 = vadd.xlane.f32.xlu1 %v3406_v1  ;;  %v3424_v22 = vsel %vm3108_vm0, %v3085_v37, 0.0 }
 0x408   : > { %v12169_v26 = vpop.xlane.xlu1 %3155  ;;  %3404 = vadd.xlane.f32.xlu0 %v3403_v42  ;;  %v8878_v42 = vpop.eup %8877  ;;  %v3421_v43 = vsel %vm3108_vm0, %v3084_v58, 0.0  ;;  %8909 = vtanh.f32 %v2822_v41 }
 0x409   : > { %16184 = vst [vmem:[#allocation39_spill] sm:$0xff] %v12169_v26  ;;  %v12173_v23 = vpop.xlane.xlu0 %3152  ;;  %v8880_v9 = vpop.eup %8879  ;;  %v3087_v34 = vmul.f32 %v11886_v61, %v8878_v42  ;;  %8911 = vtanh.f32 %v2817_v12 }
 0x40a   : > { %16185 = vst [vmem:[#allocation40_spill] sm:$0xff] %v12173_v23  ;;  %v3086_v28 = vmul.f32 %v11886_v61, %v8880_v9 }
 0x40b   : > { %3413 = vadd.xlane.f32.xlu1 %v3412_v38  ;;  %v3430_v37 = vsel %vm3108_vm0, %v3087_v34, 0.0 }
 0x40c   : > { %v12181_v1 = vpop.xlane.xlu1 %3347  ;;  %3410 = vadd.xlane.f32.xlu0 %v3409_v0  ;;  %v8882_v0 = vpop.eup %8881  ;;  %v3427_v58 = vsel %vm3108_vm0, %v3086_v28, 0.0  ;;  %8913 = vtanh.f32 %v2832_v31 }
 0x40d   : > { %16186 = vst [vmem:[#allocation17_spill] sm:$0xff] %v12181_v1  ;;  %v12185_v32 = vpop.xlane.xlu0 %3344  ;;  %v8884_v60 = vpop.eup %8883  ;;  %v3089_v42 = vmul.f32 %v11886_v61, %v8882_v0  ;;  %8915 = vtanh.f32 %v2827_v30 }
 0x40e   : > { %16187 = vst [vmem:[#allocation18_spill] sm:$0xff] %v12185_v32  ;;  %v3088_v9 = vmul.f32 %v11886_v61, %v8884_v60 }
 0x40f   : > { %3419 = vadd.xlane.f32.xlu1 %v3418_v39  ;;  %v3436_v34 = vsel %vm3108_vm0, %v3089_v42, 0.0 }
 0x410   : > { %v12193_v38 = vpop.xlane.xlu1 %3161  ;;  %3416 = vadd.xlane.f32.xlu0 %v3415_v57  ;;  %v8886_v57 = vpop.eup %8885  ;;  %v3433_v28 = vsel %vm3108_vm0, %v3088_v9, 0.0  ;;  %8917 = vtanh.f32 %v2842_v8 }
 0x411   : > { %16188 = vst [vmem:[#allocation19_spill] sm:$0xff] %v12193_v38  ;;  %v12197_v5 = vpop.xlane.xlu0 %3158  ;;  %v8888_v3 = vpop.eup %8887  ;;  %v3091_v0 = vmul.f32 %v11886_v61, %v8886_v57 }
 0x412   : > { %16189 = vst [vmem:[#allocation20_spill] sm:$0xff] %v12197_v5  ;;  %v3090_v60 = vmul.f32 %v11886_v61, %v8888_v3 }
 0x413   : > { %3425 = vadd.xlane.f32.xlu1 %v3424_v22  ;;  %v3442_v42 = vsel %vm3108_vm0, %v3091_v0, 0.0 }
 0x414   : > { %v12205_v39 = vpop.xlane.xlu1 %3353  ;;  %3422 = vadd.xlane.f32.xlu0 %v3421_v43  ;;  %v8890_v43 = vpop.eup %8889  ;;  %v3439_v9 = vsel %vm3108_vm0, %v3090_v60, 0.0 }
 0x415   : > { %16190 = vst [vmem:[#allocation41_spill] sm:$0xff] %v12205_v39  ;;  %v12209_v15 = vpop.xlane.xlu0 %3350  ;;  %v8892_v50 = vpop.eup %8891  ;;  %v3093_v57 = vmul.f32 %v11886_v61, %v8890_v43 }
 0x416   : > { %16191 = vst [vmem:[#allocation42_spill] sm:$0xff] %v12209_v15  ;;  %v3092_v3 = vmul.f32 %v11886_v61, %v8892_v50 }
 0x417   : > { %3431 = vadd.xlane.f32.xlu1 %v3430_v37  ;;  %v3448_v0 = vsel %vm3108_vm0, %v3093_v57, 0.0 }
 0x418   : > { %v12217_v22 = vpop.xlane.xlu1 %3167  ;;  %3428 = vadd.xlane.f32.xlu0 %v3427_v58  ;;  %v8894_v58 = vpop.eup %8893  ;;  %v3445_v60 = vsel %vm3108_vm0, %v3092_v3, 0.0 }
 0x419   : > { %16192 = vst [vmem:[#allocation95_spill] sm:$0xff] %v12217_v22  ;;  %v12221_v33 = vpop.xlane.xlu0 %3164  ;;  %v8896_v49 = vpop.eup %8895  ;;  %v3095_v43 = vmul.f32 %v11886_v61, %v8894_v58 }
 0x41a   : > { %16193 = vst [vmem:[#allocation21_spill] sm:$0xff] %v12221_v33  ;;  %v3094_v50 = vmul.f32 %v11886_v61, %v8896_v49 }
 0x41b   : > { %3437 = vadd.xlane.f32.xlu1 %v3436_v34  ;;  %v3454_v57 = vsel %vm3108_vm0, %v3095_v43, 0.0  ;;  %v2837_v43 = vadd.f32 %v9279_v59, %v16202_v18 }
 0x41c   : > { %v12229_v37 = vpop.xlane.xlu1 %3173  ;;  %3434 = vadd.xlane.f32.xlu0 %v3433_v28  ;;  %v8898_v28 = vpop.eup %8897  ;;  %v3451_v3 = vsel %vm3108_vm0, %v3094_v50, 0.0 }
 0x41d   : > { %16194 = vst [vmem:[#allocation96_spill] sm:$0xff] %v12229_v37  ;;  %v12233_v36 = vpop.xlane.xlu0 %3170  ;;  %v8900_v35 = vpop.eup %8899  ;;  %v3097_v58 = vmul.f32 %v11886_v61, %v8898_v28  ;;  %8919 = vtanh.f32 %v2837_v43 }
 0x41e   : > { %16195 = vst [vmem:[#allocation22_spill] sm:$0xff] %v12233_v36  ;;  %v3096_v49 = vmul.f32 %v11886_v61, %v8900_v35 }
 0x41f   : > { %3443 = vadd.xlane.f32.xlu1 %v3442_v42  ;;  %v3460_v28 = vsel %vm3108_vm0, %v3097_v58, 0.0 }
 0x420   : > { %v12241_v34 = vpop.xlane.xlu1 %3179  ;;  %3440 = vadd.xlane.f32.xlu0 %v3439_v9  ;;  %v8902_v9 = vpop.eup %8901  ;;  %v3457_v50 = vsel %vm3108_vm0, %v3096_v49, 0.0 }
 0x421   : > { %16196 = vst [vmem:[#allocation43_spill] sm:$0xff] %v12241_v34  ;;  %v12245_v13 = vpop.xlane.xlu0 %3176  ;;  %v8904_v41 = vpop.eup %8903 }
 0x422   : > { %16197 = vst [vmem:[#allocation44_spill] sm:$0xff] %v12245_v13  ;;  %v3098_v35 = vmul.f32 %v11886_v61, %v8904_v41 }
 0x423   : > { %3449 = vadd.xlane.f32.xlu1 %v3448_v0 }
 0x424   : > { %v12253_v42 = vpop.xlane.xlu1 %3185  ;;  %3446 = vadd.xlane.f32.xlu0 %v3445_v60  ;;  %v3099_v60 = vmul.f32 %v11886_v61, %v8902_v9  ;;  %v3463_v58 = vsel %vm3108_vm0, %v3098_v35, 0.0 }
 0x425   : > { %16198 = vst [vmem:[#allocation23_spill] sm:$0xff] %v12253_v42  ;;  %v12259_v24 = vpop.xlane.xlu0 %3182 }
 0x426   : > { %16199 = vst [vmem:[#allocation24_spill] sm:$0xff] %v12259_v24  ;;  %v3466_v59 = vsel %vm3108_vm0, %v3099_v60, 0.0 }
 0x427   : > { %3455 = vadd.xlane.f32.xlu1 %v3454_v57  ;;  %v8906_v57 = vpop.eup %8905 }
 0x428   : > { %v12266_v0 = vpop.xlane.xlu1 %3191  ;;  %3452 = vadd.xlane.f32.xlu0 %v3451_v3  ;;  %v8908_v1 = vpop.eup %8907  ;;  %v3101_v31 = vmul.f32 %v11886_v61, %v8906_v57 }
 0x429   : > { %16200 = vst [vmem:[#allocation26_spill] sm:$0xff] %v12266_v0  ;;  %v12269_v12 = vpop.xlane.xlu0 %3188  ;;  %v8910_v30 = vpop.eup %8909  ;;  %v3100_v9 = vmul.f32 %v11886_v61, %v8908_v1 }
 0x42a   : > { %16201 = vst [vmem:[#allocation47_spill] sm:$0xff] %v12269_v12  ;;  %v8912_v49 = vpop.eup %8911  ;;  %v3472_v8 = vsel %vm3108_vm0, %v3101_v31, 0.0  ;;  %v3103_v43 = vmul.f32 %v11886_v61, %v8910_v30 }
 0x42b   : > { %3461 = vadd.xlane.f32.xlu1 %v3460_v28  ;;  %v8914_v28 = vpop.eup %8913  ;;  %v3469_v60 = vsel %vm3108_vm0, %v3100_v9, 0.0  ;;  %v3102_v57 = vmul.f32 %v11886_v61, %v8912_v49 }
 0x42c   : > { %v12276_v3 = vpop.xlane.xlu1 %3197  ;;  %3458 = vadd.xlane.f32.xlu0 %v3457_v50  ;;  %v8916_v50 = vpop.eup %8915 }
 0x42d   : > { %16203 = vst [vmem:[#allocation48_spill] sm:$0xff] %v12276_v3  ;;  %v12278_v53 = vpop.xlane.xlu0 %3194  ;;  %v8918_v32 = vpop.eup %8917  ;;  %v3475_v31 = vsel %vm3108_vm0, %v3102_v57, 0.0  ;;  %v3104_v30 = vmul.f32 %v11886_v61, %v8916_v50 }
 0x42e   : > { %16204 = vst [vmem:[#allocation27_spill] sm:$0xff] %v12278_v53 }
 0x42f   : > { %3467 = vadd.xlane.f32.xlu1 %v3466_v59  ;;  %v3478_v59 = vsel %vm3108_vm0, %v3103_v43, 0.0  ;;  %v3481_v43 = vsel %vm3108_vm0, %v3104_v30, 0.0 }
 0x430   : > { %v12284_v41 = vpop.xlane.xlu1 %3203  ;;  %3464 = vadd.xlane.f32.xlu0 %v3463_v58  ;;  %v3105_v58 = vmul.f32 %v11886_v61, %v8914_v28 }
 0x431   : > { %16205 = vst [vmem:[#allocation49_spill] sm:$0xff] %v12284_v41  ;;  %v12286_v18 = vpop.xlane.xlu0 %3200  ;;  %v3107_v41 = vmul.f32 %v11886_v61, %v8918_v32 }
 0x432   : > { %16206 = vst [vmem:[#allocation50_spill] sm:$0xff] %v12286_v18 }
 0x433   : > { %3473 = vadd.xlane.f32.xlu1 %v3472_v8  ;;  %v8920_v8 = vpop.eup %8919  ;;  %v3490_v50 = vsel %vm3108_vm0, %v3107_v41, 0.0 }
 0x434   : > { %v12292_v35 = vpop.xlane.xlu1 %3209  ;;  %3470 = vadd.xlane.f32.xlu0 %v3469_v60  ;;  %v3484_v60 = vsel %vm3108_vm0, %v3105_v58, 0.0  ;;  %v3106_v28 = vmul.f32 %v11886_v61, %v8920_v8 }
 0x435   : > { %16207 = vst [vmem:[#allocation51_spill] sm:$0xff] %v12292_v35  ;;  %v12294_v1 = vpop.xlane.xlu0 %3206 }
 0x436   : > { %16208 = vst [vmem:[#allocation52_spill] sm:$0xff] %v12294_v1 }
 0x437   : > { %3479 = vadd.xlane.f32.xlu1 %v3478_v59 }
 0x438   : > { %v12300_v9 = vpop.xlane.xlu1 %3215  ;;  %3476 = vadd.xlane.f32.xlu0 %v3475_v31  ;;  %v3487_v31 = vsel %vm3108_vm0, %v3106_v28, 0.0  ;;  %vm15651_vm0 = vcmask 1041409  }
 0x439   : > { %16209 = vst [vmem:[#allocation29_spill] sm:$0xff] %v12300_v9  ;;  %v12302_v49 = vpop.xlane.xlu0 %3212 }
 0x43a   : > { %16210 = vst [vmem:[#allocation30_spill] sm:$0xff] %v12302_v49 }
 0x43b   : > { %3485 = vadd.xlane.f32.xlu1 %v3484_v60 }
 0x43c   : > { %v12308_v59 = vpop.xlane.xlu1 %3221  ;;  %3482 = vadd.xlane.f32.xlu0 %v3481_v43 }
 0x43d   : > { %16211 = vst [vmem:[#allocation31_spill] sm:$0xff] %v12308_v59  ;;  %v12310_v57 = vpop.xlane.xlu0 %3218 }
 0x43e   : > { %16212 = vst [vmem:[#allocation32_spill] sm:$0xff] %v12310_v57 }
 0x43f   : > { %3491 = vadd.xlane.f32.xlu1 %v3490_v50 }
 0x440   : > { %v12314_v15 = vpop.xlane.xlu1 %3227  ;;  %3488 = vadd.xlane.f32.xlu0 %v3487_v31 }
 0x441   : > { %16213 = vst [vmem:[#allocation53_spill] sm:$0xff] %v12314_v15  ;;  %v12316_v58 = vpop.xlane.xlu0 %3224 }
 0x442   : > { %16214 = vst [vmem:[#allocation54_spill] sm:$0xff] %v12316_v58 }
 0x444   : > { %v12318_v32 = vpop.xlane.xlu1 %3233 }
 0x445   : > { %16215 = vst [vmem:[#allocation33_spill] sm:$0xff] %v12318_v32  ;;  %v12320_v30 = vpop.xlane.xlu0 %3230 }
 0x446   : > { %16216 = vst [vmem:[#allocation34_spill] sm:$0xff] %v12320_v30 }
 0x448   : > { %v12322_v61 = vpop.xlane.xlu1 %3239 }
 0x449   : > { %16217 = vst [vmem:[#allocation55_spill] sm:$0xff] %v12322_v61  ;;  %v12324_v8 = vpop.xlane.xlu0 %3236 }
 0x44a   : > { %16218 = vst [vmem:[#allocation56_spill] sm:$0xff] %v12324_v8 }
 0x44c   : > { %v12326_v60 = vpop.xlane.xlu1 %3245 }
 0x44d   : > { %16219 = vst [vmem:[#allocation58_spill] sm:$0xff] %v12326_v60  ;;  %v12328_v43 = vpop.xlane.xlu0 %3242 }
 0x44e   : > { %16220 = vst [vmem:[#allocation59_spill] sm:$0xff] %v12328_v43 }
 0x450   : > { %v12330_v41 = vpop.xlane.xlu1 %3251 }
 0x451   : > { %16221 = vst [vmem:[#allocation60_spill] sm:$0xff] %v12330_v41  ;;  %v12332_v28 = vpop.xlane.xlu0 %3248 }
 0x452   : > { %16222 = vst [vmem:[#allocation85_spill] sm:$0xff] %v12332_v28 }
 0x454   : > { %v12334_v50 = vpop.xlane.xlu1 %3257 }
 0x455   : > { %16223 = vst [vmem:[#allocation86_spill] sm:$0xff] %v12334_v50  ;;  %v12336_v31 = vpop.xlane.xlu0 %3254 }
 0x456   : > { %16224 = vst [vmem:[#allocation87_spill] sm:$0xff] %v12336_v31 }
 0x458   : > { %v12338_v39 = vpop.xlane.xlu1 %3263 }
 0x459   : > { %16225 = vst [vmem:[#allocation88_spill] sm:$0xff] %v12338_v39  ;;  %v12340_v3 = vpop.xlane.xlu0 %3260 }
 0x45a   : > { %16226 = vst [vmem:[#allocation89_spill] sm:$0xff] %v12340_v3 }
 0x45c   : > { %v12342_v26 = vpop.xlane.xlu1 %3269 }
 0x45d   : > { %16227 = vst [vmem:[#allocation90_spill] sm:$0xff] %v12342_v26  ;;  %v12344_v61 = vpop.xlane.xlu0 %3266 }
 0x45e   : > { %16228 = vst [vmem:[#allocation91_spill] sm:$0xff] %v12344_v61 }
 0x460   : > { %v12346_v32 = vpop.xlane.xlu1 %3275 }
 0x461   : > { %16229 = vst [vmem:[#allocation92_spill] sm:$0xff] %v12346_v32  ;;  %v12348_v60 = vpop.xlane.xlu0 %3272 }
 0x462   : > { %16230 = vst [vmem:[#allocation93_spill] sm:$0xff] %v12348_v60  ;;  %v3621_v60 = vlaneseq }
 0x464   : > { %v12350_v43 = vpop.xlane.xlu1 %3281 }
 0x465   : > { %16231 = vst [vmem:[#allocation94_spill] sm:$0xff] %v12350_v43  ;;  %v12352_v41 = vpop.xlane.xlu0 %3278 }
 0x466   : > { %16232 = vst [vmem:[#allocation97_spill] sm:$0xff] %v12352_v41 }
 0x468   : > { %v12354_v28 = vpop.xlane.xlu1 %3287 }
 0x469   : > { %16233 = vst [vmem:[#allocation98_spill] sm:$0xff] %v12354_v28  ;;  %v12356_v18 = vpop.xlane.xlu0 %3284  ;;  %v12374_v28 = vand.u32 127, %v3621_v60 }
 0x46a   : > { %16234 = vst [vmem:[#allocation99_spill] sm:$0xff] %v12356_v18 }
 0x46b   : > { %v3641_v50 = vadd.s32 4294967272, %v12374_v28  ;;  %v3655_v8 = vadd.s32 4294967256, %v12374_v28  ;;  %v3683_v15 = vadd.s32 4294967224, %v12374_v28 }
 0x46c   : > { %v12358_v31 = vpop.xlane.xlu1 %3293 }
 0x46d   : > { %16235 = vst [vmem:[#allocation100_spill] sm:$0xff] %v12358_v31  ;;  %v12360_v39 = vpop.xlane.xlu0 %3290 }
 0x46e   : > { %16236 = vst [vmem:[#allocation101_spill] sm:$0xff] %v12360_v39  ;;  %v12380_v39 = vshrl.u32 %v3621_v60, 7 }
 0x470   : > { %v12362_v3 = vpop.xlane.xlu1 %3299  ;;  %16245 = vst [vmem:[#allocation110_spill] sm:$0xff] %v12380_v39  ;;  %v12423_v53 = vsub.s32 %v3641_v50, %v12380_v39  ;;  %v12426_v0 = vsub.s32 %v3655_v8, %v12380_v39  ;;  %v3676_v8 = vadd.s32 4294967232, %v12374_v28  ;;  %v12450_v29 = vsub.s32 %v3683_v15, %v12380_v39 }
 0x471   : > { %16237 = vst [vmem:[#allocation102_spill] sm:$0xff] %v12362_v3  ;;  %v12364_v26 = vpop.xlane.xlu0 %3296  ;;  %v3627_v3 = vadd.s32 4294967288, %v12374_v28 }
 0x472   : > { %16238 = vst [vmem:[#allocation103_spill] sm:$0xff] %v12364_v26  ;;  %16256 = vst [vmem:[#allocation46_spill] sm:$0xff] %v12423_v53  ;;  %v12468_v14 = vsub.s32 %v3676_v8, %v12380_v39 }
 0x473   : > { %16257 = vst [vmem:[#allocation64_spill] sm:$0xff] %v12426_v0  ;;  %16262 = vst [vmem:[#allocation67_spill] sm:$0xff] %v12450_v29 }
 0x474   : > { %v12366_v61 = vpop.xlane.xlu1 %3359  ;;  %16264 = vst [vmem:[#allocation69_spill] sm:$0xff] %v12468_v14 }
 0x475   : > { %16239 = vst [vmem:[#allocation104_spill] sm:$0xff] %v12366_v61  ;;  %v12368_v32 = vpop.xlane.xlu0 %3356 }
 0x476   : > { %16240 = vst [vmem:[#allocation105_spill] sm:$0xff] %v12368_v32  ;;  %v12388_v32 = vsub.s32 %v3627_v3, %v12380_v39  ;;  %v3648_v3 = vadd.s32 4294967264, %v12374_v28 }
 0x478   : > { %v12370_v43 = vpop.xlane.xlu1 %3365  ;;  %16248 = vst [vmem:[#allocation113_spill] sm:$0xff] %v12388_v32  ;;  %v3631_v60 = vrot.slane %v12001_v52, %v12388_v32  ;;  %v12419_v2 = vsub.s32 %v3648_v3, %v12380_v39  ;;  %v3976_v3 = vrot.slane %v12013_v20, %v12388_v32  ;;  %v3645_v20 = vrot.slane %v12025_v17, %v12423_v53 }
 0x479   : > { %16241 = vst [vmem:[#allocation106_spill] sm:$0xff] %v12370_v43  ;;  %v12372_v41 = vpop.xlane.xlu0 %3362  ;;  %v12392_v43 = vsub.s32 %v12374_v28, %v12380_v39 }
 0x47a   : > { %16242 = vst [vmem:[#allocation107_spill] sm:$0xff] %v12372_v41  ;;  %v3634_v41 = vadd.s32 4294967280, %v12374_v28  ;;  %16255 = vst [vmem:[#allocation45_spill] sm:$0xff] %v12419_v2 }
 0x47b   : > { %16249 = vst [vmem:[#allocation114_spill] sm:$0xff] %v12392_v43  ;;  %v3972_v50 = vrot.slane %v12017_v46, %v12392_v43  ;;  %v3690_v46 = vadd.s32 4294967216, %v12374_v28 }
 0x47c   : > { %v12376_v18 = vpop.xlane.xlu1 %3371 }
 0x47d   : > { %16243 = vst [vmem:[#allocation108_spill] sm:$0xff] %v12376_v18  ;;  %v12378_v31 = vpop.xlane.xlu0 %3368  ;;  %v3977_v17 = vsel %vm3632_vm1, %v3976_v3, %v3972_v50  ;;  %v12486_v50 = vsub.s32 %v3690_v46, %v12380_v39  ;;  %v3996_v46 = vrot.slane %v12061_v44, %v12426_v0 }
 0x47e   : > { %16244 = vst [vmem:[#allocation109_spill] sm:$0xff] %v12378_v31 }
 0x47f   : > { %16267 = vst [vmem:[#allocation71_spill] sm:$0xff] %v12486_v50 }
 0x480   : > { %v12383_v26 = vpop.xlane.xlu1 %3377 }
 0x481   : > { %16246 = vst [vmem:[#allocation111_spill] sm:$0xff] %v12383_v26  ;;  %v12385_v61 = vpop.xlane.xlu0 %3374  ;;  %v3626_v26 = vrot.slane %v12003_v48, %v12392_v43 }
 0x482   : > { %16247 = vst [vmem:[#allocation112_spill] sm:$0xff] %v12385_v61  ;;  %v12404_v61 = vsub.s32 %v3634_v41, %v12380_v39 }
 0x483   : > { %v3633_v48 = vsel %vm3632_vm1, %v3631_v60, %v3626_v26 }
 0x484   : > { %v12395_v18 = vpop.xlane.xlu1 %3383  ;;  %16252 = vst [vmem:[#allocation117_spill] sm:$0xff] %v12404_v61  ;;  %v3638_v41 = vrot.slane %v12029_v40, %v12404_v61  ;;  %v3697_v40 = vadd.s32 4294967208, %v12374_v28  ;;  %v3744_v15 = vrot.slane %v12221_v33, %v12404_v61  ;;  %v3991_v33 = vrot.slane %v12065_v4, %v12419_v2 }
 0x485   : > { %16250 = vst [vmem:[#allocation115_spill] sm:$0xff] %v12395_v18  ;;  %v12397_v31 = vpop.xlane.xlu0 %3380  ;;  %v3669_v18 = vadd.s32 4294967240, %v12374_v28  ;;  %v3680_v4 = vrot.slane %v12101_v45, %v12468_v14 }
 0x486   : > { %16251 = vst [vmem:[#allocation116_spill] sm:$0xff] %v12397_v31  ;;  %v3662_v31 = vadd.s32 4294967248, %v12374_v28 }
 0x488   : > { %v12411_v23 = vpop.xlane.xlu1 %3389  ;;  %v12432_v26 = vsub.s32 %v3662_v31, %v12380_v39  ;;  %v3981_v31 = vrot.slane %v12041_v47, %v12404_v61  ;;  %v3704_v47 = vadd.s32 4294967200, %v12374_v28 }
 0x489   : > { %16253 = vst [vmem:[#allocation62_spill] sm:$0xff] %v12411_v23  ;;  %v12413_v52 = vpop.xlane.xlu0 %3386  ;;  %v12429_v23 = vsub.s32 %v3669_v18, %v12380_v39  ;;  %v3640_v18 = vsel %vm3639_vm2, %v3638_v41, %v3633_v48  ;;  %v3735_v48 = vrot.slane %v12197_v5, %v12392_v43  ;;  %v3711_v41 = vadd.s32 4294967192, %v12374_v28 }
 0x48a   : > { %16254 = vst [vmem:[#allocation61_spill] sm:$0xff] %v12413_v52  ;;  %16259 = vst [vmem:[#allocation25_spill] sm:$0xff] %v12432_v26  ;;  %v3647_v30 = vsel %vm3646_vm3, %v3645_v20, %v3640_v18  ;;  %v3982_v56 = vsel %vm3639_vm2, %v3981_v31, %v3977_v17  ;;  %v3666_v3 = vrot.slane %v12077_v62, %v12432_v26 }
 0x48b   : > { %16258 = vst [vmem:[#allocation63_spill] sm:$0xff] %v12429_v23  ;;  %v3986_v20 = vrot.slane %v12037_v7, %v12423_v53  ;;  %v3754_v18 = vrot.slane %v12233_v36, %v12419_v2 }
 0x48c   : > { %v12434_v60 = vpop.xlane.xlu1 %3395 }
 0x48d   : > { %16260 = vst [vmem:[#allocation65_spill] sm:$0xff] %v12434_v60  ;;  %v12442_v52 = vpop.xlane.xlu0 %3392  ;;  %v3652_v60 = vrot.slane %v12053_v55, %v12419_v2  ;;  %v3987_v7 = vsel %vm3646_vm3, %v3986_v20, %v3982_v56  ;;  %v3673_v56 = vrot.slane %v12073_v6, %v12429_v23  ;;  %v3818_v20 = vrot.slane %v12292_v35, %v12388_v32 }
 0x48e   : > { %16261 = vst [vmem:[#allocation66_spill] sm:$0xff] %v12442_v52  ;;  %v3739_v52 = vrot.slane %v12193_v38, %v12388_v32  ;;  %v12471_v38 = vsub.s32 %v3697_v40, %v12380_v39  ;;  %v3659_v40 = vrot.slane %v12049_v21, %v12426_v0  ;;  %v3759_v35 = vrot.slane %v12229_v37, %v12426_v0 }
 0x48f   : > { %v3654_v59 = vsel %vm15627_vm4, %v3652_v60, %v3647_v30  ;;  %v12490_v30 = vsub.s32 %v3711_v41, %v12380_v39  ;;  %v12493_v60 = vsub.s32 %v3704_v47, %v12380_v39  ;;  %v3992_v47 = vsel %vm15627_vm4, %v3991_v33, %v3987_v7 }
 0x490   : > { %v12463_v55 = vpop.xlane.xlu1 %3401  ;;  %16265 = vst [vmem:[#allocation70_spill] sm:$0xff] %v12471_v38  ;;  %v3740_v17 = vsel %vm3632_vm1, %v3739_v52, %v3735_v48  ;;  %v3661_v52 = vsel %vm15633_vm5, %v3659_v40, %v3654_v59  ;;  %v3749_v48 = vrot.slane %v12217_v22, %v12423_v53  ;;  %v3814_v7 = vrot.slane %v12294_v1, %v12392_v43 }
 0x491   : > { %16263 = vst [vmem:[#allocation68_spill] sm:$0xff] %v12463_v55  ;;  %v12473_v5 = vpop.xlane.xlu0 %3398  ;;  %v3745_v8 = vsel %vm3639_vm2, %v3744_v15, %v3740_v17  ;;  %v3668_v15 = vsel %vm15640_vm6, %v3666_v3, %v3661_v52  ;;  %v4001_v17 = vrot.slane %v12089_v19, %v12432_v26  ;;  %v3725_v33 = vadd.s32 4294967176, %v12374_v28 }
 0x492   : > { %16266 = vst [vmem:[#allocation28_spill] sm:$0xff] %v12473_v5  ;;  %v3750_v59 = vsel %vm3646_vm3, %v3749_v48, %v3745_v8  ;;  %v3764_v40 = vrot.slane %v12245_v13, %v12432_v26  ;;  %v3823_v52 = vrot.slane %v12302_v49, %v12404_v61  ;;  %v3997_v8 = vsel %vm15633_vm5, %v3996_v46, %v3992_v47 }
 0x493   : > { %v3755_v3 = vsel %vm15627_vm4, %v3754_v18, %v3750_v59  ;;  %v3675_v48 = vsel %vm3674_vm7, %v3673_v56, %v3668_v15  ;;  %v3718_v19 = vadd.s32 4294967184, %v12374_v28  ;;  %v4002_v18 = vsel %vm15640_vm6, %v4001_v17, %v3997_v8 }
 0x494   : > { %v12498_v31 = vpop.xlane.xlu1 %3407  ;;  %v3682_v59 = vsel %vm3681_vm8, %v3680_v4, %v3675_v48  ;;  %v4011_v49 = vrot.slane %v12113_v51, %v12468_v14  ;;  %v3694_v46 = vrot.slane %v12125_v25, %v12486_v50  ;;  %v4006_v47 = vrot.slane %v12085_v27, %v12429_v23 }
 0x495   : > { %16268 = vst [vmem:[#allocation118_spill] sm:$0xff] %v12498_v31  ;;  %v12506_v41 = vpop.xlane.xlu0 %3404  ;;  %v3687_v28 = vrot.slane %v12097_v54, %v12450_v29  ;;  %v3760_v15 = vsel %vm15633_vm5, %v3759_v35, %v3755_v3  ;;  %v3819_v56 = vsel %vm3632_vm1, %v3818_v20, %v3814_v7  ;;  %v3774_v4 = vrot.slane %v12259_v24, %v12468_v14  ;;  %v16299_v54 = vld [vmem:[#allocation49_spill] sm:$0xff] }
 0x496   : > { %16269 = vst [vmem:[#allocation119_spill] sm:$0xff] %v12506_v41  ;;  %v3765_v17 = vsel %vm15640_vm6, %v3764_v40, %v3760_v15  ;;  %v3824_v8 = vsel %vm3639_vm2, %v3823_v52, %v3819_v56  ;;  %v3833_v48 = vrot.slane %v12310_v57, %v12419_v2  ;;  %v4007_v27 = vsel %vm3674_vm7, %v4006_v47, %v4002_v18 }
 0x497   : > { %v3689_v37 = vsel %vm3688_vm9, %v3687_v28, %v3682_v59  ;;  %v3769_v35 = vrot.slane %v12241_v34, %v12429_v23  ;;  %v3828_v20 = vrot.slane %v12300_v9, %v12423_v53  ;;  %v4016_v3 = vrot.slane %v12109_v11, %v12450_v29  ;;  %v16279_v9 = vld [vmem:[#allocation57_spill] sm:$0xff] }
 0x498   : > { %v12527_v44 = vpop.xlane.xlu1 %3413  ;;  %v4012_v40 = vsel %vm3681_vm8, %v4011_v49, %v4007_v27  ;;  %v3701_v52 = vrot.slane %v12121_v16, %v12471_v38  ;;  %v3696_v18 = vsel %vm3695_vm10, %v3694_v46, %v3689_v37  ;;  %v4021_v59 = vrot.slane %v12137_v63, %v12486_v50 }
 0x499   : > { %16270 = vst [vmem:[#allocation120_spill] sm:$0xff] %v12527_v44  ;;  %v12534_v22 = vpop.xlane.xlu0 %3410  ;;  %v3708_v47 = vrot.slane %v12149_v10, %v12493_v60  ;;  %v3770_v28 = vsel %vm3674_vm7, %v3769_v35, %v3765_v17  ;;  %v3829_v15 = vsel %vm3646_vm3, %v3828_v20, %v3824_v8  ;;  %v3784_v27 = vrot.slane %v12269_v12, %v12486_v50  ;;  %v16276_v8 = vld [vmem:[#allocation31_spill] sm:$0xff] }
 0x49a   : > { %16271 = vst [vmem:[#allocation121_spill] sm:$0xff] %v12534_v22  ;;  %v3775_v56 = vsel %vm3681_vm8, %v3774_v4, %v3770_v28  ;;  %v3834_v49 = vsel %vm15627_vm4, %v3833_v48, %v3829_v15  ;;  %v3843_v37 = vrot.slane %v12316_v58, %v12432_v26  ;;  %v12585_v11 = vsub.s32 %v3725_v33, %v12380_v39  ;;  %v16278_v20 = vld [vmem:[#allocation15_spill] sm:$0xff] }
 0x49b   : > { %v3779_v17 = vrot.slane %v12253_v42, %v12450_v29  ;;  %v3838_v4 = vrot.slane %v16276_v8, %v12426_v0  ;;  %v4026_v48 = vrot.slane %v16278_v20, %v12471_v38  ;;  %v4017_v28 = vsel %vm3688_vm9, %v4016_v3, %v4012_v40  ;;  %v16280_v40 = vld [vmem:[#allocation34_spill] sm:$0xff] }
 0x49c   : > { %v12554_v51 = vpop.xlane.xlu1 %3419  ;;  %16275 = vst [vmem:[#allocation125_spill] sm:$0xff] %v12585_v11  ;;  %v3703_v15 = vsel %vm3702_vm11, %v3701_v52, %v3696_v18  ;;  %v12598_v63 = vsub.s32 %v3718_v19, %v12380_v39  ;;  %v4022_v33 = vsel %vm3695_vm10, %v4021_v59, %v4017_v28  ;;  %v4031_v42 = vrot.slane %v16279_v9, %v12493_v60  ;;  %v16282_v18 = vld [vmem:[#allocation37_spill] sm:$0xff]  ;;  %v16283_v28 = vld [vmem:[#allocation26_spill] sm:$0xff] }
 0x49d   : > { %16272 = vst [vmem:[#allocation122_spill] sm:$0xff] %v12554_v51  ;;  %v12562_v7 = vpop.xlane.xlu0 %3416  ;;  %v3780_v34 = vsel %vm3688_vm9, %v3779_v17, %v3775_v56  ;;  %v3839_v8 = vsel %vm15633_vm5, %v3838_v4, %v3834_v49  ;;  %v3710_v58 = vsel %vm3709_vm12, %v3708_v47, %v3703_v15  ;;  %v3853_v52 = vrot.slane %v16280_v40, %v12468_v14  ;;  %v16284_v56 = vld [vmem:[#allocation27_spill] sm:$0xff]  ;;  %v16285_v47 = vld [vmem:[#allocation53_spill] sm:$0xff]  ;;  %v16288_v4 = vld [vmem:[#allocation40_spill] sm:$0xff] }
 0x49e   : > { %16273 = vst [vmem:[#allocation123_spill] sm:$0xff] %v12562_v7  ;;  %v3785_v20 = vsel %vm3695_vm10, %v3784_v27, %v3780_v34  ;;  %v3844_v3 = vsel %vm15640_vm6, %v3843_v37, %v3839_v8  ;;  %v3715_v59 = vrot.slane %v16282_v18, %v12490_v30  ;;  %v3789_v9 = vrot.slane %v16283_v28, %v12471_v38  ;;  %v16287_v27 = vld [vmem:[#allocation38_spill] sm:$0xff]  ;;  %v16289_v18 = vld [vmem:[#allocation56_spill] sm:$0xff] }
 0x49f   : > { %v3794_v49 = vrot.slane %v16284_v56, %v12493_v60  ;;  %v3848_v17 = vrot.slane %v16285_v47, %v12429_v23  ;;  %v4036_v37 = vrot.slane %v16287_v27, %v12490_v30  ;;  %v4027_v8 = vsel %vm3702_vm11, %v4026_v48, %v4022_v33  ;;  %v16290_v48 = vld [vmem:[#allocation86_spill] sm:$0xff]  ;;  %v16291_v56 = vld [vmem:[#allocation87_spill] sm:$0xff] }
 0x4a0   : > { %v12582_v46 = vpop.xlane.xlu1 %3425  ;;  %v3722_v15 = vrot.slane %v16288_v4, %v12598_v63  ;;  %v4032_v40 = vsel %vm3709_vm12, %v4031_v42, %v4027_v8  ;;  %v3717_v28 = vsel %vm15801_vm13, %v3715_v59, %v3710_v58  ;;  %v3790_v57 = vsel %vm3702_vm11, %v3789_v9, %v3785_v20  ;;  %v16292_v58 = vld [vmem:[#allocation50_spill] sm:$0xff]  ;;  %v16293_v20 = vld [vmem:[#allocation33_spill] sm:$0xff] }
 0x4a1   : > { %16274 = vst [vmem:[#allocation124_spill] sm:$0xff] %v12582_v46  ;;  %v12591_v35 = vpop.xlane.xlu0 %3422  ;;  %v3849_v47 = vsel %vm3674_vm7, %v3848_v17, %v3844_v3  ;;  %v3863_v27 = vrot.slane %v16289_v18, %v12486_v50  ;;  %v3897_v33 = vrot.slane %v16290_v48, %v12388_v32  ;;  %v3893_v16 = vrot.slane %v16291_v56, %v12392_v43  ;;  %v16295_v17 = vld [vmem:[#allocation39_spill] sm:$0xff]  ;;  %v16297_v18 = vld [vmem:[#allocation41_spill] sm:$0xff] }
 0x4a2   : > { %16277 = vst [vmem:[#allocation126_spill] sm:$0xff] %v12591_v35  ;;  %v3854_v1 = vsel %vm3681_vm8, %v3853_v52, %v3849_v47  ;;  %v3795_v42 = vsel %vm3709_vm12, %v3794_v49, %v3790_v57  ;;  %v3804_v9 = vrot.slane %v16292_v58, %v12598_v63  ;;  %v3858_v3 = vrot.slane %v16293_v20, %v12450_v29  ;;  %v16294_v52 = vld [vmem:[#allocation89_spill] sm:$0xff]  ;;  %v16296_v57 = vld [vmem:[#allocation48_spill] sm:$0xff]  ;;  %v16298_v58 = vld [vmem:[#allocation42_spill] sm:$0xff] }
 0x4a3   : > { %v3902_v59 = vrot.slane %v16294_v52, %v12404_v61  ;;  %v12652_v48 = vsel %vm3723_vm14, %v3722_v15, %v3717_v28  ;;  %v12655_v56 = vsel %vm15801_vm13, %v4036_v37, %v4032_v40  ;;  %v3799_v49 = vrot.slane %v16296_v57, %v12490_v30  ;;  %v16300_v40 = vld [vmem:[#allocation59_spill] sm:$0xff] }
 0x4a4   : > { %v12610_v19 = vpop.xlane.xlu1 %3431  ;;  %v4055_v20 = vrot.slane %v16297_v18, %v12388_v32  ;;  %v4051_v52 = vrot.slane %v16298_v58, %v12392_v43  ;;  %v3809_v24 = vrot.slane %v16299_v54, %v12585_v11  ;;  %v3859_v8 = vsel %vm3688_vm9, %v3858_v3, %v3854_v1  ;;  %v16301_v58 = vld [vmem:[#allocation55_spill] sm:$0xff] }
 0x4a5   : > { %16281 = vst [vmem:[#allocation127_spill] sm:$0xff] %v12610_v19  ;;  %v12620_v34 = vpop.xlane.xlu0 %3428  ;;  %v3800_v28 = vsel %vm15801_vm13, %v3799_v49, %v3795_v42  ;;  %v3864_v15 = vsel %vm3695_vm10, %v3863_v27, %v3859_v8  ;;  %v3873_v37 = vrot.slane %v16300_v40, %v12493_v60  ;;  %v3898_v57 = vsel %vm3632_vm1, %v3897_v33, %v3893_v16  ;;  %v16302_v1 = vld [vmem:[#allocation91_spill] sm:$0xff]  ;;  %v16303_v27 = vld [vmem:[#allocation88_spill] sm:$0xff]  ;;  %v16304_v49 = vld [vmem:[#allocation105_spill] sm:$0xff] }
 0x4a6   : > { %16286 = vst [vmem:[#allocation128_spill] sm:$0xff] %v12620_v34  ;;  %v3805_v18 = vsel %vm3723_vm14, %v3804_v9, %v3800_v28  ;;  %v3868_v13 = vrot.slane %v16301_v58, %v12471_v38  ;;  %v3903_v54 = vsel %vm3639_vm2, %v3902_v59, %v3898_v57  ;;  %v3912_v3 = vrot.slane %v16302_v1, %v12419_v2  ;;  %v16305_v28 = vld [vmem:[#allocation18_spill] sm:$0xff]  ;;  %v16308_v59 = vld [vmem:[#allocation60_spill] sm:$0xff] }
 0x4a7   : > { %v3907_v8 = vrot.slane %v16303_v27, %v12423_v53  ;;  %v4060_v16 = vrot.slane %v16304_v49, %v12404_v61  ;;  %v4134_v33 = vrot.slane %v12463_v55, %v12388_v32  ;;  %v4130_v9 = vrot.slane %v12473_v5, %v12392_v43  ;;  %v16306_v49 = vld [vmem:[#allocation58_spill] sm:$0xff] }
 0x4a8   : > { %v12638_v12 = vpop.xlane.xlu1 %3437  ;;  %v4056_v57 = vsel %vm3632_vm1, %v4055_v20, %v4051_v52  ;;  %v3869_v58 = vsel %vm3702_vm11, %v3868_v13, %v3864_v15  ;;  %v4139_v1 = vrot.slane %v12506_v41, %v12404_v61  ;;  %v12696_v27 = vsel %vm3730_vm15, %v3809_v24, %v3805_v18  ;;  %v16309_v13 = vld [vmem:[#allocation90_spill] sm:$0xff]  ;;  %v16310_v24 = vld [vmem:[#allocation93_spill] sm:$0xff] }
 0x4a9   : > { %v12647_v47 = vpop.xlane.xlu0 %3434  ;;  %v3878_v40 = vrot.slane %v16306_v49, %v12490_v30  ;;  %v3874_v55 = vsel %vm3709_vm12, %v3873_v37, %v3869_v58  ;;  %v3908_v5 = vsel %vm3646_vm3, %v3907_v8, %v3903_v54  ;;  %v3917_v52 = vrot.slane %v16309_v13, %v12426_v0  ;;  %v16312_v49 = vld [vmem:[#allocation104_spill] sm:$0xff]  ;;  %v16313_v37 = vld [vmem:[#allocation107_spill] sm:$0xff] }
 0x4aa   : > { %v3913_v15 = vsel %vm15627_vm4, %v3912_v3, %v3908_v5  ;;  %v3922_v18 = vrot.slane %v16310_v24, %v12432_v26  ;;  %v4065_v58 = vrot.slane %v16312_v49, %v12423_v53  ;;  %v4061_v54 = vsel %vm3639_vm2, %v4060_v16, %v4056_v57  ;;  %v16314_v16 = vld [vmem:[#allocation85_spill] sm:$0xff] }
 0x4ab   : > { %v4070_v8 = vrot.slane %v16313_v37, %v12419_v2  ;;  %v4135_v20 = vsel %vm3632_vm1, %v4134_v33, %v4130_v9  ;;  %v4149_v5 = vrot.slane %v12534_v22, %v12419_v2  ;;  %v12727_v49 = vsel %vm15801_vm13, %v3878_v40, %v3874_v55  ;;  %v16316_v9 = vld [vmem:[#allocation92_spill] sm:$0xff]  ;;  %v16320_v22 = vld [vmem:[#allocation106_spill] sm:$0xff] }
 0x4ac   : > { %v12671_v45 = vpop.xlane.xlu1 %3443  ;;  %v4140_v36 = vsel %vm3639_vm2, %v4139_v1, %v4135_v20  ;;  %v3918_v37 = vsel %vm15633_vm5, %v3917_v52, %v3913_v15  ;;  %v4144_v1 = vrot.slane %v12498_v31, %v12423_v53  ;;  %v3927_v20 = vrot.slane %v16316_v9, %v12429_v23  ;;  %v16319_v52 = vld [vmem:[#allocation109_spill] sm:$0xff] }
 0x4ad   : > { %v12679_v42 = vpop.xlane.xlu0 %3440  ;;  %v4066_v55 = vsel %vm3646_vm3, %v4065_v58, %v4061_v54  ;;  %v4080_v15 = vrot.slane %v16319_v52, %v12432_v26  ;;  %v4159_v58 = vrot.slane %v12562_v7, %v12432_v26 }
 0x4ae   : > { %v4071_v57 = vsel %vm15627_vm4, %v4070_v8, %v4066_v55  ;;  %v4145_v31 = vsel %vm3646_vm3, %v4144_v1, %v4140_v36  ;;  %v16321_v8 = vld [vmem:[#allocation94_spill] sm:$0xff]  ;;  %v4154_v36 = vrot.slane %v12527_v44, %v12426_v0 }
 0x4af   : > { %v3937_v55 = vrot.slane %v16321_v8, %v12450_v29 }
 0x4b0   : > { %v12702_v6 = vpop.xlane.xlu1 %3449 }
 0x4b1   : > { %16307 = vst [vmem:[#allocation40_spill] sm:$0xff] %v12702_v6  ;;  %v12711_v41 = vpop.xlane.xlu0 %3446  ;;  %v4213_v3 = vrot.slane %v12702_v6, %v12388_v32  ;;  %v3923_v32 = vsel %vm15640_vm6, %v3922_v18, %v3918_v37  ;;  %v4075_v18 = vrot.slane %v16320_v22, %v12426_v0  ;;  %v4150_v37 = vsel %vm15627_vm4, %v4149_v5, %v4145_v31  ;;  %v16323_v31 = vld [vmem:[#allocation99_spill] sm:$0xff] }
 0x4b2   : > { %16311 = vst [vmem:[#allocation39_spill] sm:$0xff] %v12711_v41  ;;  %v4209_v13 = vrot.slane %v12711_v41, %v12392_v43  ;;  %v16317_v43 = vld [vmem:[#allocation97_spill] sm:$0xff]  ;;  %v3928_v52 = vsel %vm3674_vm7, %v3927_v20, %v3923_v32  ;;  %v3942_v5 = vrot.slane %v16323_v31, %v12486_v50  ;;  %v16325_v20 = vld [vmem:[#allocation112_spill] sm:$0xff] }
 0x4b3   : > { %v3932_v6 = vrot.slane %v16317_v43, %v12468_v14  ;;  %v4076_v7 = vsel %vm15633_vm5, %v4075_v18, %v4071_v57  ;;  %v4090_v44 = vrot.slane %v16325_v20, %v12468_v14  ;;  %v4169_v18 = vrot.slane %v12591_v35, %v12468_v14 }
 0x4b4   : > { %v12734_v33 = vpop.xlane.xlu1 %3455  ;;  %v4214_v54 = vsel %vm3632_vm1, %v4213_v3, %v4209_v13  ;;  %v4081_v32 = vsel %vm15640_vm6, %v4080_v15, %v4076_v7  ;;  %v16327_v7 = vld [vmem:[#allocation98_spill] sm:$0xff] }
 0x4b5   : > { %16315 = vst [vmem:[#allocation18_spill] sm:$0xff] %v12734_v33  ;;  %v12742_v40 = vpop.xlane.xlu0 %3452  ;;  %v4223_v13 = vrot.slane %v12734_v33, %v12423_v53  ;;  %v3947_v15 = vrot.slane %v16327_v7, %v12471_v38 }
 0x4b6   : > { %16318 = vst [vmem:[#allocation60_spill] sm:$0xff] %v12742_v40  ;;  %v4218_v41 = vrot.slane %v12742_v40, %v12404_v61  ;;  %v3933_v40 = vsel %vm3681_vm8, %v3932_v6, %v3928_v52  ;;  %v16326_v52 = vld [vmem:[#allocation108_spill] sm:$0xff] }
 0x4b7   : > { %v3938_v33 = vsel %vm3688_vm9, %v3937_v55, %v3933_v40  ;;  %v16331_v55 = vld [vmem:[#allocation116_spill] sm:$0xff] }
 0x4b8   : > { %v4219_v1 = vsel %vm3639_vm2, %v4218_v41, %v4214_v54  ;;  %v12762_v61 = vpop.xlane.xlu1 %3461  ;;  %v4155_v41 = vsel %vm15633_vm5, %v4154_v36, %v4150_v37  ;;  %v4085_v54 = vrot.slane %v16326_v52, %v12429_v23  ;;  %v4164_v37 = vrot.slane %v12554_v51, %v12429_v23 }
 0x4b9   : > { %16322 = vst [vmem:[#allocation93_spill] sm:$0xff] %v12762_v61  ;;  %v12770_v3 = vpop.xlane.xlu0 %3458  ;;  %v4160_v57 = vsel %vm15640_vm6, %v4159_v58, %v4155_v41  ;;  %v4224_v53 = vsel %vm3646_vm3, %v4223_v13, %v4219_v1  ;;  %v16329_v58 = vld [vmem:[#allocation101_spill] sm:$0xff]  ;;  %v4233_v1 = vrot.slane %v12762_v61, %v12426_v0  ;;  %v4100_v51 = vrot.slane %v16331_v55, %v12486_v50 }
 0x4ba   : > { %16324 = vst [vmem:[#allocation85_spill] sm:$0xff] %v12770_v3  ;;  %v4228_v6 = vrot.slane %v12770_v3, %v12419_v2  ;;  %v3943_v3 = vsel %vm3695_vm10, %v3942_v5, %v3938_v33  ;;  %v3952_v41 = vrot.slane %v16329_v58, %v12493_v60  ;;  %v4086_v35 = vsel %vm3674_vm7, %v4085_v54, %v4081_v32  ;;  %v16332_v5 = vld [vmem:[#allocation111_spill] sm:$0xff] }
 0x4bb   : > { %v4091_v40 = vsel %vm3681_vm8, %v4090_v44, %v4086_v35  ;;  %v4179_v54 = vrot.slane %v12620_v34, %v12486_v50  ;;  %v16333_v44 = vld [vmem:[#allocation100_spill] sm:$0xff] }
 0x4bc   : > { %v4229_v36 = vsel %vm15627_vm4, %v4228_v6, %v4224_v53  ;;  %v12790_v2 = vpop.xlane.xlu1 %3467  ;;  %v4165_v53 = vsel %vm3674_vm7, %v4164_v37, %v4160_v57  ;;  %v4095_v6 = vrot.slane %v16332_v5, %v12450_v29  ;;  %vm15650_vm4 = vcmask 1042434  }
 0x4bd   : > { %16328 = vst [vmem:[#allocation92_spill] sm:$0xff] %v12790_v2  ;;  %v12798_v13 = vpop.xlane.xlu0 %3464  ;;  %v4170_v32 = vsel %vm3681_vm8, %v4169_v18, %v4165_v53  ;;  %v4234_v0 = vsel %vm15633_vm5, %v4233_v1, %v4229_v36  ;;  %v3957_v35 = vrot.slane %v16333_v44, %v12490_v30  ;;  %v3948_v57 = vsel %vm3702_vm11, %v3947_v15, %v3943_v3  ;;  %v16335_v53 = vld [vmem:[#allocation103_spill] sm:$0xff]  ;;  %v16337_v15 = vld [vmem:[#allocation61_spill] sm:$0xff] }
 0x4be   : > { %16330 = vst [vmem:[#allocation97_spill] sm:$0xff] %v12798_v13  ;;  %v4238_v33 = vrot.slane %v12798_v13, %v12432_v26  ;;  %v4174_v37 = vrot.slane %v12582_v46, %v12450_v29  ;;  %v3953_v18 = vsel %vm3709_vm12, %v3952_v41, %v3948_v57  ;;  %v3962_v13 = vrot.slane %v16335_v53, %v12598_v63  ;;  %v16338_v57 = vld [vmem:[#allocation115_spill] sm:$0xff] }
 0x4bf   : > { %v4096_v36 = vsel %vm3688_vm9, %v4095_v6, %v4091_v40  ;;  %v4243_v1 = vrot.slane %v12790_v2, %v12429_v23  ;;  %vm15652_vm5 = vcmask 1043459   ;;  %v4105_v46 = vrot.slane %v16338_v57, %v12471_v38 }
 0x4c0   : > { %v4239_v26 = vsel %vm15640_vm6, %v4238_v33, %v4234_v0  ;;  %v12818_v61 = vpop.xlane.xlu1 %3473  ;;  %v4101_v3 = vsel %vm3695_vm10, %v4100_v51, %v4096_v36  ;;  %v4110_v0 = vrot.slane %v16337_v15, %v12493_v60  ;;  %v4175_v33 = vsel %vm3688_vm9, %v4174_v37, %v4170_v32 }
 0x4c1   : > { %16334 = vst [vmem:[#allocation106_spill] sm:$0xff] %v12818_v61  ;;  %v12826_v34 = vpop.xlane.xlu0 %3470  ;;  %v4180_v40 = vsel %vm3695_vm10, %v4179_v54, %v4175_v33  ;;  %v4189_v6 = vrot.slane %v12647_v47, %v12493_v60  ;;  %v4244_v23 = vsel %vm3674_vm7, %v4243_v1, %v4239_v26  ;;  %v16339_v51 = vrot.slane %v16314_v16, %v12598_v63  ;;  %v16340_v54 = vld [vmem:[#allocation102_spill] sm:$0xff] }
 0x4c2   : > { %16336 = vst [vmem:[#allocation94_spill] sm:$0xff] %v12826_v34  ;;  %v4248_v41 = vrot.slane %v12826_v34, %v12468_v14  ;;  %v3958_v32 = vsel %vm15801_vm13, %v3957_v35, %v3953_v18  ;;  %v4184_v37 = vrot.slane %v12610_v19, %v12471_v38  ;;  %vm15800_vm6 = vcmask 1044484   ;;  %v16341_v18 = vld [vmem:[#allocation66_spill] sm:$0xff] }
 0x4c3   : > { %v3884_v36 = vsel %vm3723_vm14, %v16339_v51, %v12727_v49  ;;  %v3967_v33 = vrot.slane %v16340_v54, %v12585_v11  ;;  %v3963_v26 = vsel %vm3723_vm14, %v3962_v13, %v3958_v32  ;;  %v4106_v1 = vsel %vm3702_vm11, %v4105_v46, %v4101_v3  ;;  %v16342_v34 = vld [vmem:[#allocation62_spill] sm:$0xff] }
 0x4c4   : > { %v4249_v14 = vsel %vm3681_vm8, %v4248_v41, %v4244_v23  ;;  %v12849_v2 = vpop.xlane.xlu1 %3479  ;;  %v4253_v49 = vrot.slane %v12818_v61, %v12450_v29  ;;  %v4111_v35 = vsel %vm3709_vm12, %v4110_v0, %v4106_v1  ;;  %v4120_v23 = vrot.slane %v16341_v18, %v12598_v63 }
 0x4c5   : > { %v12857_v51 = vpop.xlane.xlu0 %3476  ;;  %v4185_v41 = vsel %vm3702_vm11, %v4184_v37, %v4180_v40  ;;  %v4115_v13 = vrot.slane %v16342_v34, %v12490_v30  ;;  %v4199_v3 = vrot.slane %v12679_v42, %v12598_v63  ;;  %v16343_v0 = vrot.slane %v16295_v17, %v12585_v11 }
 0x4c6   : > { %v4258_v19 = vrot.slane %v12857_v51, %v12486_v50  ;;  %v4190_v46 = vsel %vm3709_vm12, %v4189_v6, %v4185_v41  ;;  %v4254_v32 = vsel %vm3688_vm9, %v4253_v49, %v4249_v14  ;;  %v16344_v40 = vrot.slane %v16308_v59, %v12585_v11 }
 0x4c7   : > { %v3731_v1 = vsel %vm3730_vm15, %v16343_v0, %v12652_v48  ;;  %v4194_v50 = vrot.slane %v12638_v12, %v12490_v30  ;;  %v16345_v14 = vrot.slane %v16305_v28, %v12598_v63  ;;  %v3968_v48 = vsel %vm3730_vm15, %v3967_v33, %v3963_v26  ;;  %v16346_v33 = vld [vmem:[#allocation65_spill] sm:$0xff] }
 0x4c8   : > { %v3889_v37 = vsel %vm3730_vm15, %v16344_v40, %v3884_v36  ;;  %v4259_v6 = vsel %vm3695_vm10, %v4258_v19, %v4254_v32  ;;  %v12883_v41 = vpop.xlane.xlu1 %3485  ;;  %v4116_v0 = vsel %vm15801_vm13, %v4115_v13, %v4111_v35  ;;  %v4263_v36 = vrot.slane %v12849_v2, %v12471_v38 }
 0x4c9   : > { %v4042_v49 = vsel %vm3723_vm14, %v16345_v14, %v12655_v56  ;;  %v12894_v40 = vpop.xlane.xlu0 %3482  ;;  %v4286_v19 = vsel %vm15651_vm0, %v12696_v27, %v3731_v1  ;;  %v4121_v32 = vsel %vm3723_vm14, %v4120_v23, %v4116_v0  ;;  %v4195_v29 = vsel %vm15801_vm13, %v4194_v50, %v4190_v46  ;;  %v16347_v14 = vld [vmem:[#allocation17_spill] sm:$0xff] }
 0x4ca   : > { %v4268_v61 = vrot.slane %v12894_v40, %v12493_v60  ;;  %v4288_v56 = vsel %vm15650_vm4, %v3889_v37, %v4286_v19  ;;  %v4125_v26 = vrot.slane %v16346_v33, %v12585_v11  ;;  %v4200_v35 = vsel %vm3723_vm14, %v4199_v3, %v4195_v29 }
 0x4cb   : > { %v4264_v13 = vsel %vm3702_vm11, %v4263_v36, %v4259_v6  ;;  %v4046_v38 = vrot.slane %v16347_v14, %v12585_v11  ;;  %v4204_v27 = vrot.slane %v12671_v45, %v12585_v11  ;;  %v4290_v46 = vsel %vm15652_vm5, %v3968_v48, %v4288_v56 }
 0x4cc   : > { %v4269_v50 = vsel %vm3709_vm12, %v4268_v61, %v4264_v13  ;;  %v12912_v23 = vpop.xlane.xlu1 %3491  ;;  %v4273_v1 = vrot.slane %v12883_v41, %v12490_v30  ;;  %v4126_v29 = vsel %vm3730_vm15, %v4125_v26, %v4121_v32  ;;  %vm15799_vm4 = vcmask 1045509  }
 0x4cd   : > { %v12917_v37 = vpop.xlane.xlu0 %3488  ;;  %v4047_v3 = vsel %vm3730_vm15, %v4046_v38, %v4042_v49  ;;  %v4205_v0 = vsel %vm3730_vm15, %v4204_v27, %v4200_v35  ;;  %vm15798_vm0 = vcmask 1046534   ;;  %v4283_v61 = vrot.slane %v12912_v23, %v12585_v11 }
 0x4ce   : > { %v4278_v6 = vrot.slane %v12917_v37, %v12598_v63  ;;  %v4274_v48 = vsel %vm15801_vm13, %v4273_v1, %v4269_v50  ;;  %v4292_v36 = vsel %vm15800_vm6, %v4047_v3, %v4290_v46  ;;  %vm15797_vm5 = vcmask 1047559   ;;  %v16348_v50 = vld [vmem:[#allocation72_spill] sm:$0xff]  ;;  %v16349_v1 = vld [vmem:[#allocation73_spill] sm:$0xff] }
 0x4cf   : > { %v4294_v32 = vsel %vm15799_vm4, %v4126_v29, %v4292_v36  ;;  %v9413_v26 = vmov 0   ;;  %v15654_v35 = vsub.s32 0, %v12380_v39  ;;  %v15653_v36 = vsub.s32 1, %v12380_v39 }
 0x4d0   : > { %v4279_v19 = vsel %vm3723_vm14, %v4278_v6, %v4274_v48  ;;  %v4296_v49 = vsel %vm15798_vm0, %v4205_v0, %v4294_v32  ;;  %8408 = vset.pattern.permute.xlu0 %v9413_v26  ;;  %8407 = vset.pattern.permute.xlu1 %v9413_v26  ;;  %v16350_v6 = vld [vmem:[#allocation77_spill] sm:$0xff]  ;;  %vm16632_vm6 = vcmask 458112  }
 0x4d1   : > { %v4284_v38 = vsel %vm3730_vm15, %v4283_v61, %v4279_v19 }
 0x4d2   : > { %v4298_v56 = vsel %vm15797_vm5, %v4284_v38, %v4296_v49  ;;  %v16351_v49 = vld [vmem:[#allocation76_spill] sm:$0xff]  ;;  %vm16626_vm5 = vcmask 326912  }
 0x4d3   : > { %4300 = vmax.xlane.f32.xlu0 %v4298_v56  ;;  %vm16629_vm0 = vmmov %vm16626_vm5 }
 0x560   : > { %v12934_v13 = vpop.xlane.xlu0 %4300 }
 0x561   : > { %v12939_v27 = vrot.slane %v12934_v13, %v15654_v35 }
 0x563   : > { %v4344_v46 = vsub.f32 %v16348_v50, %v12939_v27  ;;  %v4343_v29 = vsub.f32 %v16349_v1, %v12939_v27  ;;  %v4353_v3 = vsub.f32 %v12125_v25, %v12939_v27  ;;  %v4345_v0 = vsub.f32 %v16350_v6, %v12939_v27  ;;  %v16352_v1 = vld [vmem:[#allocation80_spill] sm:$0xff] }
 0x564   : > { %v4355_v32 = vsub.f32 %v12149_v10, %v12939_v27  ;;  %v4346_v56 = vsub.f32 %v16351_v49, %v12939_v27  ;;  %v12957_v25 = vrot.slane %v12934_v13, %v15653_v36  ;;  %v4357_v50 = vsub.f32 %v16288_v4, %v12939_v27 }
 0x565   : > { %v4473_v61 = vmul.f32 1.442695, %v4344_v46  ;;  %v4471_v48 = vmul.f32 1.442695, %v4343_v29  ;;  %v4491_v19 = vmul.f32 1.442695, %v4353_v3  ;;  %v4347_v10 = vsub.f32 %v16352_v1, %v12939_v27 }
 0x566   : > { %v4475_v38 = vmul.f32 1.442695, %v4345_v0  ;;  %v4495_v26 = vmul.f32 1.442695, %v4355_v32  ;;  %v4477_v46 = vmul.f32 1.442695, %v4346_v56  ;;  %v4349_v56 = vsub.f32 %v12077_v62, %v12939_v27 }
 0x567   : > { %8921 = vpow2.f32 %v4473_v61  ;;  %v4499_v29 = vmul.f32 1.442695, %v4357_v50  ;;  %v16353_v3 = vld [vmem:[#allocation20_spill] sm:$0xff]  ;;  %v4479_v0 = vmul.f32 1.442695, %v4347_v10  ;;  %v4348_v61 = vsub.f32 %v12049_v21, %v12939_v27  ;;  %v16356_v32 = vld [vmem:[#allocation21_spill] sm:$0xff] }
 0x568   : > { %8923 = vpow2.f32 %v4471_v48  ;;  %v4359_v6 = vsub.f32 %v16353_v3, %v12957_v25  ;;  %v4483_v10 = vmul.f32 1.442695, %v4349_v56 }
 0x569   : > { %8925 = vpow2.f32 %v4491_v19  ;;  %v4481_v49 = vmul.f32 1.442695, %v4348_v61  ;;  %v16363_v61 = vld [vmem:[#allocation44_spill] sm:$0xff] }
 0x56a   : > { %8927 = vpow2.f32 %v4475_v38  ;;  %v4503_v4 = vmul.f32 1.442695, %v4359_v6  ;;  %v4361_v38 = vsub.f32 %v16356_v32, %v12957_v25 }
 0x56b   : > { %8929 = vpow2.f32 %v4495_v26 }
 0x56c   : > { %8931 = vpow2.f32 %v4477_v46  ;;  %v4507_v50 = vmul.f32 1.442695, %v4361_v38  ;;  %v16359_v46 = vld [vmem:[#allocation22_spill] sm:$0xff]  ;;  %v16364_v38 = vld [vmem:[#allocation13_spill] sm:$0xff] }
 0x56d   : > { %8933 = vpow2.f32 %v4499_v29  ;;  %v4363_v1 = vsub.f32 %v16359_v46, %v12957_v25  ;;  %v16360_v29 = vld [vmem:[#allocation83_spill] sm:$0xff] }
 0x56e   : > { %8935 = vpow2.f32 %v4479_v0  ;;  %v4350_v3 = vsub.f32 %v16360_v29, %v12939_v27 }
 0x56f   : > { %8937 = vpow2.f32 %v4503_v4  ;;  %v4511_v0 = vmul.f32 1.442695, %v4363_v1  ;;  %v4365_v4 = vsub.f32 %v16363_v61, %v12957_v25 }
 0x570   : > { %8939 = vpow2.f32 %v4481_v49  ;;  %v4485_v32 = vmul.f32 1.442695, %v4350_v3  ;;  %v4351_v49 = vsub.f32 %v16364_v38, %v12939_v27 }
 0x571   : > { %v12967_v48 = vpop.eup %8921  ;;  %8941 = vpow2.f32 %v4507_v50  ;;  %v4515_v29 = vmul.f32 1.442695, %v4365_v4  ;;  %v16367_v50 = vld [vmem:[#allocation24_spill] sm:$0xff] }
 0x572   : > { %16354 = vst [vmem:[#allocation99_spill] sm:$0xff] %v12967_v48  ;;  %v12969_v19 = vpop.eup %8923  ;;  %4859 = vperm.xlu0 %8408, %v12967_v48   ;;  %8943 = vpow2.f32 %v4483_v10  ;;  %v4367_v1 = vsub.f32 %v16367_v50, %v12957_v25  ;;  %v4487_v61 = vmul.f32 1.442695, %v4351_v49  ;;  %v16368_v10 = vld [vmem:[#allocation12_spill] sm:$0xff] }
 0x573   : > { %16355 = vst [vmem:[#allocation112_spill] sm:$0xff] %v12969_v19  ;;  %4856 = vperm.xlu1 %8407, %v12969_v19   ;;  %v12977_v26 = vpop.eup %8925  ;;  %8945 = vpow2.f32 %v4511_v0  ;;  %v4352_v3 = vsub.f32 %v16368_v10, %v12939_v27  ;;  %v16371_v0 = vld [vmem:[#allocation47_spill] sm:$0xff] }
 0x574   : > { %16357 = vst [vmem:[#allocation108_spill] sm:$0xff] %v12977_v26  ;;  %v12979_v21 = vpop.eup %8927  ;;  %8947 = vpow2.f32 %v4485_v32  ;;  %v4519_v35 = vmul.f32 1.442695, %v4367_v1  ;;  %v4369_v4 = vsub.f32 %v16371_v0, %v12957_v25  ;;  %v16372_v32 = vld [vmem:[#allocation36_spill] sm:$0xff]  ;;  %v16375_v1 = vld [vmem:[#allocation27_spill] sm:$0xff] }
 0x575   : > { %16358 = vst [vmem:[#allocation98_spill] sm:$0xff] %v12979_v21  ;;  %v12987_v6 = vpop.eup %8929  ;;  %8949 = vpow2.f32 %v4515_v29  ;;  %v4489_v50 = vmul.f32 1.442695, %v4352_v3  ;;  %v4354_v49 = vsub.f32 %v16372_v32, %v12939_v27  ;;  %v4371_v0 = vsub.f32 %v16375_v1, %v12957_v25  ;;  %v16376_v3 = vld [vmem:[#allocation37_spill] sm:$0xff] }
 0x576   : > { %4886 = vperm.xlu0 %8408, %v12977_v26   ;;  %16361 = vst [vmem:[#allocation101_spill] sm:$0xff] %v12987_v6  ;;  %v12989_v62 = vpop.eup %8931  ;;  %8951 = vpow2.f32 %v4487_v61  ;;  %v15661_v26 = vsub.s32 2, %v12380_v39  ;;  %v4523_v29 = vmul.f32 1.442695, %v4369_v4  ;;  %v4356_v32 = vsub.f32 %v16376_v3, %v12939_v27  ;;  %v16379_v4 = vld [vmem:[#allocation50_spill] sm:$0xff] }
 0x577   : > { %4862 = vperm.xlu1 %8407, %v12979_v21   ;;  %16362 = vst [vmem:[#allocation116_spill] sm:$0xff] %v12989_v62  ;;  %v12997_v56 = vpop.eup %8933  ;;  %8953 = vpow2.f32 %v4519_v35  ;;  %v4493_v61 = vmul.f32 1.442695, %v4354_v49  ;;  %v4527_v35 = vmul.f32 1.442695, %v4371_v0  ;;  %v4358_v1 = vsub.f32 %v16295_v17, %v12939_v27 }
 0x578   : > { %16365 = vst [vmem:[#allocation111_spill] sm:$0xff] %v12997_v56  ;;  %v12999_v46 = vpop.eup %8935  ;;  %8955 = vpow2.f32 %v4489_v50  ;;  %v4373_v50 = vsub.f32 %v16379_v4, %v12957_v25  ;;  %v4497_v49 = vmul.f32 1.442695, %v4356_v32 }
 0x579   : > { %16366 = vst [vmem:[#allocation100_spill] sm:$0xff] %v12999_v46  ;;  %v13007_v36 = vpop.eup %8937  ;;  %8957 = vpow2.f32 %v4523_v29  ;;  %v16382_v29 = vld [vmem:[#allocation52_spill] sm:$0xff]  ;;  %v4501_v4 = vmul.f32 1.442695, %v4358_v1 }
 0x57a   : > { %4892 = vperm.xlu0 %8408, %v12987_v6   ;;  %16369 = vst [vmem:[#allocation103_spill] sm:$0xff] %v13007_v36  ;;  %v13009_v38 = vpop.eup %8939  ;;  %8959 = vpow2.f32 %v4493_v61  ;;  %v16383_v61 = vld [vmem:[#allocation19_spill] sm:$0xff] }
 0x57b   : > { %4865 = vperm.xlu1 %8407, %v12989_v62   ;;  %16370 = vst [vmem:[#allocation61_spill] sm:$0xff] %v13009_v38  ;;  %v13017_v6 = vpop.eup %8941  ;;  %8961 = vpow2.f32 %v4527_v35  ;;  %v4360_v32 = vsub.f32 %v16383_v61, %v12957_v25  ;;  %v16386_v35 = vld [vmem:[#allocation30_spill] sm:$0xff] }
 0x57c   : > { %16373 = vst [vmem:[#allocation115_spill] sm:$0xff] %v13017_v6  ;;  %v13019_v10 = vpop.eup %8943  ;;  %8963 = vpow2.f32 %v4497_v49  ;;  %v16387_v49 = vld [vmem:[#allocation95_spill] sm:$0xff] }
 0x57d   : > { %16374 = vst [vmem:[#allocation102_spill] sm:$0xff] %v13019_v10  ;;  %v4362_v1 = vsub.f32 %v16387_v49, %v12957_v25 }
 0x57e   : > { %4898 = vperm.xlu0 %8408, %v12997_v56  }
 0x57f   : > { %4868 = vperm.xlu1 %8407, %v12999_v46  }
 0x582   : > { %4904 = vperm.xlu0 %8408, %v13007_v36  }
 0x583   : > { %4871 = vperm.xlu1 %8407, %v13009_v38   ;;  %v13028_v38 = vpop.eup %8945 }
 0x584   : > { %16377 = vst [vmem:[#allocation66_spill] sm:$0xff] %v13028_v38  ;;  %v13030_v46 = vpop.eup %8947 }
 0x585   : > { %16378 = vst [vmem:[#allocation62_spill] sm:$0xff] %v13030_v46  ;;  %v13043_v3 = vpop.eup %8949 }
 0x586   : > { %4910 = vperm.xlu0 %8408, %v13017_v6   ;;  %16380 = vst [vmem:[#allocation65_spill] sm:$0xff] %v13043_v3 }
 0x587   : > { %4874 = vperm.xlu1 %8407, %v13019_v10   ;;  %v13036_v10 = vrot.slane %v12934_v13, %v15661_v26  ;;  %v4531_v26 = vmul.f32 1.442695, %v4373_v50 }
 0x589   : > { %v4375_v0 = vsub.f32 %v16382_v29, %v13036_v10  ;;  %8965 = vpow2.f32 %v4531_v26  ;;  %v4377_v50 = vsub.f32 %v16386_v35, %v13036_v10  ;;  %v4505_v29 = vmul.f32 1.442695, %v4360_v32  ;;  %v16390_v26 = vld [vmem:[#allocation32_spill] sm:$0xff] }
 0x58a   : > { %4916 = vperm.xlu0 %8408, %v13028_v38   ;;  %v13045_v38 = vpop.eup %8951  ;;  %8967 = vpow2.f32 %v4501_v4  ;;  %v4509_v35 = vmul.f32 1.442695, %v4362_v1  ;;  %v16391_v4 = vld [vmem:[#allocation96_spill] sm:$0xff] }
 0x58b   : > { %4877 = vperm.xlu1 %8407, %v13030_v46   ;;  %16381 = vst [vmem:[#allocation17_spill] sm:$0xff] %v13045_v38  ;;  %v13053_v46 = vpop.eup %8953  ;;  %v4535_v27 = vmul.f32 1.442695, %v4375_v0  ;;  %v4379_v0 = vsub.f32 %v16390_v26, %v13036_v10  ;;  %v4364_v32 = vsub.f32 %v16391_v4, %v12957_v25 }
 0x58c   : > { %16384 = vst [vmem:[#allocation72_spill] sm:$0xff] %v13053_v46  ;;  %v13055_v17 = vpop.eup %8955 }
 0x58d   : > { %16385 = vst [vmem:[#allocation73_spill] sm:$0xff] %v13055_v17  ;;  %8969 = vpow2.f32 %v4535_v27  ;;  %v16394_v27 = vld [vmem:[#allocation54_spill] sm:$0xff]  ;;  %v4513_v26 = vmul.f32 1.442695, %v4364_v32 }
 0x58e   : > { %4922 = vperm.xlu0 %8408, %v13043_v3   ;;  %v13063_v3 = vpop.eup %8957  ;;  %8971 = vpow2.f32 %v4505_v29  ;;  %v16395_v29 = vld [vmem:[#allocation43_spill] sm:$0xff] }
 0x58f   : > { %4880 = vperm.xlu1 %8407, %v13045_v38   ;;  %16388 = vst [vmem:[#allocation77_spill] sm:$0xff] %v13063_v3  ;;  %v13065_v61 = vpop.eup %8959  ;;  %v4366_v1 = vsub.f32 %v16395_v29, %v12957_v25 }
 0x590   : > { %16389 = vst [vmem:[#allocation76_spill] sm:$0xff] %v13065_v61 }
 0x592   : > { %4928 = vperm.xlu0 %8408, %v13053_v46   ;;  %v13073_v46 = vpop.eup %8961 }
 0x593   : > { %4883 = vperm.xlu1 %8407, %v13055_v17   ;;  %v4539_v17 = vmul.f32 1.442695, %v4377_v50  ;;  %16392 = vst [vmem:[#allocation80_spill] sm:$0xff] %v13073_v46  ;;  %v13075_v49 = vpop.eup %8963  ;;  %v4381_v50 = vsub.f32 %v16394_v27, %v13036_v10  ;;  %v4517_v27 = vmul.f32 1.442695, %v4366_v1 }
 0x594   : > { %16393 = vst [vmem:[#allocation20_spill] sm:$0xff] %v13075_v49 }
 0x595   : > { %8973 = vpow2.f32 %v4539_v17  ;;  %v16398_v17 = vld [vmem:[#allocation34_spill] sm:$0xff] }
 0x596   : > { %4934 = vperm.xlu0 %8408, %v13063_v3   ;;  %8975 = vpow2.f32 %v4509_v35  ;;  %v13083_v3 = vpop.eup %8965  ;;  %v16399_v35 = vld [vmem:[#allocation23_spill] sm:$0xff] }
 0x597   : > { %4889 = vperm.xlu1 %8407, %v13065_v61   ;;  %v4543_v61 = vmul.f32 1.442695, %v4379_v0  ;;  %16396 = vst [vmem:[#allocation21_spill] sm:$0xff] %v13083_v3  ;;  %v13085_v4 = vpop.eup %8967  ;;  %v4383_v0 = vsub.f32 %v16398_v17, %v13036_v10  ;;  %v4368_v32 = vsub.f32 %v16399_v35, %v12957_v25 }
 0x598   : > { %16397 = vst [vmem:[#allocation22_spill] sm:$0xff] %v13085_v4 }
 0x599   : > { %8977 = vpow2.f32 %v4543_v61  ;;  %v16402_v61 = vld [vmem:[#allocation56_spill] sm:$0xff]  ;;  %v4521_v17 = vmul.f32 1.442695, %v4368_v32 }
 0x59a   : > { %4940 = vperm.xlu0 %8408, %v13073_v46   ;;  %8979 = vpow2.f32 %v4513_v26  ;;  %v13093_v46 = vpop.eup %8969  ;;  %v16403_v26 = vld [vmem:[#allocation26_spill] sm:$0xff]  ;;  %v16407_v32 = vld [vmem:[#allocation48_spill] sm:$0xff] }
 0x59b   : > { %4895 = vperm.xlu1 %8407, %v13075_v49   ;;  %v4547_v49 = vmul.f32 1.442695, %v4381_v50  ;;  %16400 = vst [vmem:[#allocation83_spill] sm:$0xff] %v13093_v46  ;;  %v13095_v29 = vpop.eup %8971  ;;  %v4385_v50 = vsub.f32 %v16402_v61, %v13036_v10  ;;  %v4370_v1 = vsub.f32 %v16403_v26, %v12957_v25  ;;  %v4372_v26 = vsub.f32 %v16407_v32, %v12957_v25 }
 0x59c   : > { %16401 = vst [vmem:[#allocation44_spill] sm:$0xff] %v13095_v29 }
 0x59d   : > { %8981 = vpow2.f32 %v4547_v49  ;;  %v4555_v49 = vmul.f32 1.442695, %v4385_v50  ;;  %v4389_v50 = vsub.f32 %v16314_v16, %v13036_v10 }
 0x59e   : > { %4946 = vperm.xlu0 %8408, %v13083_v3   ;;  %8983 = vpow2.f32 %v4517_v27  ;;  %v4525_v27 = vmul.f32 1.442695, %v4370_v1  ;;  %v16410_v1 = vld [vmem:[#allocation49_spill] sm:$0xff] }
 0x59f   : > { %4901 = vperm.xlu1 %8407, %v13085_v4   ;;  %v4551_v4 = vmul.f32 1.442695, %v4383_v0  ;;  %v13103_v3 = vpop.eup %8973  ;;  %v16406_v0 = vld [vmem:[#allocation59_spill] sm:$0xff] }
 0x5a0   : > { %16404 = vst [vmem:[#allocation13_spill] sm:$0xff] %v13103_v3  ;;  %v13105_v35 = vpop.eup %8975  ;;  %v4387_v61 = vsub.f32 %v16406_v0, %v13036_v10  ;;  %v4374_v0 = vsub.f32 %v16410_v1, %v12957_v25 }
 0x5a1   : > { %16405 = vst [vmem:[#allocation24_spill] sm:$0xff] %v13105_v35  ;;  %8985 = vpow2.f32 %v4551_v4 }
 0x5a2   : > { %4952 = vperm.xlu0 %8408, %v13093_v46   ;;  %v15677_v46 = vsub.s32 3, %v12380_v39  ;;  %8987 = vpow2.f32 %v4521_v17  ;;  %v4559_v4 = vmul.f32 1.442695, %v4387_v61  ;;  %v4529_v17 = vmul.f32 1.442695, %v4372_v26 }
 0x5a3   : > { %4907 = vperm.xlu1 %8407, %v13095_v29   ;;  %v13114_v29 = vpop.eup %8977  ;;  %8989 = vpow2.f32 %v4555_v49  ;;  %v16413_v49 = vld [vmem:[#allocation87_spill] sm:$0xff]  ;;  %v4533_v16 = vmul.f32 1.442695, %v4374_v0 }
 0x5a4   : > { %16408 = vst [vmem:[#allocation12_spill] sm:$0xff] %v13114_v29  ;;  %v13116_v62 = vpop.eup %8979  ;;  %8991 = vpow2.f32 %v4525_v27  ;;  %v16414_v27 = vld [vmem:[#allocation51_spill] sm:$0xff] }
 0x5a5   : > { %16409 = vst [vmem:[#allocation47_spill] sm:$0xff] %v13116_v62  ;;  %8993 = vpow2.f32 %v4559_v4  ;;  %v4376_v26 = vsub.f32 %v16414_v27, %v13036_v10  ;;  %v16417_v4 = vld [vmem:[#allocation89_spill] sm:$0xff] }
 0x5a6   : > { %4958 = vperm.xlu0 %8408, %v13103_v3   ;;  %8995 = vpow2.f32 %v4529_v17  ;;  %v16418_v17 = vld [vmem:[#allocation29_spill] sm:$0xff] }
 0x5a7   : > { %4913 = vperm.xlu1 %8407, %v13105_v35   ;;  %v13122_v35 = vrot.slane %v12934_v13, %v15677_v46  ;;  %v13129_v32 = vpop.eup %8981  ;;  %v4563_v46 = vmul.f32 1.442695, %v4389_v50  ;;  %v4378_v0 = vsub.f32 %v16418_v17, %v13036_v10 }
 0x5a8   : > { %16411 = vst [vmem:[#allocation36_spill] sm:$0xff] %v13129_v32 }
 0x5a9   : > { %v4391_v61 = vsub.f32 %v16413_v49, %v13122_v35  ;;  %8997 = vpow2.f32 %v4563_v46  ;;  %v4393_v50 = vsub.f32 %v16417_v4, %v13122_v35  ;;  %v4537_v49 = vmul.f32 1.442695, %v4376_v26  ;;  %v16421_v46 = vld [vmem:[#allocation91_spill] sm:$0xff] }
 0x5aa   : > { %4964 = vperm.xlu0 %8408, %v13114_v29   ;;  %v13131_v29 = vpop.eup %8983  ;;  %8999 = vpow2.f32 %v4533_v16  ;;  %v4541_v4 = vmul.f32 1.442695, %v4378_v0  ;;  %v16422_v16 = vld [vmem:[#allocation31_spill] sm:$0xff] }
 0x5ab   : > { %4919 = vperm.xlu1 %8407, %v13116_v62   ;;  %16412 = vst [vmem:[#allocation27_spill] sm:$0xff] %v13131_v29  ;;  %v13139_v62 = vpop.eup %8985  ;;  %v4567_v1 = vmul.f32 1.442695, %v4391_v61  ;;  %v4395_v61 = vsub.f32 %v16421_v46, %v13122_v35  ;;  %v4380_v26 = vsub.f32 %v16422_v16, %v13036_v10 }
 0x5ac   : > { %16415 = vst [vmem:[#allocation37_spill] sm:$0xff] %v13139_v62  ;;  %v13141_v25 = vpop.eup %8987 }
 0x5ad   : > { %16416 = vst [vmem:[#allocation50_spill] sm:$0xff] %v13141_v25  ;;  %9001 = vpow2.f32 %v4567_v1  ;;  %v4397_v1 = vsub.f32 %v16310_v24, %v13122_v35 }
 0x5ae   : > { %4970 = vperm.xlu0 %8408, %v13129_v32   ;;  %9003 = vpow2.f32 %v4537_v49  ;;  %v16425_v49 = vld [vmem:[#allocation53_spill] sm:$0xff] }
 0x5af   : > { %4925 = vperm.xlu1 %8407, %v13131_v29   ;;  %v13149_v29 = vpop.eup %8989  ;;  %v4382_v0 = vsub.f32 %v16425_v49, %v13036_v10 }
 0x5b0   : > { %16419 = vst [vmem:[#allocation52_spill] sm:$0xff] %v13149_v29  ;;  %v13151_v27 = vpop.eup %8991 }
 0x5b1   : > { %16420 = vst [vmem:[#allocation19_spill] sm:$0xff] %v13151_v27  ;;  %v4549_v24 = vmul.f32 1.442695, %v4382_v0 }
 0x5b2   : > { %4976 = vperm.xlu0 %8408, %v13139_v62   ;;  %v13159_v62 = vpop.eup %8993 }
 0x5b3   : > { %4931 = vperm.xlu1 %8407, %v13141_v25   ;;  %v4571_v25 = vmul.f32 1.442695, %v4393_v50  ;;  %16423 = vst [vmem:[#allocation30_spill] sm:$0xff] %v13159_v62  ;;  %v13161_v17 = vpop.eup %8995  ;;  %v4545_v50 = vmul.f32 1.442695, %v4380_v26 }
 0x5b4   : > { %16424 = vst [vmem:[#allocation95_spill] sm:$0xff] %v13161_v17  ;;  %v13169_v46 = vpop.eup %8997 }
 0x5b5   : > { %9005 = vpow2.f32 %v4571_v25  ;;  %16426 = vst [vmem:[#allocation32_spill] sm:$0xff] %v13169_v46  ;;  %v13171_v16 = vpop.eup %8999  ;;  %v4399_v25 = vsub.f32 %v16317_v43, %v13122_v35 }
 0x5b6   : > { %4982 = vperm.xlu0 %8408, %v13149_v29   ;;  %9007 = vpow2.f32 %v4541_v4  ;;  %16427 = vst [vmem:[#allocation96_spill] sm:$0xff] %v13171_v16 }
 0x5b7   : > { %4937 = vperm.xlu1 %8407, %v13151_v27   ;;  %v4575_v27 = vmul.f32 1.442695, %v4395_v61  ;;  %v16428_v61 = vld [vmem:[#allocation33_spill] sm:$0xff]  ;;  %v13179_v26 = vpop.eup %9001 }
 0x5b8   : > { %v4384_v4 = vsub.f32 %v16428_v61, %v13036_v10  ;;  %16429 = vst [vmem:[#allocation54_spill] sm:$0xff] %v13179_v26  ;;  %v13181_v49 = vpop.eup %9003 }
 0x5b9   : > { %9009 = vpow2.f32 %v4575_v27  ;;  %16430 = vst [vmem:[#allocation43_spill] sm:$0xff] %v13181_v49  ;;  %v4401_v27 = vsub.f32 %v16323_v31, %v13122_v35  ;;  %v4403_v31 = vsub.f32 %v16329_v58, %v13122_v35 }
 0x5ba   : > { %4988 = vperm.xlu0 %8408, %v13159_v62   ;;  %9011 = vpow2.f32 %v4545_v50  ;;  %v4553_v43 = vmul.f32 1.442695, %v4384_v4 }
 0x5bb   : > { %4943 = vperm.xlu1 %8407, %v13161_v17   ;;  %v4579_v17 = vmul.f32 1.442695, %v4397_v1  ;;  %v16431_v1 = vld [vmem:[#allocation55_spill] sm:$0xff]  ;;  %v4591_v58 = vmul.f32 1.442695, %v4403_v31 }
 0x5bc   : > { %v4386_v50 = vsub.f32 %v16431_v1, %v13036_v10 }
 0x5bd   : > { %9013 = vpow2.f32 %v4579_v17  ;;  %v4587_v17 = vmul.f32 1.442695, %v4401_v27 }
 0x5be   : > { %4994 = vperm.xlu0 %8408, %v13169_v46   ;;  %9015 = vpow2.f32 %v4549_v24  ;;  %v16434_v24 = vld [vmem:[#allocation58_spill] sm:$0xff] }
 0x5bf   : > { %4949 = vperm.xlu1 %8407, %v13171_v16   ;;  %v4583_v16 = vmul.f32 1.442695, %v4399_v25  ;;  %v13189_v0 = vpop.eup %9005  ;;  %v4557_v25 = vmul.f32 1.442695, %v4386_v50  ;;  %v4388_v4 = vsub.f32 %v16434_v24, %v13036_v10 }
 0x5c0   : > { %16432 = vst [vmem:[#allocation34_spill] sm:$0xff] %v13189_v0  ;;  %v13191_v61 = vpop.eup %9007 }
 0x5c1   : > { %16433 = vst [vmem:[#allocation23_spill] sm:$0xff] %v13191_v61  ;;  %9017 = vpow2.f32 %v4583_v16  ;;  %v4405_v16 = vsub.f32 %v16335_v53, %v13122_v35  ;;  %v4561_v27 = vmul.f32 1.442695, %v4388_v4 }
 0x5c2   : > { %5000 = vperm.xlu0 %8408, %v13179_v26   ;;  %v15688_v26 = vsub.s32 4, %v12380_v39  ;;  %9019 = vpow2.f32 %v4553_v43  ;;  %v4390_v43 = vsub.f32 %v16308_v59, %v13036_v10 }
 0x5c3   : > { %4955 = vperm.xlu1 %8407, %v13181_v49   ;;  %v13200_v1 = vpop.eup %9009  ;;  %9021 = vpow2.f32 %v4587_v17  ;;  %v16439_v17 = vld [vmem:[#allocation75_spill] sm:$0xff] }
 0x5c4   : > { %16435 = vst [vmem:[#allocation56_spill] sm:$0xff] %v13200_v1  ;;  %v13202_v49 = vpop.eup %9011  ;;  %9023 = vpow2.f32 %v4557_v25  ;;  %v4565_v53 = vmul.f32 1.442695, %v4390_v43  ;;  %v16440_v25 = vld [vmem:[#allocation86_spill] sm:$0xff] }
 0x5c5   : > { %16436 = vst [vmem:[#allocation26_spill] sm:$0xff] %v13202_v49  ;;  %9025 = vpow2.f32 %v4591_v58  ;;  %v4392_v4 = vsub.f32 %v16440_v25, %v13122_v35  ;;  %v16443_v58 = vld [vmem:[#allocation79_spill] sm:$0xff] }
 0x5c6   : > { %5006 = vperm.xlu0 %8408, %v13189_v0   ;;  %9027 = vpow2.f32 %v4561_v27  ;;  %v16444_v27 = vld [vmem:[#allocation88_spill] sm:$0xff] }
 0x5c7   : > { %4961 = vperm.xlu1 %8407, %v13191_v61   ;;  %v13208_v61 = vrot.slane %v12934_v13, %v15688_v26  ;;  %v13215_v50 = vpop.eup %9013  ;;  %v4595_v26 = vmul.f32 1.442695, %v4405_v16  ;;  %v4394_v43 = vsub.f32 %v16444_v27, %v13122_v35 }
 0x5c8   : > { %16437 = vst [vmem:[#allocation59_spill] sm:$0xff] %v13215_v50  ;;  %v13217_v24 = vpop.eup %9015 }
 0x5c9   : > { %16438 = vst [vmem:[#allocation48_spill] sm:$0xff] %v13217_v24  ;;  %v4407_v31 = vsub.f32 %v16439_v17, %v13208_v61  ;;  %9029 = vpow2.f32 %v4595_v26  ;;  %v4409_v16 = vsub.f32 %v16443_v58, %v13208_v61  ;;  %v4569_v17 = vmul.f32 1.442695, %v4392_v4  ;;  %v16447_v26 = vld [vmem:[#allocation82_spill] sm:$0xff] }
 0x5ca   : > { %5012 = vperm.xlu0 %8408, %v13200_v1   ;;  %9031 = vpow2.f32 %v4565_v53  ;;  %v4573_v58 = vmul.f32 1.442695, %v4394_v43  ;;  %v16448_v53 = vld [vmem:[#allocation90_spill] sm:$0xff] }
 0x5cb   : > { %4967 = vperm.xlu1 %8407, %v13202_v49   ;;  %v13225_v49 = vpop.eup %9017  ;;  %v4599_v10 = vmul.f32 1.442695, %v4407_v31  ;;  %v4411_v31 = vsub.f32 %v16447_v26, %v13208_v61  ;;  %v4396_v4 = vsub.f32 %v16448_v53, %v13122_v35 }
 0x5cc   : > { %16441 = vst [vmem:[#allocation49_spill] sm:$0xff] %v13225_v49  ;;  %v13227_v59 = vpop.eup %9019 }
 0x5cd   : > { %16442 = vst [vmem:[#allocation87_spill] sm:$0xff] %v13227_v59  ;;  %9033 = vpow2.f32 %v4599_v10  ;;  %v16451_v10 = vld [vmem:[#allocation11_spill] sm:$0xff]  ;;  %v4577_v26 = vmul.f32 1.442695, %v4396_v4 }
 0x5ce   : > { %5018 = vperm.xlu0 %8408, %v13215_v50   ;;  %9035 = vpow2.f32 %v4569_v17  ;;  %v4398_v17 = vsub.f32 %v16316_v9, %v13122_v35 }
 0x5cf   : > { %4973 = vperm.xlu1 %8407, %v13217_v24   ;;  %v13235_v24 = vpop.eup %9021 }
 0x5d0   : > { %16445 = vst [vmem:[#allocation51_spill] sm:$0xff] %v13235_v24  ;;  %v13237_v25 = vpop.eup %9023 }
 0x5d1   : > { %16446 = vst [vmem:[#allocation89_spill] sm:$0xff] %v13237_v25 }
 0x5d2   : > { %5024 = vperm.xlu0 %8408, %v13225_v49   ;;  %v13245_v49 = vpop.eup %9025 }
 0x5d3   : > { %4979 = vperm.xlu1 %8407, %v13227_v59   ;;  %v4603_v59 = vmul.f32 1.442695, %v4409_v16  ;;  %16449 = vst [vmem:[#allocation29_spill] sm:$0xff] %v13245_v49  ;;  %v13247_v27 = vpop.eup %9027  ;;  %v4413_v16 = vsub.f32 %v16451_v10, %v13208_v61  ;;  %v4581_v10 = vmul.f32 1.442695, %v4398_v17 }
 0x5d4   : > { %16450 = vst [vmem:[#allocation91_spill] sm:$0xff] %v13247_v27  ;;  %v13255_v43 = vpop.eup %9029 }
 0x5d5   : > { %9037 = vpow2.f32 %v4603_v59  ;;  %16452 = vst [vmem:[#allocation31_spill] sm:$0xff] %v13255_v43  ;;  %v13257_v53 = vpop.eup %9031  ;;  %v16454_v59 = vld [vmem:[#allocation35_spill] sm:$0xff] }
 0x5d6   : > { %5030 = vperm.xlu0 %8408, %v13235_v24   ;;  %9039 = vpow2.f32 %v4573_v58  ;;  %16453 = vst [vmem:[#allocation53_spill] sm:$0xff] %v13257_v53  ;;  %v4400_v58 = vsub.f32 %v16321_v8, %v13122_v35 }
 0x5d7   : > { %4985 = vperm.xlu1 %8407, %v13237_v25   ;;  %v4607_v25 = vmul.f32 1.442695, %v4411_v31  ;;  %v4415_v31 = vsub.f32 %v16454_v59, %v13208_v61  ;;  %v13265_v4 = vpop.eup %9033 }
 0x5d8   : > { %16455 = vst [vmem:[#allocation33_spill] sm:$0xff] %v13265_v4  ;;  %v13267_v9 = vpop.eup %9035  ;;  %v4585_v59 = vmul.f32 1.442695, %v4400_v58 }
 0x5d9   : > { %9041 = vpow2.f32 %v4607_v25  ;;  %16456 = vst [vmem:[#allocation55_spill] sm:$0xff] %v13267_v9  ;;  %v16457_v25 = vld [vmem:[#allocation16_spill] sm:$0xff] }
 0x5da   : > { %5036 = vperm.xlu0 %8408, %v13245_v49   ;;  %9043 = vpow2.f32 %v4577_v26  ;;  %v4402_v26 = vsub.f32 %v16327_v7, %v13122_v35  ;;  %v4404_v7 = vsub.f32 %v16333_v44, %v13122_v35 }
 0x5db   : > { %4991 = vperm.xlu1 %8407, %v13247_v27   ;;  %v4611_v27 = vmul.f32 1.442695, %v4413_v16  ;;  %v4417_v16 = vsub.f32 %v16457_v25, %v13208_v61 }
 0x5dc   : > { %v4593_v44 = vmul.f32 1.442695, %v4404_v7 }
 0x5dd   : > { %9045 = vpow2.f32 %v4611_v27  ;;  %v4619_v27 = vmul.f32 1.442695, %v4417_v16  ;;  %v4421_v16 = vsub.f32 %v16305_v28, %v13208_v61 }
 0x5de   : > { %5042 = vperm.xlu0 %8408, %v13255_v43   ;;  %9047 = vpow2.f32 %v4581_v10  ;;  %v4589_v10 = vmul.f32 1.442695, %v4402_v26 }
 0x5df   : > { %4997 = vperm.xlu1 %8407, %v13257_v53   ;;  %v4615_v53 = vmul.f32 1.442695, %v4415_v31  ;;  %v13275_v17 = vpop.eup %9037  ;;  %v16460_v31 = vld [vmem:[#allocation57_spill] sm:$0xff] }
 0x5e0   : > { %16458 = vst [vmem:[#allocation58_spill] sm:$0xff] %v13275_v17  ;;  %v13277_v8 = vpop.eup %9039  ;;  %v4419_v25 = vsub.f32 %v16460_v31, %v13208_v61 }
 0x5e1   : > { %16459 = vst [vmem:[#allocation75_spill] sm:$0xff] %v13277_v8  ;;  %9049 = vpow2.f32 %v4615_v53 }
 0x5e2   : > { %5048 = vperm.xlu0 %8408, %v13265_v4   ;;  %v15699_v4 = vsub.s32 5, %v12380_v39  ;;  %9051 = vpow2.f32 %v4585_v59  ;;  %v4623_v53 = vmul.f32 1.442695, %v4419_v25  ;;  %v4406_v59 = vsub.f32 %v16340_v54, %v13122_v35 }
 0x5e3   : > { %5003 = vperm.xlu1 %8407, %v13267_v9   ;;  %v13286_v58 = vpop.eup %9041  ;;  %9053 = vpow2.f32 %v4619_v27  ;;  %v16465_v27 = vld [vmem:[#allocation42_spill] sm:$0xff] }
 0x5e4   : > { %16461 = vst [vmem:[#allocation86_spill] sm:$0xff] %v13286_v58  ;;  %v13288_v9 = vpop.eup %9043  ;;  %9055 = vpow2.f32 %v4589_v10  ;;  %v4597_v28 = vmul.f32 1.442695, %v4406_v59  ;;  %v16466_v10 = vld [vmem:[#allocation74_spill] sm:$0xff] }
 0x5e5   : > { %16462 = vst [vmem:[#allocation79_spill] sm:$0xff] %v13288_v9  ;;  %9057 = vpow2.f32 %v4623_v53  ;;  %v4408_v7 = vsub.f32 %v16466_v10, %v13208_v61 }
 0x5e6   : > { %5054 = vperm.xlu0 %8408, %v13275_v17   ;;  %9059 = vpow2.f32 %v4593_v44 }
 0x5e7   : > { %5009 = vperm.xlu1 %8407, %v13277_v8   ;;  %v13294_v8 = vrot.slane %v12934_v13, %v15699_v4  ;;  %v13301_v26 = vpop.eup %9045  ;;  %v4627_v4 = vmul.f32 1.442695, %v4421_v16  ;;  %v16469_v16 = vld [vmem:[#allocation105_spill] sm:$0xff]  ;;  %v4601_v59 = vmul.f32 1.442695, %v4408_v7 }
 0x5e8   : > { %16463 = vst [vmem:[#allocation88_spill] sm:$0xff] %v13301_v26  ;;  %v13303_v31 = vpop.eup %9047 }
 0x5e9   : > { %16464 = vst [vmem:[#allocation82_spill] sm:$0xff] %v13303_v31  ;;  %v4423_v25 = vsub.f32 %v16465_v27, %v13294_v8  ;;  %9061 = vpow2.f32 %v4627_v4  ;;  %v4425_v44 = vsub.f32 %v16469_v16, %v13294_v8  ;;  %v16470_v27 = vld [vmem:[#allocation78_spill] sm:$0xff]  ;;  %v16474_v16 = vld [vmem:[#allocation81_spill] sm:$0xff] }
 0x5ea   : > { %5060 = vperm.xlu0 %8408, %v13286_v58   ;;  %9063 = vpow2.f32 %v4597_v28  ;;  %v4410_v10 = vsub.f32 %v16470_v27, %v13208_v61  ;;  %v4412_v27 = vsub.f32 %v16474_v16, %v13208_v61 }
 0x5eb   : > { %5015 = vperm.xlu1 %8407, %v13288_v9   ;;  %v13311_v9 = vpop.eup %9049  ;;  %v4631_v53 = vmul.f32 1.442695, %v4423_v25  ;;  %v4635_v4 = vmul.f32 1.442695, %v4425_v44  ;;  %v16473_v25 = vld [vmem:[#allocation107_spill] sm:$0xff]  ;;  %v16477_v44 = vld [vmem:[#allocation109_spill] sm:$0xff] }
 0x5ec   : > { %16467 = vst [vmem:[#allocation90_spill] sm:$0xff] %v13311_v9  ;;  %v13315_v35 = vpop.eup %9051  ;;  %v4427_v28 = vsub.f32 %v16473_v25, %v13294_v8  ;;  %v4605_v7 = vmul.f32 1.442695, %v4410_v10  ;;  %v4609_v10 = vmul.f32 1.442695, %v4412_v27  ;;  %v16478_v25 = vld [vmem:[#allocation84_spill] sm:$0xff] }
 0x5ed   : > { %16468 = vst [vmem:[#allocation11_spill] sm:$0xff] %v13315_v35  ;;  %9065 = vpow2.f32 %v4631_v53  ;;  %v4414_v16 = vsub.f32 %v16478_v25, %v13208_v61  ;;  %v16481_v27 = vld [vmem:[#allocation14_spill] sm:$0xff] }
 0x5ee   : > { %5066 = vperm.xlu0 %8408, %v13301_v26   ;;  %9067 = vpow2.f32 %v4601_v59  ;;  %v4639_v53 = vmul.f32 1.442695, %v4427_v28  ;;  %v4429_v59 = vsub.f32 %v16477_v44, %v13294_v8  ;;  %v4431_v28 = vsub.f32 %v16325_v20, %v13294_v8 }
 0x5ef   : > { %5021 = vperm.xlu1 %8407, %v13303_v31   ;;  %v13325_v31 = vpop.eup %9053  ;;  %9069 = vpow2.f32 %v4635_v4  ;;  %v4416_v44 = vsub.f32 %v16481_v27, %v13208_v61  ;;  %v4433_v20 = vsub.f32 %v16331_v55, %v13294_v8 }
 0x5f0   : > { %16471 = vst [vmem:[#allocation35_spill] sm:$0xff] %v13325_v31  ;;  %v13329_v17 = vpop.eup %9055  ;;  %9071 = vpow2.f32 %v4605_v7  ;;  %v4643_v4 = vmul.f32 1.442695, %v4429_v59  ;;  %v4613_v7 = vmul.f32 1.442695, %v4414_v16 }
 0x5f1   : > { %v13313_v54 = vpop.permute.xlu0 %4859  ;;  %16472 = vst [vmem:[#allocation16_spill] sm:$0xff] %v13329_v17  ;;  %9073 = vpow2.f32 %v4639_v53  ;;  %v4647_v53 = vmul.f32 1.442695, %v4431_v28  ;;  %v4617_v59 = vmul.f32 1.442695, %v4416_v44  ;;  %v4435_v28 = vsub.f32 %v16337_v15, %v13294_v8  ;;  %v16487_v44 = vld [vmem:[#allocation38_spill] sm:$0xff] }
 0x5f2   : > { %v13317_v58 = vpop.permute.xlu1 %4856  ;;  %5072 = vperm.xlu0 %8408, %v13311_v9   ;;  %9075 = vpow2.f32 %v4609_v10  ;;  %v16484_v10 = vld [vmem:[#allocation15_spill] sm:$0xff]  ;;  %v4651_v55 = vmul.f32 1.442695, %v4433_v20  ;;  %v4437_v20 = vsub.f32 %v16341_v18, %v13294_v8  ;;  %v16492_v18 = vld [vmem:[#allocation28_spill] sm:$0xff] }
 0x5f3   : > { %5027 = vperm.xlu1 %8407, %v13315_v35   ;;  %v13339_v35 = vpop.eup %9057  ;;  %9077 = vpow2.f32 %v4643_v4  ;;  %v4418_v16 = vsub.f32 %v16484_v10, %v13208_v61  ;;  %v15726_v4 = vsub.s32 6, %v12380_v39  ;;  %v4420_v10 = vsub.f32 %v16487_v44, %v13208_v61 }
 0x5f4   : > { %16475 = vst [vmem:[#allocation57_spill] sm:$0xff] %v13339_v35  ;;  %v13343_v49 = vpop.eup %9059  ;;  %9079 = vpow2.f32 %v4613_v7  ;;  %v4655_v15 = vmul.f32 1.442695, %v4435_v28 }
 0x5f5   : > { %v13327_v26 = vpop.permute.xlu0 %4886  ;;  %16476 = vst [vmem:[#allocation42_spill] sm:$0xff] %v13343_v49  ;;  %9081 = vpow2.f32 %v4647_v53  ;;  %v4621_v7 = vmul.f32 1.442695, %v4418_v16  ;;  %v13408_v53 = vrot.slane %v12934_v13, %v15726_v4  ;;  %v4422_v16 = vsub.f32 %v16347_v14, %v13208_v61  ;;  %v16493_v14 = vld [vmem:[#allocation41_spill] sm:$0xff] }
 0x5f6   : > { %v13331_v43 = vpop.permute.xlu1 %4862  ;;  %5078 = vperm.xlu0 %8408, %v13325_v31   ;;  %9083 = vpow2.f32 %v4617_v59  ;;  %v4625_v59 = vmul.f32 1.442695, %v4420_v10  ;;  %v4424_v61 = vsub.f32 %v16493_v14, %v13294_v8 }
 0x5f7   : > { %5033 = vperm.xlu1 %8407, %v13329_v17   ;;  %v13353_v17 = vpop.eup %9061  ;;  %9085 = vpow2.f32 %v4651_v55  ;;  %v4659_v55 = vmul.f32 1.442695, %v4437_v20  ;;  %v4439_v28 = vsub.f32 %v16492_v18, %v13408_v53  ;;  %v16496_v20 = vld [vmem:[#allocation119_spill] sm:$0xff]  ;;  %v16497_v18 = vld [vmem:[#allocation104_spill] sm:$0xff] }
 0x5f8   : > { %16479 = vst [vmem:[#allocation74_spill] sm:$0xff] %v13353_v17  ;;  %v13357_v50 = vpop.eup %9063  ;;  %9087 = vpow2.f32 %v4621_v7  ;;  %v4629_v7 = vmul.f32 1.442695, %v4422_v16  ;;  %v4633_v16 = vmul.f32 1.442695, %v4424_v61  ;;  %v4426_v14 = vsub.f32 %v16497_v18, %v13294_v8 }
 0x5f9   : > { %v13341_v9 = vpop.permute.xlu0 %4892  ;;  %16480 = vst [vmem:[#allocation105_spill] sm:$0xff] %v13357_v50  ;;  %v13367_v25 = vpop.eup %9065  ;;  %9089 = vpow2.f32 %v4655_v15  ;;  %v4663_v15 = vmul.f32 1.442695, %v4439_v28  ;;  %v16500_v28 = vld [vmem:[#allocation121_spill] sm:$0xff] }
 0x5fa   : > { %v13345_v24 = vpop.permute.xlu1 %4865  ;;  %5084 = vperm.xlu0 %8408, %v13339_v35   ;;  %16482 = vst [vmem:[#allocation78_spill] sm:$0xff] %v13367_v25  ;;  %v13371_v35 = vpop.eup %9067  ;;  %9091 = vpow2.f32 %v4625_v59  ;;  %v4441_v59 = vsub.f32 %v16496_v20, %v13408_v53  ;;  %v4637_v61 = vmul.f32 1.442695, %v4426_v14  ;;  %v4428_v20 = vsub.f32 %v16320_v22, %v13294_v8 }
 0x5fb   : > { %5039 = vperm.xlu1 %8407, %v13343_v49   ;;  %16483 = vst [vmem:[#allocation107_spill] sm:$0xff] %v13371_v35  ;;  %v13381_v27 = vpop.eup %9069  ;;  %9093 = vpow2.f32 %v4659_v55  ;;  %v4430_v22 = vsub.f32 %v16326_v52, %v13294_v8  ;;  %v4432_v52 = vsub.f32 %v16332_v5, %v13294_v8  ;;  %v4434_v5 = vsub.f32 %v16338_v57, %v13294_v8 }
 0x5fc   : > { %16485 = vst [vmem:[#allocation81_spill] sm:$0xff] %v13381_v27  ;;  %9095 = vpow2.f32 %v4629_v7  ;;  %v4667_v55 = vmul.f32 1.442695, %v4441_v59  ;;  %v4443_v7 = vsub.f32 %v16500_v28, %v13408_v53  ;;  %v16504_v59 = vld [vmem:[#allocation123_spill] sm:$0xff]  ;;  %v4641_v14 = vmul.f32 1.442695, %v4428_v20 }
 0x5fd   : > { %v13355_v31 = vpop.permute.xlu0 %4898  ;;  %9097 = vpow2.f32 %v4663_v15  ;;  %v4645_v20 = vmul.f32 1.442695, %v4430_v22  ;;  %v4649_v22 = vmul.f32 1.442695, %v4432_v52  ;;  %v4653_v57 = vmul.f32 1.442695, %v4434_v5 }
 0x5fe   : > { %v13359_v1 = vpop.permute.xlu1 %4868  ;;  %5090 = vperm.xlu0 %8408, %v13353_v17   ;;  %v13385_v17 = vpop.eup %9071  ;;  %9099 = vpow2.f32 %v4633_v16  ;;  %v4671_v15 = vmul.f32 1.442695, %v4443_v7  ;;  %v4445_v16 = vsub.f32 %v16504_v59, %v13408_v53  ;;  %v16509_v7 = vld [vmem:[#allocation126_spill] sm:$0xff]  ;;  %v4436_v52 = vsub.f32 %v16342_v34, %v13294_v8 }
 0x5ff   : > { %5045 = vperm.xlu1 %8407, %v13357_v50   ;;  %16486 = vst [vmem:[#allocation109_spill] sm:$0xff] %v13385_v17  ;;  %9101 = vpow2.f32 %v4667_v55  ;;  %v4453_v34 = vsub.f32 %v12679_v42, %v13408_v53  ;;  %v16519_v42 = vld [vmem:[#allocation39_spill] sm:$0xff] }
 0x600   : > { %9103 = vpow2.f32 %v4637_v61  ;;  %v4675_v55 = vmul.f32 1.442695, %v4445_v16  ;;  %v4447_v61 = vsub.f32 %v16509_v7, %v13408_v53  ;;  %v16512_v16 = vld [vmem:[#allocation128_spill] sm:$0xff] }
 0x601   : > { %v13369_v49 = vpop.permute.xlu0 %4904 }
 0x602   : > { %v13373_v0 = vpop.permute.xlu1 %4871  ;;  %5096 = vperm.xlu0 %8408, %v13367_v25  }
 0x603   : > { %5051 = vperm.xlu1 %8407, %v13371_v35   ;;  %v13396_v35 = vpop.eup %9073  ;;  %9105 = vpow2.f32 %v4671_v15  ;;  %v4679_v15 = vmul.f32 1.442695, %v4447_v61 }
 0x604   : > { %16488 = vst [vmem:[#allocation84_spill] sm:$0xff] %v13396_v35  ;;  %v13400_v62 = vpop.eup %9075  ;;  %9107 = vpow2.f32 %v4641_v14  ;;  %v4449_v14 = vsub.f32 %v16512_v16, %v13408_v53 }
 0x605   : > { %v13383_v50 = vpop.permute.xlu0 %4910  ;;  %16489 = vst [vmem:[#allocation14_spill] sm:$0xff] %v13400_v62  ;;  %v13415_v44 = vpop.eup %9077  ;;  %9109 = vpow2.f32 %v4675_v55  ;;  %v15751_v55 = vsub.s32 7, %v12380_v39 }
 0x606   : > { %v13387_v46 = vpop.permute.xlu1 %4874  ;;  %5102 = vperm.xlu0 %8408, %v13381_v27   ;;  %16490 = vst [vmem:[#allocation15_spill] sm:$0xff] %v13415_v44  ;;  %v4683_v61 = vmul.f32 1.442695, %v4449_v14  ;;  %v4657_v14 = vmul.f32 1.442695, %v4436_v52 }
 0x607   : > { %5057 = vperm.xlu1 %8407, %v13385_v17  }
 0x609   : > { %v13398_v25 = vpop.permute.xlu0 %4916 }
 0x60a   : > { %v13402_v27 = vpop.permute.xlu1 %4877  ;;  %5108 = vperm.xlu0 %8408, %v13396_v35   ;;  %v13419_v35 = vpop.eup %9079  ;;  %9111 = vpow2.f32 %v4645_v20  ;;  %v4451_v20 = vsub.f32 %v12647_v47, %v13408_v53 }
 0x60b   : > { %5063 = vperm.xlu1 %8407, %v13400_v62   ;;  %16491 = vst [vmem:[#allocation38_spill] sm:$0xff] %v13419_v35  ;;  %v13429_v10 = vpop.eup %9081  ;;  %9113 = vpow2.f32 %v4679_v15  ;;  %v13526_v15 = vrot.slane %v12934_v13, %v15751_v55 }
 0x60c   : > { %16494 = vst [vmem:[#allocation28_spill] sm:$0xff] %v13429_v10  ;;  %v13433_v29 = vpop.eup %9083  ;;  %9115 = vpow2.f32 %v4649_v22  ;;  %v4687_v47 = vmul.f32 1.442695, %v4451_v20  ;;  %v4438_v22 = vsub.f32 %v16346_v33, %v13294_v8  ;;  %v16520_v33 = vld [vmem:[#allocation68_spill] sm:$0xff] }
 0x60d   : > { %v13417_v17 = vpop.permute.xlu0 %4922  ;;  %16495 = vst [vmem:[#allocation41_spill] sm:$0xff] %v13433_v29  ;;  %v4455_v20 = vsub.f32 %v16519_v42, %v13526_v15  ;;  %v4440_v8 = vsub.f32 %v16520_v33, %v13408_v53  ;;  %v16524_v42 = vld [vmem:[#allocation118_spill] sm:$0xff] }
 0x60e   : > { %v13421_v4 = vpop.permute.xlu1 %4880  ;;  %5114 = vperm.xlu0 %8408, %v13415_v44   ;;  %v4442_v33 = vsub.f32 %v16524_v42, %v13408_v53 }
 0x60f   : > { %5069 = vperm.xlu1 %8407, %v13419_v35   ;;  %v13443_v35 = vpop.eup %9085  ;;  %9117 = vpow2.f32 %v4683_v61  ;;  %v4691_v61 = vmul.f32 1.442695, %v4453_v34  ;;  %v16523_v34 = vld [vmem:[#allocation60_spill] sm:$0xff] }
 0x610   : > { %16498 = vst [vmem:[#allocation119_spill] sm:$0xff] %v13443_v35  ;;  %v13447_v3 = vpop.eup %9087  ;;  %9119 = vpow2.f32 %v4653_v57  ;;  %v4661_v57 = vmul.f32 1.442695, %v4438_v22  ;;  %v4665_v22 = vmul.f32 1.442695, %v4440_v8 }
 0x611   : > { %v13431_v62 = vpop.permute.xlu0 %4928  ;;  %16499 = vst [vmem:[#allocation104_spill] sm:$0xff] %v13447_v3  ;;  %v13457_v18 = vpop.eup %9089  ;;  %9121 = vpow2.f32 %v4687_v47  ;;  %v4695_v47 = vmul.f32 1.442695, %v4455_v20  ;;  %v16527_v20 = vld [vmem:[#allocation85_spill] sm:$0xff]  ;;  %v4669_v8 = vmul.f32 1.442695, %v4442_v33 }
 0x612   : > { %v13435_v32 = vpop.permute.xlu1 %4883  ;;  %5120 = vperm.xlu0 %8408, %v13429_v10   ;;  %16501 = vst [vmem:[#allocation121_spill] sm:$0xff] %v13457_v18  ;;  %v13461_v10 = vpop.eup %9091  ;;  %9123 = vpow2.f32 %v4657_v14  ;;  %v4457_v14 = vsub.f32 %v16523_v34, %v13526_v15  ;;  %v16528_v34 = vld [vmem:[#allocation120_spill] sm:$0xff] }
 0x613   : > { %5075 = vperm.xlu1 %8407, %v13433_v29   ;;  %16503 = vst [vmem:[#allocation130_spill] sm:$0xff] %v13461_v10  ;;  %v13471_v28 = vpop.eup %9093  ;;  %9125 = vpow2.f32 %v4691_v61  ;;  %v4444_v42 = vsub.f32 %v16528_v34, %v13408_v53 }
 0x614   : > { %16505 = vst [vmem:[#allocation123_spill] sm:$0xff] %v13471_v28  ;;  %v4699_v61 = vmul.f32 1.442695, %v4457_v14  ;;  %v16532_v14 = vld [vmem:[#allocation97_spill] sm:$0xff] }
 0x615   : > { %v13445_v44 = vpop.permute.xlu0 %4934  ;;  %v4673_v33 = vmul.f32 1.442695, %v4444_v42 }
 0x616   : > { %v13449_v6 = vpop.permute.xlu1 %4889  ;;  %5126 = vperm.xlu0 %8408, %v13443_v35   ;;  %v13475_v35 = vpop.eup %9095  ;;  %9127 = vpow2.f32 %v4661_v57  ;;  %v4459_v57 = vsub.f32 %v16527_v20, %v13526_v15  ;;  %v16533_v20 = vld [vmem:[#allocation122_spill] sm:$0xff] }
 0x617   : > { %5081 = vperm.xlu1 %8407, %v13447_v3   ;;  %16507 = vst [vmem:[#allocation132_spill] sm:$0xff] %v13475_v35  ;;  %v13485_v59 = vpop.eup %9097  ;;  %9129 = vpow2.f32 %v4695_v47  ;;  %v4446_v34 = vsub.f32 %v16533_v20, %v13408_v53 }
 0x618   : > { %16510 = vst [vmem:[#allocation126_spill] sm:$0xff] %v13485_v59  ;;  %v4703_v47 = vmul.f32 1.442695, %v4459_v57  ;;  %v16538_v57 = vld [vmem:[#allocation94_spill] sm:$0xff] }
 0x619   : > { %v13459_v29 = vpop.permute.xlu0 %4940  ;;  %v4677_v42 = vmul.f32 1.442695, %v4446_v34  ;;  %v16542_v34 = vld [vmem:[#allocation127_spill] sm:$0xff] }
 0x61a   : > { %16502 = vst [vmem:[#allocation129_spill] sm:$0xff] %v13459_v29  ;;  %v13463_v21 = vpop.permute.xlu1 %4895  ;;  %5132 = vperm.xlu0 %8408, %v13457_v18   ;;  %v13489_v18 = vpop.eup %9099  ;;  %9131 = vpow2.f32 %v4665_v22  ;;  %v4461_v22 = vsub.f32 %v16532_v14, %v13526_v15  ;;  %v16539_v14 = vld [vmem:[#allocation124_spill] sm:$0xff] }
 0x61b   : > { %5087 = vperm.xlu1 %8407, %v13461_v10   ;;  %16511 = vst [vmem:[#allocation134_spill] sm:$0xff] %v13489_v18  ;;  %v13499_v7 = vpop.eup %9101  ;;  %9133 = vpow2.f32 %v4699_v61  ;;  %v4448_v20 = vsub.f32 %v16539_v14, %v13408_v53 }
 0x61c   : > { %16513 = vst [vmem:[#allocation128_spill] sm:$0xff] %v13499_v7  ;;  %v4707_v61 = vmul.f32 1.442695, %v4461_v22  ;;  %v4465_v22 = vsub.f32 %v12857_v51, %v13526_v15  ;;  %v4467_v51 = vsub.f32 %v12894_v40, %v13526_v15  ;;  %v4469_v40 = vsub.f32 %v12917_v37, %v13526_v15 }
 0x61d   : > { %v13473_v3 = vpop.permute.xlu0 %4946 }
 0x61e   : > { %16506 = vst [vmem:[#allocation131_spill] sm:$0xff] %v13473_v3  ;;  %v13477_v36 = vpop.permute.xlu1 %4901  ;;  %5138 = vperm.xlu0 %8408, %v13471_v28   ;;  %v13503_v28 = vpop.eup %9103  ;;  %9135 = vpow2.f32 %v4669_v8  ;;  %v4463_v8 = vsub.f32 %v16538_v57, %v13526_v15  ;;  %v4450_v57 = vsub.f32 %v16542_v34, %v13408_v53 }
 0x61f   : > { %16508 = vst [vmem:[#allocation133_spill] sm:$0xff] %v13477_v36  ;;  %5093 = vperm.xlu1 %8407, %v13475_v35   ;;  %16514 = vst [vmem:[#allocation135_spill] sm:$0xff] %v13503_v28  ;;  %v13514_v16 = vpop.eup %9105  ;;  %9137 = vpow2.f32 %v4703_v47 }
 0x620   : > { %16515 = vst [vmem:[#allocation136_spill] sm:$0xff] %v13514_v16  ;;  %v4711_v47 = vmul.f32 1.442695, %v4463_v8  ;;  %v4685_v8 = vmul.f32 1.442695, %v4450_v57 }
 0x621   : > { %v13487_v10 = vpop.permute.xlu0 %4952 }
 0x622   : > { %v13491_v48 = vpop.permute.xlu1 %4907  ;;  %5144 = vperm.xlu0 %8408, %v13485_v59   ;;  %v13518_v59 = vpop.eup %9107  ;;  %9139 = vpow2.f32 %v4673_v33  ;;  %v4681_v33 = vmul.f32 1.442695, %v4448_v20 }
 0x623   : > { %5099 = vperm.xlu1 %8407, %v13489_v18   ;;  %16516 = vst [vmem:[#allocation137_spill] sm:$0xff] %v13518_v59  ;;  %v13533_v5 = vpop.eup %9109  ;;  %9141 = vpow2.f32 %v4707_v61  ;;  %v4715_v61 = vmul.f32 1.442695, %v4465_v22 }
 0x624   : > { %16517 = vst [vmem:[#allocation138_spill] sm:$0xff] %v13533_v5 }
 0x625   : > { %v13501_v35 = vpop.permute.xlu0 %4958 }
 0x626   : > { %v13505_v56 = vpop.permute.xlu1 %4913  ;;  %5150 = vperm.xlu0 %8408, %v13499_v7  }
 0x627   : > { %5105 = vperm.xlu1 %8407, %v13503_v28  }
 0x629   : > { %v13516_v18 = vpop.permute.xlu0 %4964 }
 0x62a   : > { %v13520_v7 = vpop.permute.xlu1 %4919  ;;  %5156 = vperm.xlu0 %8408, %v13514_v16   ;;  %v13537_v16 = vpop.eup %9111  ;;  %9143 = vpow2.f32 %v4677_v42  ;;  %v4452_v42 = vsub.f32 %v12638_v12, %v13408_v53  ;;  %v4454_v12 = vsub.f32 %v12671_v45, %v13408_v53 }
 0x62b   : > { %5111 = vperm.xlu1 %8407, %v13518_v59   ;;  %16518 = vst [vmem:[#allocation139_spill] sm:$0xff] %v13537_v16  ;;  %v13547_v52 = vpop.eup %9113  ;;  %9145 = vpow2.f32 %v4711_v47  ;;  %v4719_v47 = vmul.f32 1.442695, %v4467_v51  ;;  %v16550_v51 = vld [vmem:[#allocation40_spill] sm:$0xff] }
 0x62c   : > { %16521 = vst [vmem:[#allocation39_spill] sm:$0xff] %v13547_v52  ;;  %v13551_v59 = vpop.eup %9115  ;;  %9147 = vpow2.f32 %v4681_v33  ;;  %v4689_v22 = vmul.f32 1.442695, %v4452_v42  ;;  %v4693_v37 = vmul.f32 1.442695, %v4454_v12 }
 0x62d   : > { %v13535_v28 = vpop.permute.xlu0 %4970  ;;  %16522 = vst [vmem:[#allocation68_spill] sm:$0xff] %v13551_v59 }
 0x62e   : > { %v13539_v13 = vpop.permute.xlu1 %4925  ;;  %5162 = vperm.xlu0 %8408, %v13533_v5  }
 0x62f   : > { %5117 = vperm.xlu1 %8407, %v13537_v16   ;;  %v13561_v16 = vpop.eup %9117  ;;  %9149 = vpow2.f32 %v4715_v61  ;;  %v4723_v61 = vmul.f32 1.442695, %v4469_v40  ;;  %v16554_v40 = vld [vmem:[#allocation18_spill] sm:$0xff] }
 0x630   : > { %16525 = vst [vmem:[#allocation60_spill] sm:$0xff] %v13561_v16  ;;  %v13565_v38 = vpop.eup %9119  ;;  %9151 = vpow2.f32 %v4685_v8  ;;  %v4456_v8 = vsub.f32 %v16550_v51, %v13526_v15 }
 0x631   : > { %v13549_v55 = vpop.permute.xlu0 %4976  ;;  %16526 = vst [vmem:[#allocation118_spill] sm:$0xff] %v13565_v38 }
 0x632   : > { %v13553_v19 = vpop.permute.xlu1 %4931  ;;  %5168 = vperm.xlu0 %8408, %v13547_v52  }
 0x633   : > { %5123 = vperm.xlu1 %8407, %v13551_v59   ;;  %v13575_v59 = vpop.eup %9121  ;;  %9153 = vpow2.f32 %v4719_v47  ;;  %v4697_v47 = vmul.f32 1.442695, %v4456_v8 }
 0x634   : > { %16529 = vst [vmem:[#allocation85_spill] sm:$0xff] %v13575_v59  ;;  %v13579_v3 = vpop.eup %9123  ;;  %9155 = vpow2.f32 %v4689_v22  ;;  %v4458_v22 = vsub.f32 %v16554_v40, %v13526_v15 }
 0x635   : > { %v13563_v5 = vpop.permute.xlu0 %4982  ;;  %16531 = vst [vmem:[#allocation140_spill] sm:$0xff] %v13579_v3 }
 0x636   : > { %v13567_v39 = vpop.permute.xlu1 %4937  ;;  %5174 = vperm.xlu0 %8408, %v13561_v16   ;;  %v13589_v16 = vpop.eup %9125  ;;  %9157 = vpow2.f32 %v4723_v61  ;;  %v16558_v61 = vld [vmem:[#allocation93_spill] sm:$0xff] }
 0x637   : > { %5129 = vperm.xlu1 %8407, %v13565_v38   ;;  %16534 = vst [vmem:[#allocation97_spill] sm:$0xff] %v13589_v16 }
 0x639   : > { %v13577_v52 = vpop.permute.xlu0 %4988 }
 0x63a   : > { %16530 = vst [vmem:[#allocation120_spill] sm:$0xff] %v13577_v52  ;;  %v13581_v36 = vpop.permute.xlu1 %4943  ;;  %5180 = vperm.xlu0 %8408, %v13575_v59   ;;  %v13593_v52 = vpop.eup %9127  ;;  %9159 = vpow2.f32 %v4693_v37  ;;  %v4460_v37 = vsub.f32 %v16558_v61, %v13526_v15 }
 0x63b   : > { %5135 = vperm.xlu1 %8407, %v13579_v3   ;;  %16536 = vst [vmem:[#allocation141_spill] sm:$0xff] %v13593_v52  ;;  %v13603_v59 = vpop.eup %9129  ;;  %9161 = vpow2.f32 %v4697_v47  ;;  %v16563_v47 = vld [vmem:[#allocation92_spill] sm:$0xff] }
 0x63c   : > { %16540 = vst [vmem:[#allocation94_spill] sm:$0xff] %v13603_v59 }
 0x63d   : > { %v13591_v38 = vpop.permute.xlu0 %4994 }
 0x63e   : > { %16535 = vst [vmem:[#allocation122_spill] sm:$0xff] %v13591_v38  ;;  %v13595_v11 = vpop.permute.xlu1 %4949  ;;  %5186 = vperm.xlu0 %8408, %v13589_v16   ;;  %v13607_v38 = vpop.eup %9131 }
 0x63f   : > { %16537 = vst [vmem:[#allocation142_spill] sm:$0xff] %v13595_v11  ;;  %5141 = vperm.xlu1 %8407, %v13593_v52   ;;  %16541 = vst [vmem:[#allocation124_spill] sm:$0xff] %v13607_v38  ;;  %v13617_v14 = vpop.eup %9133 }
 0x640   : > { %16543 = vst [vmem:[#allocation127_spill] sm:$0xff] %v13617_v14  ;;  %v13621_v52 = vpop.eup %9135 }
 0x641   : > { %v13605_v3 = vpop.permute.xlu0 %5000  ;;  %16544 = vst [vmem:[#allocation143_spill] sm:$0xff] %v13621_v52  ;;  %v13631_v20 = vpop.eup %9137 }
 0x642   : > { %v13609_v11 = vpop.permute.xlu1 %4955  ;;  %5192 = vperm.xlu0 %8408, %v13603_v59   ;;  %16545 = vst [vmem:[#allocation144_spill] sm:$0xff] %v13631_v20  ;;  %v13635_v59 = vpop.eup %9139 }
 0x643   : > { %5147 = vperm.xlu1 %8407, %v13607_v38   ;;  %16546 = vst [vmem:[#allocation145_spill] sm:$0xff] %v13635_v59  ;;  %v13645_v33 = vpop.eup %9141 }
 0x644   : > { %16547 = vst [vmem:[#allocation146_spill] sm:$0xff] %v13645_v33 }
 0x645   : > { %v13619_v16 = vpop.permute.xlu0 %5006 }
 0x646   : > { %v13623_v29 = vpop.permute.xlu1 %4961  ;;  %5198 = vperm.xlu0 %8408, %v13617_v14   ;;  %v13649_v14 = vpop.eup %9143 }
 0x647   : > { %5153 = vperm.xlu1 %8407, %v13621_v52   ;;  %16549 = vst [vmem:[#allocation148_spill] sm:$0xff] %v13649_v14  ;;  %v13657_v45 = vpop.eup %9145 }
 0x648   : > { %16551 = vst [vmem:[#allocation40_spill] sm:$0xff] %v13657_v45  ;;  %v13661_v42 = vpop.eup %9147 }
 0x649   : > { %v13633_v34 = vpop.permute.xlu0 %5012  ;;  %16553 = vst [vmem:[#allocation150_spill] sm:$0xff] %v13661_v42  ;;  %v13669_v12 = vpop.eup %9149 }
 0x64a   : > { %v13637_v38 = vpop.permute.xlu1 %4967  ;;  %5204 = vperm.xlu0 %8408, %v13631_v20   ;;  %16555 = vst [vmem:[#allocation18_spill] sm:$0xff] %v13669_v12 }
 0x64b   : > { %5159 = vperm.xlu1 %8407, %v13635_v59  }
 0x64d   : > { %v13647_v57 = vpop.permute.xlu0 %5018 }
 0x64e   : > { %16548 = vst [vmem:[#allocation147_spill] sm:$0xff] %v13647_v57  ;;  %v13651_v52 = vpop.permute.xlu1 %4973  ;;  %5210 = vperm.xlu0 %8408, %v13645_v33   ;;  %v13673_v33 = vpop.eup %9151 }
 0x64f   : > { %5165 = vperm.xlu1 %8407, %v13649_v14   ;;  %16557 = vst [vmem:[#allocation152_spill] sm:$0xff] %v13673_v33  ;;  %v13681_v8 = vpop.eup %9153 }
 0x650   : > { %16559 = vst [vmem:[#allocation93_spill] sm:$0xff] %v13681_v8 }
 0x651   : > { %v13659_v53 = vpop.permute.xlu0 %5024 }
 0x652   : > { %16552 = vst [vmem:[#allocation149_spill] sm:$0xff] %v13659_v53  ;;  %v13663_v20 = vpop.permute.xlu1 %4979  ;;  %5216 = vperm.xlu0 %8408, %v13657_v45   ;;  %v4701_v45 = vmul.f32 1.442695, %v4458_v22  ;;  %v4462_v22 = vsub.f32 %v16563_v47, %v13526_v15 }
 0x653   : > { %5171 = vperm.xlu1 %8407, %v13661_v42   ;;  %v13685_v42 = vpop.eup %9155 }
 0x654   : > { %16561 = vst [vmem:[#allocation154_spill] sm:$0xff] %v13685_v42  ;;  %9163 = vpow2.f32 %v4701_v45  ;;  %v16568_v45 = vld [vmem:[#allocation106_spill] sm:$0xff] }
 0x655   : > { %v13671_v51 = vpop.permute.xlu0 %5030 }
 0x656   : > { %16556 = vst [vmem:[#allocation151_spill] sm:$0xff] %v13671_v51  ;;  %v13675_v14 = vpop.permute.xlu1 %4985  ;;  %5222 = vperm.xlu0 %8408, %v13669_v12   ;;  %v4705_v12 = vmul.f32 1.442695, %v4460_v37  ;;  %v4464_v37 = vsub.f32 %v16568_v45, %v13526_v15 }
 0x657   : > { %5177 = vperm.xlu1 %8407, %v13673_v33   ;;  %v13693_v33 = vpop.eup %9157 }
 0x658   : > { %16564 = vst [vmem:[#allocation92_spill] sm:$0xff] %v13693_v33  ;;  %v13697_v51 = vpop.eup %9159  ;;  %9165 = vpow2.f32 %v4705_v12 }
 0x659   : > { %v13683_v40 = vpop.permute.xlu0 %5036  ;;  %16566 = vst [vmem:[#allocation157_spill] sm:$0xff] %v13697_v51  ;;  %v13707_v47 = vpop.eup %9161 }
 0x65a   : > { %16560 = vst [vmem:[#allocation153_spill] sm:$0xff] %v13683_v40  ;;  %v13687_v59 = vpop.permute.xlu1 %4991  ;;  %5228 = vperm.xlu0 %8408, %v13681_v8   ;;  %v4709_v8 = vmul.f32 1.442695, %v4462_v22  ;;  %16570 = vst [vmem:[#allocation159_spill] sm:$0xff] %v13707_v47 }
 0x65b   : > { %16562 = vst [vmem:[#allocation155_spill] sm:$0xff] %v13687_v59  ;;  %5183 = vperm.xlu1 %8407, %v13685_v42   ;;  %v16623_v59 = vld [vmem:[#allocation45_spill] sm:$0xff] }
 0x65c   : > { %9167 = vpow2.f32 %v4709_v8 }
 0x65d   : > { %v13695_v61 = vpop.permute.xlu0 %5042 }
 0x65e   : > { %16565 = vst [vmem:[#allocation156_spill] sm:$0xff] %v13695_v61  ;;  %v13699_v40 = vpop.permute.xlu1 %4997  ;;  %5234 = vperm.xlu0 %8408, %v13693_v33   ;;  %v4713_v61 = vmul.f32 1.442695, %v4464_v37  ;;  %v4466_v33 = vsub.f32 %v12849_v2, %v13526_v15  ;;  %v13716_v12 = vpop.eup %9163 }
 0x65f   : > { %16567 = vst [vmem:[#allocation158_spill] sm:$0xff] %v13699_v40  ;;  %5189 = vperm.xlu1 %8407, %v13697_v51   ;;  %16572 = vst [vmem:[#allocation161_spill] sm:$0xff] %v13716_v12  ;;  %v4468_v51 = vsub.f32 %v12883_v41, %v13526_v15 }
 0x660   : > { %9169 = vpow2.f32 %v4713_v61  ;;  %v4717_v45 = vmul.f32 1.442695, %v4466_v33 }
 0x661   : > { %v13705_v42 = vpop.permute.xlu0 %5048  ;;  %v4721_v2 = vmul.f32 1.442695, %v4468_v51 }
 0x662   : > { %16569 = vst [vmem:[#allocation106_spill] sm:$0xff] %v13705_v42  ;;  %v13709_v53 = vpop.permute.xlu1 %5003  ;;  %v13725_v8 = vpop.eup %9165  ;;  %9171 = vpow2.f32 %v4717_v45 }
 0x663   : > { %5195 = vperm.xlu1 %8407, %v13707_v47   ;;  %16574 = vst [vmem:[#allocation163_spill] sm:$0xff] %v13725_v8  ;;  %v4470_v47 = vsub.f32 %v12912_v23, %v13526_v15  ;;  %9173 = vpow2.f32 %v4721_v2 }
 0x665   : > { %v13714_v40 = vpop.permute.xlu0 %5054  ;;  %v4725_v41 = vmul.f32 1.442695, %v4470_v47 }
 0x666   : > { %16571 = vst [vmem:[#allocation160_spill] sm:$0xff] %v13714_v40  ;;  %v13718_v22 = vpop.permute.xlu1 %5009  ;;  %v13734_v61 = vpop.eup %9167 }
 0x667   : > { %5201 = vperm.xlu1 %8407, %v13716_v12   ;;  %16576 = vst [vmem:[#allocation165_spill] sm:$0xff] %v13734_v61  ;;  %9175 = vpow2.f32 %v4725_v41 }
 0x669   : > { %v13723_v42 = vpop.permute.xlu0 %5060 }
 0x66a   : > { %16573 = vst [vmem:[#allocation162_spill] sm:$0xff] %v13723_v42  ;;  %v13727_v37 = vpop.permute.xlu1 %5015  ;;  %v13741_v42 = vpop.eup %9169 }
 0x66b   : > { %5207 = vperm.xlu1 %8407, %v13725_v8   ;;  %16578 = vst [vmem:[#allocation167_spill] sm:$0xff] %v13741_v42 }
 0x66c   : > { %v13748_v15 = vpop.eup %9171 }
 0x66d   : > { %v13732_v40 = vpop.permute.xlu0 %5066  ;;  %16581 = vst [vmem:[#allocation170_spill] sm:$0xff] %v13748_v15  ;;  %v13755_v47 = vpop.eup %9173 }
 0x66e   : > { %16575 = vst [vmem:[#allocation164_spill] sm:$0xff] %v13732_v40  ;;  %v13736_v33 = vpop.permute.xlu1 %5021  ;;  %16584 = vst [vmem:[#allocation173_spill] sm:$0xff] %v13755_v47 }
 0x66f   : > { %5213 = vperm.xlu1 %8407, %v13734_v61  }
 0x671   : > { %v13739_v12 = vpop.permute.xlu0 %5072 }
 0x672   : > { %16577 = vst [vmem:[#allocation166_spill] sm:$0xff] %v13739_v12  ;;  %v13743_v8 = vpop.permute.xlu1 %5027 }
 0x673   : > { %16579 = vst [vmem:[#allocation168_spill] sm:$0xff] %v13743_v8  ;;  %5219 = vperm.xlu1 %8407, %v13741_v42   ;;  %v13762_v42 = vpop.eup %9175 }
 0x674   : > { %16587 = vst [vmem:[#allocation176_spill] sm:$0xff] %v13762_v42 }
 0x675   : > { %v13746_v23 = vpop.permute.xlu0 %5078 }
 0x676   : > { %16580 = vst [vmem:[#allocation169_spill] sm:$0xff] %v13746_v23  ;;  %v13750_v51 = vpop.permute.xlu1 %5033 }
 0x677   : > { %16582 = vst [vmem:[#allocation171_spill] sm:$0xff] %v13750_v51  ;;  %5225 = vperm.xlu1 %8407, %v13748_v15  }
 0x679   : > { %v13753_v45 = vpop.permute.xlu0 %5084 }
 0x67a   : > { %16583 = vst [vmem:[#allocation172_spill] sm:$0xff] %v13753_v45  ;;  %v13757_v2 = vpop.permute.xlu1 %5039 }
 0x67b   : > { %16585 = vst [vmem:[#allocation174_spill] sm:$0xff] %v13757_v2  ;;  %5231 = vperm.xlu1 %8407, %v13755_v47  }
 0x67d   : > { %v13760_v61 = vpop.permute.xlu0 %5090 }
 0x67e   : > { %16586 = vst [vmem:[#allocation175_spill] sm:$0xff] %v13760_v61  ;;  %v13764_v41 = vpop.permute.xlu1 %5045 }
 0x67f   : > { %16588 = vst [vmem:[#allocation177_spill] sm:$0xff] %v13764_v41  ;;  %5237 = vperm.xlu1 %8407, %v13762_v42  }
 0x681   : > { %v13767_v23 = vpop.permute.xlu0 %5096 }
 0x682   : > { %16589 = vst [vmem:[#allocation178_spill] sm:$0xff] %v13767_v23  ;;  %v13769_v12 = vpop.permute.xlu1 %5051 }
 0x683   : > { %16590 = vst [vmem:[#allocation179_spill] sm:$0xff] %v13769_v12 }
 0x685   : > { %v13771_v15 = vpop.permute.xlu0 %5102 }
 0x686   : > { %16591 = vst [vmem:[#allocation180_spill] sm:$0xff] %v13771_v15  ;;  %v13773_v45 = vpop.permute.xlu1 %5057 }
 0x687   : > { %16592 = vst [vmem:[#allocation181_spill] sm:$0xff] %v13773_v45 }
 0x689   : > { %v13775_v40 = vpop.permute.xlu0 %5108 }
 0x68a   : > { %16593 = vst [vmem:[#allocation182_spill] sm:$0xff] %v13775_v40  ;;  %v13777_v2 = vpop.permute.xlu1 %5063 }
 0x68b   : > { %16594 = vst [vmem:[#allocation183_spill] sm:$0xff] %v13777_v2 }
 0x68d   : > { %v13779_v47 = vpop.permute.xlu0 %5114 }
 0x68e   : > { %16595 = vst [vmem:[#allocation184_spill] sm:$0xff] %v13779_v47  ;;  %v13781_v61 = vpop.permute.xlu1 %5069 }
 0x68f   : > { %16596 = vst [vmem:[#allocation185_spill] sm:$0xff] %v13781_v61 }
 0x691   : > { %v13783_v51 = vpop.permute.xlu0 %5120 }
 0x692   : > { %16597 = vst [vmem:[#allocation186_spill] sm:$0xff] %v13783_v51  ;;  %v13785_v41 = vpop.permute.xlu1 %5075 }
 0x693   : > { %16598 = vst [vmem:[#allocation187_spill] sm:$0xff] %v13785_v41 }
 0x695   : > { %v13787_v42 = vpop.permute.xlu0 %5126 }
 0x696   : > { %16599 = vst [vmem:[#allocation188_spill] sm:$0xff] %v13787_v42  ;;  %v13789_v23 = vpop.permute.xlu1 %5081 }
 0x697   : > { %16600 = vst [vmem:[#allocation189_spill] sm:$0xff] %v13789_v23 }
 0x699   : > { %v13791_v12 = vpop.permute.xlu0 %5132 }
 0x69a   : > { %16601 = vst [vmem:[#allocation190_spill] sm:$0xff] %v13791_v12  ;;  %v13793_v15 = vpop.permute.xlu1 %5087 }
 0x69b   : > { %16602 = vst [vmem:[#allocation191_spill] sm:$0xff] %v13793_v15 }
 0x69d   : > { %v13795_v45 = vpop.permute.xlu0 %5138 }
 0x69e   : > { %16603 = vst [vmem:[#allocation192_spill] sm:$0xff] %v13795_v45  ;;  %v13797_v40 = vpop.permute.xlu1 %5093 }
 0x69f   : > { %16604 = vst [vmem:[#allocation193_spill] sm:$0xff] %v13797_v40 }
 0x6a1   : > { %v13799_v2 = vpop.permute.xlu0 %5144 }
 0x6a2   : > { %16605 = vst [vmem:[#allocation194_spill] sm:$0xff] %v13799_v2  ;;  %v13801_v47 = vpop.permute.xlu1 %5099 }
 0x6a3   : > { %16606 = vst [vmem:[#allocation195_spill] sm:$0xff] %v13801_v47  ;;  %v16617_v47 = vld [vmem:[#allocation113_spill] sm:$0xff] }
 0x6a5   : > { %v13805_v51 = vpop.permute.xlu0 %5150 }
 0x6a6   : > { %v13803_v61 = vpop.permute.xlu1 %5105  ;;  %16608 = vst [vmem:[#allocation197_spill] sm:$0xff] %v13805_v51  ;;  %v16618_v51 = vld [vmem:[#allocation114_spill] sm:$0xff] }
 0x6a7   : > { %16607 = vst [vmem:[#allocation196_spill] sm:$0xff] %v13803_v61  ;;  %v5325_v61 = vrot.slane %v13491_v48, %v16617_v47  ;;  %v16621_v48 = vld [vmem:[#allocation46_spill] sm:$0xff] }
 0x6a8   : > { %v5335_v8 = vrot.slane %v13505_v56, %v16621_v48 }
 0x6a9   : > { %v13809_v42 = vpop.permute.xlu0 %5156 }
 0x6aa   : > { %v13807_v41 = vpop.permute.xlu1 %5111  ;;  %16610 = vst [vmem:[#allocation199_spill] sm:$0xff] %v13809_v42  ;;  %v5242_v42 = vrot.slane %v13317_v58, %v16618_v51  ;;  %v5256_v58 = vrot.slane %v13345_v24, %v16621_v48  ;;  %v5414_v24 = vrot.slane %v13623_v29, %v16621_v48  ;;  %v5340_v29 = vrot.slane %v13398_v25, %v16623_v59 }
 0x6ab   : > { %16609 = vst [vmem:[#allocation198_spill] sm:$0xff] %v13807_v41  ;;  %v5246_v41 = vrot.slane %v13313_v54, %v16617_v47 }
 0x6ad   : > { %v13815_v15 = vpop.permute.xlu0 %5162 }
 0x6ae   : > { %v13811_v23 = vpop.permute.xlu1 %5117  ;;  %16613 = vst [vmem:[#allocation202_spill] sm:$0xff] %v13815_v15 }
 0x6af   : > { %16611 = vst [vmem:[#allocation200_spill] sm:$0xff] %v13811_v23  ;;  %v16619_v23 = vld [vmem:[#allocation117_spill] sm:$0xff] }
 0x6b0   : > { %v5251_v15 = vrot.slane %v13331_v43, %v16619_v23  ;;  %v5400_v43 = vrot.slane %v13487_v10, %v16618_v51  ;;  %v5409_v10 = vrot.slane %v13501_v35, %v16619_v23 }
 0x6b1   : > { %v13819_v40 = vpop.permute.xlu0 %5168 }
 0x6b2   : > { %v13813_v12 = vpop.permute.xlu1 %5123  ;;  %16615 = vst [vmem:[#allocation204_spill] sm:$0xff] %v13819_v40 }
 0x6b3   : > { %16612 = vst [vmem:[#allocation201_spill] sm:$0xff] %v13813_v12  ;;  %v5321_v12 = vrot.slane %v13369_v49, %v16618_v51  ;;  %v5330_v49 = vrot.slane %v13383_v50, %v16619_v23  ;;  %v16624_v50 = vld [vmem:[#allocation64_spill] sm:$0xff] }
 0x6b4   : > { %v5266_v57 = vrot.slane %v13373_v0, %v16624_v50 }
 0x6b5   : > { %v13840_v54 = vpop.permute.xlu0 %5174 }
 0x6b6   : > { %v13817_v45 = vpop.permute.xlu1 %5129  ;;  %16622 = vst [vmem:[#allocation114_spill] sm:$0xff] %v13840_v54 }
 0x6b7   : > { %16614 = vst [vmem:[#allocation203_spill] sm:$0xff] %v13817_v45  ;;  %v5404_v45 = vrot.slane %v13609_v11, %v16617_v47  ;;  %v5247_v11 = vsel %vm3632_vm1, %v5246_v41, %v5242_v42 }
 0x6ba   : > { %v13821_v2 = vpop.permute.xlu1 %5135 }
 0x6bb   : > { %16616 = vst [vmem:[#allocation205_spill] sm:$0xff] %v13821_v2  ;;  %v5326_v2 = vsel %vm3632_vm1, %v5325_v61, %v5321_v12  ;;  %v5252_v12 = vsel %vm3639_vm2, %v5251_v15, %v5247_v11  ;;  %v5405_v61 = vsel %vm3632_vm1, %v5404_v45, %v5400_v43  ;;  %v13874_v43 = vpop.permute.xlu0 %5180 }
 0x6bc   : > { %v5331_v56 = vsel %vm3639_vm2, %v5330_v49, %v5326_v2  ;;  %v5257_v15 = vsel %vm3646_vm3, %v5256_v58, %v5252_v12  ;;  %v16625_v2 = vld [vmem:[#allocation25_spill] sm:$0xff]  ;;  %v16627_v49 = vld [vmem:[#allocation63_spill] sm:$0xff]  ;;  %v5410_v35 = vsel %vm3639_vm2, %v5409_v10, %v5405_v61 }
 0x6bd   : > { %v5336_v42 = vsel %vm3646_vm3, %v5335_v8, %v5331_v56  ;;  %v5271_v45 = vrot.slane %v13387_v46, %v16625_v2  ;;  %v5276_v0 = vrot.slane %v13402_v27, %v16627_v49  ;;  %v16628_v8 = vld [vmem:[#allocation69_spill] sm:$0xff]  ;;  %v5415_v11 = vsel %vm3646_vm3, %v5414_v24, %v5410_v35  ;;  %v16633_v24 = vld [vmem:[#allocation67_spill] sm:$0xff]  ;;  %v16635_v35 = vld [vmem:[#allocation70_spill] sm:$0xff] }
 0x6be   : > { %v13835_v40 = vpop.permute.xlu1 %5141  ;;  %v5341_v58 = vsel %vm16629_vm0, %v5340_v29, %v5336_v42  ;;  %v5424_v46 = vrot.slane %v13637_v38, %v16624_v50  ;;  %v5419_v27 = vrot.slane %v13516_v18, %v16623_v59  ;;  %v5355_v56 = vrot.slane %v13539_v13, %v16627_v49 }
 0x6bf   : > { %16620 = vst [vmem:[#allocation113_spill] sm:$0xff] %v13835_v40  ;;  %v5261_v40 = vrot.slane %v13359_v1, %v16623_v59  ;;  %v5345_v1 = vrot.slane %v13520_v7, %v16624_v50  ;;  %v5281_v7 = vrot.slane %v13421_v4, %v16628_v8  ;;  %v5350_v61 = vrot.slane %v13417_v17, %v16625_v2 }
 0x6c0   : > { %v5286_v38 = vrot.slane %v13435_v32, %v16633_v24  ;;  %v5483_v18 = vrot.slane %v13709_v53, %v16617_v47  ;;  %v5429_v32 = vrot.slane %v13535_v28, %v16625_v2  ;;  %v5365_v29 = vrot.slane %v13553_v19, %v16633_v24 }
 0x6c1   : > { %v5262_v41 = vsel %vm16626_vm5, %v5261_v40, %v5257_v15  ;;  %vm16630_vm5 = vcmask 392512   ;;  %v5434_v15 = vrot.slane %v13651_v52, %v16627_v49  ;;  %v5479_v53 = vrot.slane %v13605_v3, %v16618_v51 }
 0x6c2   : > { %v13856_v54 = vpop.permute.xlu1 %5147  ;;  %v5267_v40 = vsel %vm16630_vm5, %v5266_v57, %v5262_v41  ;;  %vm16631_vm4 = vmmov %vm16630_vm5  ;;  %v5420_v57 = vsel %vm16629_vm0, %v5419_v27, %v5415_v11  ;;  %v13913_v41 = vpop.permute.xlu0 %5186  ;;  %v5493_v3 = vrot.slane %v13718_v22, %v16621_v48  ;;  %v5375_v22 = vrot.slane %v13567_v39, %v16635_v35 }
 0x6c3   : > { %v5346_v12 = vsel %vm16631_vm4, %v5345_v1, %v5341_v58  ;;  %v5272_v4 = vsel %vm16632_vm6, %v5271_v45, %v5267_v40  ;;  %vm16634_vm4 = vmmov %vm16632_vm6  ;;  %v5425_v13 = vsel %vm16630_vm5, %v5424_v46, %v5420_v57  ;;  %v16636_v58 = vld [vmem:[#allocation71_spill] sm:$0xff]  ;;  %v5484_v19 = vsel %vm3632_vm1, %v5483_v18, %v5479_v53 }
 0x6c4   : > { %v5277_v10 = vsel %vm3674_vm7, %v5276_v0, %v5272_v4  ;;  %v5351_v1 = vsel %vm16634_vm4, %v5350_v61, %v5346_v12  ;;  %v5360_v0 = vrot.slane %v13431_v62, %v16628_v8  ;;  %v5291_v28 = vrot.slane %v13327_v26, %v16636_v58  ;;  %vm16637_vm6 = vmmov %vm16634_vm4 }
 0x6c5   : > { %v5282_v42 = vsel %vm3681_vm8, %v5281_v7, %v5277_v10  ;;  %v5356_v45 = vsel %vm3674_vm7, %v5355_v56, %v5351_v1  ;;  %v5296_v7 = vrot.slane %v13449_v6, %v16635_v35  ;;  %v5430_v11 = vsel %vm16637_vm6, %v5429_v32, %v5425_v13  ;;  %vm16639_vm4 = vmmov %vm16630_vm5 }
 0x6c6   : > { %v13882_v25 = vpop.permute.xlu1 %5153  ;;  %v5287_v52 = vsel %vm3688_vm9, %v5286_v38, %v5282_v42  ;;  %v5361_v46 = vsel %vm3681_vm8, %v5360_v0, %v5356_v45  ;;  %v5488_v62 = vrot.slane %v13619_v16, %v16619_v23  ;;  %v5435_v40 = vsel %vm3674_vm7, %v5434_v15, %v5430_v11  ;;  %v13952_v57 = vpop.permute.xlu0 %5192  ;;  %vm16647_vm5 = vmmov %vm16637_vm6 }
 0x6c7   : > { %v5444_v6 = vrot.slane %v13663_v20, %v16633_v24  ;;  %v5292_v26 = vsel %vm3695_vm10, %v5291_v28, %v5287_v52  ;;  %v5439_v12 = vrot.slane %v13549_v55, %v16628_v8  ;;  %v5366_v56 = vsel %vm3688_vm9, %v5365_v29, %v5361_v46  ;;  %v16641_v28 = vld [vmem:[#allocation155_spill] sm:$0xff]  ;;  %v16643_v46 = vld [vmem:[#allocation133_spill] sm:$0xff]  ;;  %vm16675_vm6 = vmmov %vm16629_vm0 }
 0x6c8   : > { %v5301_v16 = vrot.slane %v13341_v9, %v12493_v60  ;;  %v5370_v4 = vrot.slane %v13445_v44, %v16636_v58  ;;  %v5297_v20 = vsel %vm3702_vm11, %v5296_v7, %v5292_v26  ;;  %v5489_v61 = vsel %vm3639_vm2, %v5488_v62, %v5484_v19  ;;  %v16645_v26 = vld [vmem:[#allocation142_spill] sm:$0xff] }
 0x6c9   : > { %v5306_v38 = vrot.slane %v13463_v21, %v12490_v30  ;;  %v5440_v55 = vsel %vm3681_vm8, %v5439_v12, %v5435_v40  ;;  %v5494_v10 = vsel %vm3646_vm3, %v5493_v3, %v5489_v61  ;;  %v5503_v39 = vrot.slane %v13727_v37, %v16624_v50  ;;  %v16642_v3 = vld [vmem:[#allocation125_spill] sm:$0xff]  ;;  %v16644_v40 = vld [vmem:[#allocation120_spill] sm:$0xff] }
 0x6ca   : > { %v13904_v17 = vpop.permute.xlu1 %5159  ;;  %v5371_v9 = vsel %vm3695_vm10, %v5370_v4, %v5366_v56  ;;  %v5498_v44 = vrot.slane %v13633_v34, %v16623_v59  ;;  %v5445_v18 = vsel %vm3688_vm9, %v5444_v6, %v5440_v55  ;;  %v5454_v42 = vrot.slane %v13675_v14, %v16635_v35  ;;  %v16638_v34 = vld [vmem:[#allocation129_spill] sm:$0xff]  ;;  %v13993_v56 = vpop.permute.xlu0 %5198  ;;  %v16648_v55 = vld [vmem:[#allocation168_spill] sm:$0xff] }
 0x6cb   : > { %v5449_v1 = vrot.slane %v13563_v5, %v16636_v58  ;;  %v5376_v13 = vsel %vm3702_vm11, %v5375_v22, %v5371_v9  ;;  %v5385_v37 = vrot.slane %v13581_v36, %v12490_v30  ;;  %v5311_v15 = vrot.slane %v13355_v31, %v12598_v63  ;;  %v16640_v31 = vld [vmem:[#allocation147_spill] sm:$0xff]  ;;  %v16649_v9 = vld [vmem:[#allocation149_spill] sm:$0xff] }
 0x6cc   : > { %v5380_v32 = vrot.slane %v16638_v34, %v12493_v60  ;;  %v5302_v45 = vsel %vm3709_vm12, %v5301_v16, %v5297_v20  ;;  %v5499_v14 = vsel %vm16629_vm0, %v5498_v44, %v5494_v10  ;;  %v5513_v0 = vrot.slane %v13736_v33, %v16627_v49  ;;  %v16646_v22 = vld [vmem:[#allocation131_spill] sm:$0xff]  ;;  %vm16677_vm0 = vmmov %vm16639_vm4 }
 0x6cd   : > { %v5307_v29 = vsel %vm15801_vm13, %v5306_v38, %v5302_v45  ;;  %v5450_v53 = vsel %vm3695_vm10, %v5449_v1, %v5445_v18  ;;  %v5504_v5 = vsel %vm16639_vm4, %v5503_v39, %v5499_v14  ;;  %v5508_v52 = vrot.slane %v16640_v31, %v16625_v2  ;;  %v16652_v45 = vld [vmem:[#allocation151_spill] sm:$0xff]  ;;  %vm16679_vm4 = vmmov %vm16675_vm6 }
 0x6ce   : > { %v13932_v27 = vpop.permute.xlu1 %5165  ;;  %v5381_v36 = vsel %vm3709_vm12, %v5380_v32, %v5376_v13  ;;  %v5455_v7 = vsel %vm3702_vm11, %v5454_v42, %v5450_v53  ;;  %v5464_v11 = vrot.slane %v16641_v28, %v12490_v30  ;;  %v5316_v62 = vrot.slane %v16643_v46, %v16642_v3  ;;  %v16650_v42 = vld [vmem:[#allocation158_spill] sm:$0xff]  ;;  %v16655_v31 = vld [vmem:[#allocation179_spill] sm:$0xff] }
 0x6cf   : > { %v5459_v6 = vrot.slane %v16644_v40, %v12493_v60  ;;  %v5386_v33 = vsel %vm15801_vm13, %v5385_v37, %v5381_v36  ;;  %v5395_v12 = vrot.slane %v16645_v26, %v16642_v3  ;;  %v5390_v16 = vrot.slane %v16646_v22, %v12598_v63  ;;  %v16658_v26 = vld [vmem:[#allocation106_spill] sm:$0xff]  ;;  %v16659_v22 = vld [vmem:[#allocation160_spill] sm:$0xff] }
 0x6d0   : > { %v5509_v4 = vsel %vm16647_vm5, %v5508_v52, %v5504_v5  ;;  %v5312_v20 = vsel %vm3723_vm14, %v5311_v15, %v5307_v29  ;;  %v5523_v10 = vrot.slane %v16648_v55, %v16633_v24  ;;  %v5518_v44 = vrot.slane %v16649_v9, %v16628_v8  ;;  %v16651_v15 = vld [vmem:[#allocation122_spill] sm:$0xff]  ;;  %v16653_v29 = vld [vmem:[#allocation153_spill] sm:$0xff]  ;;  %v16654_v5 = vld [vmem:[#allocation156_spill] sm:$0xff] }
 0x6d1   : > { %v5460_v61 = vsel %vm3709_vm12, %v5459_v6, %v5455_v7  ;;  %v5514_v38 = vsel %vm3674_vm7, %v5513_v0, %v5509_v4  ;;  %v5391_v39 = vsel %vm3723_vm14, %v5390_v16, %v5386_v33  ;;  %v5474_v1 = vrot.slane %v16650_v42, %v16642_v3  ;;  %v14034_v6 = vpop.permute.xlu0 %5204  ;;  %v16661_v55 = vld [vmem:[#allocation164_spill] sm:$0xff]  ;;  %vm16680_vm5 = vmmov %vm16677_vm0 }
 0x6d2   : > { %v13960_v21 = vpop.permute.xlu1 %5171  ;;  %v5465_v18 = vsel %vm15801_vm13, %v5464_v11, %v5460_v61  ;;  %v14012_v37 = vsel %vm3730_vm15, %v5316_v62, %v5312_v20  ;;  %v5469_v34 = vrot.slane %v16651_v15, %v12598_v63  ;;  %v14017_v32 = vsel %vm3730_vm15, %v5395_v12, %v5391_v39  ;;  %v16656_v11 = vld [vmem:[#allocation171_spill] sm:$0xff]  ;;  %v16660_v61 = vld [vmem:[#allocation162_spill] sm:$0xff] }
 0x6d3   : > { %v5528_v14 = vrot.slane %v16652_v45, %v16636_v58  ;;  %v5538_v53 = vrot.slane %v16653_v29, %v12493_v60  ;;  %v5548_v0 = vrot.slane %v16654_v5, %v12598_v63  ;;  %v5519_v36 = vsel %vm3681_vm8, %v5518_v44, %v5514_v38  ;;  %v16657_v62 = vld [vmem:[#allocation195_spill] sm:$0xff]  ;;  %v16662_v39 = vld [vmem:[#allocation166_spill] sm:$0xff]  ;;  %v16666_v29 = vld [vmem:[#allocation169_spill] sm:$0xff] }
 0x6d4   : > { %v5562_v52 = vrot.slane %v16655_v31, %v16617_v47  ;;  %v5470_v7 = vsel %vm3723_vm14, %v5469_v34, %v5465_v18  ;;  %v5524_v28 = vsel %vm3688_vm9, %v5523_v10, %v5519_v36  ;;  %v5533_v46 = vrot.slane %v16656_v11, %v16635_v35  ;;  %v16663_v44 = vld [vmem:[#allocation178_spill] sm:$0xff]  ;;  %v16667_v11 = vld [vmem:[#allocation196_spill] sm:$0xff] }
 0x6d5   : > { %v5641_v40 = vrot.slane %v16657_v62, %v16617_v47  ;;  %v14037_v33 = vsel %vm3730_vm15, %v5474_v1, %v5470_v7  ;;  %v5558_v12 = vrot.slane %v16658_v26, %v16618_v51  ;;  %v5567_v16 = vrot.slane %v16659_v22, %v16619_v23  ;;  %v16665_v34 = vld [vmem:[#allocation194_spill] sm:$0xff] }
 0x6d6   : > { %v13984_v19 = vpop.permute.xlu1 %5177  ;;  %v5720_v4 = vrot.slane %v13856_v54, %v16617_v47  ;;  %v5577_v38 = vrot.slane %v16660_v61, %v16623_v59  ;;  %v5587_v10 = vrot.slane %v16661_v55, %v16625_v2  ;;  %v5597_v9 = vrot.slane %v16662_v39, %v16628_v8  ;;  %v16664_v54 = vld [vmem:[#allocation181_spill] sm:$0xff]  ;;  %v16696_v39 = vld [vmem:[#allocation203_spill] sm:$0xff] }
 0x6d7   : > { %v5637_v18 = vrot.slane %v16663_v44, %v16618_v51  ;;  %v5529_v42 = vsel %vm3695_vm10, %v5528_v14, %v5524_v28  ;;  %v5563_v1 = vsel %vm3632_vm1, %v5562_v52, %v5558_v12  ;;  %v5572_v15 = vrot.slane %v16664_v54, %v16621_v48  ;;  %v16668_v14 = vld [vmem:[#allocation172_spill] sm:$0xff] }
 0x6d8   : > { %v5716_v45 = vrot.slane %v16665_v34, %v16618_v51  ;;  %v5607_v36 = vrot.slane %v16666_v29, %v16636_v58  ;;  %v5534_v31 = vsel %vm3702_vm11, %v5533_v46, %v5529_v42  ;;  %v5651_v62 = vrot.slane %v16667_v11, %v16621_v48  ;;  %v16669_v52 = vld [vmem:[#allocation180_spill] sm:$0xff]  ;;  %v16670_v46 = vld [vmem:[#allocation197_spill] sm:$0xff] }
 0x6d9   : > { %v5642_v7 = vsel %vm3632_vm1, %v5641_v40, %v5637_v18  ;;  %v5617_v28 = vrot.slane %v16668_v14, %v12493_v60  ;;  %v5646_v26 = vrot.slane %v16669_v52, %v16619_v23  ;;  %v5730_v22 = vrot.slane %v13882_v25, %v16621_v48  ;;  %v5211_v18 = vpop.permute.xlu0 %5210  ;;  %v16700_v29 = vld [vmem:[#allocation205_spill] sm:$0xff] }
 0x6da   : > { %v14009_v13 = vpop.permute.xlu1 %5183  ;;  %v5721_v12 = vsel %vm3632_vm1, %v5720_v4, %v5716_v45  ;;  %v5568_v55 = vsel %vm3639_vm2, %v5567_v16, %v5563_v1  ;;  %v5725_v40 = vrot.slane %v16670_v46, %v16619_v23  ;;  %v5795_v44 = vrot.slane %v13952_v57, %v16618_v51  ;;  %v16671_v4 = vld [vmem:[#allocation183_spill] sm:$0xff]  ;;  %v16672_v1 = vld [vmem:[#allocation198_spill] sm:$0xff]  ;;  %v16704_v14 = vld [vmem:[#allocation113_spill] sm:$0xff] }
 0x6db   : > { %v5539_v54 = vsel %vm3709_vm12, %v5538_v53, %v5534_v31  ;;  %v5573_v34 = vsel %vm3646_vm3, %v5572_v15, %v5568_v55  ;;  %v5582_v45 = vrot.slane %v16671_v4, %v16624_v50  ;;  %v5647_v25 = vsel %vm3639_vm2, %v5646_v26, %v5642_v7 }
 0x6dc   : > { %v5652_v16 = vsel %vm3646_vm3, %v5651_v62, %v5647_v25  ;;  %v5661_v11 = vrot.slane %v16672_v1, %v16624_v50  ;;  %v5726_v52 = vsel %vm3639_vm2, %v5725_v40, %v5721_v12  ;;  %v5804_v53 = vrot.slane %v13993_v56, %v16619_v23  ;;  %v16674_v62 = vld [vmem:[#allocation174_spill] sm:$0xff]  ;;  %v16676_v12 = vld [vmem:[#allocation199_spill] sm:$0xff]  ;;  %v16678_v56 = vld [vmem:[#allocation185_spill] sm:$0xff] }
 0x6dd   : > { %v5731_v15 = vsel %vm3646_vm3, %v5730_v22, %v5726_v52  ;;  %v5740_v31 = vrot.slane %v13904_v17, %v16624_v50  ;;  %v5543_v26 = vrot.slane %v16674_v62, %v12490_v30  ;;  %v5578_v55 = vsel %vm16675_vm6, %v5577_v38, %v5573_v34  ;;  %v16681_v1 = vld [vmem:[#allocation200_spill] sm:$0xff]  ;;  %vm16682_vm6 = vmmov %vm16679_vm4  ;;  %v5217_v34 = vpop.permute.xlu0 %5216 }
 0x6de   : > { %v14045_v20 = vpop.permute.xlu1 %5189  ;;  %v5735_v40 = vrot.slane %v16676_v12, %v16623_v59  ;;  %v5592_v4 = vrot.slane %v16678_v56, %v16627_v49  ;;  %v5671_v52 = vrot.slane %v16681_v1, %v16627_v49  ;;  %v5814_v62 = vrot.slane %v14034_v6, %v16623_v59 }
 0x6e0   : > { %v5736_v38 = vsel %vm16682_vm6, %v5735_v40, %v5731_v15  ;;  %v16685_v15 = vld [vmem:[#allocation202_spill] sm:$0xff] }
 0x6e2   : > { %v5196_v61 = vpop.permute.xlu1 %5195 }
 0x6e3   : > { %v5799_v42 = vrot.slane %v5196_v61, %v16617_v47  ;;  %v16673_v61 = vld [vmem:[#allocation182_spill] sm:$0xff] }
 0x6e4   : > { %v5656_v46 = vrot.slane %v16673_v61, %v16623_v59 }
 0x6e5   : > { %v5800_v57 = vsel %vm3632_vm1, %v5799_v42, %v5795_v44  ;;  %v5583_v42 = vsel %vm16677_vm0, %v5582_v45, %v5578_v55  ;;  %v5745_v55 = vrot.slane %v16685_v15, %v16625_v2 }
 0x6e6   : > { %v5202_v7 = vpop.permute.xlu1 %5201  ;;  %v5657_v22 = vsel %vm16679_vm4, %v5656_v46, %v5652_v16  ;;  %v5805_v17 = vsel %vm3639_vm2, %v5804_v53, %v5800_v57  ;;  %v5741_v16 = vsel %vm16677_vm0, %v5740_v31, %v5736_v38  ;;  %v5750_v57 = vrot.slane %v13932_v27, %v16627_v49 }
 0x6e7   : > { %v5809_v44 = vrot.slane %v5202_v7, %v16621_v48  ;;  %v5662_v25 = vsel %vm16680_vm5, %v5661_v11, %v5657_v22  ;;  %v16683_v7 = vld [vmem:[#allocation184_spill] sm:$0xff]  ;;  %v5544_v46 = vsel %vm15801_vm13, %v5543_v26, %v5539_v54  ;;  %vm16684_vm4 = vcmask 458112   ;;  %v16688_v54 = vld [vmem:[#allocation201_spill] sm:$0xff]  ;;  %v16691_v22 = vld [vmem:[#allocation186_spill] sm:$0xff] }
 0x6e8   : > { %v5666_v45 = vrot.slane %v16683_v7, %v16625_v2  ;;  %v5588_v53 = vsel %vm16684_vm4, %v5587_v10, %v5583_v42  ;;  %vm16687_vm5 = vmmov %vm16684_vm4  ;;  %v5681_v26 = vrot.slane %v16688_v54, %v16633_v24 }
 0x6e9   : > { %v5810_v61 = vsel %vm3646_vm3, %v5809_v44, %v5805_v17  ;;  %v5593_v40 = vsel %vm3674_vm7, %v5592_v4, %v5588_v53  ;;  %v16686_v44 = vld [vmem:[#allocation187_spill] sm:$0xff]  ;;  %vm16689_vm0 = vmmov %vm16684_vm4  ;;  %vm16690_vm4 = vcmask 392512   ;;  %v5676_v17 = vrot.slane %v16691_v22, %v16628_v8 }
 0x6ea   : > { %v5208_v11 = vpop.permute.xlu1 %5207  ;;  %v5602_v6 = vrot.slane %v16686_v44, %v16633_v24  ;;  %v5667_v31 = vsel %vm16687_vm5, %v5666_v45, %v5662_v25  ;;  %v5815_v56 = vsel %vm16682_vm6, %v5814_v62, %v5810_v61  ;;  %v5746_v10 = vsel %vm16689_vm0, %v5745_v55, %v5741_v16  ;;  %v16693_v45 = vld [vmem:[#allocation204_spill] sm:$0xff]  ;;  %v5223_v16 = vpop.permute.xlu0 %5222  ;;  %vm16695_vm5 = vmmov %vm16689_vm0 }
 0x6eb   : > { %v5819_v12 = vrot.slane %v5208_v11, %v16624_v50  ;;  %v5672_v27 = vsel %vm3674_vm7, %v5671_v52, %v5667_v31  ;;  %v5824_v4 = vrot.slane %v5211_v18, %v16625_v2  ;;  %v5751_v1 = vsel %vm3674_vm7, %v5750_v57, %v5746_v10  ;;  %v16692_v52 = vld [vmem:[#allocation175_spill] sm:$0xff]  ;;  %v16694_v11 = vld [vmem:[#allocation189_spill] sm:$0xff]  ;;  %v16697_v44 = vld [vmem:[#allocation188_spill] sm:$0xff] }
 0x6ec   : > { %v5760_v25 = vrot.slane %v13960_v21, %v16633_v24  ;;  %v5627_v61 = vrot.slane %v16692_v52, %v12598_v63  ;;  %v5598_v7 = vsel %vm3681_vm8, %v5597_v9, %v5593_v40  ;;  %v5755_v62 = vrot.slane %v16693_v45, %v16628_v8  ;;  %v16701_v52 = vld [vmem:[#allocation190_spill] sm:$0xff] }
 0x6ed   : > { %v5820_v42 = vsel %vm16690_vm4, %v5819_v12, %v5815_v56  ;;  %v5603_v57 = vsel %vm3688_vm9, %v5602_v6, %v5598_v7  ;;  %v5612_v21 = vrot.slane %v16694_v11, %v16635_v35  ;;  %v5677_v53 = vsel %vm3681_vm8, %v5676_v17, %v5672_v27  ;;  %v16702_v11 = vld [vmem:[#allocation177_spill] sm:$0xff] }
 0x6ee   : > { %v5214_v38 = vpop.permute.xlu1 %5213  ;;  %v5825_v15 = vsel %vm16695_vm5, %v5824_v4, %v5820_v42  ;;  %v5682_v55 = vsel %vm3688_vm9, %v5681_v26, %v5677_v53  ;;  %v5691_v9 = vrot.slane %v16696_v39, %v16635_v35  ;;  %v5756_v12 = vsel %vm3681_vm8, %v5755_v62, %v5751_v1  ;;  %v16698_v42 = vld [vmem:[#allocation114_spill] sm:$0xff]  ;;  %v16703_v39 = vld [vmem:[#allocation193_spill] sm:$0xff] }
 0x6ef   : > { %v5829_v18 = vrot.slane %v5214_v38, %v16627_v49  ;;  %v5686_v31 = vrot.slane %v16697_v44, %v16636_v58  ;;  %v5834_v6 = vrot.slane %v5217_v34, %v16628_v8  ;;  %v5761_v56 = vsel %vm3688_vm9, %v5760_v25, %v5756_v12  ;;  %v5229_v25 = vpop.permute.xlu0 %5228 }
 0x6f0   : > { %v5770_v27 = vrot.slane %v13984_v19, %v16635_v35  ;;  %v5549_v26 = vsel %vm3723_vm14, %v5548_v0, %v5544_v46  ;;  %v5608_v10 = vsel %vm3695_vm10, %v5607_v36, %v5603_v57  ;;  %v5765_v22 = vrot.slane %v16698_v42, %v16636_v58  ;;  %v16699_v19 = vld [vmem:[#allocation191_spill] sm:$0xff] }
 0x6f1   : > { %v5830_v40 = vsel %vm3674_vm7, %v5829_v18, %v5825_v15  ;;  %v5613_v17 = vsel %vm3702_vm11, %v5612_v21, %v5608_v10  ;;  %v5622_v4 = vrot.slane %v16699_v19, %v12490_v30  ;;  %v5687_v1 = vsel %vm3695_vm10, %v5686_v31, %v5682_v55  ;;  %v16705_v31 = vld [vmem:[#allocation192_spill] sm:$0xff] }
 0x6f2   : > { %v5220_v54 = vpop.permute.xlu1 %5219  ;;  %v5835_v5 = vsel %vm3681_vm8, %v5834_v6, %v5830_v40  ;;  %v5692_v0 = vsel %vm3702_vm11, %v5691_v9, %v5687_v1  ;;  %v5701_v46 = vrot.slane %v16700_v29, %v12490_v30  ;;  %v5766_v36 = vsel %vm3695_vm10, %v5765_v22, %v5761_v56 }
 0x6f3   : > { %v5839_v34 = vrot.slane %v5220_v54, %v16633_v24  ;;  %v5696_v7 = vrot.slane %v16701_v52, %v12493_v60  ;;  %v5844_v45 = vrot.slane %v5223_v16, %v16636_v58  ;;  %v5771_v62 = vsel %vm3702_vm11, %v5770_v27, %v5766_v36 }
 0x6f4   : > { %v5780_v18 = vrot.slane %v14009_v13, %v12490_v30  ;;  %v5553_v21 = vrot.slane %v16702_v11, %v16642_v3  ;;  %v5618_v53 = vsel %vm3709_vm12, %v5617_v28, %v5613_v17  ;;  %v5775_v15 = vrot.slane %v13874_v43, %v12493_v60  ;;  %v5235_v17 = vpop.permute.xlu0 %5234 }
 0x6f5   : > { %v5840_v38 = vsel %vm3688_vm9, %v5839_v34, %v5835_v5  ;;  %v5623_v16 = vsel %vm15801_vm13, %v5622_v4, %v5618_v53  ;;  %v5632_v9 = vrot.slane %v16703_v39, %v16642_v3  ;;  %v5697_v13 = vsel %vm3709_vm12, %v5696_v7, %v5692_v0  ;;  %v16717_v39 = vld [vmem:[#allocation112_spill] sm:$0xff] }
 0x6f6   : > { %v5226_v57 = vpop.permute.xlu1 %5225  ;;  %v5845_v12 = vsel %vm3695_vm10, %v5844_v45, %v5840_v38  ;;  %v5702_v40 = vsel %vm15801_vm13, %v5701_v46, %v5697_v13  ;;  %v5711_v44 = vrot.slane %v16704_v14, %v16642_v3  ;;  %v5776_v28 = vsel %vm3709_vm12, %v5775_v15, %v5771_v62  ;;  %v16718_v13 = vld [vmem:[#allocation111_spill] sm:$0xff] }
 0x6f7   : > { %v5849_v55 = vrot.slane %v5226_v57, %v16635_v35  ;;  %v5706_v6 = vrot.slane %v16705_v31, %v12598_v63  ;;  %v5854_v56 = vrot.slane %v5229_v25, %v12493_v60  ;;  %v5781_v27 = vsel %vm15801_vm13, %v5780_v18, %v5776_v28  ;;  %v16713_v18 = vld [vmem:[#allocation110_spill] sm:$0xff]  ;;  %v16720_v28 = vld [vmem:[#allocation103_spill] sm:$0xff] }
 0x6f8   : > { %v5790_v54 = vrot.slane %v14045_v20, %v16642_v3  ;;  %v5554_v42 = vsel %vm3730_vm15, %v5553_v21, %v5549_v26  ;;  %v5628_v22 = vsel %vm3723_vm14, %v5627_v61, %v5623_v16  ;;  %v5785_v34 = vrot.slane %v13913_v41, %v12598_v63  ;;  %v16721_v31 = vld [vmem:[#allocation98_spill] sm:$0xff] }
 0x6f9   : > { %v5850_v43 = vsel %vm3702_vm11, %v5849_v55, %v5845_v12  ;;  %vm16706_vm6 = vcmask 1041409   ;;  %v5633_v1 = vsel %vm3730_vm15, %v5632_v9, %v5628_v22  ;;  %v5707_v5 = vsel %vm3723_vm14, %v5706_v6, %v5702_v40  ;;  %v16716_v55 = vld [vmem:[#allocation17_spill] sm:$0xff]  ;;  %v16719_v40 = vld [vmem:[#allocation99_spill] sm:$0xff] }
 0x6fa   : > { %v5232_v10 = vpop.permute.xlu1 %5231  ;;  %v5871_v4 = vsel %vm16706_vm6, %v14017_v32, %v14012_v37  ;;  %v5855_v20 = vsel %vm3709_vm12, %v5854_v56, %v5850_v43  ;;  %vm16707_vm0 = vcmask 1042434   ;;  %v5712_v61 = vsel %vm3730_vm15, %v5711_v44, %v5707_v5  ;;  %v16722_v56 = vld [vmem:[#allocation115_spill] sm:$0xff] }
 0x6fb   : > { %v5859_v19 = vrot.slane %v5232_v10, %v12490_v30  ;;  %v5872_v26 = vsel %vm16707_vm0, %v14037_v33, %v5871_v4  ;;  %v5786_v0 = vsel %vm3723_vm14, %v5785_v34, %v5781_v27  ;;  %vm16708_vm4 = vcmask 1043459   ;;  %v16725_v34 = vld [vmem:[#allocation100_spill] sm:$0xff] }
 0x6fc   : > { %v5873_v29 = vsel %vm16708_vm4, %v5554_v42, %v5872_v26  ;;  %v5864_v46 = vrot.slane %v5235_v17, %v12598_v63  ;;  %v5791_v32 = vsel %vm3730_vm15, %v5790_v54, %v5786_v0  ;;  %vm16709_vm5 = vcmask 1044484   ;;  %v16723_v54 = vld [vmem:[#allocation116_spill] sm:$0xff]  ;;  %v16724_v42 = vld [vmem:[#allocation66_spill] sm:$0xff] }
 0x6fd   : > { %v5860_v41 = vsel %vm15801_vm13, %v5859_v19, %v5855_v20  ;;  %v5874_v25 = vsel %vm16709_vm5, %v5633_v1, %v5873_v29  ;;  %vm16710_vm6 = vcmask 1045509   ;;  %vm16711_vm0 = vcmask 1046534   ;;  %v16726_v19 = vld [vmem:[#allocation65_spill] sm:$0xff]  ;;  %v16730_v0 = vld [vmem:[#allocation102_spill] sm:$0xff] }
 0x6fe   : > { %v5238_v37 = vpop.permute.xlu1 %5237  ;;  %v5865_v38 = vsel %vm3723_vm14, %v5864_v46, %v5860_v41  ;;  %v5875_v33 = vsel %vm16710_vm6, %v5712_v61, %v5874_v25  ;;  %vm16712_vm13 = vcmask 1047559   ;;  %v16714_v57 = vsub.s32 0, %v16713_v18  ;;  %v16727_v1 = vld [vmem:[#allocation61_spill] sm:$0xff]  ;;  %v16729_v61 = vld [vmem:[#allocation72_spill] sm:$0xff] }
 0x6ff   : > { %v5869_v36 = vrot.slane %v5238_v37, %v16642_v3  ;;  %v5876_v7 = vsel %vm16711_vm0, %v5791_v32, %v5875_v33  ;;  %v16715_v21 = vsub.s32 1, %v16713_v18  ;;  %v16728_v20 = vsub.s32 2, %v16713_v18  ;;  %v16731_v46 = vld [vmem:[#allocation77_spill] sm:$0xff]  ;;  %v16732_v32 = vld [vmem:[#allocation62_spill] sm:$0xff]  ;;  %v16733_v25 = vld [vmem:[#allocation80_spill] sm:$0xff] }
 0x700   : > { %v16734_v33 = vld [vmem:[#allocation73_spill] sm:$0xff]  ;;  %vm16828_vm4 = vcmask 392512   ;;  %vm16832_vm5 = vcmask 458112   ;;  %vm16840_vm6 = vcmask 917312  }
 0x701   : > { %v5870_v52 = vsel %vm3730_vm15, %v5869_v36, %v5865_v38 }
 0x702   : > { %v5877_v45 = vsel %vm16712_vm13, %v5870_v52, %v5876_v7  ;;  %v16735_v7 = vld [vmem:[#allocation21_spill] sm:$0xff]  ;;  %vm16827_vm13 = vcmask 326912  }
 0x703   : > { %5879 = vadd.xlane.f32.xlu0 %v5877_v45  ;;  %vm16853_vm0 = vmmov %vm16827_vm13 }
 0x790   : > { %v14244_v62 = vpop.xlane.xlu0 %5879 }
 0x791   : > { %v5885_v11 = vrot.slane %v14244_v62, %v16714_v57  ;;  %v5889_v53 = vrot.slane %v14244_v62, %v16715_v21  ;;  %v5893_v26 = vrot.slane %v14244_v62, %v16728_v20  ;;  %v16736_v57 = vld [vmem:[#allocation108_spill] sm:$0xff]  ;;  %v16750_v20 = vld [vmem:[#allocation30_spill] sm:$0xff] }
 0x793   : > { %9177 = vrcp.f32 %v5885_v11 }
 0x794   : > { %9179 = vrcp.f32 %v5889_v53  ;;  %v16737_v53 = vld [vmem:[#allocation83_spill] sm:$0xff] }
 0x795   : > { %9181 = vrcp.f32 %v5893_v26 }
 0x79d   : > { %v9178_v15 = vpop.eup %9177 }
 0x79e   : > { %v5931_v16 = vmul.f32 %v9178_v15, %v16716_v55  ;;  %v5923_v9 = vmul.f32 %v9178_v15, %v16717_v39  ;;  %v5937_v12 = vmul.f32 %v9178_v15, %v16718_v13  ;;  %v5924_v14 = vmul.f32 %v9178_v15, %v16719_v40  ;;  %v14256_v44 = vpop.eup %9179 }
 0x79f   : > { %v5940_v43 = vmul.f32 %v14256_v44, %v16720_v28  ;;  %v5925_v6 = vmul.f32 %v9178_v15, %v16721_v31  ;;  %v5942_v27 = vmul.f32 %v14256_v44, %v16722_v56  ;;  %v5926_v10 = vmul.f32 %v9178_v15, %v16723_v54  ;;  %v14285_v21 = vpop.eup %9181 }
 0x7a0   : > { %6211 = vperm.xlu0 %8408, %v5931_v16   ;;  %6187 = vperm.xlu1 %8407, %v5923_v9   ;;  %v5944_v22 = vmul.f32 %v14256_v44, %v16724_v42  ;;  %v5927_v17 = vmul.f32 %v9178_v15, %v16725_v34  ;;  %v5946_v4 = vmul.f32 %v14256_v44, %v16726_v19  ;;  %v16738_v16 = vld [vmem:[#allocation76_spill] sm:$0xff]  ;;  %v16739_v9 = vld [vmem:[#allocation13_spill] sm:$0xff] }
 0x7a1   : > { %v5928_v5 = vmul.f32 %v9178_v15, %v16727_v1  ;;  %v5948_v41 = vmul.f32 %v14256_v44, %v16729_v61  ;;  %v5929_v29 = vmul.f32 %v9178_v15, %v16730_v0  ;;  %v5950_v37 = vmul.f32 %v14256_v44, %v16731_v46  ;;  %v16751_v61 = vld [vmem:[#allocation47_spill] sm:$0xff]  ;;  %v16752_v0 = vld [vmem:[#allocation32_spill] sm:$0xff] }
 0x7a2   : > { %v5930_v36 = vmul.f32 %v9178_v15, %v16732_v32  ;;  %v5952_v38 = vmul.f32 %v14256_v44, %v16733_v25  ;;  %v5932_v52 = vmul.f32 %v9178_v15, %v16734_v33  ;;  %v5954_v45 = vmul.f32 %v14256_v44, %v16735_v7  ;;  %v16753_v46 = vld [vmem:[#allocation27_spill] sm:$0xff] }
 0x7a3   : > { %v5933_v11 = vmul.f32 %v9178_v15, %v16736_v57  ;;  %v5957_v55 = vmul.f32 %v14285_v21, %v16737_v53  ;;  %v5934_v39 = vmul.f32 %v9178_v15, %v16738_v16  ;;  %v5959_v13 = vmul.f32 %v14285_v21, %v16739_v9 }
 0x7a4   : > { %6229 = vperm.xlu0 %8408, %v5937_v12   ;;  %6190 = vperm.xlu1 %8407, %v5924_v14   ;;  %v16740_v12 = vld [vmem:[#allocation101_spill] sm:$0xff]  ;;  %v16741_v14 = vld [vmem:[#allocation12_spill] sm:$0xff]  ;;  %v5969_v26 = vmul.f32 %v14285_v21, %v16750_v20 }
 0x7a5   : > { %v5935_v40 = vmul.f32 %v9178_v15, %v16740_v12  ;;  %v5961_v28 = vmul.f32 %v14285_v21, %v16741_v14 }
 0x7a8   : > { %6235 = vperm.xlu0 %8408, %v5940_v43   ;;  %6193 = vperm.xlu1 %8407, %v5925_v6   ;;  %v16742_v43 = vld [vmem:[#allocation20_spill] sm:$0xff] }
 0x7a9   : > { %v5936_v31 = vmul.f32 %v9178_v15, %v16742_v43  ;;  %v16743_v6 = vld [vmem:[#allocation36_spill] sm:$0xff] }
 0x7aa   : > { %v5963_v56 = vmul.f32 %v14285_v21, %v16743_v6 }
 0x7ac   : > { %6241 = vperm.xlu0 %8408, %v5942_v27   ;;  %6196 = vperm.xlu1 %8407, %v5926_v10   ;;  %v16744_v27 = vld [vmem:[#allocation22_spill] sm:$0xff]  ;;  %v16745_v10 = vsub.s32 3, %v16713_v18 }
 0x7ad   : > { %v5938_v54 = vmul.f32 %v9178_v15, %v16744_v27 }
 0x7ae   : > { %v5897_v42 = vrot.slane %v14244_v62, %v16745_v10  ;;  %v16767_v10 = vld [vmem:[#allocation29_spill] sm:$0xff] }
 0x7b0   : > { %6247 = vperm.xlu0 %8408, %v5944_v22   ;;  %6199 = vperm.xlu1 %8407, %v5927_v17   ;;  %v16746_v22 = vld [vmem:[#allocation37_spill] sm:$0xff]  ;;  %v16747_v17 = vld [vmem:[#allocation44_spill] sm:$0xff]  ;;  %9183 = vrcp.f32 %v5897_v42 }
 0x7b1   : > { %v5965_v34 = vmul.f32 %v14285_v21, %v16746_v22  ;;  %v5941_v19 = vmul.f32 %v14256_v44, %v16747_v17  ;;  %v16768_v22 = vld [vmem:[#allocation26_spill] sm:$0xff]  ;;  %v16769_v17 = vld [vmem:[#allocation31_spill] sm:$0xff] }
 0x7b4   : > { %6253 = vperm.xlu0 %8408, %v5946_v4   ;;  %6202 = vperm.xlu1 %8407, %v5928_v5   ;;  %v16748_v4 = vld [vmem:[#allocation52_spill] sm:$0xff] }
 0x7b5   : > { %v5967_v1 = vmul.f32 %v14285_v21, %v16748_v4  ;;  %v16749_v5 = vld [vmem:[#allocation24_spill] sm:$0xff] }
 0x7b6   : > { %v5943_v15 = vmul.f32 %v14256_v44, %v16749_v5  ;;  %v16770_v4 = vld [vmem:[#allocation48_spill] sm:$0xff] }
 0x7b8   : > { %6259 = vperm.xlu0 %8408, %v5948_v41   ;;  %6205 = vperm.xlu1 %8407, %v5929_v29   ;;  %v5945_v41 = vmul.f32 %v14256_v44, %v16751_v61  ;;  %v5971_v29 = vmul.f32 %v14285_v21, %v16752_v0 }
 0x7ba   : > { %v14318_v32 = vpop.eup %9183 }
 0x7bb   : > { %v5986_v42 = vmul.f32 %v14318_v32, %v16767_v10 }
 0x7bc   : > { %6265 = vperm.xlu0 %8408, %v5950_v37   ;;  %6208 = vperm.xlu1 %8407, %v5930_v36   ;;  %v5947_v37 = vmul.f32 %v14256_v44, %v16753_v46  ;;  %v16754_v36 = vld [vmem:[#allocation54_spill] sm:$0xff] }
 0x7bd   : > { %v5974_v25 = vmul.f32 %v14318_v32, %v16754_v36 }
 0x7c0   : > { %6271 = vperm.xlu0 %8408, %v5952_v38   ;;  %6214 = vperm.xlu1 %8407, %v5932_v52   ;;  %v16755_v38 = vld [vmem:[#allocation50_spill] sm:$0xff] }
 0x7c1   : > { %v5949_v33 = vmul.f32 %v14256_v44, %v16755_v38  ;;  %v16756_v52 = vld [vmem:[#allocation34_spill] sm:$0xff] }
 0x7c2   : > { %v5976_v7 = vmul.f32 %v14318_v32, %v16756_v52 }
 0x7c4   : > { %6277 = vperm.xlu0 %8408, %v5954_v45   ;;  %6217 = vperm.xlu1 %8407, %v5933_v11   ;;  %v16757_v45 = vld [vmem:[#allocation19_spill] sm:$0xff]  ;;  %v16758_v11 = vld [vmem:[#allocation56_spill] sm:$0xff] }
 0x7c5   : > { %v5951_v57 = vmul.f32 %v14256_v44, %v16757_v45  ;;  %v5978_v53 = vmul.f32 %v14318_v32, %v16758_v11 }
 0x7c8   : > { %6283 = vperm.xlu0 %8408, %v5957_v55   ;;  %6220 = vperm.xlu1 %8407, %v5934_v39   ;;  %v16759_v55 = vld [vmem:[#allocation95_spill] sm:$0xff] }
 0x7c9   : > { %v5953_v16 = vmul.f32 %v14256_v44, %v16759_v55  ;;  %v16760_v39 = vld [vmem:[#allocation59_spill] sm:$0xff] }
 0x7ca   : > { %v5980_v9 = vmul.f32 %v14318_v32, %v16760_v39 }
 0x7cc   : > { %6289 = vperm.xlu0 %8408, %v5959_v13   ;;  %6223 = vperm.xlu1 %8407, %v5935_v40   ;;  %v16761_v13 = vld [vmem:[#allocation96_spill] sm:$0xff]  ;;  %v16762_v40 = vsub.s32 4, %v16713_v18 }
 0x7cd   : > { %v5955_v12 = vmul.f32 %v14256_v44, %v16761_v13 }
 0x7ce   : > { %v5901_v14 = vrot.slane %v14244_v62, %v16762_v40  ;;  %v16784_v40 = vld [vmem:[#allocation57_spill] sm:$0xff] }
 0x7d0   : > { %6295 = vperm.xlu0 %8408, %v5961_v28   ;;  %6226 = vperm.xlu1 %8407, %v5936_v31   ;;  %v16763_v28 = vld [vmem:[#allocation49_spill] sm:$0xff]  ;;  %v16764_v31 = vld [vmem:[#allocation43_spill] sm:$0xff]  ;;  %9185 = vrcp.f32 %v5901_v14 }
 0x7d1   : > { %v5982_v43 = vmul.f32 %v14318_v32, %v16763_v28  ;;  %v5958_v6 = vmul.f32 %v14285_v21, %v16764_v31  ;;  %v16785_v31 = vld [vmem:[#allocation79_spill] sm:$0xff] }
 0x7d4   : > { %6301 = vperm.xlu0 %8408, %v5963_v56   ;;  %6232 = vperm.xlu1 %8407, %v5938_v54   ;;  %v16765_v56 = vld [vmem:[#allocation51_spill] sm:$0xff] }
 0x7d5   : > { %v5984_v27 = vmul.f32 %v14318_v32, %v16765_v56  ;;  %v16766_v54 = vld [vmem:[#allocation23_spill] sm:$0xff]  ;;  %v16786_v56 = vld [vmem:[#allocation74_spill] sm:$0xff] }
 0x7d6   : > { %v5960_v44 = vmul.f32 %v14285_v21, %v16766_v54 }
 0x7d8   : > { %6307 = vperm.xlu0 %8408, %v5965_v34   ;;  %6238 = vperm.xlu1 %8407, %v5941_v19   ;;  %v5962_v34 = vmul.f32 %v14285_v21, %v16768_v22  ;;  %v5988_v19 = vmul.f32 %v14318_v32, %v16769_v17 }
 0x7da   : > { %v14355_v5 = vpop.eup %9185 }
 0x7db   : > { %v6003_v14 = vmul.f32 %v14355_v5, %v16784_v40 }
 0x7dc   : > { %6313 = vperm.xlu0 %8408, %v5967_v1   ;;  %6244 = vperm.xlu1 %8407, %v5943_v15   ;;  %v5964_v1 = vmul.f32 %v14285_v21, %v16770_v4  ;;  %v16771_v15 = vld [vmem:[#allocation33_spill] sm:$0xff] }
 0x7dd   : > { %v5991_v20 = vmul.f32 %v14355_v5, %v16771_v15 }
 0x7e0   : > { %6319 = vperm.xlu0 %8408, %v5969_v26   ;;  %6250 = vperm.xlu1 %8407, %v5945_v41   ;;  %v16772_v26 = vld [vmem:[#allocation87_spill] sm:$0xff]  ;;  %v16773_v41 = vld [vmem:[#allocation58_spill] sm:$0xff] }
 0x7e1   : > { %v5966_v61 = vmul.f32 %v14285_v21, %v16772_v26  ;;  %v5993_v0 = vmul.f32 %v14355_v5, %v16773_v41 }
 0x7e4   : > { %6325 = vperm.xlu0 %8408, %v5971_v29   ;;  %6256 = vperm.xlu1 %8407, %v5947_v37   ;;  %v16774_v29 = vld [vmem:[#allocation89_spill] sm:$0xff]  ;;  %v16775_v37 = vld [vmem:[#allocation86_spill] sm:$0xff] }
 0x7e5   : > { %v5968_v46 = vmul.f32 %v14285_v21, %v16774_v29  ;;  %v5995_v36 = vmul.f32 %v14355_v5, %v16775_v37 }
 0x7e8   : > { %6331 = vperm.xlu0 %8408, %v5974_v25   ;;  %6262 = vperm.xlu1 %8407, %v5949_v33   ;;  %v16776_v25 = vld [vmem:[#allocation91_spill] sm:$0xff]  ;;  %v16777_v33 = vld [vmem:[#allocation88_spill] sm:$0xff] }
 0x7e9   : > { %v5970_v38 = vmul.f32 %v14285_v21, %v16776_v25  ;;  %v5997_v52 = vmul.f32 %v14355_v5, %v16777_v33 }
 0x7ec   : > { %6337 = vperm.xlu0 %8408, %v5976_v7   ;;  %6268 = vperm.xlu1 %8407, %v5951_v57   ;;  %v16778_v7 = vld [vmem:[#allocation53_spill] sm:$0xff]  ;;  %v16779_v57 = vsub.s32 5, %v16713_v18 }
 0x7ed   : > { %v5972_v45 = vmul.f32 %v14285_v21, %v16778_v7 }
 0x7ee   : > { %v5905_v11 = vrot.slane %v14244_v62, %v16779_v57 }
 0x7f0   : > { %6343 = vperm.xlu0 %8408, %v5978_v53   ;;  %6274 = vperm.xlu1 %8407, %v5953_v16   ;;  %v16780_v53 = vld [vmem:[#allocation90_spill] sm:$0xff]  ;;  %v16781_v16 = vld [vmem:[#allocation55_spill] sm:$0xff]  ;;  %9187 = vrcp.f32 %v5905_v11  ;;  %v16796_v11 = vld [vmem:[#allocation105_spill] sm:$0xff] }
 0x7f1   : > { %v5999_v55 = vmul.f32 %v14355_v5, %v16780_v53  ;;  %v5975_v39 = vmul.f32 %v14318_v32, %v16781_v16  ;;  %v5989_v53 = vmul.f32 %v14318_v32, %v16796_v11 }
 0x7f4   : > { %6349 = vperm.xlu0 %8408, %v5980_v9   ;;  %6280 = vperm.xlu1 %8407, %v5955_v12   ;;  %v16782_v9 = vld [vmem:[#allocation35_spill] sm:$0xff] }
 0x7f5   : > { %v6001_v13 = vmul.f32 %v14355_v5, %v16782_v9  ;;  %v16783_v12 = vld [vmem:[#allocation75_spill] sm:$0xff] }
 0x7f6   : > { %v5977_v21 = vmul.f32 %v14318_v32, %v16783_v12 }
 0x7f8   : > { %6355 = vperm.xlu0 %8408, %v5982_v43   ;;  %6286 = vperm.xlu1 %8407, %v5958_v6   ;;  %v5979_v6 = vmul.f32 %v14318_v32, %v16785_v31 }
 0x7fa   : > { %v14394_v54 = vpop.eup %9187 }
 0x7fc   : > { %6361 = vperm.xlu0 %8408, %v5984_v27   ;;  %6292 = vperm.xlu1 %8407, %v5960_v44   ;;  %v6005_v27 = vmul.f32 %v14355_v5, %v16786_v56  ;;  %v16801_v56 = vld [vmem:[#allocation109_spill] sm:$0xff] }
 0x800   : > { %6367 = vperm.xlu0 %8408, %v5986_v42   ;;  %6298 = vperm.xlu1 %8407, %v5962_v34   ;;  %v16788_v42 = vld [vmem:[#allocation82_spill] sm:$0xff] }
 0x801   : > { %v5981_v22 = vmul.f32 %v14318_v32, %v16788_v42  ;;  %v16789_v34 = vld [vmem:[#allocation78_spill] sm:$0xff]  ;;  %v16802_v42 = vld [vmem:[#allocation121_spill] sm:$0xff] }
 0x802   : > { %v6008_v17 = vmul.f32 %v14394_v54, %v16789_v34 }
 0x804   : > { %6373 = vperm.xlu0 %8408, %v5988_v19   ;;  %6304 = vperm.xlu1 %8407, %v5964_v1   ;;  %v16790_v1 = vld [vmem:[#allocation11_spill] sm:$0xff] }
 0x805   : > { %v5983_v15 = vmul.f32 %v14318_v32, %v16790_v1  ;;  %v16803_v1 = vld [vmem:[#allocation14_spill] sm:$0xff] }
 0x808   : > { %6379 = vperm.xlu0 %8408, %v5991_v20   ;;  %6310 = vperm.xlu1 %8407, %v5966_v61   ;;  %v16791_v20 = vld [vmem:[#allocation81_spill] sm:$0xff] }
 0x809   : > { %v6010_v26 = vmul.f32 %v14394_v54, %v16791_v20  ;;  %v16804_v20 = vsub.s32 7, %v16713_v18 }
 0x80c   : > { %6385 = vperm.xlu0 %8408, %v5993_v0   ;;  %6316 = vperm.xlu1 %8407, %v5968_v46   ;;  %v16792_v0 = vld [vmem:[#allocation16_spill] sm:$0xff] }
 0x80d   : > { %v5985_v29 = vmul.f32 %v14318_v32, %v16792_v0  ;;  %v16793_v46 = vld [vmem:[#allocation84_spill] sm:$0xff]  ;;  %v16805_v0 = vld [vmem:[#allocation123_spill] sm:$0xff] }
 0x80e   : > { %v6012_v37 = vmul.f32 %v14394_v54, %v16793_v46 }
 0x810   : > { %6391 = vperm.xlu0 %8408, %v5995_v36   ;;  %6322 = vperm.xlu1 %8407, %v5970_v38   ;;  %v16794_v38 = vld [vmem:[#allocation42_spill] sm:$0xff] }
 0x811   : > { %v5987_v33 = vmul.f32 %v14318_v32, %v16794_v38  ;;  %v16800_v32 = vld [vmem:[#allocation119_spill] sm:$0xff] }
 0x814   : > { %6397 = vperm.xlu0 %8408, %v5997_v52   ;;  %6328 = vperm.xlu1 %8407, %v5972_v45   ;;  %v16795_v52 = vld [vmem:[#allocation15_spill] sm:$0xff] }
 0x815   : > { %v6014_v7 = vmul.f32 %v14394_v54, %v16795_v52 }
 0x818   : > { %6403 = vperm.xlu0 %8408, %v5999_v55   ;;  %6334 = vperm.xlu1 %8407, %v5975_v39   ;;  %v16797_v55 = vsub.s32 6, %v16713_v18  ;;  %v16798_v39 = vld [vmem:[#allocation28_spill] sm:$0xff] }
 0x819   : > { %v6016_v9 = vmul.f32 %v14394_v54, %v16798_v39 }
 0x81a   : > { %v5909_v16 = vrot.slane %v14244_v62, %v16797_v55 }
 0x81c   : > { %6409 = vperm.xlu0 %8408, %v6001_v13   ;;  %6340 = vperm.xlu1 %8407, %v5977_v21   ;;  %v16799_v21 = vld [vmem:[#allocation107_spill] sm:$0xff]  ;;  %9189 = vrcp.f32 %v5909_v16  ;;  %v16809_v16 = vld [vmem:[#allocation128_spill] sm:$0xff] }
 0x81d   : > { %v5992_v40 = vmul.f32 %v14355_v5, %v16799_v21 }
 0x81f   : > { %v14386_v28 = vpop.permute.xlu0 %6211  ;;  %v14388_v43 = vpop.permute.xlu1 %6187 }
 0x820   : > { %6415 = vperm.xlu0 %8408, %v6003_v14   ;;  %6346 = vperm.xlu1 %8407, %v5979_v6   ;;  %v6018_v14 = vmul.f32 %v14394_v54, %v16800_v32 }
 0x823   : > { %v14396_v44 = vpop.permute.xlu0 %6229  ;;  %v14398_v10 = vpop.permute.xlu1 %6190 }
 0x824   : > { %16787 = vst [vmem:[#allocation117_spill] sm:$0xff] %v14396_v44  ;;  %6421 = vperm.xlu0 %8408, %v6005_v27   ;;  %6352 = vperm.xlu1 %8407, %v5981_v22   ;;  %v5994_v27 = vmul.f32 %v14355_v5, %v16801_v56  ;;  %v6020_v22 = vmul.f32 %v14394_v54, %v16802_v42 }
 0x826   : > { %v14466_v46 = vpop.eup %9189 }
 0x827   : > { %v14404_v19 = vpop.permute.xlu0 %6235  ;;  %v14406_v4 = vpop.permute.xlu1 %6193  ;;  %v6027_v39 = vmul.f32 %v14466_v46, %v16809_v16  ;;  %v7229_v16 = vld [vmem:[%s9564_s15 + $0x90] sm:$0xff] }
 0x828   : > { %6427 = vperm.xlu0 %8408, %v6008_v17   ;;  %6358 = vperm.xlu1 %8407, %v5983_v15   ;;  %v5996_v15 = vmul.f32 %v14355_v5, %v16803_v1  ;;  %v16813_v1 = vld [vmem:[#allocation130_spill] sm:$0xff] }
 0x82b   : > { %v14412_v61 = vpop.permute.xlu0 %6241  ;;  %v14414_v41 = vpop.permute.xlu1 %6196 }
 0x82c   : > { %6433 = vperm.xlu0 %8408, %v6010_v26   ;;  %6364 = vperm.xlu1 %8407, %v5985_v29   ;;  %v5913_v26 = vrot.slane %v14244_v62, %v16804_v20  ;;  %v6022_v29 = vmul.f32 %v14394_v54, %v16805_v0  ;;  %v16814_v20 = vld [vmem:[#allocation159_spill] sm:$0xff] }
 0x82e   : > { %9191 = vrcp.f32 %v5913_v26 }
 0x82f   : > { %v14420_v36 = vpop.permute.xlu0 %6247  ;;  %v14422_v25 = vpop.permute.xlu1 %6199 }
 0x830   : > { %6439 = vperm.xlu0 %8408, %v6012_v37   ;;  %6370 = vperm.xlu1 %8407, %v5987_v33   ;;  %v16806_v33 = vld [vmem:[#allocation38_spill] sm:$0xff] }
 0x831   : > { %v5998_v52 = vmul.f32 %v14355_v5, %v16806_v33  ;;  %v16817_v33 = vld [vmem:[#allocation132_spill] sm:$0xff] }
 0x833   : > { %v14428_v45 = vpop.permute.xlu0 %6253  ;;  %v14430_v57 = vpop.permute.xlu1 %6202 }
 0x834   : > { %6445 = vperm.xlu0 %8408, %v6014_v7   ;;  %6376 = vperm.xlu1 %8407, %v5989_v53   ;;  %v16807_v7 = vld [vmem:[#allocation126_spill] sm:$0xff]  ;;  %v16808_v53 = vld [vmem:[#allocation41_spill] sm:$0xff] }
 0x835   : > { %v6025_v18 = vmul.f32 %v14466_v46, %v16807_v7  ;;  %v6000_v55 = vmul.f32 %v14355_v5, %v16808_v53  ;;  %v7227_v7 = vld [vmem:[%s9564_s15 + $0x80] sm:$0xff]  ;;  %v16818_v53 = vld [vmem:[#allocation161_spill] sm:$0xff] }
 0x837   : > { %v14439_v13 = vpop.permute.xlu0 %6259  ;;  %v14441_v12 = vpop.permute.xlu1 %6205 }
 0x838   : > { %6451 = vperm.xlu0 %8408, %v6016_v9   ;;  %6382 = vperm.xlu1 %8407, %v5992_v40   ;;  %v16810_v40 = vld [vmem:[#allocation104_spill] sm:$0xff] }
 0x839   : > { %v6002_v32 = vmul.f32 %v14355_v5, %v16810_v40 }
 0x83b   : > { %v14447_v31 = vpop.permute.xlu0 %6265  ;;  %v14449_v6 = vpop.permute.xlu1 %6208 }
 0x83c   : > { %6457 = vperm.xlu0 %8408, %v6018_v14   ;;  %6388 = vperm.xlu1 %8407, %v5994_v27   ;;  %v16811_v14 = vld [vmem:[#allocation136_spill] sm:$0xff]  ;;  %v14492_v27 = vpop.eup %9191 }
 0x83d   : > { %v6029_v56 = vmul.f32 %v14466_v46, %v16811_v14  ;;  %v6043_v26 = vmul.f32 %v14492_v27, %v16814_v20  ;;  %v7485_v20 = vmul.f32 %v7229_v16, %v14412_v61  ;;  %v7231_v16 = vld [vmem:[%s9564_s15 + $0xa0] sm:$0xff] }
 0x83f   : > { %v14455_v34 = vpop.permute.xlu0 %6271  ;;  %v14457_v17 = vpop.permute.xlu1 %6214 }
 0x840   : > { %6463 = vperm.xlu0 %8408, %v6020_v22   ;;  %6394 = vperm.xlu1 %8407, %v5996_v15   ;;  %v6004_v15 = vmul.f32 %v14355_v5, %v16813_v1 }
 0x843   : > { %v14468_v37 = vpop.permute.xlu0 %6277  ;;  %v14470_v38 = vpop.permute.xlu1 %6217 }
 0x844   : > { %6469 = vperm.xlu0 %8408, %v6022_v29   ;;  %6400 = vperm.xlu1 %8407, %v5998_v52   ;;  %v6006_v52 = vmul.f32 %v14355_v5, %v16817_v33  ;;  %v7483_v5 = vmul.f32 %v7227_v7, %v14404_v19 }
 0x847   : > { %v14476_v62 = vpop.permute.xlu0 %6283  ;;  %v14478_v11 = vpop.permute.xlu1 %6220 }
 0x848   : > { %6475 = vperm.xlu0 %8408, %v6025_v18   ;;  %6406 = vperm.xlu1 %8407, %v6000_v55   ;;  %v7228_v18 = vld [vmem:[%s9564_s15 + $0x88] sm:$0xff]  ;;  %v6045_v55 = vmul.f32 %v14492_v27, %v16818_v53  ;;  %v16821_v53 = vld [vmem:[#allocation145_spill] sm:$0xff] }
 0x84b   : > { %v14484_v9 = vpop.permute.xlu0 %6289  ;;  %v14486_v21 = vpop.permute.xlu1 %6223 }
 0x84c   : > { %6481 = vperm.xlu0 %8408, %v6027_v39   ;;  %6412 = vperm.xlu1 %8407, %v6002_v32   ;;  %v16820_v32 = vld [vmem:[#allocation134_spill] sm:$0xff] }
 0x84d   : > { %v6009_v14 = vmul.f32 %v14394_v54, %v16820_v32  ;;  %v6030_v32 = vmul.f32 %v14466_v46, %v16821_v53  ;;  %v7232_v53 = vld [vmem:[%s9564_s15 + $0xa8] sm:$0xff] }
 0x84f   : > { %v14494_v42 = vpop.permute.xlu0 %6295  ;;  %v14496_v22 = vpop.permute.xlu1 %6226 }
 0x850   : > { %16812 = vst [vmem:[#allocation46_spill] sm:$0xff] %v14496_v22  ;;  %6487 = vperm.xlu0 %8408, %v6029_v56   ;;  %6418 = vperm.xlu1 %8407, %v6004_v15   ;;  %v6652_v56 = vrot.slane %v14404_v19, %v16618_v51  ;;  %v6661_v19 = vrot.slane %v14412_v61, %v16619_v23 }
 0x853   : > { %v14502_v0 = vpop.permute.xlu0 %6301  ;;  %v14504_v29 = vpop.permute.xlu1 %6232 }
 0x854   : > { %16815 = vst [vmem:[#allocation45_spill] sm:$0xff] %v14502_v0  ;;  %16816 = vst [vmem:[#allocation64_spill] sm:$0xff] %v14504_v29  ;;  %6526 = vperm.xlu0 %8408, %v6043_v26   ;;  %6424 = vperm.xlu1 %8407, %v6006_v52   ;;  %v7230_v52 = vld [vmem:[%s9564_s15 + $0x98] sm:$0xff] }
 0x857   : > { %v14513_v39 = vpop.permute.xlu0 %6307  ;;  %v6239_v40 = vpop.permute.xlu1 %6238 }
 0x858   : > { %16819 = vst [vmem:[#allocation25_spill] sm:$0xff] %v14513_v39  ;;  %v6656_v1 = vrot.slane %v6239_v40, %v16617_v47  ;;  %v7484_v15 = vmul.f32 %v7228_v18, %v6239_v40  ;;  %6532 = vperm.xlu0 %8408, %v6045_v55   ;;  %6430 = vperm.xlu1 %8407, %v6009_v14   ;;  %v16823_v55 = vld [vmem:[#allocation135_spill] sm:$0xff] }
 0x859   : > { %v6011_v40 = vmul.f32 %v14394_v54, %v16823_v55  ;;  %v7211_v39 = vld [vmem:[%s9564_s15] sm:$0xff]  ;;  %v7213_v55 = vld [vmem:[%s9564_s15 + $0x10] sm:$0xff] }
 0x85a   : > { %v6657_v26 = vsel %vm3632_vm1, %v6656_v1, %v6652_v56  ;;  %v7616_v33 = vadd.f32 %v7484_v15, %v7483_v5  ;;  %v7212_v5 = vld [vmem:[%s9564_s15 + $0x8] sm:$0xff] }
 0x85b   : > { %v14528_v7 = vpop.permute.xlu0 %6313  ;;  %v6245_v18 = vpop.permute.xlu1 %6244  ;;  %v6662_v1 = vsel %vm3639_vm2, %v6661_v19, %v6657_v26 }
 0x85c   : > { %16822 = vst [vmem:[#allocation63_spill] sm:$0xff] %v14528_v7  ;;  %v7617_v14 = vadd.f32 %v7616_v33, %v7485_v20  ;;  %v6666_v56 = vrot.slane %v6245_v18, %v16621_v48  ;;  %6490 = vperm.xlu0 %8408, %v6030_v32   ;;  %v7486_v15 = vmul.f32 %v7230_v52, %v6245_v18  ;;  %v16824_v7 = vld [vmem:[#allocation138_spill] sm:$0xff]  ;;  %v16826_v52 = vld [vmem:[#allocation137_spill] sm:$0xff] }
 0x85d   : > { %6436 = vperm.xlu1 %8407, %v6011_v40   ;;  %v6031_v29 = vmul.f32 %v14466_v46, %v16824_v7  ;;  %v6671_v20 = vrot.slane %v14420_v36, %v16623_v59  ;;  %v7487_v33 = vmul.f32 %v7231_v16, %v14420_v36  ;;  %v6013_v19 = vmul.f32 %v14394_v54, %v16826_v52  ;;  %v7233_v40 = vld [vmem:[%s9564_s15 + $0xb0] sm:$0xff]  ;;  %v7234_v36 = vld [vmem:[%s9564_s15 + $0xb8] sm:$0xff]  ;;  %v16829_v52 = vld [vmem:[#allocation148_spill] sm:$0xff] }
 0x85e   : > { %v6667_v61 = vsel %vm3646_vm3, %v6666_v56, %v6662_v1  ;;  %v7618_v32 = vadd.f32 %v7617_v14, %v7486_v15  ;;  %v7468_v18 = vmul.f32 %v7212_v5, %v14398_v10  ;;  %v7214_v1 = vld [vmem:[%s9564_s15 + $0x18] sm:$0xff]  ;;  %v7467_v16 = vmul.f32 %v7211_v39, %v14388_v43  ;;  %v16831_v39 = vld [vmem:[#allocation139_spill] sm:$0xff] }
 0x85f   : > { %v14545_v44 = vpop.permute.xlu0 %6319  ;;  %v6251_v26 = vpop.permute.xlu1 %6250  ;;  %v6672_v0 = vsel %vm16827_vm13, %v6671_v20, %v6667_v61  ;;  %v7469_v14 = vmul.f32 %v7213_v55, %v14406_v4  ;;  %v6032_v5 = vmul.f32 %v14466_v46, %v16829_v52  ;;  %v6015_v55 = vmul.f32 %v14394_v54, %v16831_v39  ;;  %v7237_v39 = vld [vmem:[%s9564_s15 + $0xd0] sm:$0xff]  ;;  %vm16855_vm13 = vmmov %vm16828_vm4 }
 0x860   : > { %16825 = vst [vmem:[#allocation69_spill] sm:$0xff] %v14545_v44  ;;  %v6676_v7 = vrot.slane %v6251_v26, %v16624_v50  ;;  %v7488_v56 = vmul.f32 %v7232_v53, %v6251_v26  ;;  %6493 = vperm.xlu0 %8408, %v6031_v29   ;;  %v7619_v22 = vadd.f32 %v7618_v32, %v7487_v33  ;;  %v7215_v44 = vld [vmem:[%s9564_s15 + $0x20] sm:$0xff] }
 0x861   : > { %6442 = vperm.xlu1 %8407, %v6013_v19   ;;  %v6681_v29 = vrot.slane %v14428_v45, %v16625_v2  ;;  %v7489_v53 = vmul.f32 %v7233_v40, %v14428_v45  ;;  %v7595_v32 = vadd.f32 %v7468_v18, %v7467_v16  ;;  %v7235_v26 = vld [vmem:[%s9564_s15 + $0xc0] sm:$0xff] }
 0x862   : > { %v6677_v15 = vsel %vm16828_vm4, %v6676_v7, %v6672_v0  ;;  %v7620_v61 = vadd.f32 %v7619_v22, %v7488_v56  ;;  %v7470_v0 = vmul.f32 %v7214_v1, %v14414_v41  ;;  %v7236_v22 = vld [vmem:[%s9564_s15 + $0xc8] sm:$0xff]  ;;  %v7471_v56 = vmul.f32 %v7215_v44, %v14422_v25  ;;  %v16833_v16 = vld [vmem:[#allocation39_spill] sm:$0xff]  ;;  %vm16856_vm4 = vmmov %vm16832_vm5 }
 0x863   : > { %v14564_v20 = vpop.permute.xlu0 %6325  ;;  %v6257_v33 = vpop.permute.xlu1 %6256  ;;  %v6682_v52 = vsel %vm16832_vm5, %v6681_v29, %v6677_v15  ;;  %v7596_v40 = vadd.f32 %v7595_v32, %v7469_v14  ;;  %v6033_v1 = vmul.f32 %v14466_v46, %v16833_v16  ;;  %v7491_v15 = vmul.f32 %v7235_v26, %v14439_v13  ;;  %v16835_v14 = vld [vmem:[#allocation68_spill] sm:$0xff]  ;;  %vm16858_vm5 = vmmov %vm16853_vm0 }
 0x864   : > { %16830 = vst [vmem:[#allocation67_spill] sm:$0xff] %v14564_v20  ;;  %v6686_v19 = vrot.slane %v6257_v33, %v16627_v49  ;;  %v7490_v7 = vmul.f32 %v7234_v36, %v6257_v33  ;;  %6496 = vperm.xlu0 %8408, %v6032_v5   ;;  %v7621_v45 = vadd.f32 %v7620_v61, %v7489_v53  ;;  %v7216_v20 = vld [vmem:[%s9564_s15 + $0x28] sm:$0xff]  ;;  %v7217_v33 = vld [vmem:[%s9564_s15 + $0x30] sm:$0xff] }
 0x865   : > { %6448 = vperm.xlu1 %8407, %v6015_v55   ;;  %v6691_v36 = vrot.slane %v14439_v13, %v16628_v8  ;;  %v6017_v44 = vmul.f32 %v14394_v54, %v16835_v14  ;;  %v7597_v61 = vadd.f32 %v7596_v40, %v7470_v0  ;;  %v16836_v14 = vld [vmem:[#allocation150_spill] sm:$0xff] }
 0x866   : > { %v6687_v18 = vsel %vm3674_vm7, %v6686_v19, %v6682_v52  ;;  %v7622_v5 = vadd.f32 %v7621_v45, %v7490_v7  ;;  %v7472_v19 = vmul.f32 %v7216_v20, %v14430_v57  ;;  %v7238_v7 = vld [vmem:[%s9564_s15 + $0xd8] sm:$0xff]  ;;  %v6034_v0 = vmul.f32 %v14466_v46, %v16836_v14 }
 0x867   : > { %v14581_v29 = vpop.permute.xlu0 %6331  ;;  %v6263_v53 = vpop.permute.xlu1 %6262  ;;  %v6692_v13 = vsel %vm3681_vm8, %v6691_v36, %v6687_v18  ;;  %v7598_v52 = vadd.f32 %v7597_v61, %v7471_v56  ;;  %v7218_v45 = vld [vmem:[%s9564_s15 + $0x38] sm:$0xff]  ;;  %v6701_v20 = vrot.slane %v14447_v31, %v16636_v58  ;;  %v7493_v18 = vmul.f32 %v7237_v39, %v14447_v31  ;;  %v16838_v39 = vld [vmem:[#allocation60_spill] sm:$0xff] }
 0x868   : > { %16834 = vst [vmem:[#allocation70_spill] sm:$0xff] %v14581_v29  ;;  %v6696_v55 = vrot.slane %v6263_v53, %v16633_v24  ;;  %v7492_v32 = vmul.f32 %v7236_v22, %v6263_v53  ;;  %6499 = vperm.xlu0 %8408, %v6033_v1   ;;  %v7623_v26 = vadd.f32 %v7622_v5, %v7491_v15  ;;  %v16837_v40 = vld [vmem:[#allocation118_spill] sm:$0xff]  ;;  %v7239_v15 = vld [vmem:[%s9564_s15 + $0xe0] sm:$0xff] }
 0x869   : > { %6454 = vperm.xlu1 %8407, %v6017_v44   ;;  %v6019_v29 = vmul.f32 %v14394_v54, %v16837_v40  ;;  %v7473_v22 = vmul.f32 %v7217_v33, %v14441_v12  ;;  %v7599_v44 = vadd.f32 %v7598_v52, %v7472_v19  ;;  %v7474_v61 = vmul.f32 %v7218_v45, %v14449_v6  ;;  %v7241_v40 = vld [vmem:[%s9564_s15 + $0xf0] sm:$0xff] }
 0x86a   : > { %v6697_v16 = vsel %vm3688_vm9, %v6696_v55, %v6692_v13  ;;  %v7624_v1 = vadd.f32 %v7623_v26, %v7492_v32  ;;  %v7240_v13 = vld [vmem:[%s9564_s15 + $0xe8] sm:$0xff]  ;;  %v6035_v32 = vmul.f32 %v14466_v46, %v16838_v39  ;;  %v6711_v19 = vrot.slane %v14455_v34, %v12493_v60 }
 0x86b   : > { %v14601_v36 = vpop.permute.xlu0 %6337  ;;  %v6269_v56 = vpop.permute.xlu1 %6268  ;;  %v6702_v33 = vsel %vm3695_vm10, %v6701_v20, %v6697_v16  ;;  %v16839_v26 = vld [vmem:[#allocation140_spill] sm:$0xff]  ;;  %v7495_v52 = vmul.f32 %v7239_v15, %v14455_v34 }
 0x86c   : > { %v6706_v5 = vrot.slane %v6269_v56, %v16635_v35  ;;  %v7494_v53 = vmul.f32 %v7238_v7, %v6269_v56  ;;  %6502 = vperm.xlu0 %8408, %v6034_v0   ;;  %v7625_v55 = vadd.f32 %v7624_v1, %v7493_v18  ;;  %v6021_v14 = vmul.f32 %v14394_v54, %v16839_v26  ;;  %v7219_v0 = vld [vmem:[%s9564_s15 + $0x40] sm:$0xff]  ;;  %v16841_v15 = vld [vmem:[#allocation152_spill] sm:$0xff] }
 0x86d   : > { %6460 = vperm.xlu1 %8407, %v6019_v29   ;;  %v7600_v7 = vadd.f32 %v7599_v44, %v7473_v22  ;;  %v7220_v44 = vld [vmem:[%s9564_s15 + $0x48] sm:$0xff] }
 0x86e   : > { %v6707_v31 = vsel %vm3702_vm11, %v6706_v5, %v6702_v33  ;;  %v7626_v45 = vadd.f32 %v7625_v55, %v7494_v53  ;;  %v7242_v5 = vld [vmem:[%s9564_s15 + $0xf8] sm:$0xff]  ;;  %v6036_v53 = vmul.f32 %v14466_v46, %v16841_v15  ;;  %v16842_v33 = vld [vmem:[#allocation141_spill] sm:$0xff] }
 0x86f   : > { %v14616_v16 = vpop.permute.xlu0 %6343  ;;  %v6275_v29 = vpop.permute.xlu1 %6274  ;;  %v7601_v1 = vadd.f32 %v7600_v7, %v7474_v61  ;;  %v6712_v22 = vsel %vm3709_vm12, %v6711_v19, %v6707_v31  ;;  %v6023_v55 = vmul.f32 %v14394_v54, %v16842_v33  ;;  %v6721_v61 = vrot.slane %v14468_v37, %v12598_v63  ;;  %v16846_v33 = vld [vmem:[#allocation154_spill] sm:$0xff] }
 0x870   : > { %v6716_v20 = vrot.slane %v6275_v29, %v12490_v30  ;;  %v7496_v18 = vmul.f32 %v7240_v13, %v6275_v29  ;;  %6505 = vperm.xlu0 %8408, %v6035_v32   ;;  %v7627_v56 = vadd.f32 %v7626_v45, %v7495_v52  ;;  %v7475_v13 = vmul.f32 %v7219_v0, %v14386_v28  ;;  %v7243_v45 = vld [vmem:[%s9564_s15 + $0x100] sm:$0xff] }
 0x871   : > { %6466 = vperm.xlu1 %8407, %v6021_v14   ;;  %v7497_v31 = vmul.f32 %v7241_v40, %v14468_v37  ;;  %v7221_v14 = vld [vmem:[%s9564_s15 + $0x50] sm:$0xff]  ;;  %v7476_v52 = vmul.f32 %v7220_v44, %v14457_v17  ;;  %v7244_v37 = vld [vmem:[%s9564_s15 + $0x108] sm:$0xff] }
 0x872   : > { %v6717_v34 = vsel %vm16840_vm6, %v6716_v20, %v6712_v22  ;;  %v7628_v39 = vadd.f32 %v7627_v56, %v7496_v18  ;;  %v7602_v54 = vadd.f32 %v7601_v1, %v7475_v13  ;;  %v16843_v20 = vld [vmem:[#allocation85_spill] sm:$0xff]  ;;  %v16844_v22 = vld [vmem:[#allocation124_spill] sm:$0xff]  ;;  %v7477_v1 = vmul.f32 %v7221_v14, %v14470_v38  ;;  %v16847_v13 = vld [vmem:[#allocation143_spill] sm:$0xff] }
 0x873   : > { %v14633_v32 = vpop.permute.xlu0 %6349  ;;  %v6281_v26 = vpop.permute.xlu1 %6280  ;;  %v6722_v29 = vsel %vm3723_vm14, %v6721_v61, %v6717_v34  ;;  %v6037_v18 = vmul.f32 %v14466_v46, %v16843_v20  ;;  %v6026_v56 = vmul.f32 %v14466_v46, %v16844_v22  ;;  %v7245_v44 = vld [vmem:[%s9564_s15 + $0x110] sm:$0xff]  ;;  %v6028_v61 = vmul.f32 %v14466_v46, %v16847_v13  ;;  %v16849_v22 = vld [vmem:[#allocation94_spill] sm:$0xff]  ;;  %vm16859_vm6 = vmmov %vm16855_vm13 }
 0x874   : > { %v6726_v7 = vrot.slane %v6281_v26, %v16642_v3  ;;  %v7498_v19 = vmul.f32 %v7242_v5, %v6281_v26  ;;  %6508 = vperm.xlu0 %8408, %v6036_v53   ;;  %v7629_v0 = vadd.f32 %v7628_v39, %v7497_v31  ;;  %v7222_v5 = vld [vmem:[%s9564_s15 + $0x58] sm:$0xff]  ;;  %v6731_v31 = vrot.slane %v14476_v62, %v16618_v51 }
 0x875   : > { %6472 = vperm.xlu1 %8407, %v6023_v55   ;;  %v6038_v55 = vmul.f32 %v14466_v46, %v16846_v33  ;;  %v7499_v39 = vmul.f32 %v7243_v45, %v14476_v62  ;;  %v6042_v33 = vmul.f32 %v14492_v27, %v16849_v22  ;;  %v7478_v62 = vmul.f32 %v7222_v5, %v14478_v11  ;;  %v16851_v5 = vld [vmem:[#allocation127_spill] sm:$0xff] }
 0x876   : > { %v14642_v40 = vsel %vm3730_vm15, %v6726_v7, %v6722_v29  ;;  %v14651_v15 = vadd.f32 %v7629_v0, %v7498_v19  ;;  %v7603_v7 = vadd.f32 %v7602_v54, %v7476_v52  ;;  %v6740_v19 = vrot.slane %v14484_v9, %v16619_v23  ;;  %v7223_v29 = vld [vmem:[%s9564_s15 + $0x60] sm:$0xff]  ;;  %v16848_v0 = vld [vmem:[#allocation97_spill] sm:$0xff]  ;;  %v7246_v54 = vld [vmem:[%s9564_s15 + $0x118] sm:$0xff] }
 0x877   : > { %v14653_v34 = vpop.permute.xlu0 %6355  ;;  %v6287_v53 = vpop.permute.xlu1 %6286  ;;  %v6039_v20 = vmul.f32 %v14466_v46, %v16848_v0  ;;  %v7501_v45 = vmul.f32 %v7245_v44, %v14484_v9  ;;  %v6577_v52 = vrot.slane %v14398_v10, %v16617_v47  ;;  %v6044_v9 = vmul.f32 %v14492_v27, %v16851_v5 }
 0x878   : > { %16845 = vst [vmem:[#allocation71_spill] sm:$0xff] %v14653_v34  ;;  %v6735_v26 = vrot.slane %v6287_v53, %v16617_v47  ;;  %v7500_v14 = vmul.f32 %v7244_v37, %v6287_v53  ;;  %6511 = vperm.xlu0 %8408, %v6037_v18   ;;  %v7224_v53 = vld [vmem:[%s9564_s15 + $0x68] sm:$0xff]  ;;  %v16850_v34 = vld [vmem:[#allocation157_spill] sm:$0xff]  ;;  %v7604_v44 = vadd.f32 %v7603_v7, %v7477_v1 }
 0x879   : > { %6478 = vperm.xlu1 %8407, %v6026_v56   ;;  %v6040_v22 = vmul.f32 %v14466_v46, %v16850_v34  ;;  %v6750_v46 = vrot.slane %v14494_v42, %v16623_v59  ;;  %v7248_v1 = vld [vmem:[%s9564_s15 + $0x128] sm:$0xff]  ;;  %v6587_v7 = vrot.slane %v14414_v41, %v16621_v48  ;;  %v6592_v41 = vrot.slane %v14422_v25, %v16623_v59  ;;  %v7250_v25 = vld [vmem:[%s9564_s15 + $0x138] sm:$0xff] }
 0x87a   : > { %v6736_v37 = vsel %vm3632_vm1, %v6735_v26, %v6731_v31  ;;  %v7637_v18 = vadd.f32 %v7500_v14, %v7499_v39  ;;  %v7479_v31 = vmul.f32 %v7223_v29, %v14486_v21  ;;  %v7247_v39 = vld [vmem:[%s9564_s15 + $0x120] sm:$0xff]  ;;  %v6573_v14 = vrot.slane %v14388_v43, %v16618_v51 }
 0x87b   : > { %v14677_v56 = vpop.permute.xlu0 %6361  ;;  %v6741_v13 = vsel %vm3639_vm2, %v6740_v19, %v6736_v37  ;;  %v6293_v0 = vpop.permute.xlu1 %6292  ;;  %v6582_v19 = vrot.slane %v14406_v4, %v16619_v23  ;;  %v7605_v29 = vadd.f32 %v7604_v44, %v7478_v62  ;;  %v7503_v4 = vmul.f32 %v7247_v39, %v14494_v42  ;;  %v7249_v62 = vld [vmem:[%s9564_s15 + $0x130] sm:$0xff] }
 0x87c   : > { %v7638_v26 = vadd.f32 %v7637_v18, %v7501_v45  ;;  %v6745_v10 = vrot.slane %v6293_v0, %v16621_v48  ;;  %6514 = vperm.xlu0 %8408, %v6038_v55   ;;  %v7502_v34 = vmul.f32 %v7246_v54, %v6293_v0  ;;  %v16852_v45 = vld [vmem:[#allocation46_spill] sm:$0xff]  ;;  %v6578_v43 = vsel %vm3632_vm1, %v6577_v52, %v6573_v14  ;;  %v7225_v52 = vld [vmem:[%s9564_s15 + $0x70] sm:$0xff] }
 0x87d   : > { %6484 = vperm.xlu1 %8407, %v6028_v61   ;;  %v7480_v55 = vmul.f32 %v7224_v53, %v16852_v45  ;;  %v7606_v0 = vadd.f32 %v7605_v29, %v7479_v31  ;;  %v6583_v42 = vsel %vm3639_vm2, %v6582_v19, %v6578_v43  ;;  %v6597_v44 = vrot.slane %v14430_v57, %v16624_v50  ;;  %v16854_v39 = vld [vmem:[#allocation45_spill] sm:$0xff] }
 0x87e   : > { %v6746_v37 = vsel %vm3646_vm3, %v6745_v10, %v6741_v13  ;;  %v7639_v18 = vadd.f32 %v7638_v26, %v7502_v34  ;;  %v6760_v26 = vrot.slane %v16854_v39, %v16625_v2  ;;  %v6588_v31 = vsel %vm3646_vm3, %v6587_v7, %v6583_v42  ;;  %v7226_v34 = vld [vmem:[%s9564_s15 + $0x78] sm:$0xff]  ;;  %v16857_v7 = vld [vmem:[#allocation117_spill] sm:$0xff]  ;;  %v16863_v42 = vld [vmem:[#allocation64_spill] sm:$0xff] }
 0x87f   : > { %v14700_v5 = vpop.permute.xlu0 %6367  ;;  %v6751_v61 = vsel %vm16853_vm0, %v6750_v46, %v6746_v37  ;;  %v6299_v54 = vpop.permute.xlu1 %6298  ;;  %v6602_v14 = vrot.slane %v14441_v12, %v16625_v2  ;;  %v7607_v46 = vadd.f32 %v7606_v0, %v7480_v55  ;;  %v6607_v19 = vrot.slane %v14449_v6, %v16627_v49  ;;  %v7251_v55 = vld [vmem:[%s9564_s15 + $0x140] sm:$0xff]  ;;  %vm16862_vm0 = vmmov %vm16856_vm4 }
 0x880   : > { %v6755_v53 = vrot.slane %v6299_v54, %v16624_v50  ;;  %v7504_v13 = vmul.f32 %v7248_v1, %v6299_v54  ;;  %6517 = vperm.xlu0 %8408, %v6039_v20   ;;  %v7640_v10 = vadd.f32 %v7639_v18, %v7503_v4  ;;  %v7505_v57 = vmul.f32 %v7249_v62, %v16854_v39  ;;  %v7252_v62 = vld [vmem:[%s9564_s15 + $0x148] sm:$0xff] }
 0x881   : > { %6523 = vperm.xlu1 %8407, %v6042_v33   ;;  %v7481_v43 = vmul.f32 %v7225_v52, %v16857_v7  ;;  %v6593_v12 = vsel %vm16858_vm5, %v6592_v41, %v6588_v31  ;;  %v7482_v39 = vmul.f32 %v7226_v34, %v16863_v42  ;;  %v6617_v34 = vrot.slane %v14457_v17, %v16633_v24 }
 0x882   : > { %v6756_v20 = vsel %vm16855_vm13, %v6755_v53, %v6751_v61  ;;  %v7641_v1 = vadd.f32 %v7640_v10, %v7504_v13  ;;  %v6598_v6 = vsel %vm16859_vm6, %v6597_v44, %v6593_v12  ;;  %v16860_v61 = vld [vmem:[#allocation25_spill] sm:$0xff]  ;;  %v16861_v53 = vld [vmem:[#allocation144_spill] sm:$0xff]  ;;  %v6627_v17 = vrot.slane %v14478_v11, %v16635_v35 }
 0x883   : > { %v14722_v29 = vpop.permute.xlu0 %6373  ;;  %v6761_v33 = vsel %vm16856_vm4, %v6760_v26, %v6756_v20  ;;  %v6305_v37 = vpop.permute.xlu1 %6304  ;;  %v6770_v54 = vrot.slane %v16860_v61, %v16628_v8  ;;  %v6046_v13 = vmul.f32 %v14492_v27, %v16861_v53  ;;  %v6603_v52 = vsel %vm16862_vm0, %v6602_v14, %v6598_v6  ;;  %v7253_v14 = vld [vmem:[%s9564_s15 + $0x150] sm:$0xff] }
 0x884   : > { %v6765_v4 = vrot.slane %v6305_v37, %v16627_v49  ;;  %v7506_v18 = vmul.f32 %v7250_v25, %v6305_v37  ;;  %6520 = vperm.xlu0 %8408, %v6040_v22   ;;  %v7642_v0 = vadd.f32 %v7641_v1, %v7505_v57  ;;  %v7608_v41 = vadd.f32 %v7607_v46, %v7481_v43  ;;  %v7254_v37 = vld [vmem:[%s9564_s15 + $0x158] sm:$0xff]  ;;  %v16865_v43 = vld [vmem:[#allocation163_spill] sm:$0xff] }
 0x885   : > { %6529 = vperm.xlu1 %8407, %v6044_v9   ;;  %v6608_v44 = vsel %vm3674_vm7, %v6607_v19, %v6603_v52  ;;  %v7507_v26 = vmul.f32 %v7251_v55, %v16860_v61  ;;  %v6612_v20 = vrot.slane %v14386_v28, %v16628_v8  ;;  %v16864_v19 = vld [vmem:[#allocation63_spill] sm:$0xff]  ;;  %v6047_v12 = vmul.f32 %v14492_v27, %v16865_v43 }
 0x886   : > { %v6766_v22 = vsel %vm3674_vm7, %v6765_v4, %v6761_v33  ;;  %v7643_v10 = vadd.f32 %v7642_v0, %v7506_v18  ;;  %v6780_v1 = vrot.slane %v16864_v19, %v16636_v58  ;;  %v6622_v28 = vrot.slane %v14470_v38, %v16636_v58 }
 0x887   : > { %v14740_v25 = vpop.permute.xlu0 %6379  ;;  %v6771_v9 = vsel %vm3681_vm8, %v6770_v54, %v6766_v22  ;;  %v6311_v31 = vpop.permute.xlu1 %6310  ;;  %v6613_v55 = vsel %vm3681_vm8, %v6612_v20, %v6608_v44  ;;  %v7609_v4 = vadd.f32 %v7608_v41, %v7482_v39  ;;  %v7509_v6 = vmul.f32 %v7253_v14, %v16864_v19  ;;  %v16866_v22 = vld [vmem:[#allocation69_spill] sm:$0xff]  ;;  %v16867_v20 = vld [vmem:[#allocation146_spill] sm:$0xff] }
 0x888   : > { %v6775_v46 = vrot.slane %v6311_v31, %v16633_v24  ;;  %v7508_v57 = vmul.f32 %v7252_v62, %v6311_v31  ;;  %v7644_v33 = vadd.f32 %v7643_v10, %v7507_v26  ;;  %v6632_v53 = vrot.slane %v14486_v21, %v12493_v60  ;;  %v7256_v10 = vld [vmem:[%s9564_s15 + $0x168] sm:$0xff] }
 0x889   : > { %6535 = vperm.xlu1 %8407, %v6046_v13   ;;  %v7255_v13 = vld [vmem:[%s9564_s15 + $0x160] sm:$0xff]  ;;  %v7631_v38 = vrot.slane %v14651_v15, 4  ;;  %v6618_v11 = vsel %vm3688_vm9, %v6617_v34, %v6613_v55  ;;  %v6637_v39 = vrot.slane %v16852_v45, %v12490_v30  ;;  %v6790_v44 = vrot.slane %v16866_v22, %v12493_v60 }
 0x88a   : > { %v6776_v18 = vsel %vm3688_vm9, %v6775_v46, %v6771_v9  ;;  %v7645_v61 = vadd.f32 %v7644_v33, %v7508_v57  ;;  %v6623_v21 = vsel %vm3695_vm10, %v6622_v28, %v6618_v11  ;;  %v7610_v9 = vrot.slane %v7609_v4, 4  ;;  %v16871_v11 = vld [vmem:[#allocation165_spill] sm:$0xff] }
 0x88b   : > { %v14761_v54 = vpop.permute.xlu0 %6385  ;;  %v6781_v0 = vsel %vm3695_vm10, %v6780_v1, %v6776_v18  ;;  %v6317_v62 = vpop.permute.xlu1 %6316  ;;  %v6048_v14 = vmul.f32 %v14492_v27, %v16867_v20  ;;  %v6628_v46 = vsel %vm3702_vm11, %v6627_v17, %v6623_v21  ;;  %v7511_v45 = vmul.f32 %v7255_v13, %v16866_v22  ;;  %v16869_v17 = vld [vmem:[#allocation67_spill] sm:$0xff] }
 0x88c   : > { %v6785_v52 = vrot.slane %v6317_v62, %v16635_v35  ;;  %v7510_v41 = vmul.f32 %v7254_v37, %v6317_v62  ;;  %v7646_v26 = vadd.f32 %v7645_v61, %v7509_v6  ;;  %v6633_v33 = vsel %vm3709_vm12, %v6632_v53, %v6628_v46  ;;  %v7257_v37 = vld [vmem:[%s9564_s15 + $0x170] sm:$0xff]  ;;  %v16873_v46 = vld [vmem:[#allocation70_spill] sm:$0xff] }
 0x88d   : > { %6538 = vperm.xlu1 %8407, %v6047_v12   ;;  %v7632_v43 = vadd.f32 %v7631_v38, %v14651_v15  ;;  %vm16868_vm13 = vcmask 917312   ;;  %v6647_v18 = vrot.slane %v16863_v42, %v16642_v3  ;;  %v6800_v6 = vrot.slane %v16869_v17, %v12598_v63 }
 0x88e   : > { %v6786_v31 = vsel %vm3702_vm11, %v6785_v52, %v6781_v0  ;;  %v7647_v57 = vadd.f32 %v7646_v26, %v7510_v41  ;;  %v6638_v28 = vsel %vm16868_vm13, %v6637_v39, %v6633_v33  ;;  %v7258_v0 = vld [vmem:[%s9564_s15 + $0x178] sm:$0xff]  ;;  %v6642_v62 = vrot.slane %v16857_v7, %v12598_v63  ;;  %vm16870_vm4 = vmmov %vm16868_vm13 }
 0x88f   : > { %v14781_v34 = vpop.permute.xlu0 %6391  ;;  %v6791_v19 = vsel %vm3709_vm12, %v6790_v44, %v6786_v31  ;;  %v6323_v1 = vpop.permute.xlu1 %6322  ;;  %v7611_v53 = vadd.f32 %v7610_v9, %v7609_v4  ;;  %v7513_v13 = vmul.f32 %v7257_v37, %v16869_v17  ;;  %v6049_v39 = vmul.f32 %v14492_v27, %v16871_v11  ;;  %v7260_v9 = vld [vmem:[%s9564_s15 + $0x188] sm:$0xff] }
 0x890   : > { %v6795_v12 = vrot.slane %v6323_v1, %v12490_v30  ;;  %v7512_v55 = vmul.f32 %v7256_v10, %v6323_v1  ;;  %v7648_v61 = vadd.f32 %v7647_v57, %v7511_v45  ;;  %v6643_v22 = vsel %vm3723_vm14, %v6642_v62, %v6638_v28  ;;  %v7259_v10 = vld [vmem:[%s9564_s15 + $0x180] sm:$0xff]  ;;  %v7261_v57 = vld [vmem:[%s9564_s15 + $0x190] sm:$0xff] }
 0x891   : > { %6541 = vperm.xlu1 %8407, %v6048_v14   ;;  %v7633_v44 = vrot.slane %v7632_v43, 2  ;;  %v6648_v26 = vsel %vm3730_vm15, %v6647_v18, %v6643_v22  ;;  %v7612_v31 = vrot.slane %v7611_v53, 2  ;;  %vm16872_vm5 = vcmask 1041409  }
 0x892   : > { %v6796_v15 = vsel %vm16870_vm4, %v6795_v12, %v6791_v19  ;;  %v7649_v38 = vadd.f32 %v7648_v61, %v7512_v55  ;;  %v7202_v20 = vsel %vm16872_vm5, %v14642_v40, %v6648_v26  ;;  %v6810_v45 = vrot.slane %v16873_v46, %v16618_v51  ;;  %v16875_v12 = vld [vmem:[#allocation40_spill] sm:$0xff]  ;;  %vm16881_vm4 = vmmov %vm16872_vm5 }
 0x893   : > { %v14798_v52 = vpop.permute.xlu0 %6397  ;;  %v6801_v42 = vsel %vm3723_vm14, %v6800_v6, %v6796_v15  ;;  %v6329_v41 = vpop.permute.xlu1 %6328  ;;  %vm16874_vm6 = vcmask 1042434   ;;  %v6050_v55 = vmul.f32 %v14492_v27, %v16875_v12  ;;  %v7515_v28 = vmul.f32 %v7259_v10, %v16873_v46  ;;  %v7265_v12 = vld [vmem:[%s9564_s15 + $0x1b0] sm:$0xff] }
 0x894   : > { %v6805_v7 = vrot.slane %v6329_v41, %v16642_v3  ;;  %v7514_v4 = vmul.f32 %v7258_v0, %v6329_v41  ;;  %v7650_v21 = vadd.f32 %v7649_v38, %v7513_v13  ;;  %v7634_v40 = vadd.f32 %v7633_v44, %v7632_v43  ;;  %v7262_v38 = vld [vmem:[%s9564_s15 + $0x198] sm:$0xff]  ;;  %v7263_v44 = vld [vmem:[%s9564_s15 + $0x1a0] sm:$0xff] }
 0x895   : > { %6544 = vperm.xlu1 %8407, %v6049_v39   ;;  %v6819_v6 = vrot.slane %v14601_v36, %v16619_v23  ;;  %v7613_v0 = vadd.f32 %v7612_v31, %v7611_v53  ;;  %v7517_v62 = vmul.f32 %v7261_v57, %v14601_v36  ;;  %v16876_v39 = vld [vmem:[#allocation167_spill] sm:$0xff]  ;;  %v7264_v31 = vld [vmem:[%s9564_s15 + $0x1a8] sm:$0xff]  ;;  %v7519_v46 = vmul.f32 %v7263_v44, %v14616_v16 }
 0x896   : > { %v6806_v14 = vsel %vm3730_vm15, %v6805_v7, %v6801_v42  ;;  %v7651_v1 = vadd.f32 %v7650_v21, %v7514_v4  ;;  %v6051_v22 = vmul.f32 %v14492_v27, %v16876_v39  ;;  %v7635_v7 = vrot.slane %v7634_v40, 1 }
 0x897   : > { %v14815_v19 = vsel %vm16874_vm6, %v6806_v14, %v7202_v20  ;;  %v14817_v33 = vpop.permute.xlu0 %6403  ;;  %v6335_v37 = vpop.permute.xlu1 %6334  ;;  %v6829_v4 = vrot.slane %v14616_v16, %v16623_v59  ;;  %v7614_v21 = vrot.slane %v7613_v0, 1  ;;  %v16877_v20 = vld [vmem:[#allocation18_spill] sm:$0xff]  ;;  %vm16878_vm0 = vcmask 326912  }
 0x898   : > { %v6814_v18 = vrot.slane %v6335_v37, %v16617_v47  ;;  %v7516_v17 = vmul.f32 %v7260_v9, %v6335_v37  ;;  %v7652_v61 = vrot.slane %v7651_v1, 4  ;;  %v6052_v14 = vmul.f32 %v14492_v27, %v16877_v20 }
 0x899   : > { %6547 = vperm.xlu1 %8407, %v6050_v55   ;;  %v7636_v55 = vadd.f32 %v7635_v7, %v7634_v40  ;;  %v6839_v16 = vrot.slane %v14633_v32, %v16625_v2  ;;  %vm16880_vm13 = vcmask 392512   ;;  %vm16882_vm5 = vcmask 458112  }
 0x89a   : > { %v6815_v15 = vsel %vm3632_vm1, %v6814_v18, %v6810_v45  ;;  %v7658_v13 = vadd.f32 %v7516_v17, %v7515_v28  ;;  %v7653_v42 = vadd.f32 %v7652_v61, %v7651_v1 }
 0x89b   : > { %v14828_v41 = vpop.permute.xlu0 %6409  ;;  %v6820_v43 = vsel %vm3639_vm2, %v6819_v6, %v6815_v15  ;;  %v6341_v11 = vpop.permute.xlu1 %6340  ;;  %v7266_v15 = vld [vmem:[%s9564_s15 + $0x1b8] sm:$0xff] }
 0x89c   : > { %v7659_v53 = vadd.f32 %v7658_v13, %v7517_v62  ;;  %v6824_v36 = vrot.slane %v6341_v11, %v16621_v48  ;;  %v7654_v26 = vrot.slane %v7653_v42, 2  ;;  %v7518_v10 = vmul.f32 %v7262_v38, %v6341_v11  ;;  %v16879_v13 = vld [vmem:[#allocation170_spill] sm:$0xff] }
 0x89d   : > { %6550 = vperm.xlu1 %8407, %v6051_v22   ;;  %v7615_v62 = vadd.f32 %v7614_v21, %v7613_v0  ;;  %v6053_v38 = vmul.f32 %v14492_v27, %v16879_v13  ;;  %v7267_v0 = vld [vmem:[%s9564_s15 + $0x1c0] sm:$0xff]  ;;  %v7268_v21 = vld [vmem:[%s9564_s15 + $0x1c8] sm:$0xff]  ;;  %v16885_v13 = vld [vmem:[#allocation173_spill] sm:$0xff] }
 0x89e   : > { %v6825_v9 = vsel %vm3646_vm3, %v6824_v36, %v6820_v43  ;;  %v7655_v45 = vadd.f32 %v7654_v26, %v7653_v42  ;;  %v7660_v57 = vadd.f32 %v7659_v53, %v7518_v10  ;;  %v7521_v42 = vmul.f32 %v7265_v12, %v14633_v32  ;;  %v16883_v26 = vld [vmem:[#allocation71_spill] sm:$0xff] }
 0x89f   : > { %v14842_v1 = vpop.permute.xlu0 %6415  ;;  %v6830_v37 = vsel %vm16878_vm0, %v6829_v4, %v6825_v9  ;;  %v6347_v28 = vpop.permute.xlu1 %6346  ;;  %v7771_v22 = vsel %vm16881_vm4, %v7636_v55, %v7615_v62  ;;  %v6849_v10 = vrot.slane %v16883_v26, %v16628_v8  ;;  %v7523_v9 = vmul.f32 %v7267_v0, %v16883_v26  ;;  %v16886_v26 = vld [vmem:[#allocation92_spill] sm:$0xff] }
 0x8a0   : > { %v7656_v18 = vrot.slane %v7655_v45, 1  ;;  %v7661_v17 = vadd.f32 %v7660_v57, %v7519_v46  ;;  %v6834_v6 = vrot.slane %v6347_v28, %v16624_v50  ;;  %v7520_v61 = vmul.f32 %v7264_v31, %v6347_v28  ;;  %v16884_v46 = vld [vmem:[#allocation93_spill] sm:$0xff] }
 0x8a1   : > { %6553 = vperm.xlu1 %8407, %v6052_v14   ;;  %v7269_v57 = vld [vmem:[%s9564_s15 + $0x1d0] sm:$0xff]  ;;  %vm16887_vm0 = vcmask 917312   ;;  %vm16890_vm4 = vcmask 326912  }
 0x8a2   : > { %v7657_v40 = vadd.f32 %v7656_v18, %v7655_v45  ;;  %v6835_v43 = vsel %vm16880_vm13, %v6834_v6, %v6830_v37  ;;  %v7662_v11 = vadd.f32 %v7661_v17, %v7520_v61  ;;  %v6054_v45 = vmul.f32 %v14492_v27, %v16884_v46  ;;  %v7270_v6 = vld [vmem:[%s9564_s15 + $0x1d8] sm:$0xff] }
 0x8a3   : > { %v14854_v39 = vpop.permute.xlu0 %6421  ;;  %v6840_v44 = vsel %vm16882_vm5, %v6839_v16, %v6835_v43  ;;  %v6353_v7 = vpop.permute.xlu1 %6352  ;;  %v6859_v17 = vrot.slane %v14677_v56, %v16636_v58  ;;  %v7525_v61 = vmul.f32 %v7269_v57, %v14677_v56  ;;  %v6869_v56 = vrot.slane %v14700_v5, %v12493_v60  ;;  %v7274_v57 = vld [vmem:[%s9564_s15 + $0x1f8] sm:$0xff] }
 0x8a4   : > { %v14860_v53 = vsel %vm16874_vm6, %v7657_v40, %v7771_v22  ;;  %v7663_v36 = vadd.f32 %v7662_v11, %v7521_v42  ;;  %v6844_v4 = vrot.slane %v6353_v7, %v16627_v49  ;;  %v7522_v32 = vmul.f32 %v7266_v15, %v6353_v7  ;;  %v7271_v42 = vld [vmem:[%s9564_s15 + $0x1e0] sm:$0xff] }
 0x8a5   : > { %6556 = vperm.xlu1 %8407, %v6053_v38   ;;  %v6055_v38 = vmul.f32 %v14492_v27, %v16885_v13  ;;  %v7527_v7 = vmul.f32 %v7271_v42, %v14700_v5  ;;  %v6879_v5 = vrot.slane %v14722_v29, %v12598_v63  ;;  %vm16889_vm13 = vcmask 1043459  }
 0x8a6   : > { %v6845_v31 = vsel %vm3674_vm7, %v6844_v4, %v6840_v44  ;;  %v7664_v20 = vadd.f32 %v7663_v36, %v7522_v32  ;;  %v7272_v44 = vld [vmem:[%s9564_s15 + $0x1e8] sm:$0xff]  ;;  %vm16891_vm5 = vcmask 392512   ;;  %vm16892_vm6 = vcmask 458112  }
 0x8a7   : > { %v14868_v14 = vpop.permute.xlu0 %6427  ;;  %v6850_v37 = vsel %vm3681_vm8, %v6849_v10, %v6845_v31  ;;  %v6359_v12 = vpop.permute.xlu1 %6358  ;;  %v6056_v10 = vmul.f32 %v14492_v27, %v16886_v26  ;;  %v7278_v26 = vld [vmem:[%s9564_s15 + $0x218] sm:$0xff] }
 0x8a8   : > { %v7665_v55 = vadd.f32 %v7664_v20, %v7523_v9  ;;  %v6854_v28 = vrot.slane %v6359_v12, %v16633_v24  ;;  %v7524_v18 = vmul.f32 %v7268_v21, %v6359_v12  ;;  %v7273_v21 = vld [vmem:[%s9564_s15 + $0x1f0] sm:$0xff] }
 0x8a9   : > { %6559 = vperm.xlu1 %8407, %v6054_v45  }
 0x8aa   : > { %v6855_v62 = vsel %vm3688_vm9, %v6854_v28, %v6850_v37  ;;  %v7666_v16 = vadd.f32 %v7665_v55, %v7524_v18  ;;  %v7529_v37 = vmul.f32 %v7273_v21, %v14722_v29  ;;  %v16888_v18 = vld [vmem:[#allocation176_spill] sm:$0xff] }
 0x8ab   : > { %v14880_v15 = vpop.permute.xlu0 %6433  ;;  %v6860_v40 = vsel %vm3695_vm10, %v6859_v17, %v6855_v62  ;;  %v6365_v43 = vpop.permute.xlu1 %6364  ;;  %v6057_v17 = vmul.f32 %v14492_v27, %v16888_v18  ;;  %v7276_v29 = vld [vmem:[%s9564_s15 + $0x208] sm:$0xff]  ;;  %v6889_v27 = vrot.slane %v14740_v25, %v16618_v51 }
 0x8ac   : > { %v7667_v11 = vadd.f32 %v7666_v16, %v7525_v61  ;;  %v6864_v22 = vrot.slane %v6365_v43, %v16635_v35  ;;  %v7526_v0 = vmul.f32 %v7270_v6, %v6365_v43 }
 0x8ad   : > { %6562 = vperm.xlu1 %8407, %v6055_v38   ;;  %v7275_v38 = vld [vmem:[%s9564_s15 + $0x200] sm:$0xff] }
 0x8ae   : > { %v6865_v36 = vsel %vm3702_vm11, %v6864_v22, %v6860_v40  ;;  %v7668_v4 = vadd.f32 %v7667_v11, %v7526_v0  ;;  %v7277_v11 = vld [vmem:[%s9564_s15 + $0x210] sm:$0xff] }
 0x8af   : > { %v14892_v32 = vpop.permute.xlu0 %6439  ;;  %v6870_v9 = vsel %vm3709_vm12, %v6869_v56, %v6865_v36  ;;  %v6371_v31 = vpop.permute.xlu1 %6370  ;;  %v7531_v56 = vmul.f32 %v7275_v38, %v14740_v25 }
 0x8b0   : > { %v7669_v20 = vadd.f32 %v7668_v4, %v7527_v7  ;;  %v6874_v46 = vrot.slane %v6371_v31, %v12490_v30  ;;  %v7528_v45 = vmul.f32 %v7272_v44, %v6371_v31  ;;  %v6898_v4 = vrot.slane %v14761_v54, %v16619_v23 }
 0x8b1   : > { %6565 = vperm.xlu1 %8407, %v6056_v10   ;;  %v7533_v10 = vmul.f32 %v7277_v11, %v14761_v54  ;;  %v6908_v54 = vrot.slane %v14781_v34, %v16623_v59 }
 0x8b2   : > { %v6875_v12 = vsel %vm16887_vm0, %v6874_v46, %v6870_v9  ;;  %v7670_v55 = vadd.f32 %v7669_v20, %v7528_v45  ;;  %v7279_v20 = vld [vmem:[%s9564_s15 + $0x220] sm:$0xff]  ;;  %vm16893_vm0 = vmmov %vm16889_vm13 }
 0x8b3   : > { %v14904_v28 = vpop.permute.xlu0 %6445  ;;  %v6880_v6 = vsel %vm3723_vm14, %v6879_v5, %v6875_v12  ;;  %v6377_v61 = vpop.permute.xlu1 %6376  ;;  %v7280_v12 = vld [vmem:[%s9564_s15 + $0x228] sm:$0xff] }
 0x8b4   : > { %v7671_v62 = vadd.f32 %v7670_v55, %v7529_v37  ;;  %v6884_v16 = vrot.slane %v6377_v61, %v16642_v3  ;;  %v7530_v13 = vmul.f32 %v7274_v57, %v6377_v61  ;;  %v7535_v55 = vmul.f32 %v7279_v20, %v14781_v34  ;;  %v7284_v20 = vld [vmem:[%s9564_s15 + $0x248] sm:$0xff] }
 0x8b5   : > { %6568 = vperm.xlu1 %8407, %v6057_v17   ;;  %v6918_v34 = vrot.slane %v14798_v52, %v16625_v2 }
 0x8b6   : > { %v6885_v42 = vsel %vm3730_vm15, %v6884_v16, %v6880_v6  ;;  %v7672_v40 = vadd.f32 %v7671_v62, %v7530_v13  ;;  %v7281_v62 = vld [vmem:[%s9564_s15 + $0x230] sm:$0xff] }
 0x8b7   : > { %v14913_v43 = vpop.permute.xlu0 %6451  ;;  %v14920_v22 = vsel %vm16889_vm13, %v6885_v42, %v14815_v19  ;;  %v6383_v0 = vpop.permute.xlu1 %6382  ;;  %v7537_v11 = vmul.f32 %v7281_v62, %v14798_v52  ;;  %vm16894_vm13 = vcmask 917312  }
 0x8b8   : > { %v7673_v44 = vrot.slane %v7672_v40, 4  ;;  %v6893_v7 = vrot.slane %v6383_v0, %v16617_v47  ;;  %v7532_v36 = vmul.f32 %v7276_v29, %v6383_v0 }
 0x8ba   : > { %v7674_v21 = vadd.f32 %v7673_v44, %v7672_v40  ;;  %v6894_v9 = vsel %vm3632_vm1, %v6893_v7, %v6889_v27  ;;  %v7679_v31 = vadd.f32 %v7532_v36, %v7531_v56  ;;  %v7282_v27 = vld [vmem:[%s9564_s15 + $0x238] sm:$0xff]  ;;  %v7283_v36 = vld [vmem:[%s9564_s15 + $0x240] sm:$0xff] }
 0x8bb   : > { %v14929_v19 = vpop.permute.xlu0 %6457  ;;  %v6899_v25 = vsel %vm3639_vm2, %v6898_v4, %v6894_v9  ;;  %v6389_v46 = vpop.permute.xlu1 %6388 }
 0x8bc   : > { %v7675_v45 = vrot.slane %v7674_v21, 2  ;;  %v7680_v5 = vadd.f32 %v7679_v31, %v7533_v10  ;;  %v6903_v57 = vrot.slane %v6389_v46, %v16621_v48  ;;  %v7534_v37 = vmul.f32 %v7278_v26, %v6389_v46 }
 0x8bd   : > { %v6928_v31 = vrot.slane %v14817_v33, %v16628_v8 }
 0x8be   : > { %v7676_v18 = vadd.f32 %v7675_v45, %v7674_v21  ;;  %v6904_v17 = vsel %vm3646_vm3, %v6903_v57, %v6899_v25  ;;  %v7681_v6 = vadd.f32 %v7680_v5, %v7534_v37  ;;  %v7539_v25 = vmul.f32 %v7283_v36, %v14817_v33  ;;  %v7285_v5 = vld [vmem:[%s9564_s15 + $0x250] sm:$0xff] }
 0x8bf   : > { %v14939_v61 = vpop.permute.xlu0 %6463  ;;  %v6909_v16 = vsel %vm16890_vm4, %v6908_v54, %v6904_v17  ;;  %v6395_v13 = vpop.permute.xlu1 %6394  ;;  %v7286_v17 = vld [vmem:[%s9564_s15 + $0x258] sm:$0xff]  ;;  %v7541_v33 = vmul.f32 %v7285_v5, %v14828_v41  ;;  %vm16895_vm4 = vcmask 1044484  }
 0x8c0   : > { %v7677_v38 = vrot.slane %v7676_v18, 1  ;;  %v7682_v29 = vadd.f32 %v7681_v6, %v7535_v55  ;;  %v6913_v42 = vrot.slane %v6395_v13, %v16624_v50  ;;  %v7536_v40 = vmul.f32 %v7280_v12, %v6395_v13 }
 0x8c2   : > { %v7678_v0 = vadd.f32 %v7677_v38, %v7676_v18  ;;  %v6914_v56 = vsel %vm16891_vm5, %v6913_v42, %v6909_v16  ;;  %v7683_v44 = vadd.f32 %v7682_v29, %v7536_v40  ;;  %v6938_v18 = vrot.slane %v14828_v41, %v16636_v58  ;;  %v7287_v16 = vld [vmem:[%s9564_s15 + $0x260] sm:$0xff] }
 0x8c3   : > { %v14949_v7 = vpop.permute.xlu0 %6469  ;;  %v6919_v4 = vsel %vm16892_vm6, %v6918_v34, %v6914_v56  ;;  %v6401_v26 = vpop.permute.xlu1 %6400  ;;  %v6948_v34 = vrot.slane %v14842_v1, %v12493_v60  ;;  %vm16896_vm5 = vcmask 326912   ;;  %vm16897_vm6 = vcmask 392512  }
 0x8c4   : > { %v14955_v10 = vsel %vm16893_vm0, %v7678_v0, %v14860_v53  ;;  %v7684_v21 = vadd.f32 %v7683_v44, %v7537_v11  ;;  %v6923_v9 = vrot.slane %v6401_v26, %v16627_v49  ;;  %v7538_v52 = vmul.f32 %v7282_v27, %v6401_v26  ;;  %v7288_v27 = vld [vmem:[%s9564_s15 + $0x268] sm:$0xff]  ;;  %v7289_v44 = vld [vmem:[%s9564_s15 + $0x270] sm:$0xff] }
 0x8c5   : > { %v7543_v11 = vmul.f32 %v7287_v16, %v14842_v1  ;;  %vm16898_vm0 = vcmask 458112  }
 0x8c6   : > { %v6924_v46 = vsel %vm3674_vm7, %v6923_v9, %v6919_v4  ;;  %v7685_v45 = vadd.f32 %v7684_v21, %v7538_v52  ;;  %v6958_v52 = vrot.slane %v14854_v39, %v12598_v63 }
 0x8c7   : > { %v6929_v57 = vsel %vm3681_vm8, %v6928_v31, %v6924_v46  ;;  %v6407_v53 = vpop.permute.xlu1 %6406  ;;  %v14965_v37 = vpop.permute.xlu0 %6475  ;;  %v7290_v31 = vld [vmem:[%s9564_s15 + $0x278] sm:$0xff] }
 0x8c8   : > { %v7686_v54 = vadd.f32 %v7685_v45, %v7539_v25  ;;  %v6933_v12 = vrot.slane %v6407_v53, %v16633_v24  ;;  %v7540_v55 = vmul.f32 %v7284_v20, %v6407_v53  ;;  %v7545_v20 = vmul.f32 %v7289_v44, %v14854_v39 }
 0x8ca   : > { %v6934_v6 = vsel %vm3688_vm9, %v6933_v12, %v6929_v57  ;;  %v7687_v62 = vadd.f32 %v7686_v54, %v7540_v55 }
 0x8cb   : > { %v6939_v13 = vsel %vm3695_vm10, %v6938_v18, %v6934_v6  ;;  %v6413_v38 = vpop.permute.xlu1 %6412  ;;  %v14980_v0 = vpop.permute.xlu0 %6481 }
 0x8cc   : > { %v7688_v29 = vadd.f32 %v7687_v62, %v7541_v33  ;;  %v6943_v42 = vrot.slane %v6413_v38, %v16635_v35  ;;  %v7542_v40 = vmul.f32 %v7286_v17, %v6413_v38  ;;  %v6968_v17 = vrot.slane %v14868_v14, %v16618_v51 }
 0x8cd   : > { %v6977_v62 = vrot.slane %v14880_v15, %v16619_v23 }
 0x8ce   : > { %v6944_v41 = vsel %vm3702_vm11, %v6943_v42, %v6939_v13  ;;  %v7689_v56 = vadd.f32 %v7688_v29, %v7542_v40 }
 0x8cf   : > { %v6949_v36 = vsel %vm3709_vm12, %v6948_v34, %v6944_v41  ;;  %v6419_v4 = vpop.permute.xlu1 %6418  ;;  %v14992_v5 = vpop.permute.xlu0 %6487  ;;  %v6987_v34 = vrot.slane %v14892_v32, %v16623_v59 }
 0x8d0   : > { %v7690_v26 = vadd.f32 %v7689_v56, %v7543_v11  ;;  %v6953_v21 = vrot.slane %v6419_v4, %v12490_v30  ;;  %v7544_v9 = vmul.f32 %v7288_v27, %v6419_v4 }
 0x8d2   : > { %v6954_v1 = vsel %vm16894_vm13, %v6953_v21, %v6949_v36  ;;  %v7691_v25 = vadd.f32 %v7690_v26, %v7544_v9  ;;  %v6997_v26 = vrot.slane %v14904_v28, %v16625_v2  ;;  %vm16899_vm13 = vmmov %vm16895_vm4 }
 0x8d3   : > { %v6959_v46 = vsel %vm3723_vm14, %v6958_v52, %v6954_v1  ;;  %v6425_v45 = vpop.permute.xlu1 %6424  ;;  %v15005_v16 = vpop.permute.xlu0 %6526 }
 0x8d4   : > { %v7692_v57 = vadd.f32 %v7691_v25, %v7545_v20  ;;  %v6963_v53 = vrot.slane %v6425_v45, %v16642_v3  ;;  %v7546_v54 = vmul.f32 %v7290_v31, %v6425_v45  ;;  %v7007_v25 = vrot.slane %v14913_v43, %v16628_v8 }
 0x8d6   : > { %v6964_v12 = vsel %vm3730_vm15, %v6963_v53, %v6959_v46  ;;  %v7693_v55 = vadd.f32 %v7692_v57, %v7546_v54  ;;  %v7292_v46 = vld [vmem:[%s9564_s15 + $0x288] sm:$0xff] }
 0x8d7   : > { %v14998_v18 = vsel %vm16895_vm4, %v6964_v12, %v14920_v22  ;;  %v6431_v39 = vpop.permute.xlu1 %6430  ;;  %v15014_v36 = vpop.permute.xlu0 %6532  ;;  %v7291_v12 = vld [vmem:[%s9564_s15 + $0x280] sm:$0xff]  ;;  %vm16900_vm4 = vcmask 917312  }
 0x8d8   : > { %v7694_v33 = vrot.slane %v7693_v55, 4  ;;  %v6972_v6 = vrot.slane %v6431_v39, %v16617_v47 }
 0x8da   : > { %v7695_v13 = vadd.f32 %v7694_v33, %v7693_v55  ;;  %v6973_v38 = vsel %vm3632_vm1, %v6972_v6, %v6968_v17  ;;  %v7017_v55 = vrot.slane %v14929_v19, %v16636_v58  ;;  %v7548_v17 = vmul.f32 %v7292_v46, %v6431_v39  ;;  %v7307_v46 = vld [vmem:[%s9564_s15 + $0x300] sm:$0xff] }
 0x8db   : > { %v6978_v29 = vsel %vm3639_vm2, %v6977_v62, %v6973_v38  ;;  %v15032_v45 = vpop.permute.xlu0 %6490  ;;  %v7547_v6 = vmul.f32 %v7291_v12, %v14868_v14  ;;  %v7293_v38 = vld [vmem:[%s9564_s15 + $0x290] sm:$0xff]  ;;  %v7296_v12 = vld [vmem:[%s9564_s15 + $0x2a8] sm:$0xff] }
 0x8dc   : > { %v6437_v42 = vpop.permute.xlu1 %6436  ;;  %v7696_v22 = vrot.slane %v7695_v13, 2  ;;  %v7549_v14 = vmul.f32 %v7293_v38, %v14880_v15  ;;  %v7295_v15 = vld [vmem:[%s9564_s15 + $0x2a0] sm:$0xff] }
 0x8dd   : > { %v6982_v40 = vrot.slane %v6437_v42, %v16621_v48  ;;  %v7700_v39 = vadd.f32 %v7548_v17, %v7547_v6  ;;  %v7309_v17 = vld [vmem:[%s9564_s15 + $0x310] sm:$0xff] }
 0x8de   : > { %v7697_v27 = vadd.f32 %v7696_v22, %v7695_v13 }
 0x8df   : > { %v6983_v11 = vsel %vm3646_vm3, %v6982_v40, %v6978_v29  ;;  %v15049_v29 = vpop.permute.xlu0 %6493  ;;  %v7027_v40 = vrot.slane %v14939_v61, %v12493_v60 }
 0x8e0   : > { %v6988_v41 = vsel %vm16896_vm5, %v6987_v34, %v6983_v11  ;;  %v6443_v56 = vpop.permute.xlu1 %6442  ;;  %v7698_v44 = vrot.slane %v7697_v27, 1  ;;  %v7294_v34 = vld [vmem:[%s9564_s15 + $0x298] sm:$0xff]  ;;  %vm16901_vm5 = vcmask 1045509  }
 0x8e1   : > { %v6992_v4 = vrot.slane %v6443_v56, %v16624_v50 }
 0x8e2   : > { %v7699_v21 = vadd.f32 %v7698_v44, %v7697_v27 }
 0x8e3   : > { %v6993_v9 = vsel %vm16897_vm6, %v6992_v4, %v6988_v41  ;;  %v7701_v4 = vadd.f32 %v7700_v39, %v7549_v14  ;;  %v7552_v39 = vmul.f32 %v7296_v12, %v6443_v56  ;;  %v7311_v14 = vld [vmem:[%s9564_s15 + $0x320] sm:$0xff]  ;;  %vm16902_vm6 = vcmask 326912  }
 0x8e4   : > { %v6998_v52 = vsel %vm16898_vm0, %v6997_v26, %v6993_v9  ;;  %v15021_v31 = vpop.permute.xlu1 %6448  ;;  %v15025_v20 = vsel %vm16899_vm13, %v7699_v21, %v14955_v10  ;;  %v7550_v26 = vmul.f32 %v7294_v34, %v6437_v42  ;;  %v15063_v21 = vpop.permute.xlu0 %6496  ;;  %v7308_v42 = vld [vmem:[%s9564_s15 + $0x308] sm:$0xff]  ;;  %v7310_v34 = vld [vmem:[%s9564_s15 + $0x318] sm:$0xff]  ;;  %vm16903_vm0 = vcmask 392512  }
 0x8e5   : > { %v7002_v1 = vrot.slane %v15021_v31, %v16627_v49  ;;  %vm16904_vm13 = vcmask 458112  }
 0x8e7   : > { %v7003_v57 = vsel %vm3674_vm7, %v7002_v1, %v6998_v52  ;;  %v7037_v52 = vrot.slane %v14949_v7, %v12598_v63 }
 0x8e8   : > { %v7008_v53 = vsel %vm3681_vm8, %v7007_v25, %v7003_v57  ;;  %v15036_v54 = vpop.permute.xlu1 %6454  ;;  %v7702_v57 = vadd.f32 %v7701_v4, %v7550_v26  ;;  %v15085_v38 = vpop.permute.xlu0 %6499  ;;  %v7312_v26 = vld [vmem:[%s9564_s15 + $0x328] sm:$0xff] }
 0x8e9   : > { %v7012_v10 = vrot.slane %v15036_v54, %v16633_v24 }
 0x8eb   : > { %v7013_v33 = vsel %vm3688_vm9, %v7012_v10, %v7008_v53 }
 0x8ec   : > { %v7018_v62 = vsel %vm3695_vm10, %v7017_v55, %v7013_v33  ;;  %v15046_v13 = vpop.permute.xlu1 %6460  ;;  %v7551_v55 = vmul.f32 %v7295_v15, %v14892_v32  ;;  %v7298_v15 = vld [vmem:[%s9564_s15 + $0x2b8] sm:$0xff] }
 0x8ed   : > { %v7022_v22 = vrot.slane %v15046_v13, %v16635_v35 }
 0x8ef   : > { %v7023_v27 = vsel %vm3702_vm11, %v7022_v22, %v7018_v62  ;;  %v7563_v62 = vmul.f32 %v7307_v46, %v14965_v37 }
 0x8f0   : > { %v7028_v11 = vsel %vm3709_vm12, %v7027_v40, %v7023_v27  ;;  %v15059_v41 = vpop.permute.xlu1 %6466  ;;  %v7703_v40 = vadd.f32 %v7702_v57, %v7551_v55  ;;  %v7565_v27 = vmul.f32 %v7309_v17, %v14980_v0  ;;  %v7313_v57 = vld [vmem:[%s9564_s15 + $0x330] sm:$0xff]  ;;  %v7554_v55 = vmul.f32 %v7298_v15, %v15021_v31 }
 0x8f1   : > { %v7032_v44 = vrot.slane %v15059_v41, %v12490_v30  ;;  %v7569_v17 = vmul.f32 %v7313_v57, %v15049_v29  ;;  %v7316_v57 = vld [vmem:[%s9564_s15 + $0x348] sm:$0xff] }
 0x8f3   : > { %v7033_v9 = vsel %vm16900_vm4, %v7032_v44, %v7028_v11  ;;  %v7297_v44 = vld [vmem:[%s9564_s15 + $0x2b0] sm:$0xff] }
 0x8f4   : > { %v15068_v1 = vpop.permute.xlu1 %6472  ;;  %v7038_v53 = vsel %vm3723_vm14, %v7037_v52, %v7033_v9  ;;  %v7704_v9 = vadd.f32 %v7703_v40, %v7552_v39  ;;  %v7567_v52 = vmul.f32 %v7311_v14, %v14992_v5  ;;  %v7553_v46 = vmul.f32 %v7297_v44, %v14904_v28  ;;  %v7299_v39 = vld [vmem:[%s9564_s15 + $0x2c0] sm:$0xff] }
 0x8f5   : > { %v7042_v25 = vrot.slane %v15068_v1, %v16642_v3  ;;  %v7315_v14 = vld [vmem:[%s9564_s15 + $0x340] sm:$0xff]  ;;  %v7555_v31 = vmul.f32 %v7299_v39, %v14913_v43  ;;  %v7056_v43 = vrot.slane %v14980_v0, %v16619_v23  ;;  %v7066_v0 = vrot.slane %v14992_v5, %v16623_v59 }
 0x8f7   : > { %v7043_v10 = vsel %vm3730_vm15, %v7042_v25, %v7038_v53  ;;  %v15094_v25 = vpop.permute.xlu0 %6502 }
 0x8f8   : > { %v15082_v33 = vsel %vm16901_vm5, %v7043_v10, %v14998_v18  ;;  %v6479_v6 = vpop.permute.xlu1 %6478  ;;  %v7705_v10 = vadd.f32 %v7704_v9, %v7553_v46 }
 0x8f9   : > { %v7564_v22 = vmul.f32 %v7308_v42, %v6479_v6  ;;  %v7568_v42 = vmul.f32 %v7312_v26, %v15032_v45  ;;  %v7051_v44 = vrot.slane %v6479_v6, %v16617_v47 }
 0x8fb   : > { %v7721_v32 = vadd.f32 %v7564_v22, %v7563_v62  ;;  %v7314_v62 = vld [vmem:[%s9564_s15 + $0x338] sm:$0xff] }
 0x8fc   : > { %v6485_v11 = vpop.permute.xlu1 %6484 }
 0x8fd   : > { %v7722_v4 = vadd.f32 %v7721_v32, %v7565_v27  ;;  %v7566_v18 = vmul.f32 %v7310_v34, %v6485_v11  ;;  %v15107_v34 = vpop.permute.xlu0 %6505  ;;  %v7570_v27 = vmul.f32 %v7314_v62, %v15063_v21  ;;  %v7706_v32 = vadd.f32 %v7705_v10, %v7554_v55  ;;  %v7301_v10 = vld [vmem:[%s9564_s15 + $0x2d0] sm:$0xff]  ;;  %v7302_v62 = vld [vmem:[%s9564_s15 + $0x2d8] sm:$0xff] }
 0x8fe   : > { %v7061_v6 = vrot.slane %v6485_v11, %v16621_v48  ;;  %v7557_v39 = vmul.f32 %v7301_v10, %v14929_v19  ;;  %v7558_v5 = vmul.f32 %v7302_v62, %v15046_v13 }
 0x8ff   : > { %v7723_v56 = vadd.f32 %v7722_v4, %v7566_v18  ;;  %v7300_v4 = vld [vmem:[%s9564_s15 + $0x2c8] sm:$0xff]  ;;  %v7047_v18 = vrot.slane %v14965_v37, %v16618_v51  ;;  %v7707_v15 = vadd.f32 %v7706_v32, %v7555_v31  ;;  %v7071_v31 = vrot.slane %v15032_v45, %v16624_v50 }
 0x900   : > { %v15098_v53 = vpop.permute.xlu1 %6523 }
 0x901   : > { %v7724_v12 = vadd.f32 %v7723_v56, %v7567_v52  ;;  %v7571_v52 = vmul.f32 %v7315_v14, %v15085_v38  ;;  %v7556_v56 = vmul.f32 %v7300_v4, %v15036_v54  ;;  %v7052_v46 = vsel %vm3632_vm1, %v7051_v44, %v7047_v18  ;;  %v15125_v37 = vpop.permute.xlu0 %6508  ;;  %v7324_v4 = vld [vmem:[%s9564_s15 + $0x388] sm:$0xff] }
 0x902   : > { %v7057_v55 = vsel %vm3639_vm2, %v7056_v43, %v7052_v46  ;;  %v7572_v54 = vmul.f32 %v7316_v57, %v15094_v25  ;;  %v7303_v43 = vld [vmem:[%s9564_s15 + $0x2e0] sm:$0xff]  ;;  %v7580_v45 = vmul.f32 %v7324_v4, %v15005_v16  ;;  %v7076_v57 = vrot.slane %v15049_v29, %v16625_v2 }
 0x903   : > { %v7725_v22 = vadd.f32 %v7724_v12, %v7568_v42  ;;  %v7062_v11 = vsel %vm3646_vm3, %v7061_v6, %v7057_v55  ;;  %v7304_v55 = vld [vmem:[%s9564_s15 + $0x2e8] sm:$0xff]  ;;  %v7559_v62 = vmul.f32 %v7303_v43, %v14939_v61  ;;  %v7081_v29 = vrot.slane %v15063_v21, %v16627_v49 }
 0x904   : > { %v15104_v40 = vpop.permute.xlu1 %6529  ;;  %v7067_v44 = vsel %vm16902_vm6, %v7066_v0, %v7062_v11  ;;  %v7560_v4 = vmul.f32 %v7304_v55, %v15059_v41  ;;  %v7086_v21 = vrot.slane %v15085_v38, %v16628_v8  ;;  %v7305_v41 = vld [vmem:[%s9564_s15 + $0x2f0] sm:$0xff] }
 0x905   : > { %v7726_v28 = vadd.f32 %v7725_v22, %v7569_v17  ;;  %v7708_v17 = vadd.f32 %v7707_v15, %v7556_v56  ;;  %v7317_v22 = vld [vmem:[%s9564_s15 + $0x350] sm:$0xff]  ;;  %v15141_v14 = vpop.permute.xlu0 %6511  ;;  %v7072_v56 = vsel %vm16903_vm0, %v7071_v31, %v7067_v44 }
 0x906   : > { %v7573_v19 = vmul.f32 %v7317_v22, %v15107_v34  ;;  %v7077_v11 = vsel %vm16904_vm13, %v7076_v57, %v7072_v56  ;;  %v7326_v22 = vld [vmem:[%s9564_s15 + $0x398] sm:$0xff]  ;;  %v7091_v57 = vrot.slane %v15094_v25, %v16633_v24  ;;  %v7321_v55 = vld [vmem:[%s9564_s15 + $0x370] sm:$0xff]  ;;  %v7096_v25 = vrot.slane %v15107_v34, %v16636_v58 }
 0x907   : > { %v7727_v26 = vadd.f32 %v7726_v28, %v7570_v27  ;;  %v7323_v27 = vld [vmem:[%s9564_s15 + $0x380] sm:$0xff]  ;;  %v7709_v18 = vadd.f32 %v7708_v17, %v7557_v39  ;;  %v7582_v61 = vmul.f32 %v7326_v22, %v15014_v36  ;;  %v7330_v22 = vld [vmem:[%s9564_s15 + $0x3b8] sm:$0xff] }
 0x908   : > { %v15116_v9 = vpop.permute.xlu1 %6535  ;;  %v7579_v15 = vmul.f32 %v7323_v27, %v15098_v53  ;;  %v7319_v17 = vld [vmem:[%s9564_s15 + $0x360] sm:$0xff] }
 0x909   : > { %v7728_v42 = vadd.f32 %v7727_v26, %v7571_v52  ;;  %v7325_v26 = vld [vmem:[%s9564_s15 + $0x390] sm:$0xff]  ;;  %v7318_v52 = vld [vmem:[%s9564_s15 + $0x358] sm:$0xff]  ;;  %v7575_v31 = vmul.f32 %v7319_v17, %v15141_v14 }
 0x90a   : > { %v7581_v13 = vmul.f32 %v7325_v26, %v15104_v40  ;;  %v7574_v10 = vmul.f32 %v7318_v52, %v15125_v37  ;;  %v7742_v0 = vadd.f32 %v7580_v45, %v7579_v15  ;;  %v7328_v52 = vld [vmem:[%s9564_s15 + $0x3a8] sm:$0xff] }
 0x90b   : > { %v7729_v28 = vadd.f32 %v7728_v42, %v7572_v54  ;;  %v7710_v42 = vadd.f32 %v7709_v18, %v7558_v5  ;;  %v15163_v54 = vpop.permute.xlu0 %6514  ;;  %v7082_v18 = vsel %vm3674_vm7, %v7081_v29, %v7077_v11  ;;  %v7327_v5 = vld [vmem:[%s9564_s15 + $0x3a0] sm:$0xff]  ;;  %v7561_v11 = vmul.f32 %v7305_v41, %v14949_v7  ;;  %v7332_v41 = vld [vmem:[%s9564_s15 + $0x3c8] sm:$0xff] }
 0x90c   : > { %v15127_v12 = vpop.permute.xlu1 %6538  ;;  %v7743_v27 = vadd.f32 %v7742_v0, %v7581_v13  ;;  %v7087_v56 = vsel %vm3681_vm8, %v7086_v21, %v7082_v18  ;;  %v7583_v45 = vmul.f32 %v7327_v5, %v15116_v9  ;;  %v7331_v18 = vld [vmem:[%s9564_s15 + $0x3c0] sm:$0xff]  ;;  %v7126_v5 = vrot.slane %v15098_v53, %v16618_v51 }
 0x90d   : > { %v7730_v46 = vadd.f32 %v7729_v28, %v7573_v19  ;;  %v7711_v44 = vadd.f32 %v7710_v42, %v7559_v62  ;;  %v7320_v19 = vld [vmem:[%s9564_s15 + $0x368] sm:$0xff]  ;;  %v7329_v42 = vld [vmem:[%s9564_s15 + $0x3b0] sm:$0xff]  ;;  %v7584_v17 = vmul.f32 %v7328_v52, %v15127_v12  ;;  %v7092_v0 = vsel %vm3688_vm9, %v7091_v57, %v7087_v56 }
 0x90e   : > { %v7744_v43 = vadd.f32 %v7743_v27, %v7582_v61  ;;  %v7576_v38 = vmul.f32 %v7320_v19, %v15163_v54  ;;  %v7097_v7 = vsel %vm3695_vm10, %v7096_v25, %v7092_v0  ;;  %v7322_v61 = vld [vmem:[%s9564_s15 + $0x378] sm:$0xff]  ;;  %v7130_v51 = vrot.slane %v15005_v16, %v16617_v47 }
 0x90f   : > { %v7731_v39 = vadd.f32 %v7730_v46, %v7574_v10  ;;  %v15185_v46 = vpop.permute.xlu0 %6517  ;;  %v7712_v13 = vadd.f32 %v7711_v44, %v7560_v4  ;;  %v7306_v10 = vld [vmem:[%s9564_s15 + $0x2f8] sm:$0xff]  ;;  %v7140_v47 = vrot.slane %v15014_v36, %v16621_v48  ;;  %v7111_v48 = vrot.slane %v15163_v54, %v12490_v30 }
 0x910   : > { %v15139_v32 = vpop.permute.xlu1 %6541  ;;  %v7562_v4 = vmul.f32 %v7306_v10, %v15068_v1  ;;  %v7135_v1 = vrot.slane %v15104_v40, %v16619_v23  ;;  %v7131_v23 = vsel %vm3632_vm1, %v7130_v51, %v7126_v5  ;;  %vm16905_vm1 = vmmov %vm16900_vm4  ;;  %v7116_v5 = vrot.slane %v15185_v46, %v12598_v63 }
 0x911   : > { %v7732_v26 = vadd.f32 %v7731_v39, %v7575_v31  ;;  %v7745_v39 = vadd.f32 %v7744_v43, %v7583_v45  ;;  %v7585_v27 = vmul.f32 %v7329_v42, %v15139_v32  ;;  %v7713_v44 = vadd.f32 %v7712_v13, %v7561_v11  ;;  %vm16907_vm4 = vmmov %vm16903_vm0 }
 0x912   : > { %v7577_v31 = vmul.f32 %v7321_v55, %v15185_v46  ;;  %v7136_v10 = vsel %vm3639_vm2, %v7135_v1, %v7131_v23  ;;  %v7145_v55 = vrot.slane %v15116_v9, %v16623_v59  ;;  %v7155_v36 = vrot.slane %v15139_v32, %v16625_v2  ;;  %vm16906_vm2 = vmmov %vm16902_vm6 }
 0x913   : > { %v7733_v62 = vadd.f32 %v7732_v26, %v7576_v38  ;;  %v15210_v21 = vpop.permute.xlu0 %6520  ;;  %v7746_v34 = vadd.f32 %v7745_v39, %v7584_v17  ;;  %v7101_v26 = vrot.slane %v15125_v37, %v16635_v35  ;;  %v7714_v45 = vadd.f32 %v7713_v44, %v7562_v4  ;;  %v7333_v37 = vld [vmem:[%s9564_s15 + $0x3d0] sm:$0xff]  ;;  %v7334_v17 = vld [vmem:[%s9564_s15 + $0x3d8] sm:$0xff]  ;;  %v7335_v39 = vld [vmem:[%s9564_s15 + $0x3e0] sm:$0xff] }
 0x914   : > { %v15153_v6 = vpop.permute.xlu1 %6544  ;;  %v7578_v13 = vmul.f32 %v7322_v61, %v15210_v21  ;;  %v7106_v38 = vrot.slane %v15141_v14, %v12493_v60  ;;  %v7150_v14 = vrot.slane %v15127_v12, %v16624_v50  ;;  %v7141_v59 = vsel %vm3646_vm3, %v7140_v47, %v7136_v10  ;;  %vm16908_vm3 = vmmov %vm16904_vm13 }
 0x915   : > { %v7586_v19 = vmul.f32 %v7330_v22, %v15153_v6  ;;  %v7734_v52 = vadd.f32 %v7733_v62, %v7577_v31  ;;  %v7747_v53 = vadd.f32 %v7746_v34, %v7585_v27  ;;  %v7102_v57 = vsel %vm3702_vm11, %v7101_v26, %v7097_v7  ;;  %v7336_v31 = vld [vmem:[%s9564_s15 + $0x3e8] sm:$0xff] }
 0x916   : > { %v7107_v0 = vsel %vm3709_vm12, %v7106_v38, %v7102_v57  ;;  %v7715_v25 = vrot.slane %v7714_v45, 4  ;;  %v7160_v9 = vrot.slane %v15153_v6, %v16627_v49  ;;  %v7146_v4 = vsel %vm16906_vm2, %v7145_v55, %v7141_v59 }
 0x917   : > { %v7748_v40 = vadd.f32 %v7747_v53, %v7586_v19  ;;  %v7735_v16 = vadd.f32 %v7734_v52, %v7578_v13  ;;  %v7112_v12 = vsel %vm16905_vm1, %v7111_v48, %v7107_v0  ;;  %v7151_v32 = vsel %vm16907_vm4, %v7150_v14, %v7146_v4 }
 0x918   : > { %v15170_v28 = vpop.permute.xlu1 %6547  ;;  %v7716_v7 = vadd.f32 %v7715_v25, %v7714_v45  ;;  %v7156_v61 = vsel %vm16908_vm3, %v7155_v36, %v7151_v32  ;;  %v7117_v26 = vsel %vm3723_vm14, %v7116_v5, %v7112_v12  ;;  %v7338_v45 = vld [vmem:[%s9564_s15 + $0x3f8] sm:$0xff] }
 0x919   : > { %v7587_v43 = vmul.f32 %v7331_v18, %v15170_v28  ;;  %v7736_v44 = vrot.slane %v7735_v16, 4  ;;  %v7165_v54 = vrot.slane %v15170_v28, %v16628_v8  ;;  %v7337_v8 = vld [vmem:[%s9564_s15 + $0x3f0] sm:$0xff]  ;;  %v7161_v28 = vsel %vm3674_vm7, %v7160_v9, %v7156_v61  ;;  %vm16909_vm7 = vmmov %vm16905_vm1 }
 0x91a   : > { %v7717_v57 = vrot.slane %v7716_v7, 2 }
 0x91b   : > { %v7749_v62 = vadd.f32 %v7748_v40, %v7587_v43  ;;  %v7737_v52 = vadd.f32 %v7736_v44, %v7735_v16  ;;  %v7166_v1 = vsel %vm3681_vm8, %v7165_v54, %v7161_v28  ;;  %vm16910_vm8 = vcmask 1046534  }
 0x91c   : > { %v15181_v15 = vpop.permute.xlu1 %6550  ;;  %v7718_v16 = vadd.f32 %v7717_v57, %v7716_v7 }
 0x91d   : > { %v7588_v42 = vmul.f32 %v7332_v41, %v15181_v15  ;;  %v7170_v18 = vrot.slane %v15181_v15, %v16633_v24  ;;  %v7738_v38 = vrot.slane %v7737_v52, 2 }
 0x91f   : > { %v7750_v27 = vadd.f32 %v7749_v62, %v7588_v42 }
 0x920   : > { %v15198_v29 = vpop.permute.xlu1 %6553 }
 0x921   : > { %v7589_v22 = vmul.f32 %v7333_v37, %v15198_v29  ;;  %v7175_v34 = vrot.slane %v15198_v29, %v16636_v58  ;;  %v7171_v58 = vsel %vm3688_vm9, %v7170_v18, %v7166_v1  ;;  %vm16911_vm9 = vcmask 1047559  }
 0x923   : > { %v7751_v49 = vadd.f32 %v7750_v27, %v7589_v22  ;;  %v7176_v53 = vsel %vm3695_vm10, %v7175_v34, %v7171_v58 }
 0x924   : > { %v15218_v56 = vpop.permute.xlu1 %6556 }
 0x925   : > { %v7590_v50 = vmul.f32 %v7334_v17, %v15218_v56  ;;  %v7180_v19 = vrot.slane %v15218_v56, %v16635_v35  ;;  %v7121_v56 = vrot.slane %v15210_v21, %v16642_v3 }
 0x927   : > { %v7752_v24 = vadd.f32 %v7751_v49, %v7590_v50  ;;  %v7122_v37 = vsel %vm3730_vm15, %v7121_v56, %v7117_v26 }
 0x928   : > { %v6560_v11 = vpop.permute.xlu1 %6559  ;;  %v7207_v10 = vsel %vm16910_vm8, %v7122_v37, %v15082_v33 }
 0x929   : > { %v7591_v6 = vmul.f32 %v7335_v39, %v6560_v11  ;;  %v7185_v46 = vrot.slane %v6560_v11, %v12493_v60  ;;  %v7181_v60 = vsel %vm3702_vm11, %v7180_v19, %v7176_v53 }
 0x92b   : > { %v7753_v29 = vadd.f32 %v7752_v24, %v7591_v6  ;;  %v7186_v23 = vsel %vm3709_vm12, %v7185_v46, %v7181_v60 }
 0x92c   : > { %v6563_v2 = vpop.permute.xlu1 %6562 }
 0x92d   : > { %v7592_v15 = vmul.f32 %v7336_v31, %v6563_v2  ;;  %v7190_v51 = vrot.slane %v6563_v2, %v12490_v30 }
 0x92f   : > { %v7754_v13 = vadd.f32 %v7753_v29, %v7592_v15  ;;  %v7191_v21 = vsel %vm16909_vm7, %v7190_v51, %v7186_v23 }
 0x930   : > { %v6566_v41 = vpop.permute.xlu1 %6565 }
 0x931   : > { %v7593_v35 = vmul.f32 %v7337_v8, %v6566_v41  ;;  %v7195_v43 = vrot.slane %v6566_v41, %v12598_v63 }
 0x933   : > { %v7755_v63 = vadd.f32 %v7754_v13, %v7593_v35  ;;  %v7196_v47 = vsel %vm3723_vm14, %v7195_v43, %v7191_v21 }
 0x934   : > { %v6569_v30 = vpop.permute.xlu1 %6568 }
 0x935   : > { %v7200_v40 = vrot.slane %v6569_v30, %v16642_v3  ;;  %v7594_v42 = vmul.f32 %v7338_v45, %v6569_v30  ;;  %v7739_v3 = vadd.f32 %v7738_v38, %v7737_v52 }
 0x937   : > { %v7201_v55 = vsel %vm3730_vm15, %v7200_v40, %v7196_v47  ;;  %v7756_v17 = vadd.f32 %v7755_v63, %v7594_v42 }
 0x938   : > { %v7208_v11 = vsel %vm16911_vm9, %v7201_v55, %v7207_v10 }
 0x939   : > { %v7757_v0 = vrot.slane %v7756_v17, 4  ;;  %7210 = vst [vmem:[%s308_s8] sm:$0xff] %v7208_v11 }
 0x93a   : > { %9323 = shalt.err (!%p9320_p2)
}
 0x93b   : > { %s9324_s19 = scalar_lea.hbm %s15294_s18, 128  ;;  %s9328_s17 = scalar_lea.hbm %s15383_s7, 256 }
 0x93c   : > { %p9325_p4 = scmp.ne.s32.totalorder %s15294_s18, %s9324_s19  ;;  %p9329_p9 = scmp.lt.u32.totalorder %s15294_s18, %s15383_s7 }
 0x93d   : > { %p9330_p1 = scmp.lt.u32.totalorder %s9328_s17, %s9324_s19  ;;  %p9332_p6 = scmp.lt.u32.totalorder %s9324_s19, %s15294_s18 }
 0x93e   : > { %p9326_p5 = pnand %p9325_p4, %p16912_p11 }
 0x93f   : > { %p9331_p3 = por %p9330_p1, %p9329_p9 }
 0x940   : > { %p9327_p7 = pneg %p9326_p5 }
 0x941   : > { %p9333_p12 = por %p9332_p6, %p9331_p3 }
 0x943   : > { %p9334_p13 = pnand %p9333_p12, %p9327_p7 }
 0x945   : > { %9337 = shalt.err (!%p9334_p13)
}
 0x946   : > { %8356 = dma.vmem_to_hbm [thread:$0]  (%p16912_p11), %s15296_s11, 128, %s15294_s18, %s7786_s12   ;;  %v7719_v33 = vrot.slane %v7718_v16, 1  ;;  %v7758_v14 = vadd.f32 %v7757_v0, %v7756_v17  ;;  %v7740_v62 = vrot.slane %v7739_v3, 1  ;;  %vm16913_vm10 = vmmov %vm16901_vm5 }
 0x947   : > { %s301_s20 = scalar_lea.vmem [#allocation5], %s7923_s21  ;;  %vm16914_vm11 = vmmov %vm16910_vm8  ;;  %s15331_s12 = scalar_lea.hbm %s15382_s6, %s7931_s9 }
 0x948   : > { %v7759_v22 = vrot.slane %v7758_v14, 2  ;;  %v7720_v25 = vadd.f32 %v7719_v33, %v7718_v16  ;;  %v7741_v36 = vadd.f32 %v7740_v62, %v7739_v3  ;;  %s7799_s29 = sshll.u32 %s301_s20, 4  ;;  %vm16915_vm12 = vmmov %vm16911_vm9  ;;  %s7781_s21 = scalar_lea.sflag [#allocation4], %s9560_s16  ;;  %s15333_s29 = int_to_ptr.vmem [resolvable:$true] %s7799_s29 }
 0x949   : > { %s9338_s19 = scalar_lea.vmem %s15333_s29, 128  ;;  %s9415_s28 = smov [#allocation5]  }
 0x94a   : > { %v7760_v48 = vadd.f32 %v7759_v22, %v7758_v14  ;;  %v7775_v9 = vsel %vm16913_vm10, %v7720_v25, %v15025_v20  ;;  %p9339_p8 = scmp.ne.s32.totalorder %s15333_s29, %s9338_s19  ;;  %s9342_s8 = sshll.u32 %s9415_s28, 4  ;;  %s9343_s8 = int_to_ptr.vmem [resolvable:$false] %s9342_s8 }
 0x94b   : > { %v7776_v27 = vsel %vm16914_vm11, %v7741_v36, %v7775_v9  ;;  %s9344_s15 = scalar_lea.vmem %s9343_s8, 256  ;;  %p9345_p2 = scmp.lt.s32.totalorder %s15333_s29, %s9343_s8 }
 0x94c   : > { %v7761_v39 = vrot.slane %v7760_v48, 1  ;;  %p9340_p10 = pnand %p9339_p8, %p16912_p11  ;;  %p9346_p4 = scmp.lt.s32.totalorder %s9344_s15, %s9338_s19 }
 0x94e   : > { %v7762_v59 = vadd.f32 %v7761_v39, %v7760_v48  ;;  %p9341_p0 = pneg %p9340_p10  ;;  %p9347_p5 = por %p9346_p4, %p9345_p2 }
 0x950   : > { %v7777_v50 = vsel %vm16915_vm12, %v7762_v59, %v7776_v27  ;;  %p9348_p7 = pnand %p9347_p5, %p9341_p0 }
 0x951   : > { %7779 = vst [vmem:[%s301_s20] sm:$0xff] %v7777_v50 }
 0x952   : > { %9351 = shalt.err (!%p9348_p7)
}
 0x953   : > { %s9352_s16 = scalar_lea.hbm %s15331_s12, 128  ;;  %s9356_s22 = scalar_lea.hbm %s15382_s6, 256 }
 0x954   : > { %p9353_p9 = scmp.ne.s32.totalorder %s15331_s12, %s9352_s16  ;;  %p9357_p6 = scmp.lt.u32.totalorder %s15331_s12, %s15382_s6 }
 0x955   : > { %p9358_p12 = scmp.lt.u32.totalorder %s9356_s22, %s9352_s16  ;;  %p9360_p8 = scmp.lt.u32.totalorder %s9352_s16, %s15331_s12 }
 0x956   : > { %p9354_p1 = pnand %p9353_p9, %p16912_p11 }
 0x957   : > { %p9359_p13 = por %p9358_p12, %p9357_p6 }
 0x958   : > { %p9355_p3 = pneg %p9354_p1 }
 0x959   : > { %p9361_p10 = por %p9360_p8, %p9359_p13 }
 0x95b   : > { %p9362_p0 = pnand %p9361_p10, %p9355_p3 }
 0x95d   : > { %9365 = shalt.err (!%p9362_p0)
}
 0x95e   : > { %8355 = dma.vmem_to_hbm [thread:$0]  (%p16912_p11), %s15333_s29, 128, %s15331_s12, %s7781_s21  }
 0x95f PF: > { %s7824_s11 = sand.u32 1, %s9396_s24   ;;  %p16916_p2 = scmp.ne.s32.totalorder %s15815_s14, 0 }
 0x960   : > { %p16917_p4 = scmp.ge.s32.totalorder %s9408_s27, 2  ;;  %s7825_s18 = scalar_lea.sflag [#allocation4], %s7824_s11 }
 0x962   : > { %p8364_p5 = pnand %p16917_p4, %p16916_p2 }
 0x964   : > { %9387 = dma.done.wait (!%p8364_p5), %s7825_s18, 128  }
 0x965   : > { %9389 = vsyncadd (!%p8364_p5), %s7825_s18, 4294967168  ;;  %s7834_s19 = scalar_lea.sflag [#allocation7], %s7824_s11 }
 0x966   : > { %9391 = dma.done.wait (!%p8364_p5), %s7834_s19, 128  }
 0x967   : > { %9393 = vsyncadd (!%p8364_p5), %s7834_s19, 4294967168  ;;  %p24_p11 = scmp.ge.s32.totalorder %s9481_s30, 4   ;;  %s16918_s24 = smov %s9400_s25 }
 0x968   : > { %s16919_s25 = smov %s9404_s26  ;;  %s16920_s26 = smov %s9493_s10 }
 0x969   : > { %s16921_s27 = smov %s9481_s30  ;;  %26 = sbr.rel (!%p24_p11) target bundleno = 7 (0x7), region = 106 }
 0x970   :  { %7839 = vsyncpa [#allocation3], 1 }
 0x971   :  { %7841 = vsyncpa [#allocation3 + $0x1], 1 }
 0x972   :  { %7842 = vsyncpa [#allocation4], 1 }
 0x973   :  { %7844 = vsyncpa [#allocation4 + $0x1], 1 }
 0x974   :  { %7845 = vsyncpa [#allocation7], 1 }
 0x975   :  { %7847 = vsyncpa [#allocation7 + $0x1], 1 }

</bundles_post_ra>
